<compile_context>
chip_gen: v7x
topology: tpu7x:2x2x1
jax: 0.10.0
libtpu: 0.0.40
codegen_flags: <defaults>
</compile_context>

<pallas_src>
import functools

import jax
import jax.numpy as jnp
from jax.experimental import pallas as pl
from jax.experimental.pallas import tpu as pltpu

EPS = 1e-5
LANE = 128


def _round_up(n, m):
    return ((n + m - 1) // m) * m


def _largest_divisor_leq(n, cap_product, unit):
    """Largest divisor d of n with d * unit <= cap_product (falls back to 1)."""
    best = 1
    for d in range(1, n + 1):
        if n % d == 0 and d * unit <= cap_product:
            best = d
    return best


def _vmem_limit_bytes():
    """Generation-aware VMEM limit: ~50% of physical capacity."""
    try:
        cap = int(pltpu.get_tpu_info().vmem_capacity_bytes)
    except Exception:  # pragma: no cover - conservative fallback
        cap = 64 * 1024 * 1024
    return max(32 * 1024 * 1024, min(cap // 2, 96 * 1024 * 1024))


# --------------------------------------------------------------------------- #
# In-kernel helpers
# --------------------------------------------------------------------------- #
def _fill_padded_band(src_ref, main, top, bot, band_idx, n_bands):
    """Assemble a (BH+2, W+2, C) zero-padded row band in VMEM scratch.

    main: (BH, W, C) band interior; top/bot: (W, C) halo rows from the
    neighbouring bands (zero-masked at the image borders).  Only the interior
    plus the four halo strips are written - no full-buffer fill, no concat.
    """
    bhp2, wp2, c = src_ref.shape
    bh, w = bhp2 - 2, wp2 - 2
    dt = src_ref.dtype

    src_ref[1:bh + 1, 1:w + 1, :] = main

    top_ok = (band_idx > 0).astype(dt)
    bot_ok = (band_idx < n_bands - 1).astype(dt)
    src_ref[0, 1:w + 1, :] = top * top_ok
    src_ref[bh + 1, 1:w + 1, :] = bot * bot_ok

    zcol = jnp.zeros((bhp2, 1, c), dt)
    src_ref[:, 0:1, :] = zcol
    src_ref[:, w + 1:w + 2, :] = zcol


def _conv_band(src_ref, w_ref, z_ref, stats_ref, *, th):
    """3x3 conv over a zero-padded band scratch + fused BN partial stats.

    src_ref:   (BH+2, W+2, Ci)  zero-padded bf16 band (VMEM scratch)
    w_ref:     (3, 3, Ci, Co)   bf16 HWIO weights (Co lane-dense, padded)
    z_ref:     (BH*W, Co)       bf16 pre-BN conv output for this band
    stats_ref: (2, Co)          f32 [sum, sum_sq] over the band's rows
    """
    bhp2, wp2, ci = src_ref.shape
    bh, w = bhp2 - 2, wp2 - 2
    co = z_ref.shape[-1]
    n_chunks = bh // th

    def chunk(c, carry):
        s, ss = carry
        r = pl.multiple_of(c * th, th)                      # band row offset
        row0 = pl.multiple_of(c * (th * w), th * w)         # flattened offset

        # 9 accumulating MXU dots straight from the padded scratch — no im2col
        # concatenate, no lane-axis relayout per chunk.
        acc = None
        for dy in range(3):
            for dx in range(3):
                win = src_ref[pl.ds(r + dy, th), pl.ds(dx, w), :]   # (th, w, Ci)
                p = jnp.dot(win.reshape(th * w, ci), w_ref[dy, dx],
                            preferred_element_type=jnp.float32)
                acc = p if acc is None else acc + p

        q = acc.astype(z_ref.dtype)
        z_ref[pl.ds(row0, th * w), :] = q

        # BN stats on the *stored* (rounded) values so the later normalization
        # is exactly consistent with what gets normalized.
        qf = q.astype(jnp.float32)
        s = s + jnp.sum(qf, axis=0, keepdims=True)
        ss = ss + jnp.sum(qf * qf, axis=0, keepdims=True)
        return s, ss

    zero = jnp.zeros((1, co), jnp.float32)
    s, ss = jax.lax.fori_loop(0, n_chunks, chunk, (zero, zero),
                              unroll=n_chunks <= 4)
    stats_ref[0:1, :] = s
    stats_ref[1:2, :] = ss


# --------------------------------------------------------------------------- #
# Kernels
# --------------------------------------------------------------------------- #
def _conv1_kernel(xm_ref, xt_ref, xb_ref, w_ref, z_ref, stats_ref, src_ref, *,
                  th, n_bands):
    b = pl.program_id(1)
    _fill_padded_band(src_ref, xm_ref[...], xt_ref[0], xb_ref[0], b, n_bands)
    _conv_band(src_ref, w_ref, z_ref, stats_ref, th=th)


def _conv2_kernel(zm_ref, zt_ref, zb_ref, sc_ref, sh_ref, w_ref, z_ref,
                  stats_ref, src_ref, *, th, n_bands):
    b = pl.program_id(1)
    bhp2, wp2, cm = src_ref.shape
    bh, w = bhp2 - 2, wp2 - 2
    sc = sc_ref[...]
    sh = sh_ref[...]

    def bn_relu(v):  # (rows, Cm) bf16 pre-BN -> bf16 normalized activations
        y = v.astype(jnp.float32) * sc + sh
        return jnp.maximum(y, 0.0).astype(src_ref.dtype)

    main = bn_relu(zm_ref[...]).reshape(bh, w, cm)
    _fill_padded_band(src_ref, main, bn_relu(zt_ref[...]), bn_relu(zb_ref[...]),
                      b, n_bands)
    _conv_band(src_ref, w_ref, z_ref, stats_ref, th=th)


def _bn_relu_kernel(z_ref, sc_ref, sh_ref, o_ref):
    co = o_ref.shape[-1]
    y = z_ref[:, :co].astype(jnp.float32) * sc_ref[...] + sh_ref[...]
    o_ref[...] = jnp.maximum(y, 0.0).astype(o_ref.dtype)


# --------------------------------------------------------------------------- #
# Host-side folding of BN statistics (tiny per-channel reductions)
# --------------------------------------------------------------------------- #
def _bn_affine(stats, gamma, beta, count):
    """Fold batch mean/var (biased, training-mode) + gamma/beta into scale/shift."""
    s = jnp.sum(stats[:, :, 0, :], axis=(0, 1))
    ss = jnp.sum(stats[:, :, 1, :], axis=(0, 1))
    mean = s / count
    var = jnp.maximum(ss / count - mean * mean, 0.0)   # guard fp32 cancellation
    scale = gamma * jax.lax.rsqrt(var + EPS)
    shift = beta - mean * scale
    return (scale.reshape(1, -1).astype(jnp.float32),
            shift.reshape(1, -1).astype(jnp.float32))


# --------------------------------------------------------------------------- #
# Wrapper
# --------------------------------------------------------------------------- #
@jax.jit
def double_conv(x_nchw, params):
    """x_nchw: (N, Cin, H, W). Returns (N, Cout, H, W) — PyTorch convention."""
    w1, b1, g1, be1, w2, b2, g2, be2 = params
    # Conv biases are exactly cancelled by training-mode (batch-stat) BN mean
    # subtraction — intentionally unused.  (Only valid for batch stats; eval
    # mode with running stats would need them.)
    del b1, b2

    N, Cin, H, W = x_nchw.shape
    Cmid, Cout = w1.shape[-1], w2.shape[-1]
    # TODO(synk): support W % 8 != 0 by padding W and zeroing the pad columns
    # when assembling conv2's input band.
    assert W % 8 == 0, "W must be a multiple of 8"

    cin_p = _round_up(Cin, 8)
    cm_p = _round_up(Cmid, LANE)
    co_p = _round_up(Cout, LANE)

    # Band / chunk tiling: band (grid axis) <= ~4096 rows of the (H*W, C)
    # activation slab per step (~1-2 MiB blocks), inner chunk <= ~256 rows so
    # the f32 accumulator tile stays <= ~128 KiB.
    bh = _largest_divisor_leq(H, 4096, W)
    th = _largest_divisor_leq(bh, 256, W)
    n_bands = H // bh
    count = N * H * W

    cp = pltpu.CompilerParams(
        dimension_semantics=("parallel", "parallel"),
        vmem_limit_bytes=_vmem_limit_bytes(),
    )

    # NCHW -> NHWC, bf16, channel pad (fused XLA prep; no spatial pre-padding).
    x = jnp.transpose(x_nchw, (0, 2, 3, 1)).astype(jnp.bfloat16)
    if cin_p != Cin:
        x = jnp.pad(x, ((0, 0), (0, 0), (0, 0), (0, cin_p - Cin)))

    def pad_w(w, ci_p, co_pp):
        ci, co = w.shape[-2:]
        return jnp.pad(w, ((0, 0), (0, 0), (0, ci_p - ci), (0, co_pp - co))
                       ).astype(jnp.bfloat16)

    w1p = pad_w(w1, cin_p, cm_p)
    w2p = pad_w(w2, cm_p, co_p)
    g1p = jnp.pad(g1, (0, cm_p - Cmid))     # pad gammas with 0 -> pad channels
    be1p = jnp.pad(be1, (0, cm_p - Cmid))   # stay exactly 0 through BN/ReLU
    g2p = jnp.pad(g2, (0, co_p - Cout))
    be2p = jnp.pad(be2, (0, co_p - Cout))

    # ---- pass A: conv1 (pre-BN) + per-band BN1 partial stats ----------------
    z1, stats1 = pl.pallas_call(
        functools.partial(_conv1_kernel, th=th, n_bands=n_bands),
        grid=(N, n_bands),
        in_specs=[
            pl.BlockSpec((None, bh, W, cin_p), lambda n, b: (n, b, 0, 0)),
            pl.BlockSpec((None, 1, W, cin_p),
                         lambda n, b: (n, jnp.maximum(b * bh - 1, 0), 0, 0)),
            pl.BlockSpec((None, 1, W, cin_p),
                         lambda n, b: (n, jnp.minimum((b + 1) * bh, H - 1), 0, 0)),
            pl.BlockSpec((3, 3, cin_p, cm_p), lambda n, b: (0, 0, 0, 0)),
        ],
        out_specs=[
            pl.BlockSpec((None, bh * W, cm_p), lambda n, b: (n, b, 0)),
            pl.BlockSpec((None, None, 2, cm_p), lambda n, b: (n, b, 0, 0)),
        ],
        out_shape=[
            jax.ShapeDtypeStruct((N, H * W, cm_p), jnp.bfloat16),
            jax.ShapeDtypeStruct((N, n_bands, 2, cm_p), jnp.float32),
        ],
        scratch_shapes=[pltpu.VMEM((bh + 2, W + 2, cin_p), jnp.bfloat16)],
        compiler_params=cp,
    )(x, x, x, w1p)

    scale1, shift1 = _bn_affine(stats1, g1p, be1p, count)

    # ---- pass B: BN1+ReLU fused into conv2's input, conv2 + BN2 stats -------
    z2, stats2 = pl.pallas_call(
        functools.partial(_conv2_kernel, th=th, n_bands=n_bands),
        grid=(N, n_bands),
        in_specs=[
            pl.BlockSpec((None, bh * W, cm_p), lambda n, b: (n, b, 0)),
            pl.BlockSpec((None, W, cm_p),
                         lambda n, b: (n, jnp.maximum(b * bh - 1, 0), 0)),
            pl.BlockSpec((None, W, cm_p),
                         lambda n, b: (n, jnp.minimum((b + 1) * bh, H - 1), 0)),
            pl.BlockSpec((1, cm_p), lambda n, b: (0, 0)),
            pl.BlockSpec((1, cm_p), lambda n, b: (0, 0)),
            pl.BlockSpec((3, 3, cm_p, co_p), lambda n, b: (0, 0, 0, 0)),
        ],
        out_specs=[
            pl.BlockSpec((None, bh * W, co_p), lambda n, b: (n, b, 0)),
            pl.BlockSpec((None, None, 2, co_p), lambda n, b: (n, b, 0, 0)),
        ],
        out_shape=[
            jax.ShapeDtypeStruct((N, H * W, co_p), jnp.bfloat16),
            jax.ShapeDtypeStruct((N, n_bands, 2, co_p), jnp.float32),
        ],
        scratch_shapes=[pltpu.VMEM((bh + 2, W + 2, cm_p), jnp.bfloat16)],
        compiler_params=cp,
    )(z1, z1, z1, scale1, shift1, w2p)

    scale2, shift2 = _bn_affine(stats2, g2p, be2p, count)
    scale2 = scale2[:, :Cout]
    shift2 = shift2[:, :Cout]

    # ---- pass C: BN2 + ReLU (writes the real, unpadded Cout) ----------------
    y = pl.pallas_call(
        _bn_relu_kernel,
        grid=(N, n_bands),
        in_specs=[
            pl.BlockSpec((None, bh * W, co_p), lambda n, b: (n, b, 0)),
            pl.BlockSpec((1, Cout), lambda n, b: (0, 0)),
            pl.BlockSpec((1, Cout), lambda n, b: (0, 0)),
        ],
        out_specs=pl.BlockSpec((None, bh * W, Cout), lambda n, b: (n, b, 0)),
        out_shape=jax.ShapeDtypeStruct((N, H * W, Cout), x_nchw.dtype),
        compiler_params=cp,
    )(z2, scale2, shift2)

    # NHWC -> NCHW: single fused reshape+transpose copy in XLA.
    return jnp.transpose(y.reshape(N, H, W, Cout), (0, 3, 1, 2))


# --------------------------------------------------------------------------- #
# Params / reference / test harness
# --------------------------------------------------------------------------- #
def init_params(key, in_channels, out_channels, mid_channels=None):
    """Deterministic parameter init matching DoubleConv.__init__ shapes."""
    if not mid_channels:
        mid_channels = out_channels
    k1, k2, k3, k4 = jax.random.split(key, 4)
    w1 = jax.random.normal(k1, (3, 3, in_channels, mid_channels), jnp.float32) \
        * jnp.sqrt(2.0 / (9 * in_channels))
    b1 = 0.01 * jax.random.normal(k2, (mid_channels,), jnp.float32)
    w2 = jax.random.normal(k3, (3, 3, mid_channels, out_channels), jnp.float32) \
        * jnp.sqrt(2.0 / (9 * mid_channels))
    b2 = 0.01 * jax.random.normal(k4, (out_channels,), jnp.float32)
    g1 = jnp.ones((mid_channels,), jnp.float32)
    be1 = jnp.zeros((mid_channels,), jnp.float32)
    g2 = jnp.ones((out_channels,), jnp.float32)
    be2 = jnp.zeros((out_channels,), jnp.float32)
    return (w1, b1, g1, be1, w2, b2, g2, be2)


def _reference(x_nchw, params):
    """Pure-JAX f32 reference of DoubleConv (training-mode BN forward)."""
    w1, b1, g1, be1, w2, b2, g2, be2 = params

    def conv(x, w, b):
        y = jax.lax.conv_general_dilated(
            x, w, window_strides=(1, 1), padding="SAME",
            dimension_numbers=("NHWC", "HWIO", "NHWC"),
            precision=jax.lax.Precision.HIGHEST)
        return y + b.reshape(1, 1, 1, -1)

    def bn_relu(y, g, be):
        mean = jnp.mean(y, axis=(0, 1, 2), keepdims=True)
        var = jnp.mean((y - mean) ** 2, axis=(0, 1, 2), keepdims=True)
        yn = (y - mean) * jax.lax.rsqrt(var + EPS) * g.reshape(1, 1, 1, -1) \
            + be.reshape(1, 1, 1, -1)
        return jnp.maximum(yn, 0.0)

    x = jnp.transpose(x_nchw, (0, 2, 3, 1))
    y = bn_relu(conv(x, w1, b1), g1, be1)
    y = bn_relu(conv(y, w2, b2), g2, be2)
    return jnp.transpose(y, (0, 3, 1, 2))


if __name__ == "__main__":
    key = jax.random.PRNGKey(0)
    kx, kp = jax.random.split(key)

    N, Cin, Cout, H, W = 2, 4, 8, 16, 16
    x = jax.random.normal(kx, (N, Cin, H, W), jnp.float32)    # NCHW like PyTorch
    params = init_params(kp, Cin, Cout)

    y = double_conv(x, params)
    jax.block_until_ready(y)
    assert y.shape == (N, Cout, H, W)

    # Loose check vs an f32 reference (kernel uses bf16 matmul operands).
    y_ref = _reference(x, params)
    max_err = float(jnp.max(jnp.abs(y - y_ref)))
    assert max_err < 0.25, f"max abs error vs reference too large: {max_err}"

    print("KERNEL_OK")
</pallas_src>

<mosaic_0001>
module attributes {stable_mosaic.version = 11 : i64} {
  func.func @_conv1_kernel(%arg0: i32, %arg1: i32, %arg2: memref<1x16x16x8xbf16, #tpu.memory_space<vmem>>, %arg3: memref<1x1x16x8xbf16, #tpu.memory_space<vmem>>, %arg4: memref<1x1x16x8xbf16, #tpu.memory_space<vmem>>, %arg5: memref<3x3x8x128xbf16, #tpu.memory_space<vmem>>, %arg6: memref<1x256x128xbf16, #tpu.memory_space<vmem>>, %arg7: memref<1x1x2x128xf32, #tpu.memory_space<vmem>>, %arg8: memref<18x18x8xbf16, #tpu.memory_space<vmem>>) attributes {dimension_semantics = [#tpu.dimension_semantics<parallel>, #tpu.dimension_semantics<parallel>], iteration_bounds = array<i64: 2, 1>, scalar_prefetch = 0 : i64, scratch_operands = 1 : i64, tpu.core_type = #tpu.core_type<tc>, window_params = [{transform_indices = @transform_0, window_bounds = array<i64: 1, 16, 16, 8>}, {transform_indices = @transform_1, window_bounds = array<i64: 1, 1, 16, 8>}, {transform_indices = @transform_2, window_bounds = array<i64: 1, 1, 16, 8>}, {pipeline_mode = #tpu.pipeline_mode<synchronous>, transform_indices = @transform_3, window_bounds = array<i64: 3, 3, 8, 128>}, {transform_indices = @transform_4, window_bounds = array<i64: 1, 256, 128>}, {transform_indices = @transform_5, window_bounds = array<i64: 1, 1, 2, 128>}]} {
    %c0 = arith.constant 0 : index
    %c0_0 = arith.constant 0 : index
    %c0_1 = arith.constant 0 : index
    %c0_2 = arith.constant 0 : index
    %0 = vector.load %arg2[%c0, %c0_0, %c0_1, %c0_2] : memref<1x16x16x8xbf16, #tpu.memory_space<vmem>>, vector<1x16x16x8xbf16>
    %1 = vector.shape_cast %0 : vector<1x16x16x8xbf16> to vector<16x16x8xbf16>
    %c0_3 = arith.constant 0 : index
    %c0_4 = arith.constant 0 : index
    %c0_5 = arith.constant 0 : index
    %c0_6 = arith.constant 0 : index
    %2 = vector.load %arg3[%c0_3, %c0_4, %c0_5, %c0_6] : memref<1x1x16x8xbf16, #tpu.memory_space<vmem>>, vector<1x1x16x8xbf16>
    %3 = vector.shape_cast %2 : vector<1x1x16x8xbf16> to vector<16x8xbf16>
    %c0_7 = arith.constant 0 : index
    %c0_8 = arith.constant 0 : index
    %c0_9 = arith.constant 0 : index
    %c0_10 = arith.constant 0 : index
    %4 = vector.load %arg4[%c0_7, %c0_8, %c0_9, %c0_10] : memref<1x1x16x8xbf16, #tpu.memory_space<vmem>>, vector<1x1x16x8xbf16>
    %5 = vector.shape_cast %4 : vector<1x1x16x8xbf16> to vector<16x8xbf16>
    %c1 = arith.constant 1 : index
    %c1_11 = arith.constant 1 : index
    %c0_12 = arith.constant 0 : index
    %6 = vector.load %arg8[%c1, %c1_11, %c0_12] : memref<18x18x8xbf16, #tpu.memory_space<vmem>>, vector<16x16x8xbf16>
    tpu.vector_store %arg8[%c1, %c1_11, %c0_12], %1 {strides = array<i32>} : memref<18x18x8xbf16, #tpu.memory_space<vmem>>, vector<16x16x8xbf16>,
    %c0_i32 = arith.constant 0 : i32
    %7 = arith.cmpi sgt, %arg1, %c0_i32 : i32
    %8 = arith.extui %7 : i1 to i32
    %9 = arith.sitofp %8 : i32 to f32
    %10 = arith.truncf %9 : f32 to bf16
    %c0_i32_13 = arith.constant 0 : i32
    %11 = arith.cmpi slt, %arg1, %c0_i32_13 : i32
    %12 = arith.extui %11 : i1 to i32
    %13 = arith.sitofp %12 : i32 to f32
    %14 = arith.truncf %13 : f32 to bf16
    %15 = vector.broadcast %10 : bf16 to vector<16x8xbf16>
    %16 = arith.mulf %3, %15 : vector<16x8xbf16>
    %c0_14 = arith.constant 0 : index
    %c1_15 = arith.constant 1 : index
    %c0_16 = arith.constant 0 : index
    %17 = vector.load %arg8[%c0_14, %c1_15, %c0_16] : memref<18x18x8xbf16, #tpu.memory_space<vmem>>, vector<1x16x8xbf16>
    %18 = vector.shape_cast %17 : vector<1x16x8xbf16> to vector<16x8xbf16>
    %19 = vector.shape_cast %16 : vector<16x8xbf16> to vector<1x16x8xbf16>
    tpu.vector_store %arg8[%c0_14, %c1_15, %c0_16], %19 {strides = array<i32>} : memref<18x18x8xbf16, #tpu.memory_space<vmem>>, vector<1x16x8xbf16>,
    %20 = vector.broadcast %14 : bf16 to vector<16x8xbf16>
    %21 = arith.mulf %5, %20 : vector<16x8xbf16>
    %c17 = arith.constant 17 : index
    %c1_17 = arith.constant 1 : index
    %c0_18 = arith.constant 0 : index
    %22 = vector.load %arg8[%c17, %c1_17, %c0_18] : memref<18x18x8xbf16, #tpu.memory_space<vmem>>, vector<1x16x8xbf16>
    %23 = vector.shape_cast %22 : vector<1x16x8xbf16> to vector<16x8xbf16>
    %24 = vector.shape_cast %21 : vector<16x8xbf16> to vector<1x16x8xbf16>
    tpu.vector_store %arg8[%c17, %c1_17, %c0_18], %24 {strides = array<i32>} : memref<18x18x8xbf16, #tpu.memory_space<vmem>>, vector<1x16x8xbf16>,
    %cst = arith.constant 0.000000e+00 : bf16
    %25 = vector.broadcast %cst : bf16 to vector<18x1x8xbf16>
    %c0_19 = arith.constant 0 : index
    %c0_20 = arith.constant 0 : index
    %c0_21 = arith.constant 0 : index
    %26 = vector.load %arg8[%c0_19, %c0_20, %c0_21] : memref<18x18x8xbf16, #tpu.memory_space<vmem>>, vector<18x1x8xbf16>
    tpu.vector_store %arg8[%c0_19, %c0_20, %c0_21], %25 {strides = array<i32>} : memref<18x18x8xbf16, #tpu.memory_space<vmem>>, vector<18x1x8xbf16>,
    %c0_22 = arith.constant 0 : index
    %c17_23 = arith.constant 17 : index
    %c0_24 = arith.constant 0 : index
    %27 = vector.load %arg8[%c0_22, %c17_23, %c0_24] : memref<18x18x8xbf16, #tpu.memory_space<vmem>>, vector<18x1x8xbf16>
    tpu.vector_store %arg8[%c0_22, %c17_23, %c0_24], %25 {strides = array<i32>} : memref<18x18x8xbf16, #tpu.memory_space<vmem>>, vector<18x1x8xbf16>,
    %cst_25 = arith.constant 0.000000e+00 : f32
    %28 = vector.broadcast %cst_25 : f32 to vector<1x128xf32>
    %c0_i32_26 = arith.constant 0 : i32
    %c16_i32 = arith.constant 16 : i32
    %29 = arith.muli %c0_i32_26, %c16_i32 : i32
    %30 = tpu.assume_multiple %29, 16 : i32
    %c256_i32 = arith.constant 256 : i32
    %31 = arith.muli %c0_i32_26, %c256_i32 : i32
    %32 = tpu.assume_multiple %31, 256 : i32
    %c0_i32_27 = arith.constant 0 : i32
    %33 = arith.addi %30, %c0_i32_27 : i32
    %34 = arith.index_cast %33 : i32 to index
    %c0_28 = arith.constant 0 : index
    %c0_29 = arith.constant 0 : index
    %35 = vector.load %arg8[%34, %c0_28, %c0_29] : memref<18x18x8xbf16, #tpu.memory_space<vmem>>, vector<16x16x8xbf16>
    %36 = vector.shape_cast %35 : vector<16x16x8xbf16> to vector<256x8xbf16>
    %c0_30 = arith.constant 0 : index
    %c0_31 = arith.constant 0 : index
    %c0_32 = arith.constant 0 : index
    %c0_33 = arith.constant 0 : index
    %37 = vector.load %arg5[%c0_30, %c0_31, %c0_32, %c0_33] : memref<3x3x8x128xbf16, #tpu.memory_space<vmem>>, vector<1x1x8x128xbf16>
    %38 = vector.shape_cast %37 : vector<1x1x8x128xbf16> to vector<8x128xbf16>
    %cst_34 = arith.constant dense<0.000000e+00> : vector<256x128xf32>
    %39 = tpu.matmul %36, %38, %cst_34 {dimension_numbers = #tpu.dot_dimension_numbers<[1], [0], [0], [1], [0, 0, 1, 1], [], []>} : vector<256x8xbf16>, vector<8x128xbf16>, vector<256x128xf32> -> vector<256x128xf32>
    %c0_i32_35 = arith.constant 0 : i32
    %40 = arith.addi %30, %c0_i32_35 : i32
    %41 = arith.index_cast %40 : i32 to index
    %c1_36 = arith.constant 1 : index
    %c0_37 = arith.constant 0 : index
    %42 = vector.load %arg8[%41, %c1_36, %c0_37] : memref<18x18x8xbf16, #tpu.memory_space<vmem>>, vector<16x16x8xbf16>
    %43 = vector.shape_cast %42 : vector<16x16x8xbf16> to vector<256x8xbf16>
    %c0_38 = arith.constant 0 : index
    %c1_39 = arith.constant 1 : index
    %c0_40 = arith.constant 0 : index
    %c0_41 = arith.constant 0 : index
    %44 = vector.load %arg5[%c0_38, %c1_39, %c0_40, %c0_41] : memref<3x3x8x128xbf16, #tpu.memory_space<vmem>>, vector<1x1x8x128xbf16>
    %45 = vector.shape_cast %44 : vector<1x1x8x128xbf16> to vector<8x128xbf16>
    %cst_42 = arith.constant dense<0.000000e+00> : vector<256x128xf32>
    %46 = tpu.matmul %43, %45, %cst_42 {dimension_numbers = #tpu.dot_dimension_numbers<[1], [0], [0], [1], [0, 0, 1, 1], [], []>} : vector<256x8xbf16>, vector<8x128xbf16>, vector<256x128xf32> -> vector<256x128xf32>
    %47 = arith.addf %39, %46 : vector<256x128xf32>
    %c0_i32_43 = arith.constant 0 : i32
    %48 = arith.addi %30, %c0_i32_43 : i32
    %49 = arith.index_cast %48 : i32 to index
    %c2 = arith.constant 2 : index
    %c0_44 = arith.constant 0 : index
    %50 = vector.load %arg8[%49, %c2, %c0_44] : memref<18x18x8xbf16, #tpu.memory_space<vmem>>, vector<16x16x8xbf16>
    %51 = vector.shape_cast %50 : vector<16x16x8xbf16> to vector<256x8xbf16>
    %c0_45 = arith.constant 0 : index
    %c2_46 = arith.constant 2 : index
    %c0_47 = arith.constant 0 : index
    %c0_48 = arith.constant 0 : index
    %52 = vector.load %arg5[%c0_45, %c2_46, %c0_47, %c0_48] : memref<3x3x8x128xbf16, #tpu.memory_space<vmem>>, vector<1x1x8x128xbf16>
    %53 = vector.shape_cast %52 : vector<1x1x8x128xbf16> to vector<8x128xbf16>
    %cst_49 = arith.constant dense<0.000000e+00> : vector<256x128xf32>
    %54 = tpu.matmul %51, %53, %cst_49 {dimension_numbers = #tpu.dot_dimension_numbers<[1], [0], [0], [1], [0, 0, 1, 1], [], []>} : vector<256x8xbf16>, vector<8x128xbf16>, vector<256x128xf32> -> vector<256x128xf32>
    %55 = arith.addf %47, %54 : vector<256x128xf32>
    %c1_i32 = arith.constant 1 : i32
    %56 = arith.addi %30, %c1_i32 : i32
    %57 = arith.index_cast %56 : i32 to index
    %c0_50 = arith.constant 0 : index
    %c0_51 = arith.constant 0 : index
    %58 = vector.load %arg8[%57, %c0_50, %c0_51] : memref<18x18x8xbf16, #tpu.memory_space<vmem>>, vector<16x16x8xbf16>
    %59 = vector.shape_cast %58 : vector<16x16x8xbf16> to vector<256x8xbf16>
    %c1_52 = arith.constant 1 : index
    %c0_53 = arith.constant 0 : index
    %c0_54 = arith.constant 0 : index
    %c0_55 = arith.constant 0 : index
    %60 = vector.load %arg5[%c1_52, %c0_53, %c0_54, %c0_55] : memref<3x3x8x128xbf16, #tpu.memory_space<vmem>>, vector<1x1x8x128xbf16>
    %61 = vector.shape_cast %60 : vector<1x1x8x128xbf16> to vector<8x128xbf16>
    %cst_56 = arith.constant dense<0.000000e+00> : vector<256x128xf32>
    %62 = tpu.matmul %59, %61, %cst_56 {dimension_numbers = #tpu.dot_dimension_numbers<[1], [0], [0], [1], [0, 0, 1, 1], [], []>} : vector<256x8xbf16>, vector<8x128xbf16>, vector<256x128xf32> -> vector<256x128xf32>
    %63 = arith.addf %55, %62 : vector<256x128xf32>
    %c1_i32_57 = arith.constant 1 : i32
    %64 = arith.addi %30, %c1_i32_57 : i32
    %65 = arith.index_cast %64 : i32 to index
    %c1_58 = arith.constant 1 : index
    %c0_59 = arith.constant 0 : index
    %66 = vector.load %arg8[%65, %c1_58, %c0_59] : memref<18x18x8xbf16, #tpu.memory_space<vmem>>, vector<16x16x8xbf16>
    %67 = vector.shape_cast %66 : vector<16x16x8xbf16> to vector<256x8xbf16>
    %c1_60 = arith.constant 1 : index
    %c1_61 = arith.constant 1 : index
    %c0_62 = arith.constant 0 : index
    %c0_63 = arith.constant 0 : index
    %68 = vector.load %arg5[%c1_60, %c1_61, %c0_62, %c0_63] : memref<3x3x8x128xbf16, #tpu.memory_space<vmem>>, vector<1x1x8x128xbf16>
    %69 = vector.shape_cast %68 : vector<1x1x8x128xbf16> to vector<8x128xbf16>
    %cst_64 = arith.constant dense<0.000000e+00> : vector<256x128xf32>
    %70 = tpu.matmul %67, %69, %cst_64 {dimension_numbers = #tpu.dot_dimension_numbers<[1], [0], [0], [1], [0, 0, 1, 1], [], []>} : vector<256x8xbf16>, vector<8x128xbf16>, vector<256x128xf32> -> vector<256x128xf32>
    %71 = arith.addf %63, %70 : vector<256x128xf32>
    %c1_i32_65 = arith.constant 1 : i32
    %72 = arith.addi %30, %c1_i32_65 : i32
    %73 = arith.index_cast %72 : i32 to index
    %c2_66 = arith.constant 2 : index
    %c0_67 = arith.constant 0 : index
    %74 = vector.load %arg8[%73, %c2_66, %c0_67] : memref<18x18x8xbf16, #tpu.memory_space<vmem>>, vector<16x16x8xbf16>
    %75 = vector.shape_cast %74 : vector<16x16x8xbf16> to vector<256x8xbf16>
    %c1_68 = arith.constant 1 : index
    %c2_69 = arith.constant 2 : index
    %c0_70 = arith.constant 0 : index
    %c0_71 = arith.constant 0 : index
    %76 = vector.load %arg5[%c1_68, %c2_69, %c0_70, %c0_71] : memref<3x3x8x128xbf16, #tpu.memory_space<vmem>>, vector<1x1x8x128xbf16>
    %77 = vector.shape_cast %76 : vector<1x1x8x128xbf16> to vector<8x128xbf16>
    %cst_72 = arith.constant dense<0.000000e+00> : vector<256x128xf32>
    %78 = tpu.matmul %75, %77, %cst_72 {dimension_numbers = #tpu.dot_dimension_numbers<[1], [0], [0], [1], [0, 0, 1, 1], [], []>} : vector<256x8xbf16>, vector<8x128xbf16>, vector<256x128xf32> -> vector<256x128xf32>
    %79 = arith.addf %71, %78 : vector<256x128xf32>
    %c2_i32 = arith.constant 2 : i32
    %80 = arith.addi %30, %c2_i32 : i32
    %81 = arith.index_cast %80 : i32 to index
    %c0_73 = arith.constant 0 : index
    %c0_74 = arith.constant 0 : index
    %82 = vector.load %arg8[%81, %c0_73, %c0_74] : memref<18x18x8xbf16, #tpu.memory_space<vmem>>, vector<16x16x8xbf16>
    %83 = vector.shape_cast %82 : vector<16x16x8xbf16> to vector<256x8xbf16>
    %c2_75 = arith.constant 2 : index
    %c0_76 = arith.constant 0 : index
    %c0_77 = arith.constant 0 : index
    %c0_78 = arith.constant 0 : index
    %84 = vector.load %arg5[%c2_75, %c0_76, %c0_77, %c0_78] : memref<3x3x8x128xbf16, #tpu.memory_space<vmem>>, vector<1x1x8x128xbf16>
    %85 = vector.shape_cast %84 : vector<1x1x8x128xbf16> to vector<8x128xbf16>
    %cst_79 = arith.constant dense<0.000000e+00> : vector<256x128xf32>
    %86 = tpu.matmul %83, %85, %cst_79 {dimension_numbers = #tpu.dot_dimension_numbers<[1], [0], [0], [1], [0, 0, 1, 1], [], []>} : vector<256x8xbf16>, vector<8x128xbf16>, vector<256x128xf32> -> vector<256x128xf32>
    %87 = arith.addf %79, %86 : vector<256x128xf32>
    %c2_i32_80 = arith.constant 2 : i32
    %88 = arith.addi %30, %c2_i32_80 : i32
    %89 = arith.index_cast %88 : i32 to index
    %c1_81 = arith.constant 1 : index
    %c0_82 = arith.constant 0 : index
    %90 = vector.load %arg8[%89, %c1_81, %c0_82] : memref<18x18x8xbf16, #tpu.memory_space<vmem>>, vector<16x16x8xbf16>
    %91 = vector.shape_cast %90 : vector<16x16x8xbf16> to vector<256x8xbf16>
    %c2_83 = arith.constant 2 : index
    %c1_84 = arith.constant 1 : index
    %c0_85 = arith.constant 0 : index
    %c0_86 = arith.constant 0 : index
    %92 = vector.load %arg5[%c2_83, %c1_84, %c0_85, %c0_86] : memref<3x3x8x128xbf16, #tpu.memory_space<vmem>>, vector<1x1x8x128xbf16>
    %93 = vector.shape_cast %92 : vector<1x1x8x128xbf16> to vector<8x128xbf16>
    %cst_87 = arith.constant dense<0.000000e+00> : vector<256x128xf32>
    %94 = tpu.matmul %91, %93, %cst_87 {dimension_numbers = #tpu.dot_dimension_numbers<[1], [0], [0], [1], [0, 0, 1, 1], [], []>} : vector<256x8xbf16>, vector<8x128xbf16>, vector<256x128xf32> -> vector<256x128xf32>
    %95 = arith.addf %87, %94 : vector<256x128xf32>
    %c2_i32_88 = arith.constant 2 : i32
    %96 = arith.addi %30, %c2_i32_88 : i32
    %97 = arith.index_cast %96 : i32 to index
    %c2_89 = arith.constant 2 : index
    %c0_90 = arith.constant 0 : index
    %98 = vector.load %arg8[%97, %c2_89, %c0_90] : memref<18x18x8xbf16, #tpu.memory_space<vmem>>, vector<16x16x8xbf16>
    %99 = vector.shape_cast %98 : vector<16x16x8xbf16> to vector<256x8xbf16>
    %c2_91 = arith.constant 2 : index
    %c2_92 = arith.constant 2 : index
    %c0_93 = arith.constant 0 : index
    %c0_94 = arith.constant 0 : index
    %100 = vector.load %arg5[%c2_91, %c2_92, %c0_93, %c0_94] : memref<3x3x8x128xbf16, #tpu.memory_space<vmem>>, vector<1x1x8x128xbf16>
    %101 = vector.shape_cast %100 : vector<1x1x8x128xbf16> to vector<8x128xbf16>
    %cst_95 = arith.constant dense<0.000000e+00> : vector<256x128xf32>
    %102 = tpu.matmul %99, %101, %cst_95 {dimension_numbers = #tpu.dot_dimension_numbers<[1], [0], [0], [1], [0, 0, 1, 1], [], []>} : vector<256x8xbf16>, vector<8x128xbf16>, vector<256x128xf32> -> vector<256x128xf32>
    %103 = arith.addf %95, %102 : vector<256x128xf32>
    %104 = arith.truncf %103 : vector<256x128xf32> to vector<256x128xbf16>
    %c0_96 = arith.constant 0 : index
    %105 = arith.index_cast %32 : i32 to index
    %c0_97 = arith.constant 0 : index
    %106 = vector.load %arg6[%c0_96, %105, %c0_97] : memref<1x256x128xbf16, #tpu.memory_space<vmem>>, vector<1x256x128xbf16>
    %107 = vector.shape_cast %106 : vector<1x256x128xbf16> to vector<256x128xbf16>
    %108 = vector.shape_cast %104 : vector<256x128xbf16> to vector<1x256x128xbf16>
    tpu.vector_store %arg6[%c0_96, %105, %c0_97], %108 {strides = array<i32>} : memref<1x256x128xbf16, #tpu.memory_space<vmem>>, vector<1x256x128xbf16>,
    %109 = arith.extf %104 : vector<256x128xbf16> to vector<256x128xf32>
    %cst_98 = arith.constant dense<0.000000e+00> : vector<128xf32>
    %110 = vector.multi_reduction <add>, %109, %cst_98 [0] : vector<256x128xf32> to vector<128xf32>
    %111 = vector.shape_cast %110 : vector<128xf32> to vector<1x128xf32>
    %112 = arith.addf %28, %111 : vector<1x128xf32>
    %113 = arith.mulf %109, %109 : vector<256x128xf32>
    %cst_99 = arith.constant dense<0.000000e+00> : vector<128xf32>
    %114 = vector.multi_reduction <add>, %113, %cst_99 [0] : vector<256x128xf32> to vector<128xf32>
    %115 = vector.shape_cast %114 : vector<128xf32> to vector<1x128xf32>
    %116 = arith.addf %28, %115 : vector<1x128xf32>
    %c1_i32_100 = arith.constant 1 : i32
    %c0_101 = arith.constant 0 : index
    %c0_102 = arith.constant 0 : index
    %c0_103 = arith.constant 0 : index
    %c0_104 = arith.constant 0 : index
    %117 = vector.load %arg7[%c0_101, %c0_102, %c0_103, %c0_104] : memref<1x1x2x128xf32, #tpu.memory_space<vmem>>, vector<1x1x1x128xf32>
    %118 = vector.shape_cast %117 : vector<1x1x1x128xf32> to vector<1x128xf32>
    %119 = vector.shape_cast %112 : vector<1x128xf32> to vector<1x1x1x128xf32>
    tpu.vector_store %arg7[%c0_101, %c0_102, %c0_103, %c0_104], %119 {strides = array<i32>} : memref<1x1x2x128xf32, #tpu.memory_space<vmem>>, vector<1x1x1x128xf32>,
    %c0_105 = arith.constant 0 : index
    %c0_106 = arith.constant 0 : index
    %c1_107 = arith.constant 1 : index
    %c0_108 = arith.constant 0 : index
    %120 = vector.load %arg7[%c0_105, %c0_106, %c1_107, %c0_108] : memref<1x1x2x128xf32, #tpu.memory_space<vmem>>, vector<1x1x1x128xf32>
    %121 = vector.shape_cast %120 : vector<1x1x1x128xf32> to vector<1x128xf32>
    %122 = vector.shape_cast %116 : vector<1x128xf32> to vector<1x1x1x128xf32>
    tpu.vector_store %arg7[%c0_105, %c0_106, %c1_107, %c0_108], %122 {strides = array<i32>} : memref<1x1x2x128xf32, #tpu.memory_space<vmem>>, vector<1x1x1x128xf32>,
    return
  }
  func.func @transform_0(%arg0: i32, %arg1: i32) -> (i32, i32, i32, i32) {
    %c0_i32 = arith.constant 0 : i32
    %c0_i32_0 = arith.constant 0 : i32
    %c0_i32_1 = arith.constant 0 : i32
    return %arg0, %arg1, %c0_i32, %c0_i32_0 : i32, i32, i32, i32
  }
  func.func @transform_1(%arg0: i32, %arg1: i32) -> (i32, i32, i32, i32) {
    %c16_i32 = arith.constant 16 : i32
    %0 = arith.muli %arg1, %c16_i32 : i32
    %c1_i32 = arith.constant 1 : i32
    %1 = arith.subi %0, %c1_i32 : i32
    %c0_i32 = arith.constant 0 : i32
    %2 = arith.maxsi %1, %c0_i32 : i32
    %c0_i32_0 = arith.constant 0 : i32
    %c0_i32_1 = arith.constant 0 : i32
    %c0_i32_2 = arith.constant 0 : i32
    return %arg0, %2, %c0_i32_0, %c0_i32_1 : i32, i32, i32, i32
  }
  func.func @transform_2(%arg0: i32, %arg1: i32) -> (i32, i32, i32, i32) {
    %c1_i32 = arith.constant 1 : i32
    %0 = arith.addi %arg1, %c1_i32 : i32
    %c16_i32 = arith.constant 16 : i32
    %1 = arith.muli %0, %c16_i32 : i32
    %c15_i32 = arith.constant 15 : i32
    %2 = arith.minsi %1, %c15_i32 : i32
    %c0_i32 = arith.constant 0 : i32
    %c0_i32_0 = arith.constant 0 : i32
    %c0_i32_1 = arith.constant 0 : i32
    return %arg0, %2, %c0_i32, %c0_i32_0 : i32, i32, i32, i32
  }
  func.func @transform_3(%arg0: i32, %arg1: i32) -> (i32, i32, i32, i32) {
    %c0_i32 = arith.constant 0 : i32
    %c0_i32_0 = arith.constant 0 : i32
    %c0_i32_1 = arith.constant 0 : i32
    %c0_i32_2 = arith.constant 0 : i32
    %c0_i32_3 = arith.constant 0 : i32
    return %c0_i32, %c0_i32_0, %c0_i32_1, %c0_i32_2 : i32, i32, i32, i32
  }
  func.func @transform_4(%arg0: i32, %arg1: i32) -> (i32, i32, i32) {
    %c0_i32 = arith.constant 0 : i32
    %c0_i32_0 = arith.constant 0 : i32
    return %arg0, %arg1, %c0_i32 : i32, i32, i32
  }
  func.func @transform_5(%arg0: i32, %arg1: i32) -> (i32, i32, i32, i32) {
    %c0_i32 = arith.constant 0 : i32
    %c0_i32_0 = arith.constant 0 : i32
    %c0_i32_1 = arith.constant 0 : i32
    return %arg0, %arg1, %c0_i32, %c0_i32_0 : i32, i32, i32, i32
  }
}

module attributes {stable_mosaic.version = 11 : i64} {
  func.func @_bn_relu_kernel(%arg0: i32, %arg1: i32, %arg2: memref<1x256x128xbf16, #tpu.memory_space<vmem>>, %arg3: memref<1x8xf32, #tpu.memory_space<vmem>>, %arg4: memref<1x8xf32, #tpu.memory_space<vmem>>, %arg5: memref<1x256x8xf32, #tpu.memory_space<vmem>>) attributes {dimension_semantics = [#tpu.dimension_semantics<parallel>, #tpu.dimension_semantics<parallel>], iteration_bounds = array<i64: 2, 1>, scalar_prefetch = 0 : i64, scratch_operands = 0 : i64, tpu.core_type = #tpu.core_type<tc>, window_params = [{transform_indices = @transform_0, window_bounds = array<i64: 1, 256, 128>}, {pipeline_mode = #tpu.pipeline_mode<synchronous>, transform_indices = @transform_1, window_bounds = array<i64: 1, 8>}, {pipeline_mode = #tpu.pipeline_mode<synchronous>, transform_indices = @transform_2, window_bounds = array<i64: 1, 8>}, {transform_indices = @transform_3, window_bounds = array<i64: 1, 256, 8>}]} {
    %c0 = arith.constant 0 : index
    %c0_0 = arith.constant 0 : index
    %c0_1 = arith.constant 0 : index
    %0 = vector.load %arg2[%c0, %c0_0, %c0_1] : memref<1x256x128xbf16, #tpu.memory_space<vmem>>, vector<1x256x8xbf16>
    %1 = vector.shape_cast %0 : vector<1x256x8xbf16> to vector<256x8xbf16>
    %2 = arith.extf %1 : vector<256x8xbf16> to vector<256x8xf32>
    %c0_2 = arith.constant 0 : index
    %c0_3 = arith.constant 0 : index
    %3 = vector.load %arg3[%c0_2, %c0_3] : memref<1x8xf32, #tpu.memory_space<vmem>>, vector<1x8xf32>
    %4 = vector.broadcast %3 : vector<1x8xf32> to vector<256x8xf32>
    %5 = arith.mulf %2, %4 : vector<256x8xf32>
    %c0_4 = arith.constant 0 : index
    %c0_5 = arith.constant 0 : index
    %6 = vector.load %arg4[%c0_4, %c0_5] : memref<1x8xf32, #tpu.memory_space<vmem>>, vector<1x8xf32>
    %7 = vector.broadcast %6 : vector<1x8xf32> to vector<256x8xf32>
    %8 = arith.addf %5, %7 : vector<256x8xf32>
    %cst = arith.constant 0.000000e+00 : f32
    %9 = vector.broadcast %cst : f32 to vector<256x8xf32>
    %10 = arith.maximumf %8, %9 : vector<256x8xf32>
    %c0_6 = arith.constant 0 : index
    %c0_7 = arith.constant 0 : index
    %c0_8 = arith.constant 0 : index
    %11 = vector.load %arg5[%c0_6, %c0_7, %c0_8] : memref<1x256x8xf32, #tpu.memory_space<vmem>>, vector<1x256x8xf32>
    %12 = vector.shape_cast %11 : vector<1x256x8xf32> to vector<256x8xf32>
    %13 = vector.shape_cast %10 : vector<256x8xf32> to vector<1x256x8xf32>
    tpu.vector_store %arg5[%c0_6, %c0_7, %c0_8], %13 {strides = array<i32>} : memref<1x256x8xf32, #tpu.memory_space<vmem>>, vector<1x256x8xf32>,
    return
  }
  func.func @transform_0(%arg0: i32, %arg1: i32) -> (i32, i32, i32) {
    %c0_i32 = arith.constant 0 : i32
    %c0_i32_0 = arith.constant 0 : i32
    return %arg0, %arg1, %c0_i32 : i32, i32, i32
  }
  func.func @transform_1(%arg0: i32, %arg1: i32) -> (i32, i32) {
    %c0_i32 = arith.constant 0 : i32
    %c0_i32_0 = arith.constant 0 : i32
    %c0_i32_1 = arith.constant 0 : i32
    return %c0_i32, %c0_i32_0 : i32, i32
  }
  func.func @transform_2(%arg0: i32, %arg1: i32) -> (i32, i32) {
    %c0_i32 = arith.constant 0 : i32
    %c0_i32_0 = arith.constant 0 : i32
    %c0_i32_1 = arith.constant 0 : i32
    return %c0_i32, %c0_i32_0 : i32, i32
  }
  func.func @transform_3(%arg0: i32, %arg1: i32) -> (i32, i32, i32) {
    %c0_i32 = arith.constant 0 : i32
    %c0_i32_0 = arith.constant 0 : i32
    return %arg0, %arg1, %c0_i32 : i32, i32, i32
  }
}

module attributes {stable_mosaic.version = 11 : i64} {
  func.func @_conv2_kernel(%arg0: i32, %arg1: i32, %arg2: memref<1x256x128xbf16, #tpu.memory_space<vmem>>, %arg3: memref<1x16x128xbf16, #tpu.memory_space<vmem>>, %arg4: memref<1x16x128xbf16, #tpu.memory_space<vmem>>, %arg5: memref<1x128xf32, #tpu.memory_space<vmem>>, %arg6: memref<1x128xf32, #tpu.memory_space<vmem>>, %arg7: memref<3x3x128x128xbf16, #tpu.memory_space<vmem>>, %arg8: memref<1x256x128xbf16, #tpu.memory_space<vmem>>, %arg9: memref<1x1x2x128xf32, #tpu.memory_space<vmem>>, %arg10: memref<18x18x128xbf16, #tpu.memory_space<vmem>>) attributes {dimension_semantics = [#tpu.dimension_semantics<parallel>, #tpu.dimension_semantics<parallel>], iteration_bounds = array<i64: 2, 1>, scalar_prefetch = 0 : i64, scratch_operands = 1 : i64, tpu.core_type = #tpu.core_type<tc>, window_params = [{transform_indices = @transform_0, window_bounds = array<i64: 1, 256, 128>}, {transform_indices = @transform_1, window_bounds = array<i64: 1, 16, 128>}, {transform_indices = @transform_2, window_bounds = array<i64: 1, 16, 128>}, {pipeline_mode = #tpu.pipeline_mode<synchronous>, transform_indices = @transform_3, window_bounds = array<i64: 1, 128>}, {pipeline_mode = #tpu.pipeline_mode<synchronous>, transform_indices = @transform_4, window_bounds = array<i64: 1, 128>}, {pipeline_mode = #tpu.pipeline_mode<synchronous>, transform_indices = @transform_5, window_bounds = array<i64: 3, 3, 128, 128>}, {transform_indices = @transform_6, window_bounds = array<i64: 1, 256, 128>}, {transform_indices = @transform_7, window_bounds = array<i64: 1, 1, 2, 128>}]} {
    %c0 = arith.constant 0 : index
    %c0_0 = arith.constant 0 : index
    %0 = vector.load %arg5[%c0, %c0_0] : memref<1x128xf32, #tpu.memory_space<vmem>>, vector<1x128xf32>
    %c0_1 = arith.constant 0 : index
    %c0_2 = arith.constant 0 : index
    %1 = vector.load %arg6[%c0_1, %c0_2] : memref<1x128xf32, #tpu.memory_space<vmem>>, vector<1x128xf32>
    %c0_3 = arith.constant 0 : index
    %c0_4 = arith.constant 0 : index
    %c0_5 = arith.constant 0 : index
    %2 = vector.load %arg2[%c0_3, %c0_4, %c0_5] : memref<1x256x128xbf16, #tpu.memory_space<vmem>>, vector<1x256x128xbf16>
    %3 = vector.shape_cast %2 : vector<1x256x128xbf16> to vector<256x128xbf16>
    %4 = arith.extf %3 : vector<256x128xbf16> to vector<256x128xf32>
    %5 = vector.broadcast %0 : vector<1x128xf32> to vector<256x128xf32>
    %6 = arith.mulf %4, %5 : vector<256x128xf32>
    %7 = vector.broadcast %1 : vector<1x128xf32> to vector<256x128xf32>
    %8 = arith.addf %6, %7 : vector<256x128xf32>
    %cst = arith.constant 0.000000e+00 : f32
    %9 = vector.broadcast %cst : f32 to vector<256x128xf32>
    %10 = arith.maximumf %8, %9 : vector<256x128xf32>
    %11 = arith.truncf %10 : vector<256x128xf32> to vector<256x128xbf16>
    %12 = vector.shape_cast %11 : vector<256x128xbf16> to vector<16x16x128xbf16>
    %c0_6 = arith.constant 0 : index
    %c0_7 = arith.constant 0 : index
    %c0_8 = arith.constant 0 : index
    %13 = vector.load %arg3[%c0_6, %c0_7, %c0_8] : memref<1x16x128xbf16, #tpu.memory_space<vmem>>, vector<1x16x128xbf16>
    %14 = vector.shape_cast %13 : vector<1x16x128xbf16> to vector<16x128xbf16>
    %15 = arith.extf %14 : vector<16x128xbf16> to vector<16x128xf32>
    %16 = vector.broadcast %0 : vector<1x128xf32> to vector<16x128xf32>
    %17 = arith.mulf %15, %16 : vector<16x128xf32>
    %18 = vector.broadcast %1 : vector<1x128xf32> to vector<16x128xf32>
    %19 = arith.addf %17, %18 : vector<16x128xf32>
    %cst_9 = arith.constant 0.000000e+00 : f32
    %20 = vector.broadcast %cst_9 : f32 to vector<16x128xf32>
    %21 = arith.maximumf %19, %20 : vector<16x128xf32>
    %22 = arith.truncf %21 : vector<16x128xf32> to vector<16x128xbf16>
    %c0_10 = arith.constant 0 : index
    %c0_11 = arith.constant 0 : index
    %c0_12 = arith.constant 0 : index
    %23 = vector.load %arg4[%c0_10, %c0_11, %c0_12] : memref<1x16x128xbf16, #tpu.memory_space<vmem>>, vector<1x16x128xbf16>
    %24 = vector.shape_cast %23 : vector<1x16x128xbf16> to vector<16x128xbf16>
    %25 = arith.extf %24 : vector<16x128xbf16> to vector<16x128xf32>
    %26 = vector.broadcast %0 : vector<1x128xf32> to vector<16x128xf32>
    %27 = arith.mulf %25, %26 : vector<16x128xf32>
    %28 = vector.broadcast %1 : vector<1x128xf32> to vector<16x128xf32>
    %29 = arith.addf %27, %28 : vector<16x128xf32>
    %cst_13 = arith.constant 0.000000e+00 : f32
    %30 = vector.broadcast %cst_13 : f32 to vector<16x128xf32>
    %31 = arith.maximumf %29, %30 : vector<16x128xf32>
    %32 = arith.truncf %31 : vector<16x128xf32> to vector<16x128xbf16>
    %c1 = arith.constant 1 : index
    %c1_14 = arith.constant 1 : index
    %c0_15 = arith.constant 0 : index
    %33 = vector.load %arg10[%c1, %c1_14, %c0_15] : memref<18x18x128xbf16, #tpu.memory_space<vmem>>, vector<16x16x128xbf16>
    tpu.vector_store %arg10[%c1, %c1_14, %c0_15], %12 {strides = array<i32>} : memref<18x18x128xbf16, #tpu.memory_space<vmem>>, vector<16x16x128xbf16>,
    %c0_i32 = arith.constant 0 : i32
    %34 = arith.cmpi sgt, %arg1, %c0_i32 : i32
    %35 = arith.extui %34 : i1 to i32
    %36 = arith.sitofp %35 : i32 to f32
    %37 = arith.truncf %36 : f32 to bf16
    %c0_i32_16 = arith.constant 0 : i32
    %38 = arith.cmpi slt, %arg1, %c0_i32_16 : i32
    %39 = arith.extui %38 : i1 to i32
    %40 = arith.sitofp %39 : i32 to f32
    %41 = arith.truncf %40 : f32 to bf16
    %42 = vector.broadcast %37 : bf16 to vector<16x128xbf16>
    %43 = arith.mulf %22, %42 : vector<16x128xbf16>
    %c0_17 = arith.constant 0 : index
    %c1_18 = arith.constant 1 : index
    %c0_19 = arith.constant 0 : index
    %44 = vector.load %arg10[%c0_17, %c1_18, %c0_19] : memref<18x18x128xbf16, #tpu.memory_space<vmem>>, vector<1x16x128xbf16>
    %45 = vector.shape_cast %44 : vector<1x16x128xbf16> to vector<16x128xbf16>
    %46 = vector.shape_cast %43 : vector<16x128xbf16> to vector<1x16x128xbf16>
    tpu.vector_store %arg10[%c0_17, %c1_18, %c0_19], %46 {strides = array<i32>} : memref<18x18x128xbf16, #tpu.memory_space<vmem>>, vector<1x16x128xbf16>,
    %47 = vector.broadcast %41 : bf16 to vector<16x128xbf16>
    %48 = arith.mulf %32, %47 : vector<16x128xbf16>
    %c17 = arith.constant 17 : index
    %c1_20 = arith.constant 1 : index
    %c0_21 = arith.constant 0 : index
    %49 = vector.load %arg10[%c17, %c1_20, %c0_21] : memref<18x18x128xbf16, #tpu.memory_space<vmem>>, vector<1x16x128xbf16>
    %50 = vector.shape_cast %49 : vector<1x16x128xbf16> to vector<16x128xbf16>
    %51 = vector.shape_cast %48 : vector<16x128xbf16> to vector<1x16x128xbf16>
    tpu.vector_store %arg10[%c17, %c1_20, %c0_21], %51 {strides = array<i32>} : memref<18x18x128xbf16, #tpu.memory_space<vmem>>, vector<1x16x128xbf16>,
    %cst_22 = arith.constant 0.000000e+00 : bf16
    %52 = vector.broadcast %cst_22 : bf16 to vector<18x1x128xbf16>
    %c0_23 = arith.constant 0 : index
    %c0_24 = arith.constant 0 : index
    %c0_25 = arith.constant 0 : index
    %53 = vector.load %arg10[%c0_23, %c0_24, %c0_25] : memref<18x18x128xbf16, #tpu.memory_space<vmem>>, vector<18x1x128xbf16>
    tpu.vector_store %arg10[%c0_23, %c0_24, %c0_25], %52 {strides = array<i32>} : memref<18x18x128xbf16, #tpu.memory_space<vmem>>, vector<18x1x128xbf16>,
    %c0_26 = arith.constant 0 : index
    %c17_27 = arith.constant 17 : index
    %c0_28 = arith.constant 0 : index
    %54 = vector.load %arg10[%c0_26, %c17_27, %c0_28] : memref<18x18x128xbf16, #tpu.memory_space<vmem>>, vector<18x1x128xbf16>
    tpu.vector_store %arg10[%c0_26, %c17_27, %c0_28], %52 {strides = array<i32>} : memref<18x18x128xbf16, #tpu.memory_space<vmem>>, vector<18x1x128xbf16>,
    %cst_29 = arith.constant 0.000000e+00 : f32
    %55 = vector.broadcast %cst_29 : f32 to vector<1x128xf32>
    %c0_i32_30 = arith.constant 0 : i32
    %c16_i32 = arith.constant 16 : i32
    %56 = arith.muli %c0_i32_30, %c16_i32 : i32
    %57 = tpu.assume_multiple %56, 16 : i32
    %c256_i32 = arith.constant 256 : i32
    %58 = arith.muli %c0_i32_30, %c256_i32 : i32
    %59 = tpu.assume_multiple %58, 256 : i32
    %c0_i32_31 = arith.constant 0 : i32
    %60 = arith.addi %57, %c0_i32_31 : i32
    %61 = arith.index_cast %60 : i32 to index
    %c0_32 = arith.constant 0 : index
    %c0_33 = arith.constant 0 : index
    %62 = vector.load %arg10[%61, %c0_32, %c0_33] : memref<18x18x128xbf16, #tpu.memory_space<vmem>>, vector<16x16x128xbf16>
    %63 = vector.shape_cast %62 : vector<16x16x128xbf16> to vector<256x128xbf16>
    %c0_34 = arith.constant 0 : index
    %c0_35 = arith.constant 0 : index
    %c0_36 = arith.constant 0 : index
    %c0_37 = arith.constant 0 : index
    %64 = vector.load %arg7[%c0_34, %c0_35, %c0_36, %c0_37] : memref<3x3x128x128xbf16, #tpu.memory_space<vmem>>, vector<1x1x128x128xbf16>
    %65 = vector.shape_cast %64 : vector<1x1x128x128xbf16> to vector<128x128xbf16>
    %cst_38 = arith.constant dense<0.000000e+00> : vector<256x128xf32>
    %66 = tpu.matmul %63, %65, %cst_38 {dimension_numbers = #tpu.dot_dimension_numbers<[1], [0], [0], [1], [0, 0, 1, 1], [], []>} : vector<256x128xbf16>, vector<128x128xbf16>, vector<256x128xf32> -> vector<256x128xf32>
    %c0_i32_39 = arith.constant 0 : i32
    %67 = arith.addi %57, %c0_i32_39 : i32
    %68 = arith.index_cast %67 : i32 to index
    %c1_40 = arith.constant 1 : index
    %c0_41 = arith.constant 0 : index
    %69 = vector.load %arg10[%68, %c1_40, %c0_41] : memref<18x18x128xbf16, #tpu.memory_space<vmem>>, vector<16x16x128xbf16>
    %70 = vector.shape_cast %69 : vector<16x16x128xbf16> to vector<256x128xbf16>
    %c0_42 = arith.constant 0 : index
    %c1_43 = arith.constant 1 : index
    %c0_44 = arith.constant 0 : index
    %c0_45 = arith.constant 0 : index
    %71 = vector.load %arg7[%c0_42, %c1_43, %c0_44, %c0_45] : memref<3x3x128x128xbf16, #tpu.memory_space<vmem>>, vector<1x1x128x128xbf16>
    %72 = vector.shape_cast %71 : vector<1x1x128x128xbf16> to vector<128x128xbf16>
    %cst_46 = arith.constant dense<0.000000e+00> : vector<256x128xf32>
    %73 = tpu.matmul %70, %72, %cst_46 {dimension_numbers = #tpu.dot_dimension_numbers<[1], [0], [0], [1], [0, 0, 1, 1], [], []>} : vector<256x128xbf16>, vector<128x128xbf16>, vector<256x128xf32> -> vector<256x128xf32>
    %74 = arith.addf %66, %73 : vector<256x128xf32>
    %c0_i32_47 = arith.constant 0 : i32
    %75 = arith.addi %57, %c0_i32_47 : i32
    %76 = arith.index_cast %75 : i32 to index
    %c2 = arith.constant 2 : index
    %c0_48 = arith.constant 0 : index
    %77 = vector.load %arg10[%76, %c2, %c0_48] : memref<18x18x128xbf16, #tpu.memory_space<vmem>>, vector<16x16x128xbf16>
    %78 = vector.shape_cast %77 : vector<16x16x128xbf16> to vector<256x128xbf16>
    %c0_49 = arith.constant 0 : index
    %c2_50 = arith.constant 2 : index
    %c0_51 = arith.constant 0 : index
    %c0_52 = arith.constant 0 : index
    %79 = vector.load %arg7[%c0_49, %c2_50, %c0_51, %c0_52] : memref<3x3x128x128xbf16, #tpu.memory_space<vmem>>, vector<1x1x128x128xbf16>
    %80 = vector.shape_cast %79 : vector<1x1x128x128xbf16> to vector<128x128xbf16>
    %cst_53 = arith.constant dense<0.000000e+00> : vector<256x128xf32>
    %81 = tpu.matmul %78, %80, %cst_53 {dimension_numbers = #tpu.dot_dimension_numbers<[1], [0], [0], [1], [0, 0, 1, 1], [], []>} : vector<256x128xbf16>, vector<128x128xbf16>, vector<256x128xf32> -> vector<256x128xf32>
    %82 = arith.addf %74, %81 : vector<256x128xf32>
    %c1_i32 = arith.constant 1 : i32
    %83 = arith.addi %57, %c1_i32 : i32
    %84 = arith.index_cast %83 : i32 to index
    %c0_54 = arith.constant 0 : index
    %c0_55 = arith.constant 0 : index
    %85 = vector.load %arg10[%84, %c0_54, %c0_55] : memref<18x18x128xbf16, #tpu.memory_space<vmem>>, vector<16x16x128xbf16>
    %86 = vector.shape_cast %85 : vector<16x16x128xbf16> to vector<256x128xbf16>
    %c1_56 = arith.constant 1 : index
    %c0_57 = arith.constant 0 : index
    %c0_58 = arith.constant 0 : index
    %c0_59 = arith.constant 0 : index
    %87 = vector.load %arg7[%c1_56, %c0_57, %c0_58, %c0_59] : memref<3x3x128x128xbf16, #tpu.memory_space<vmem>>, vector<1x1x128x128xbf16>
    %88 = vector.shape_cast %87 : vector<1x1x128x128xbf16> to vector<128x128xbf16>
    %cst_60 = arith.constant dense<0.000000e+00> : vector<256x128xf32>
    %89 = tpu.matmul %86, %88, %cst_60 {dimension_numbers = #tpu.dot_dimension_numbers<[1], [0], [0], [1], [0, 0, 1, 1], [], []>} : vector<256x128xbf16>, vector<128x128xbf16>, vector<256x128xf32> -> vector<256x128xf32>
    %90 = arith.addf %82, %89 : vector<256x128xf32>
    %c1_i32_61 = arith.constant 1 : i32
    %91 = arith.addi %57, %c1_i32_61 : i32
    %92 = arith.index_cast %91 : i32 to index
    %c1_62 = arith.constant 1 : index
    %c0_63 = arith.constant 0 : index
    %93 = vector.load %arg10[%92, %c1_62, %c0_63] : memref<18x18x128xbf16, #tpu.memory_space<vmem>>, vector<16x16x128xbf16>
    %94 = vector.shape_cast %93 : vector<16x16x128xbf16> to vector<256x128xbf16>
    %c1_64 = arith.constant 1 : index
    %c1_65 = arith.constant 1 : index
    %c0_66 = arith.constant 0 : index
    %c0_67 = arith.constant 0 : index
    %95 = vector.load %arg7[%c1_64, %c1_65, %c0_66, %c0_67] : memref<3x3x128x128xbf16, #tpu.memory_space<vmem>>, vector<1x1x128x128xbf16>
    %96 = vector.shape_cast %95 : vector<1x1x128x128xbf16> to vector<128x128xbf16>
    %cst_68 = arith.constant dense<0.000000e+00> : vector<256x128xf32>
    %97 = tpu.matmul %94, %96, %cst_68 {dimension_numbers = #tpu.dot_dimension_numbers<[1], [0], [0], [1], [0, 0, 1, 1], [], []>} : vector<256x128xbf16>, vector<128x128xbf16>, vector<256x128xf32> -> vector<256x128xf32>
    %98 = arith.addf %90, %97 : vector<256x128xf32>
    %c1_i32_69 = arith.constant 1 : i32
    %99 = arith.addi %57, %c1_i32_69 : i32
    %100 = arith.index_cast %99 : i32 to index
    %c2_70 = arith.constant 2 : index
    %c0_71 = arith.constant 0 : index
    %101 = vector.load %arg10[%100, %c2_70, %c0_71] : memref<18x18x128xbf16, #tpu.memory_space<vmem>>, vector<16x16x128xbf16>
    %102 = vector.shape_cast %101 : vector<16x16x128xbf16> to vector<256x128xbf16>
    %c1_72 = arith.constant 1 : index
    %c2_73 = arith.constant 2 : index
    %c0_74 = arith.constant 0 : index
    %c0_75 = arith.constant 0 : index
    %103 = vector.load %arg7[%c1_72, %c2_73, %c0_74, %c0_75] : memref<3x3x128x128xbf16, #tpu.memory_space<vmem>>, vector<1x1x128x128xbf16>
    %104 = vector.shape_cast %103 : vector<1x1x128x128xbf16> to vector<128x128xbf16>
    %cst_76 = arith.constant dense<0.000000e+00> : vector<256x128xf32>
    %105 = tpu.matmul %102, %104, %cst_76 {dimension_numbers = #tpu.dot_dimension_numbers<[1], [0], [0], [1], [0, 0, 1, 1], [], []>} : vector<256x128xbf16>, vector<128x128xbf16>, vector<256x128xf32> -> vector<256x128xf32>
    %106 = arith.addf %98, %105 : vector<256x128xf32>
    %c2_i32 = arith.constant 2 : i32
    %107 = arith.addi %57, %c2_i32 : i32
    %108 = arith.index_cast %107 : i32 to index
    %c0_77 = arith.constant 0 : index
    %c0_78 = arith.constant 0 : index
    %109 = vector.load %arg10[%108, %c0_77, %c0_78] : memref<18x18x128xbf16, #tpu.memory_space<vmem>>, vector<16x16x128xbf16>
    %110 = vector.shape_cast %109 : vector<16x16x128xbf16> to vector<256x128xbf16>
    %c2_79 = arith.constant 2 : index
    %c0_80 = arith.constant 0 : index
    %c0_81 = arith.constant 0 : index
    %c0_82 = arith.constant 0 : index
    %111 = vector.load %arg7[%c2_79, %c0_80, %c0_81, %c0_82] : memref<3x3x128x128xbf16, #tpu.memory_space<vmem>>, vector<1x1x128x128xbf16>
    %112 = vector.shape_cast %111 : vector<1x1x128x128xbf16> to vector<128x128xbf16>
    %cst_83 = arith.constant dense<0.000000e+00> : vector<256x128xf32>
    %113 = tpu.matmul %110, %112, %cst_83 {dimension_numbers = #tpu.dot_dimension_numbers<[1], [0], [0], [1], [0, 0, 1, 1], [], []>} : vector<256x128xbf16>, vector<128x128xbf16>, vector<256x128xf32> -> vector<256x128xf32>
    %114 = arith.addf %106, %113 : vector<256x128xf32>
    %c2_i32_84 = arith.constant 2 : i32
    %115 = arith.addi %57, %c2_i32_84 : i32
    %116 = arith.index_cast %115 : i32 to index
    %c1_85 = arith.constant 1 : index
    %c0_86 = arith.constant 0 : index
    %117 = vector.load %arg10[%116, %c1_85, %c0_86] : memref<18x18x128xbf16, #tpu.memory_space<vmem>>, vector<16x16x128xbf16>
    %118 = vector.shape_cast %117 : vector<16x16x128xbf16> to vector<256x128xbf16>
    %c2_87 = arith.constant 2 : index
    %c1_88 = arith.constant 1 : index
    %c0_89 = arith.constant 0 : index
    %c0_90 = arith.constant 0 : index
    %119 = vector.load %arg7[%c2_87, %c1_88, %c0_89, %c0_90] : memref<3x3x128x128xbf16, #tpu.memory_space<vmem>>, vector<1x1x128x128xbf16>
    %120 = vector.shape_cast %119 : vector<1x1x128x128xbf16> to vector<128x128xbf16>
    %cst_91 = arith.constant dense<0.000000e+00> : vector<256x128xf32>
    %121 = tpu.matmul %118, %120, %cst_91 {dimension_numbers = #tpu.dot_dimension_numbers<[1], [0], [0], [1], [0, 0, 1, 1], [], []>} : vector<256x128xbf16>, vector<128x128xbf16>, vector<256x128xf32> -> vector<256x128xf32>
    %122 = arith.addf %114, %121 : vector<256x128xf32>
    %c2_i32_92 = arith.constant 2 : i32
    %123 = arith.addi %57, %c2_i32_92 : i32
    %124 = arith.index_cast %123 : i32 to index
    %c2_93 = arith.constant 2 : index
    %c0_94 = arith.constant 0 : index
    %125 = vector.load %arg10[%124, %c2_93, %c0_94] : memref<18x18x128xbf16, #tpu.memory_space<vmem>>, vector<16x16x128xbf16>
    %126 = vector.shape_cast %125 : vector<16x16x128xbf16> to vector<256x128xbf16>
    %c2_95 = arith.constant 2 : index
    %c2_96 = arith.constant 2 : index
    %c0_97 = arith.constant 0 : index
    %c0_98 = arith.constant 0 : index
    %127 = vector.load %arg7[%c2_95, %c2_96, %c0_97, %c0_98] : memref<3x3x128x128xbf16, #tpu.memory_space<vmem>>, vector<1x1x128x128xbf16>
    %128 = vector.shape_cast %127 : vector<1x1x128x128xbf16> to vector<128x128xbf16>
    %cst_99 = arith.constant dense<0.000000e+00> : vector<256x128xf32>
    %129 = tpu.matmul %126, %128, %cst_99 {dimension_numbers = #tpu.dot_dimension_numbers<[1], [0], [0], [1], [0, 0, 1, 1], [], []>} : vector<256x128xbf16>, vector<128x128xbf16>, vector<256x128xf32> -> vector<256x128xf32>
    %130 = arith.addf %122, %129 : vector<256x128xf32>
    %131 = arith.truncf %130 : vector<256x128xf32> to vector<256x128xbf16>
    %c0_100 = arith.constant 0 : index
    %132 = arith.index_cast %59 : i32 to index
    %c0_101 = arith.constant 0 : index
    %133 = vector.load %arg8[%c0_100, %132, %c0_101] : memref<1x256x128xbf16, #tpu.memory_space<vmem>>, vector<1x256x128xbf16>
    %134 = vector.shape_cast %133 : vector<1x256x128xbf16> to vector<256x128xbf16>
    %135 = vector.shape_cast %131 : vector<256x128xbf16> to vector<1x256x128xbf16>
    tpu.vector_store %arg8[%c0_100, %132, %c0_101], %135 {strides = array<i32>} : memref<1x256x128xbf16, #tpu.memory_space<vmem>>, vector<1x256x128xbf16>,
    %136 = arith.extf %131 : vector<256x128xbf16> to vector<256x128xf32>
    %cst_102 = arith.constant dense<0.000000e+00> : vector<128xf32>
    %137 = vector.multi_reduction <add>, %136, %cst_102 [0] : vector<256x128xf32> to vector<128xf32>
    %138 = vector.shape_cast %137 : vector<128xf32> to vector<1x128xf32>
    %139 = arith.addf %55, %138 : vector<1x128xf32>
    %140 = arith.mulf %136, %136 : vector<256x128xf32>
    %cst_103 = arith.constant dense<0.000000e+00> : vector<128xf32>
    %141 = vector.multi_reduction <add>, %140, %cst_103 [0] : vector<256x128xf32> to vector<128xf32>
    %142 = vector.shape_cast %141 : vector<128xf32> to vector<1x128xf32>
    %143 = arith.addf %55, %142 : vector<1x128xf32>
    %c1_i32_104 = arith.constant 1 : i32
    %c0_105 = arith.constant 0 : index
    %c0_106 = arith.constant 0 : index
    %c0_107 = arith.constant 0 : index
    %c0_108 = arith.constant 0 : index
    %144 = vector.load %arg9[%c0_105, %c0_106, %c0_107, %c0_108] : memref<1x1x2x128xf32, #tpu.memory_space<vmem>>, vector<1x1x1x128xf32>
    %145 = vector.shape_cast %144 : vector<1x1x1x128xf32> to vector<1x128xf32>
    %146 = vector.shape_cast %139 : vector<1x128xf32> to vector<1x1x1x128xf32>
    tpu.vector_store %arg9[%c0_105, %c0_106, %c0_107, %c0_108], %146 {strides = array<i32>} : memref<1x1x2x128xf32, #tpu.memory_space<vmem>>, vector<1x1x1x128xf32>,
    %c0_109 = arith.constant 0 : index
    %c0_110 = arith.constant 0 : index
    %c1_111 = arith.constant 1 : index
    %c0_112 = arith.constant 0 : index
    %147 = vector.load %arg9[%c0_109, %c0_110, %c1_111, %c0_112] : memref<1x1x2x128xf32, #tpu.memory_space<vmem>>, vector<1x1x1x128xf32>
    %148 = vector.shape_cast %147 : vector<1x1x1x128xf32> to vector<1x128xf32>
    %149 = vector.shape_cast %143 : vector<1x128xf32> to vector<1x1x1x128xf32>
    tpu.vector_store %arg9[%c0_109, %c0_110, %c1_111, %c0_112], %149 {strides = array<i32>} : memref<1x1x2x128xf32, #tpu.memory_space<vmem>>, vector<1x1x1x128xf32>,
    return
  }
  func.func @transform_0(%arg0: i32, %arg1: i32) -> (i32, i32, i32) {
    %c0_i32 = arith.constant 0 : i32
    %c0_i32_0 = arith.constant 0 : i32
    return %arg0, %arg1, %c0_i32 : i32, i32, i32
  }
  func.func @transform_1(%arg0: i32, %arg1: i32) -> (i32, i32, i32) {
    %c16_i32 = arith.constant 16 : i32
    %0 = arith.muli %arg1, %c16_i32 : i32
    %c1_i32 = arith.constant 1 : i32
    %1 = arith.subi %0, %c1_i32 : i32
    %c0_i32 = arith.constant 0 : i32
    %2 = arith.maxsi %1, %c0_i32 : i32
    %c0_i32_0 = arith.constant 0 : i32
    %c0_i32_1 = arith.constant 0 : i32
    return %arg0, %2, %c0_i32_0 : i32, i32, i32
  }
  func.func @transform_2(%arg0: i32, %arg1: i32) -> (i32, i32, i32) {
    %c1_i32 = arith.constant 1 : i32
    %0 = arith.addi %arg1, %c1_i32 : i32
    %c16_i32 = arith.constant 16 : i32
    %1 = arith.muli %0, %c16_i32 : i32
    %c15_i32 = arith.constant 15 : i32
    %2 = arith.minsi %1, %c15_i32 : i32
    %c0_i32 = arith.constant 0 : i32
    %c0_i32_0 = arith.constant 0 : i32
    return %arg0, %2, %c0_i32 : i32, i32, i32
  }
  func.func @transform_3(%arg0: i32, %arg1: i32) -> (i32, i32) {
    %c0_i32 = arith.constant 0 : i32
    %c0_i32_0 = arith.constant 0 : i32
    %c0_i32_1 = arith.constant 0 : i32
    return %c0_i32, %c0_i32_0 : i32, i32
  }
  func.func @transform_4(%arg0: i32, %arg1: i32) -> (i32, i32) {
    %c0_i32 = arith.constant 0 : i32
    %c0_i32_0 = arith.constant 0 : i32
    %c0_i32_1 = arith.constant 0 : i32
    return %c0_i32, %c0_i32_0 : i32, i32
  }
  func.func @transform_5(%arg0: i32, %arg1: i32) -> (i32, i32, i32, i32) {
    %c0_i32 = arith.constant 0 : i32
    %c0_i32_0 = arith.constant 0 : i32
    %c0_i32_1 = arith.constant 0 : i32
    %c0_i32_2 = arith.constant 0 : i32
    %c0_i32_3 = arith.constant 0 : i32
    return %c0_i32, %c0_i32_0, %c0_i32_1, %c0_i32_2 : i32, i32, i32, i32
  }
  func.func @transform_6(%arg0: i32, %arg1: i32) -> (i32, i32, i32) {
    %c0_i32 = arith.constant 0 : i32
    %c0_i32_0 = arith.constant 0 : i32
    return %arg0, %arg1, %c0_i32 : i32, i32, i32
  }
  func.func @transform_7(%arg0: i32, %arg1: i32) -> (i32, i32, i32, i32) {
    %c0_i32 = arith.constant 0 : i32
    %c0_i32_0 = arith.constant 0 : i32
    %c0_i32_1 = arith.constant 0 : i32
    return %arg0, %arg1, %c0_i32, %c0_i32_0 : i32, i32, i32, i32
  }
}

</mosaic_0001>

<bundles_post_ra>
// kernel: double_conv.5
= control target key start
LH: loop header
LB: loop body
LE: loop exit
PB: predicated region body
PF: predicated region fallthrough
CT: control target
= control target key end

     0   :  { %s666_s12 = smov 0   ;;  %s668_s13 = smov 0   ;;  %s861_s0 = inlined_call_operand.vmem [shape: bf16[2,256,128], index: 0, kind: input, shape index: {}]   ;;  %s862_s1 = inlined_call_operand.vmem [shape: f32[1,8], index: 1, kind: input, shape index: {}]   ;;  %s863_s2 = inlined_call_operand.vmem [shape: f32[1,8], index: 2, kind: input, shape index: {}]   ;;  %s864_s3 = inlined_call_operand.vmem [shape: f32[2,256,8], index: 3, kind: output, shape index: {}]  }
   0x1   :  { %s670_s14 = smov 0  }
   0x2 LB: > { %s25_s15 = sadd.s32 1, %s640_s13  ;;  %p508_p0 = scmp.ge.s32.totalorder %s644_s14, 1  ;;  %s644_s14 = sphi %s670_s14, %s13_s14   ;;  %s640_s13 = sphi %s668_s13, %s866_s13   ;;  %s636_s12 = sphi %s666_s12, %s865_s12  }
   0x3   : > { %p27_p1 = scmp.ge.s32.totalorder %s25_s15, 2  ;;  %p158_p2 = scmp.lt.s32.totalorder %s644_s14, 3 }
   0x5   : > { %s868_s15 = smov (%p27_p1, %s25_s15), 0  ;;  %p159_p3 = pnand %p508_p0, %p158_p2 }
   0x6   : > { %p191_p4 = scmp.lt.s32.totalorder (!%p159_p3), %s636_s12, 1  ;;  %v695_v0 = vld [vmem:[%s862_s1] ss:$0 sm:$0xff] (!%p159_p3)  ;;  %vm384_vm0 = vcmask (!%p159_p3), 64512  }
   0x7   : > { %162 = sbr.rel (%p159_p3) target bundleno = 54 (0x36), region = 32  ;;  %v704_v9 = vld [vmem:[%s863_s2] ss:$0 sm:$0xff] (!%p159_p3) }
   0xe   : > { %s870_s12 = smov (!%p191_p4, %s636_s12), 1 }
   0xf   : > { %s517_s16 = sshll.u32 %s870_s12, 7  ;;  %s518_s24 = sshll.u32 %s870_s12, 8 }
  0x10   : > { %s690_s19 = scalar_lea.vmem %s861_s0, %s517_s16  ;;  %s722_s27 = scalar_lea.vmem %s864_s3, %s518_s24 }
  0x11   : > { %v520_v1 = vld [vmem:[%s690_s19] sm:$0xff]   ;;  %v583_v2 = vld [vmem:[%s690_s19 + $0x8] sm:$0xff]   ;;  %v584_v3 = vld [vmem:[%s690_s19 + $0x10] sm:$0xff]  }
  0x12   : > { %v521_v4 = vunpack.c.l.bf16 %v520_v1  ;;  %v522_v5 = vunpack.c.h.bf16 %v520_v1  ;;  %v525_v6 = vunpack.c.l.bf16 %v583_v2  ;;  %v526_v7 = vunpack.c.h.bf16 %v583_v2  ;;  %v585_v8 = vld [vmem:[%s690_s19 + $0x18] sm:$0xff]   ;;  %v586_v30 = vld [vmem:[%s690_s19 + $0x20] sm:$0xff]   ;;  %v587_v31 = vld [vmem:[%s690_s19 + $0x28] sm:$0xff]  }
  0x13   : > { %v529_v10 = vunpack.c.l.bf16 %v584_v3  ;;  %v530_v11 = vunpack.c.h.bf16 %v584_v3  ;;  %v533_v12 = vunpack.c.l.bf16 %v585_v8  ;;  %v534_v13 = vunpack.c.h.bf16 %v585_v8  ;;  %v588_v36 = vld [vmem:[%s690_s19 + $0x30] sm:$0xff]   ;;  %v589_v37 = vld [vmem:[%s690_s19 + $0x38] sm:$0xff]   ;;  %v590_v3 = vld [vmem:[%s690_s19 + $0x40] sm:$0xff]  }
  0x14   : > { %v281_v14 = vmul.f32 %v521_v4, %v695_v0  ;;  %v282_v15 = vmul.f32 %v522_v5, %v695_v0  ;;  %v283_v16 = vmul.f32 %v525_v6, %v695_v0  ;;  %v284_v17 = vmul.f32 %v526_v7, %v695_v0  ;;  %v591_v4 = vld [vmem:[%s690_s19 + $0x48] sm:$0xff]  }
  0x15   : > { %v285_v18 = vmul.f32 %v529_v10, %v695_v0  ;;  %v286_v19 = vmul.f32 %v530_v11, %v695_v0  ;;  %v287_v20 = vmul.f32 %v533_v12, %v695_v0  ;;  %v288_v21 = vmul.f32 %v534_v13, %v695_v0  ;;  %v592_v10 = vld [vmem:[%s690_s19 + $0x50] sm:$0xff]   ;;  %v593_v11 = vld [vmem:[%s690_s19 + $0x58] sm:$0xff]  }
  0x16   : > { %v320_v22 = vadd.f32 %v704_v9, %v281_v14  ;;  %v321_v23 = vadd.f32 %v704_v9, %v282_v15  ;;  %v322_v24 = vadd.f32 %v704_v9, %v283_v16  ;;  %v323_v25 = vadd.f32 %v704_v9, %v284_v17 }
  0x17   : > { %v324_v26 = vadd.f32 %v704_v9, %v285_v18  ;;  %v325_v27 = vadd.f32 %v704_v9, %v286_v19  ;;  %v326_v28 = vadd.f32 %v704_v9, %v287_v20  ;;  %v327_v29 = vadd.f32 %v704_v9, %v288_v21 }
  0x18   : > { %v352_v32 = vmax.f32 %v320_v22, 0.0  ;;  %v353_v33 = vmax.f32 %v321_v23, 0.0  ;;  %v354_v34 = vmax.f32 %v322_v24, 0.0  ;;  %v355_v35 = vmax.f32 %v323_v25, 0.0 }
  0x19   : > { %v356_v38 = vmax.f32 %v324_v26, 0.0  ;;  %v357_v39 = vmax.f32 %v325_v27, 0.0  ;;  %v358_v40 = vmax.f32 %v326_v28, 0.0  ;;  %v359_v41 = vmax.f32 %v327_v29, 0.0 }
  0x1a   : > { %385 = vst.msk [vmem:[%s722_s27] sm:$0xff] %vm384_vm0, %v352_v32  ;;  %386 = vst.msk [vmem:[%s722_s27 + $0x8] sm:$0xff] %vm384_vm0, %v353_v33  ;;  %v537_v42 = vunpack.c.l.bf16 %v586_v30  ;;  %v538_v43 = vunpack.c.h.bf16 %v586_v30  ;;  %v541_v44 = vunpack.c.l.bf16 %v587_v31  ;;  %v542_v45 = vunpack.c.h.bf16 %v587_v31 }
  0x1b   : > { %387 = vst.msk [vmem:[%s722_s27 + $0x10] sm:$0xff] %vm384_vm0, %v354_v34  ;;  %388 = vst.msk [vmem:[%s722_s27 + $0x18] sm:$0xff] %vm384_vm0, %v355_v35  ;;  %v545_v46 = vunpack.c.l.bf16 %v588_v36  ;;  %v546_v47 = vunpack.c.h.bf16 %v588_v36  ;;  %v549_v48 = vunpack.c.l.bf16 %v589_v37  ;;  %v550_v49 = vunpack.c.h.bf16 %v589_v37 }
  0x1c   : > { %389 = vst.msk [vmem:[%s722_s27 + $0x20] sm:$0xff] %vm384_vm0, %v356_v38  ;;  %390 = vst.msk [vmem:[%s722_s27 + $0x28] sm:$0xff] %vm384_vm0, %v357_v39  ;;  %v289_v50 = vmul.f32 %v537_v42, %v695_v0  ;;  %v290_v51 = vmul.f32 %v538_v43, %v695_v0  ;;  %v291_v52 = vmul.f32 %v541_v44, %v695_v0  ;;  %v553_v16 = vunpack.c.l.bf16 %v590_v3 }
  0x1d   : > { %391 = vst.msk [vmem:[%s722_s27 + $0x30] sm:$0xff] %vm384_vm0, %v358_v40  ;;  %392 = vst.msk [vmem:[%s722_s27 + $0x38] sm:$0xff] %vm384_vm0, %v359_v41  ;;  %v292_v53 = vmul.f32 %v542_v45, %v695_v0  ;;  %v293_v54 = vmul.f32 %v545_v46, %v695_v0  ;;  %v294_v55 = vmul.f32 %v546_v47, %v695_v0  ;;  %v554_v17 = vunpack.c.h.bf16 %v590_v3  ;;  %v594_v40 = vld [vmem:[%s690_s19 + $0x60] sm:$0xff]   ;;  %v595_v41 = vld [vmem:[%s690_s19 + $0x68] sm:$0xff]  }
  0x1e   : > { %v295_v56 = vmul.f32 %v549_v48, %v695_v0  ;;  %v296_v57 = vmul.f32 %v550_v49, %v695_v0  ;;  %v328_v58 = vadd.f32 %v704_v9, %v289_v50  ;;  %v329_v59 = vadd.f32 %v704_v9, %v290_v51  ;;  %v596_v46 = vld [vmem:[%s690_s19 + $0x70] sm:$0xff]   ;;  %v597_v47 = vld [vmem:[%s690_s19 + $0x78] sm:$0xff]  }
  0x1f   : > { %v330_v60 = vadd.f32 %v704_v9, %v291_v52  ;;  %v331_v61 = vadd.f32 %v704_v9, %v292_v53  ;;  %v332_v62 = vadd.f32 %v704_v9, %v293_v54  ;;  %v333_v63 = vadd.f32 %v704_v9, %v294_v55 }
  0x20   : > { %v334_v1 = vadd.f32 %v704_v9, %v295_v56  ;;  %v335_v2 = vadd.f32 %v704_v9, %v296_v57  ;;  %v360_v5 = vmax.f32 %v328_v58, 0.0  ;;  %v361_v6 = vmax.f32 %v329_v59, 0.0 }
  0x21   : > { %v362_v7 = vmax.f32 %v330_v60, 0.0  ;;  %v363_v8 = vmax.f32 %v331_v61, 0.0  ;;  %v364_v12 = vmax.f32 %v332_v62, 0.0  ;;  %v365_v13 = vmax.f32 %v333_v63, 0.0 }
  0x22   : > { %v366_v14 = vmax.f32 %v334_v1, 0.0  ;;  %v367_v15 = vmax.f32 %v335_v2, 0.0  ;;  %393 = vst.msk [vmem:[%s722_s27 + $0x40] sm:$0xff] %vm384_vm0, %v360_v5  ;;  %394 = vst.msk [vmem:[%s722_s27 + $0x48] sm:$0xff] %vm384_vm0, %v361_v6  ;;  %v557_v18 = vunpack.c.l.bf16 %v591_v4  ;;  %v558_v19 = vunpack.c.h.bf16 %v591_v4 }
  0x23   : > { %395 = vst.msk [vmem:[%s722_s27 + $0x50] sm:$0xff] %vm384_vm0, %v362_v7  ;;  %396 = vst.msk [vmem:[%s722_s27 + $0x58] sm:$0xff] %vm384_vm0, %v363_v8  ;;  %v561_v20 = vunpack.c.l.bf16 %v592_v10  ;;  %v562_v21 = vunpack.c.h.bf16 %v592_v10  ;;  %v565_v22 = vunpack.c.l.bf16 %v593_v11  ;;  %v566_v23 = vunpack.c.h.bf16 %v593_v11 }
  0x24   : > { %397 = vst.msk [vmem:[%s722_s27 + $0x60] sm:$0xff] %vm384_vm0, %v364_v12  ;;  %398 = vst.msk [vmem:[%s722_s27 + $0x68] sm:$0xff] %vm384_vm0, %v365_v13  ;;  %v297_v24 = vmul.f32 %v553_v16, %v695_v0  ;;  %v298_v25 = vmul.f32 %v554_v17, %v695_v0  ;;  %v299_v26 = vmul.f32 %v557_v18, %v695_v0  ;;  %v569_v52 = vunpack.c.l.bf16 %v594_v40 }
  0x25   : > { %399 = vst.msk [vmem:[%s722_s27 + $0x70] sm:$0xff] %vm384_vm0, %v366_v14  ;;  %400 = vst.msk [vmem:[%s722_s27 + $0x78] sm:$0xff] %vm384_vm0, %v367_v15  ;;  %v300_v27 = vmul.f32 %v558_v19, %v695_v0  ;;  %v301_v28 = vmul.f32 %v561_v20, %v695_v0  ;;  %v302_v29 = vmul.f32 %v562_v21, %v695_v0  ;;  %v570_v53 = vunpack.c.h.bf16 %v594_v40 }
  0x26   : > { %v303_v30 = vmul.f32 %v565_v22, %v695_v0  ;;  %v304_v31 = vmul.f32 %v566_v23, %v695_v0  ;;  %v336_v32 = vadd.f32 %v704_v9, %v297_v24  ;;  %v337_v33 = vadd.f32 %v704_v9, %v298_v25 }
  0x27   : > { %v338_v34 = vadd.f32 %v704_v9, %v299_v26  ;;  %v339_v35 = vadd.f32 %v704_v9, %v300_v27  ;;  %v340_v36 = vadd.f32 %v704_v9, %v301_v28  ;;  %v341_v37 = vadd.f32 %v704_v9, %v302_v29 }
  0x28   : > { %v342_v38 = vadd.f32 %v704_v9, %v303_v30  ;;  %v343_v39 = vadd.f32 %v704_v9, %v304_v31  ;;  %v368_v42 = vmax.f32 %v336_v32, 0.0  ;;  %v369_v43 = vmax.f32 %v337_v33, 0.0 }
  0x29   : > { %v370_v44 = vmax.f32 %v338_v34, 0.0  ;;  %v371_v45 = vmax.f32 %v339_v35, 0.0  ;;  %v372_v48 = vmax.f32 %v340_v36, 0.0  ;;  %v373_v49 = vmax.f32 %v341_v37, 0.0 }
  0x2a   : > { %v374_v50 = vmax.f32 %v342_v38, 0.0  ;;  %v375_v51 = vmax.f32 %v343_v39, 0.0  ;;  %401 = vst.msk [vmem:[%s722_s27 + $0x80] sm:$0xff] %vm384_vm0, %v368_v42  ;;  %402 = vst.msk [vmem:[%s722_s27 + $0x88] sm:$0xff] %vm384_vm0, %v369_v43  ;;  %v573_v54 = vunpack.c.l.bf16 %v595_v41  ;;  %v574_v55 = vunpack.c.h.bf16 %v595_v41 }
  0x2b   : > { %403 = vst.msk [vmem:[%s722_s27 + $0x90] sm:$0xff] %vm384_vm0, %v370_v44  ;;  %404 = vst.msk [vmem:[%s722_s27 + $0x98] sm:$0xff] %vm384_vm0, %v371_v45  ;;  %v577_v56 = vunpack.c.l.bf16 %v596_v46  ;;  %v578_v57 = vunpack.c.h.bf16 %v596_v46  ;;  %v581_v58 = vunpack.c.l.bf16 %v597_v47  ;;  %v582_v59 = vunpack.c.h.bf16 %v597_v47 }
  0x2c   : > { %405 = vst.msk [vmem:[%s722_s27 + $0xa0] sm:$0xff] %vm384_vm0, %v372_v48  ;;  %406 = vst.msk [vmem:[%s722_s27 + $0xa8] sm:$0xff] %vm384_vm0, %v373_v49  ;;  %v305_v60 = vmul.f32 %v569_v52, %v695_v0  ;;  %v306_v61 = vmul.f32 %v570_v53, %v695_v0  ;;  %v307_v62 = vmul.f32 %v573_v54, %v695_v0 }
  0x2d   : > { %407 = vst.msk [vmem:[%s722_s27 + $0xb0] sm:$0xff] %vm384_vm0, %v374_v50  ;;  %408 = vst.msk [vmem:[%s722_s27 + $0xb8] sm:$0xff] %vm384_vm0, %v375_v51  ;;  %v308_v63 = vmul.f32 %v574_v55, %v695_v0  ;;  %v309_v1 = vmul.f32 %v577_v56, %v695_v0  ;;  %v310_v2 = vmul.f32 %v578_v57, %v695_v0 }
  0x2e   : > { %v311_v3 = vmul.f32 %v581_v58, %v695_v0  ;;  %v312_v4 = vmul.f32 %v582_v59, %v695_v0  ;;  %v344_v5 = vadd.f32 %v704_v9, %v305_v60  ;;  %v345_v6 = vadd.f32 %v704_v9, %v306_v61 }
  0x2f   : > { %v346_v7 = vadd.f32 %v704_v9, %v307_v62  ;;  %v347_v8 = vadd.f32 %v704_v9, %v308_v63  ;;  %v348_v10 = vadd.f32 %v704_v9, %v309_v1  ;;  %v349_v11 = vadd.f32 %v704_v9, %v310_v2 }
  0x30   : > { %v350_v0 = vadd.f32 %v704_v9, %v311_v3  ;;  %v351_v12 = vadd.f32 %v704_v9, %v312_v4  ;;  %v376_v13 = vmax.f32 %v344_v5, 0.0  ;;  %v377_v14 = vmax.f32 %v345_v6, 0.0 }
  0x31   : > { %v378_v15 = vmax.f32 %v346_v7, 0.0  ;;  %v379_v16 = vmax.f32 %v347_v8, 0.0  ;;  %v380_v17 = vmax.f32 %v348_v10, 0.0  ;;  %v381_v18 = vmax.f32 %v349_v11, 0.0 }
  0x32   : > { %v382_v19 = vmax.f32 %v350_v0, 0.0  ;;  %v383_v20 = vmax.f32 %v351_v12, 0.0  ;;  %409 = vst.msk [vmem:[%s722_s27 + $0xc0] sm:$0xff] %vm384_vm0, %v376_v13  ;;  %410 = vst.msk [vmem:[%s722_s27 + $0xc8] sm:$0xff] %vm384_vm0, %v377_v14 }
  0x33   : > { %411 = vst.msk [vmem:[%s722_s27 + $0xd0] sm:$0xff] %vm384_vm0, %v378_v15  ;;  %412 = vst.msk [vmem:[%s722_s27 + $0xd8] sm:$0xff] %vm384_vm0, %v379_v16 }
  0x34   : > { %413 = vst.msk [vmem:[%s722_s27 + $0xe0] sm:$0xff] %vm384_vm0, %v380_v17  ;;  %414 = vst.msk [vmem:[%s722_s27 + $0xe8] sm:$0xff] %vm384_vm0, %v381_v18 }
  0x35   : > { %415 = vst.msk [vmem:[%s722_s27 + $0xf0] sm:$0xff] %vm384_vm0, %v382_v19  ;;  %416 = vst.msk [vmem:[%s722_s27 + $0xf8] sm:$0xff] %vm384_vm0, %v383_v20 }
  0x36 PF: > { %s13_s14 = sadd.s32 1, %s644_s14   ;;  %s865_s12 = smov %s640_s13 }
  0x37   : > { %p10_p5 = scmp.ge.s32.totalorder %s13_s14, 4   ;;  %s866_s13 = smov %s868_s15 }
  0x39   :  { %12 = sbr.rel (!%p10_p5) target bundleno = 2 (0x2), region = 62 }

// kernel: double_conv.3
= control target key start
LH: loop header
LB: loop body
LE: loop exit
PB: predicated region body
PF: predicated region fallthrough
CT: control target
= control target key end

     0   :  { %s7562_s18 = smov 0   ;;  %s7564_s19 = smov 0   ;;  %s9497_s0 = inlined_call_operand.vmem [shape: bf16[2,16,16,8], index: 0, kind: input, shape index: {}, may-alias: {0,1,2}]   ;;  %s9498_s1 = inlined_call_operand.vmem [shape: bf16[2,16,16,8], index: 1, kind: input, shape index: {}, may-alias: {0,1,2}]   ;;  %s9499_s2 = inlined_call_operand.vmem [shape: bf16[2,16,16,8], index: 2, kind: input, shape index: {}, may-alias: {0,1,2}]   ;;  %s9500_s3 = inlined_call_operand.vmem [shape: bf16[3,3,8,128], index: 3, kind: input, shape index: {}]   ;;  %s9501_s4 = inlined_call_operand.vmem [shape: bf16[2,256,128], index: 4, kind: output, shape index: {0}]   ;;  %s9502_s5 = inlined_call_operand.vmem [shape: f32[2,1,2,128], index: 5, kind: output, shape index: {1}]  }
   0x1   :  { %s7566_s20 = smov 0  }
   0x2 LB: > { %s28_s21 = sadd.s32 1, %s7526_s19  ;;  %p6140_p0 = scmp.ge.s32.totalorder %s7530_s20, 1  ;;  %s7530_s20 = sphi %s7566_s20, %s16_s20   ;;  %s7526_s19 = sphi %s7564_s19, %s9615_s19   ;;  %s7522_s18 = sphi %s7562_s18, %s9614_s18  }
   0x3   : > { %p30_p1 = scmp.ge.s32.totalorder %s28_s21, 2  ;;  %p278_p2 = scmp.lt.s32.totalorder %s7530_s20, 3 }
   0x5   : > { %s9617_s21 = smov (%p30_p1, %s28_s21), 0  ;;  %p279_p3 = pnand %p6140_p0, %p278_p2 }
   0x7   : > { %282 = sbr.rel (%p279_p3) target bundleno = 695 (0x2b7), region = 36 }
   0xe   : > { %vm1629_vm0 = vcmask 1043456   ;;  %v6297_v0 = vld [vmem:[%s9500_s3 + $0x10] sm:$0xf]  ;;  %v6150_v1 = vld [vmem:[%s9500_s3 + $0x4] sm:$0xf]  ;;  %p349_p4 = scmp.lt.s32.totalorder %s7522_s18, 1 }
   0xf   : > { %7382 = vmatprep.subr.msk.bf16.mxu0 %vm1629_vm0, %v6297_v0  ;;  %7378 = vmatprep.subr.msk.bf16.mxu1 %vm1629_vm0, %v6150_v1  ;;  %v7589_v2 = vsel %vm1629_vm0, %v6297_v0, 0  ;;  %v1631_v3 = vsel %vm1629_vm0, %v6150_v1, 0  ;;  %vm447_vm1 = vsmask.f32 256  ;;  %vm448_vm2 = vsmask.f32 4368 }
  0x10   : > { %9526 = vst [vmem:[#allocation3_spill] sm:$0xff] %v7589_v2  ;;  %6951 = vmatpush3.bf16.msra.mxu0 %v7589_v2  ;;  %6815 = vmatpush3.bf16.msra.mxu1 %v1631_v3  ;;  %s9619_s18 = smov (!%p349_p4, %s7522_s18), 1  ;;  %vm772_vm3 = vsmask.f32 7938  ;;  %vm771_vm4 = vcmask 60416   ;;  %vm779_vm5 = vcmask 57344   ;;  %vm7612_vm6 = vmor %vm447_vm1, %vm448_vm2 }
  0x11   : > { %s7596_s26 = sshll.u32 %s9619_s18, 7  ;;  %v774_v12 = vld [vmem:[#allocation2 + $0xc] sm:$0xf]  ;;  %v781_v13 = vld [vmem:[#allocation2 + $0x14] sm:$0x1]  ;;  %vm7619_vm7 = vmand %vm771_vm4, %vm772_vm3  ;;  %v9531_v23 = vmov 0 }
  0x12   : > { %s7602_s29 = scalar_lea.vmem %s9497_s0, %s7596_s26  ;;  %s371_s7 = scalar_lea.vmem %s9498_s1, %s7596_s26  ;;  %vm7625_vm8 = vmand %vm779_vm5, %vm447_vm1  ;;  %v784_v26 = vld [vmem:[#allocation2 + $0x18] sm:$0xf]  ;;  %v1126_v33 = vld [vmem:[%s9500_s3] sm:$0xf]  ;;  %vm1143_vm10 = vsmask.f32 3328 }
  0x13   : > { %v411_v4 = vld [vmem:[%s7602_s29] sm:$0xf]  ;;  %v412_v5 = vld [vmem:[%s7602_s29 + $0x4] sm:$0xf]  ;;  %v413_v10 = vld [vmem:[%s7602_s29 + $0x8] sm:$0xf]  ;;  %7379 = vmatprep.subr.msk.bf16.mxu1 %vm1629_vm0, %v1126_v33  ;;  %s9462_s14 = scalar_lea.vmem %s9501_s4, %s7596_s26 }
  0x14   : > { %v451_v6 = vshrl.u32 %v411_v4, 16  ;;  %v454_v7 = vshll.u32 %v411_v4, 16  ;;  %v459_v8 = vshrl.u32 %v412_v5, 16  ;;  %v462_v9 = vshll.u32 %v412_v5, 16  ;;  %v414_v14 = vld [vmem:[%s7602_s29 + $0xc] sm:$0xf]  ;;  %vm7670_vm9 = vmand %vm779_vm5, %vm772_vm3 }
  0x15   : > { %v468_v15 = vshrl.u32 %v413_v10, 16  ;;  %v471_v16 = vshll.u32 %v413_v10, 16  ;;  %v443_v17 = vld [vmem:[%s371_s7] sm:$0xf]  ;;  %v476_v21 = vshrl.u32 %v414_v14, 16  ;;  %v9532_v23 = vsel %vm7625_vm8, 4294967295, %v9531_v23 }
  0x16   : > { %v453_v18 = vrot.slane %v451_v6, 7  ;;  %v461_v19 = vrot.slane %v459_v8, 7  ;;  %v444_v22 = vld [vmem:[%s371_s7 + $0x4] sm:$0xf]  ;;  %9533 = vst [vmem:[#allocation4_spill] sm:$0xff] %v9532_v23  ;;  %v479_v25 = vshll.u32 %v414_v14, 16 }
  0x17   : > { %v470_v24 = vrot.slane %v468_v15, 7  ;;  %v919_v27 = vmul.bf16 0.0, %v443_v17  ;;  %v920_v28 = vmul.bf16 0.0, %v444_v22  ;;  %v6346_v34 = vld [vmem:[%s9500_s3 + $0x14] sm:$0xf]  ;;  %v478_v37 = vrot.slane %v476_v21, 7 }
  0x18   : > { %v456_v29 = vor.u32 %v454_v7, %v453_v18  ;;  %v457_v30 = vrot.slane %v453_v18, 4  ;;  %v464_v31 = vor.u32 %v462_v9, %v461_v19  ;;  %v466_v32 = vrot.slane %v461_v19, 4  ;;  %7384 = vmatprep.subr.msk.bf16.mxu0 %vm1629_vm0, %v6346_v34  ;;  %v788_v42 = vld [vmem:[#allocation2 + $0x20] sm:$0x1]  ;;  %v415_v48 = vld [vmem:[%s7602_s29 + $0x10] sm:$0xf] }
  0x19   : > { %v473_v35 = vor.u32 %v471_v16, %v470_v24  ;;  %v474_v36 = vrot.slane %v470_v24, 4  ;;  %v922_v38 = vshrl.u32 %v919_v27, 16  ;;  %v925_v43 = vshll.u32 %v919_v27, 16  ;;  %v416_v49 = vld [vmem:[%s7602_s29 + $0x14] sm:$0xf]  ;;  %s6531_s22 = sadd.s32 120, %s7596_s26 }
  0x1a   : > { %v465_v39 = vsel %vm7612_vm6, %v457_v30, %v464_v31  ;;  %v775_v40 = vsel %vm7619_vm7, %v456_v29, %v774_v12  ;;  %v782_v41 = vsel %vm7625_vm8, %v466_v32, %v781_v13  ;;  %v481_v44 = vor.u32 %v479_v25, %v478_v37  ;;  %v941_v52 = vld [vmem:[#allocation2] sm:$0xf]  ;;  %v7649_v53 = vld [vmem:[%s7602_s29 + $0x18] sm:$0xf]  ;;  %v7657_v62 = vld [vmem:[%s7602_s29 + $0x1c] sm:$0xf]  ;;  %s388_s30 = scalar_lea.vmem %s9499_s2, %s6531_s22 }
  0x1b   : > { %776 = vst [vmem:[#allocation2 + $0xc] sm:$0xf] %v775_v40  ;;  %778 = vst.msk [vmem:[#allocation2 + $0x10] sm:$0xf] %vm771_vm4, %v465_v39  ;;  %v483_v45 = vrot.slane %v478_v37, 4  ;;  %v785_v46 = vsel %vm7619_vm7, %v473_v35, %v784_v26  ;;  %v924_v47 = vrot.slane %v922_v38, 7 }
  0x1c   : > { %783 = vst [vmem:[#allocation2 + $0x14] sm:$0x1] %v782_v41  ;;  %786 = vst [vmem:[#allocation2 + $0x18] sm:$0xf] %v785_v46  ;;  %v930_v50 = vshrl.u32 %v920_v28, 16  ;;  %v933_v51 = vshll.u32 %v920_v28, 16  ;;  %v482_v54 = vsel %vm7612_vm6, %v474_v36, %v481_v44 }
  0x1d   : > { %v789_v55 = vsel %vm7625_vm8, %v483_v45, %v788_v42  ;;  %v927_v56 = vor.u32 %v925_v43, %v924_v47  ;;  %v928_v57 = vrot.slane %v924_v47, 4  ;;  %787 = vst.msk [vmem:[#allocation2 + $0x1c] sm:$0xf] %vm771_vm4, %v482_v54  ;;  %v485_v59 = vshrl.u32 %v415_v48, 16  ;;  %v945_v0 = vld [vmem:[#allocation2 + $0x8] sm:$0x1] }
  0x1e   : > { %790 = vst [vmem:[#allocation2 + $0x20] sm:$0x1] %v789_v55  ;;  %v932_v58 = vrot.slane %v930_v50, 7  ;;  %v488_v60 = vshll.u32 %v415_v48, 16  ;;  %v493_v61 = vshrl.u32 %v416_v49, 16  ;;  %v7662_v1 = vsel %vm1629_vm0, %v1126_v33, 0 }
  0x1f   : > { %v942_v63 = vsel %vm7619_vm7, %v927_v56, %v941_v52  ;;  %v7665_v3 = vsel %vm1629_vm0, %v6346_v34, 0  ;;  %v502_v4 = vshrl.u32 %v7649_v53, 16  ;;  %v9534_v5 = vmov 0  ;;  %v791_v12 = vld [vmem:[#allocation2 + $0x24] sm:$0xf]  ;;  %s6149_s26 = sshll.u32 %s9619_s18, 1 }
  0x20   : > { %v9535_v5 = vsel %vm7670_vm9, 4294967295, %v9534_v5  ;;  %v935_v6 = vor.u32 %v933_v51, %v932_v58  ;;  %v937_v7 = vrot.slane %v932_v58, 4  ;;  %943 = vst [vmem:[#allocation2] sm:$0xf] %v942_v63  ;;  %v487_v8 = vrot.slane %v485_v59, 7  ;;  %s409_s17 = scalar_lea.vmem %s9502_s5, %s6149_s26 }
  0x21   : > { %9536 = vst [vmem:[#allocation5_spill] sm:$0xff] %v9535_v5  ;;  %v7674_v9 = vrot.slane %v493_v61, 7  ;;  %v496_v10 = vshll.u32 %v416_v49, 16  ;;  %v7676_v13 = vrot.slane %v502_v4, 7  ;;  %v505_v14 = vshll.u32 %v7649_v53, 16 }
  0x22   : > { %v510_v15 = vshrl.u32 %v7657_v62, 16  ;;  %v985_v16 = vld [vmem:[#allocation2 + $0xc] sm:$0x1]  ;;  %vm1144_vm11 = vsmask.f32 7440  ;;  %v936_v19 = vsel %vm7612_vm6, %v928_v57, %v935_v6  ;;  %v946_v21 = vsel %vm7625_vm8, %v937_v7, %v945_v0 }
  0x23   : > { %v1040_v17 = vld [vmem:[#allocation2 + $0x14] sm:$0x1]  ;;  %v7680_v18 = vld [vmem:[#allocation2 + $0x10] sm:$0xf]  ;;  %v490_v22 = vor.u32 %v488_v60, %v487_v8  ;;  %v986_v24 = vsel %vm7625_vm8, 0, %v985_v16  ;;  %v491_v32 = vrot.slane %v487_v8, 4  ;;  %v498_v39 = vor.u32 %v496_v10, %v7674_v9  ;;  %vm7746_vm13 = vmor %vm1143_vm10, %vm1144_vm11 }
  0x24   : > { %v1041_v25 = vsel %vm7670_vm9, 0, %v1040_v17  ;;  %v2963_v26 = vshll.u32 %v7680_v18, 16  ;;  %v2967_v27 = vshrl.u32 %v7680_v18, 16  ;;  %v988_v28 = vld [vmem:[#allocation2 + $0x18] sm:$0x1]  ;;  %v500_v33 = vrot.slane %v7674_v9, 4 }
  0x25   : > { %944 = vst.msk [vmem:[#allocation2 + $0x4] sm:$0xf] %vm771_vm4, %v936_v19  ;;  %947 = vst [vmem:[#allocation2 + $0x8] sm:$0x1] %v946_v21  ;;  %v7694_v29 = vld [vmem:[%s7602_s29 + $0x20] sm:$0xf]  ;;  %v792_v40 = vsel %vm7619_vm7, %v490_v22, %v791_v12  ;;  %v507_v50 = vor.u32 %v505_v14, %v7676_v13  ;;  %v499_v59 = vsel %vm7612_vm6, %v491_v32, %v498_v39 }
  0x26   : > { %987 = vst [vmem:[#allocation2 + $0xc] sm:$0x1] %v986_v24  ;;  %1042 = vst [vmem:[#allocation2 + $0x14] sm:$0x1] %v1041_v25  ;;  %v989_v30 = vsel %vm7625_vm8, 0, %v988_v28  ;;  %v513_v34 = vshll.u32 %v7657_v62, 16 }
  0x27   : > { %v1097_v31 = vld [vmem:[#allocation2 + $0x10] sm:$0xf]  ;;  %v7700_v35 = vrot.slane %v2963_v26, 5  ;;  %v2969_v36 = vrot.slane %v2967_v27, 4  ;;  %990 = vst [vmem:[#allocation2 + $0x18] sm:$0x1] %v989_v30 }
  0x28   : > { %v1043_v37 = vld [vmem:[#allocation2 + $0x20] sm:$0x1]  ;;  %v7702_v38 = vld [vmem:[#allocation2 + $0x1c] sm:$0xf]  ;;  %793 = vst [vmem:[#allocation2 + $0x24] sm:$0xf] %v792_v40 }
  0x29   : > { %v1044_v41 = vsel %vm7670_vm9, 0, %v1043_v37  ;;  %v2987_v42 = vshll.u32 %v7702_v38, 16  ;;  %v2991_v43 = vshrl.u32 %v7702_v38, 16  ;;  %v3704_v44 = vrot.slane %v7702_v38, 5  ;;  %v982_v46 = vld [vmem:[#allocation2] sm:$0x1] }
  0x2a   : > { %v2970_v45 = vor.u32 %v2969_v36, %v7700_v35  ;;  %1045 = vst [vmem:[#allocation2 + $0x20] sm:$0x1] %v1044_v41  ;;  %v1180_v47 = vshll.u32 %v1097_v31, 16  ;;  %v1184_v48 = vshrl.u32 %v1097_v31, 16  ;;  %v795_v49 = vld [vmem:[#allocation2 + $0x2c] sm:$0x1] }
  0x2b   : > { %v7714_v51 = vrot.slane %v2987_v42, 5  ;;  %v2993_v52 = vrot.slane %v2991_v43, 4  ;;  %v983_v53 = vsel %vm7625_vm8, 0, %v982_v46  ;;  %v798_v54 = vld [vmem:[#allocation2 + $0x30] sm:$0xf]  ;;  %v519_v55 = vshrl.u32 %v7694_v29, 16 }
  0x2c   : > { %v3697_v56 = vrot.slane %v7680_v18, 5  ;;  %984 = vst [vmem:[#allocation2] sm:$0x1] %v983_v53  ;;  %v7720_v57 = vrot.slane %v1180_v47, 5  ;;  %v7722_v58 = vrot.slane %v1184_v48, 4  ;;  %v7726_v60 = vrot.slane %v2970_v45, 4 }
  0x2d   : > { %v7730_v61 = vrot.slane %v3704_v44, 4  ;;  %v1037_v63 = vld [vmem:[#allocation2 + $0x8] sm:$0x1]  ;;  %v1095_v0 = vld [vmem:[#allocation2 + $0x4] sm:$0xf]  ;;  %v796_v4 = vsel %vm7625_vm8, %v500_v33, %v795_v49  ;;  %v2994_v8 = vor.u32 %v2993_v52, %v7714_v51  ;;  %v799_v12 = vsel %vm7619_vm7, %v507_v50, %v798_v54 }
  0x2e   : > { %794 = vst.msk [vmem:[#allocation2 + $0x28] sm:$0xf] %vm771_vm4, %v499_v59  ;;  %v2905_v6 = vld [vmem:[#allocation2 + $0xc] sm:$0xf]  ;;  %v7735_v7 = vld [vmem:[#allocation2 + $0x14] sm:$0x1]  ;;  %v1187_v28 = vor.u32 %v7722_v58, %v7720_v57 }
  0x2f   : > { %v1038_v9 = vsel %vm7670_vm9, 0, %v1037_v63  ;;  %v1156_v10 = vshll.u32 %v1095_v0, 16  ;;  %797 = vst [vmem:[#allocation2 + $0x2c] sm:$0x1] %v796_v4  ;;  %vm1580_vm12 = vcmask 64512   ;;  %v2954_v14 = vshrl.u32 %v2905_v6, 16 }
  0x30   : > { %v2957_v16 = vshll.u32 %v2905_v6, 16  ;;  %v2973_v17 = vshll.u32 %v7735_v7, 16  ;;  %v2908_v19 = vld [vmem:[#allocation2 + $0x18] sm:$0xf]  ;;  %1039 = vst [vmem:[#allocation2 + $0x8] sm:$0x1] %v1038_v9 }
  0x31   : > { %v508_v21 = vrot.slane %v7676_v13, 4  ;;  %800 = vst [vmem:[#allocation2 + $0x30] sm:$0xf] %v799_v12  ;;  %v2978_v24 = vshrl.u32 %v2908_v19, 16  ;;  %v2981_v25 = vshll.u32 %v2908_v19, 16  ;;  %v7750_v26 = vrot.slane %v1156_v10, 5 }
  0x32   : > { %v1096_v27 = vld [vmem:[#allocation2 + $0xc] sm:$0xf]  ;;  %v2956_v30 = vrot.slane %v2954_v14, 4  ;;  %v2959_v31 = vrot.slane %v2957_v16, 5  ;;  %v2975_v32 = vrot.slane %v2973_v17, 5  ;;  %v1160_v36 = vshrl.u32 %v1095_v0, 16 }
  0x33   : > { %v7754_v33 = vld [vmem:[#allocation2 + $0x20] sm:$0x1]  ;;  %v2980_v37 = vrot.slane %v2978_v24, 4  ;;  %v2983_v39 = vrot.slane %v2981_v25, 5  ;;  %v2995_v40 = vrot.slane %v2994_v8, 4  ;;  %v1171_v47 = vshrl.u32 %v1096_v27, 16 }
  0x34   : > { %v2997_v41 = vshll.u32 %v7754_v33, 16  ;;  %v2960_v42 = vor.u32 %v2959_v31, %v2956_v30  ;;  %v2976_v43 = vsel %vm7746_vm13, %v7726_v60, %v2975_v32  ;;  %v1094_v45 = vld [vmem:[#allocation2] sm:$0xf]  ;;  %v1162_v46 = vrot.slane %v1160_v36, 4  ;;  %v1128_v58 = vld [vmem:[#allocation2 + $0x14] sm:$0x1] }
  0x35   : > { %v2984_v48 = vor.u32 %v2983_v39, %v2980_v37  ;;  %v1147_v50 = vshrl.u32 %v1094_v45, 16  ;;  %v1150_v52 = vshll.u32 %v1094_v45, 16  ;;  %v1173_v59 = vrot.slane %v1171_v47, 4  ;;  %v991_v14 = vld [vmem:[#allocation2 + $0x24] sm:$0x1] }
  0x36   : > { %v2999_v49 = vrot.slane %v2997_v41, 5  ;;  %v2961_v53 = vrot.slane %v2960_v42, 4  ;;  %v1163_v54 = vor.u32 %v1162_v46, %v7750_v26  ;;  %v1174_v63 = vshll.u32 %v1096_v27, 16  ;;  %v1046_v27 = vld [vmem:[#allocation2 + $0x2c] sm:$0x1] }
  0x37   : > { %vm2134_vm14 = vcmask 1042432   ;;  %vm2135_vm15 = vcmask 1046532   ;;  %v2985_v0 = vrot.slane %v2984_v48, 4  ;;  %v1127_v60 = vld [vmem:[#allocation2 + $0x8] sm:$0x1]  ;;  %v1149_v6 = vrot.slane %v1147_v50, 4 }
  0x38   : > { %v3000_v4 = vsel %vm7746_vm13, %v2995_v40, %v2999_v49  ;;  %v1152_v8 = vrot.slane %v1150_v52, 5  ;;  %v2966_v9 = vsel %vm7746_vm13, %v2961_v53, %v7700_v35  ;;  %v1164_v10 = vrot.slane %v1163_v54, 4  ;;  %v7771_v30 = vld [vmem:[#allocation2 + $0x28] sm:$0xf]  ;;  %v802_v48 = vld [vmem:[#allocation2 + $0x38] sm:$0x1]  ;;  %vm7812_vm1 = vmor %vm2134_vm14, %vm2135_vm15 }
  0x39   : > { %v1166_v12 = vshll.u32 %v1127_v60, 16  ;;  %v512_v16 = vrot.slane %v510_v15, 7  ;;  %v6298_v17 = vcombine.low %v2966_v9, %v2976_v43  ;;  %v2990_v19 = vsel %vm7746_vm13, %v2985_v0, %v7714_v51  ;;  %v994_v43 = vld [vmem:[#allocation2 + $0x30] sm:$0x1]  ;;  %v1098_v49 = vld [vmem:[#allocation2 + $0x18] sm:$0xf] }
  0x3a   : > { %v1153_v24 = vor.u32 %v1152_v8, %v1149_v6  ;;  %v1176_v25 = vrot.slane %v1174_v63, 5  ;;  %v6299_v31 = vcombine.low %v2990_v19, %v3000_v4  ;;  %v1188_v36 = vrot.slane %v1187_v28, 4  ;;  %v7803_v63 = vld [vmem:[#allocation2 + $0x28] sm:$0xf] }
  0x3b   : > { %v1168_v32 = vrot.slane %v1166_v12, 5  ;;  %v1190_v35 = vshll.u32 %v1128_v58, 16  ;;  %6952 = vmatprep.mubr.msk.bf16.mxu0 %vm1580_vm12, %v6298_v17  ;;  %v3707_v37 = vrot.slane %v7754_v33, 5  ;;  %v992_v40 = vsel %vm7625_vm8, 0, %v991_v14  ;;  %v1099_v58 = vld [vmem:[#allocation2 + $0x1c] sm:$0xf] }
  0x3c   : > { %v1154_v39 = vrot.slane %v1153_v24, 4  ;;  %v1177_v15 = vor.u32 %v1176_v25, %v1173_v59  ;;  %6953 = vmatmul.mubr.msk.bf16.vlgmr.msra.gmra.mrb[0].mxu0 %vm1580_vm12, %v6299_v31  ;;  %993 = vst [vmem:[#allocation2 + $0x24] sm:$0x1] %v992_v40  ;;  %v1047_v28 = vsel %vm7670_vm9, 0, %v1046_v27  ;;  %v3011_v42 = vshll.u32 %v7771_v30, 16 }
  0x3d   : > { %v1169_v51 = vsel %vm7746_vm13, %v1164_v10, %v1168_v32  ;;  %v1192_v41 = vrot.slane %v1190_v35, 5  ;;  %6985 = vmatpush3.bf16.msra.mxu0 %v7665_v3  ;;  %1048 = vst [vmem:[#allocation2 + $0x2c] sm:$0x1] %v1047_v28  ;;  %v3015_v46 = vshrl.u32 %v7771_v30, 16  ;;  %v515_v47 = vor.u32 %v513_v34, %v512_v16 }
  0x3e   : > { %v1159_v33 = vsel %vm7746_vm13, %v1154_v39, %v7750_v26  ;;  %v1178_v45 = vrot.slane %v1177_v15, 4  ;;  %v7792_v53 = vrot.slane %v3011_v42, 5  ;;  %v517_v54 = vrot.slane %v512_v16, 4  ;;  %v1129_v26 = vld [vmem:[#allocation2 + $0x20] sm:$0x1] }
  0x3f   : > { %v6151_v50 = vcombine.low %v1159_v33, %v1169_v51  ;;  %v1193_v52 = vsel %vm7746_vm13, %v1188_v36, %v1192_v41  ;;  %v3017_v59 = vrot.slane %v3015_v46, 4  ;;  %v516_v62 = vsel %vm7612_vm6, %v508_v21, %v515_v47 }
  0x40   : > { %v1183_v3 = vsel %vm7746_vm13, %v1178_v45, %v7720_v57  ;;  %v995_v34 = vsel %vm7625_vm8, 0, %v994_v43  ;;  %801 = vst.msk [vmem:[#allocation2 + $0x34] sm:$0xf] %vm771_vm4, %v516_v62  ;;  %v803_v4 = vsel %vm7625_vm8, %v517_v54, %v802_v48  ;;  %v1195_v57 = vshrl.u32 %v1098_v49, 16  ;;  %v7833_v45 = vld [vmem:[%s9500_s3 + $0x18] sm:$0xf] }
  0x41   : > { %6816 = vmatprep.mubr.msk.bf16.mxu1 %vm1580_vm12, %v6151_v50  ;;  %v6152_v0 = vcombine.low %v1183_v3, %v1193_v52  ;;  %996 = vst [vmem:[#allocation2 + $0x30] sm:$0x1] %v995_v34  ;;  %v1198_v60 = vshll.u32 %v1098_v49, 16  ;;  %v3018_v13 = vor.u32 %v3017_v59, %v7792_v53  ;;  %804 = vst [vmem:[#allocation2 + $0x38] sm:$0x1] %v803_v4  ;;  %v1204_v21 = vshll.u32 %v1099_v58, 16 }
  0x42   : > { %v1208_v6 = vshrl.u32 %v1099_v58, 16  ;;  %v1214_v8 = vshll.u32 %v1129_v26, 16  ;;  %v1197_v10 = vrot.slane %v1195_v57, 4  ;;  %v1228_v14 = vshll.u32 %v7803_v63, 16  ;;  %7385 = vmatprep.subr.msk.bf16.mxu0 %vm1629_vm0, %v7833_v45 }
  0x43   : > { %6817 = vmatmul.mubr.msk.bf16.vlgmr.msra.gmra.mrb[0].mxu1 %vm1580_vm12, %v6152_v0  ;;  %v1200_v12 = vrot.slane %v1198_v60, 5  ;;  %v1232_v16 = vshrl.u32 %v7803_v63, 16  ;;  %v2911_v17 = vld [vmem:[#allocation2 + $0x24] sm:$0xf]  ;;  %v3019_v19 = vrot.slane %v3018_v13, 4  ;;  %v1206_v24 = vrot.slane %v1204_v21, 5 }
  0x44   : > { %6849 = vmatpush3.bf16.msra.mxu1 %v7662_v1  ;;  %v1210_v25 = vrot.slane %v1208_v6, 4  ;;  %v1216_v27 = vrot.slane %v1214_v8, 5  ;;  %v7820_v31 = vld [vmem:[#allocation2 + $0x2c] sm:$0x1]  ;;  %v3002_v32 = vshrl.u32 %v2911_v17, 16  ;;  %v3005_v36 = vshll.u32 %v2911_v17, 16 }
  0x45   : > { %v1201_v35 = vor.u32 %v1200_v12, %v1197_v10  ;;  %v1100_v39 = vld [vmem:[#allocation2 + $0x24] sm:$0xf]  ;;  %v7825_v15 = vsel %vm7812_vm1, %v7730_v61, %v3707_v37  ;;  %v3021_v40 = vshll.u32 %v7820_v31, 16  ;;  %v7828_v33 = vrot.slane %v1228_v14, 5  ;;  %v1130_v4 = vld [vmem:[#allocation2 + $0x2c] sm:$0x1] }
  0x46   : > { %v1211_v51 = vor.u32 %v1210_v25, %v1206_v24  ;;  %v1219_v1 = vshrl.u32 %v1100_v39, 16  ;;  %v1222_v41 = vshll.u32 %v1100_v39, 16  ;;  %v3004_v28 = vrot.slane %v3002_v32, 4  ;;  %v420_v14 = vld [vmem:[%s7602_s29 + $0x24] sm:$0xf] }
  0x47   : > { %v3007_v42 = vrot.slane %v3005_v36, 5  ;;  %v1202_v43 = vrot.slane %v1201_v35, 4  ;;  %v3023_v46 = vrot.slane %v3021_v40, 5  ;;  %v7835_v48 = vld [vmem:[#allocation2 + $0x34] sm:$0xf]  ;;  %v1234_v12 = vrot.slane %v1232_v16, 4 }
  0x48   : > { %v2914_v47 = vld [vmem:[#allocation2 + $0x30] sm:$0xf]  ;;  %v1212_v61 = vrot.slane %v1211_v51, 4  ;;  %v1049_v49 = vld [vmem:[#allocation2 + $0x38] sm:$0x1]  ;;  %v3035_v54 = vshll.u32 %v7835_v48, 16 }
  0x49   : > { %v3008_v37 = vor.u32 %v3007_v42, %v3004_v28  ;;  %v3026_v50 = vshrl.u32 %v2914_v47, 16  ;;  %v3029_v52 = vshll.u32 %v2914_v47, 16  ;;  %v3024_v58 = vsel %vm7746_vm13, %v3019_v19, %v3023_v46  ;;  %v421_v35 = vld [vmem:[%s7602_s29 + $0x28] sm:$0xf]  ;;  %v422_v46 = vld [vmem:[%s7602_s29 + $0x2c] sm:$0xf] }
  0x4a   : > { %v1050_v26 = vsel %vm7670_vm9, 0, %v1049_v49  ;;  %v3039_v3 = vshrl.u32 %v7835_v48, 16  ;;  %v1207_v59 = vsel %vm7746_vm13, %v1202_v43, %v1206_v24  ;;  %v7847_v0 = vrot.slane %v3035_v54, 5  ;;  %v1102_v47 = vld [vmem:[#allocation2 + $0x30] sm:$0xf] }
  0x4b   : > { %v3009_v62 = vrot.slane %v3008_v37, 4  ;;  %1051 = vst [vmem:[#allocation2 + $0x38] sm:$0x1] %v1050_v26  ;;  %v3028_v34 = vrot.slane %v3026_v50, 4  ;;  %v3031_v63 = vrot.slane %v3029_v52, 5  ;;  %v1217_v60 = vsel %vm7746_vm13, %v1212_v61, %v1216_v27 }
  0x4c   : > { %v3041_v57 = vrot.slane %v3039_v3, 4  ;;  %v1221_v13 = vrot.slane %v1219_v1, 4  ;;  %v1224_v21 = vrot.slane %v1222_v41, 5  ;;  %v6153_v10 = vcombine.low %v1207_v59, %v1217_v60  ;;  %v805_v1 = vld [vmem:[#allocation2 + $0x3c] sm:$0xf] }
  0x4d   : > { %v3014_v6 = vsel %vm7746_vm13, %v3009_v62, %v7792_v53  ;;  %v3032_v8 = vor.u32 %v3031_v63, %v3028_v34  ;;  %v1238_v25 = vshll.u32 %v1130_v4, 16  ;;  %v1235_v27 = vor.u32 %v1234_v12, %v7828_v33  ;;  %v812_v63 = vld [vmem:[#allocation2 + $0x48] sm:$0xf] }
  0x4e   : > { %v6300_v17 = vcombine.low %v3014_v6, %v3024_v58  ;;  %v3042_v19 = vor.u32 %v3041_v57, %v7847_v0  ;;  %v1225_v24 = vor.u32 %v1224_v21, %v1221_v13  ;;  %6820 = vmatprep.mubr.msk.bf16.mxu1 %vm1580_vm12, %v6153_v10  ;;  %v521_v36 = vrot.slane %v519_v55, 7  ;;  %v809_v58 = vld [vmem:[#allocation2 + $0x44] sm:$0x1]  ;;  %v1103_v57 = vld [vmem:[#allocation2 + $0x34] sm:$0xf] }
  0x4f   : > { %v3033_v32 = vrot.slane %v3032_v8, 4  ;;  %v522_v53 = vshll.u32 %v7694_v29, 16  ;;  %v1240_v40 = vrot.slane %v1238_v25, 5  ;;  %v527_v51 = vshrl.u32 %v420_v14, 16 }
  0x50   : > { %6956 = vmatprep.mubr.msk.bf16.mxu0 %vm1580_vm12, %v6300_v17  ;;  %v3043_v16 = vrot.slane %v3042_v19, 4  ;;  %v1226_v39 = vrot.slane %v1225_v24, 4  ;;  %v1236_v28 = vrot.slane %v1235_v27, 4  ;;  %v525_v43 = vrot.slane %v521_v36, 4  ;;  %v423_v24 = vld [vmem:[%s7602_s29 + $0x30] sm:$0xf] }
  0x51   : > { %v3038_v41 = vsel %vm7746_vm13, %v3033_v32, %v7847_v0  ;;  %v524_v42 = vor.u32 %v522_v53, %v521_v36  ;;  %v529_v61 = vrot.slane %v527_v51, 7  ;;  %v530_v37 = vshll.u32 %v420_v14, 16  ;;  %v816_v27 = vld [vmem:[#allocation2 + $0x50] sm:$0x1]  ;;  %v424_v51 = vld [vmem:[%s7602_s29 + $0x34] sm:$0xf] }
  0x52   : > { %v7867_v55 = vld [vmem:[#allocation2 + $0x38] sm:$0x1]  ;;  %v1231_v29 = vsel %vm7746_vm13, %v1226_v39, %v7828_v33  ;;  %v536_v49 = vshrl.u32 %v421_v35, 16  ;;  %v1241_v52 = vsel %vm7746_vm13, %v1236_v28, %v1240_v40  ;;  %v539_v26 = vshll.u32 %v421_v35, 16 }
  0x53   : > { %v3045_v50 = vshll.u32 %v7867_v55, 16  ;;  %v806_v54 = vsel %vm7619_vm7, %v524_v42, %v805_v1  ;;  %v6154_v3 = vcombine.low %v1231_v29, %v1241_v52  ;;  %v532_v59 = vor.u32 %v530_v37, %v529_v61  ;;  %v1131_v10 = vld [vmem:[#allocation2 + $0x38] sm:$0x1] }
  0x54   : > { %v534_v62 = vrot.slane %v529_v61, 4  ;;  %807 = vst [vmem:[#allocation2 + $0x3c] sm:$0xf] %v806_v54  ;;  %v538_v34 = vrot.slane %v536_v49, 7  ;;  %v544_v0 = vshrl.u32 %v422_v46, 16  ;;  %v547_v4 = vshll.u32 %v422_v46, 16 }
  0x55   : > { %v3047_v33 = vrot.slane %v3045_v50, 5  ;;  %v1243_v60 = vshrl.u32 %v1102_v47, 16  ;;  %6821 = vmatmul.mubr.msk.bf16.gmra.mrb[4].mxu1 %vm1580_vm12, %v6154_v3  ;;  %v533_v13 = vsel %vm7612_vm6, %v525_v43, %v532_v59  ;;  %v1246_v19 = vshll.u32 %v1102_v47, 16 }
  0x56   : > { %v810_v21 = vsel %vm7625_vm8, %v534_v62, %v809_v58  ;;  %v541_v6 = vor.u32 %v539_v26, %v538_v34  ;;  %v542_v8 = vrot.slane %v538_v34, 4  ;;  %808 = vst.msk [vmem:[#allocation2 + $0x40] sm:$0xf] %vm771_vm4, %v533_v13  ;;  %v546_v14 = vrot.slane %v544_v0, 7 }
  0x57   : > { %v3048_v12 = vsel %vm7746_vm13, %v3043_v16, %v3047_v33  ;;  %811 = vst [vmem:[#allocation2 + $0x44] sm:$0x1] %v810_v21  ;;  %v1245_v17 = vrot.slane %v1243_v60, 4  ;;  %v1252_v36 = vshll.u32 %v1103_v57, 16  ;;  %v1256_v53 = vshrl.u32 %v1103_v57, 16 }
  0x58   : > { %v6301_v25 = vcombine.low %v3038_v41, %v3048_v12  ;;  %v813_v32 = vsel %vm7619_vm7, %v541_v6, %v812_v63  ;;  %v549_v35 = vor.u32 %v547_v4, %v546_v14  ;;  %v551_v39 = vrot.slane %v546_v14, 4  ;;  %v7891_v41 = vld [vmem:[%s7602_s29 + $0x38] sm:$0xf]  ;;  %v819_v4 = vld [vmem:[#allocation2 + $0x54] sm:$0xf] }
  0x59   : > { %814 = vst [vmem:[#allocation2 + $0x48] sm:$0xf] %v813_v32  ;;  %v1248_v16 = vrot.slane %v1246_v19, 5  ;;  %v1262_v40 = vshll.u32 %v1131_v10, 16  ;;  %v1254_v1 = vrot.slane %v1252_v36, 5  ;;  %v1258_v28 = vrot.slane %v1256_v53, 4 }
  0x5a   : > { %6957 = vmatmul.mubr.msk.bf16.gmra.mrb[4].mxu0 %vm1580_vm12, %v6301_v25  ;;  %v553_v42 = vshrl.u32 %v423_v24, 16  ;;  %v556_v43 = vshll.u32 %v423_v24, 16  ;;  %v550_v47 = vsel %vm7612_vm6, %v542_v8, %v549_v35  ;;  %v817_v29 = vsel %vm7625_vm8, %v551_v39, %v816_v27  ;;  %v7905_v57 = vld [vmem:[%s7602_s29 + $0x3c] sm:$0xf] }
  0x5b   : > { %v997_v46 = vld [vmem:[#allocation2 + $0x3c] sm:$0x1]  ;;  %v1249_v61 = vor.u32 %v1248_v16, %v1245_v17  ;;  %v1264_v37 = vrot.slane %v1262_v40, 5  ;;  %815 = vst.msk [vmem:[#allocation2 + $0x4c] sm:$0xf] %vm771_vm4, %v550_v47  ;;  %v1259_v50 = vor.u32 %v1258_v28, %v1254_v1  ;;  %v561_v54 = vshrl.u32 %v424_v51, 16 }
  0x5c   : > { %v998_v49 = vsel %vm7625_vm8, 0, %v997_v46  ;;  %818 = vst [vmem:[#allocation2 + $0x50] sm:$0x1] %v817_v29  ;;  %v555_v52 = vrot.slane %v553_v42, 7  ;;  %v564_v26 = vshll.u32 %v424_v51, 16  ;;  %v570_v3 = vshrl.u32 %v7891_v41, 16 }
  0x5d   : > { %999 = vst [vmem:[#allocation2 + $0x3c] sm:$0x1] %v998_v49  ;;  %v1250_v58 = vrot.slane %v1249_v61, 4  ;;  %v573_v59 = vshll.u32 %v7891_v41, 16  ;;  %v7902_v34 = vld [vmem:[#allocation2 + $0x40] sm:$0xf] }
  0x5e   : > { %v1052_v62 = vld [vmem:[#allocation2 + $0x44] sm:$0x1]  ;;  %v1260_v63 = vrot.slane %v1259_v50, 4  ;;  %v558_v33 = vor.u32 %v556_v43, %v555_v52  ;;  %v559_v0 = vrot.slane %v555_v52, 4  ;;  %v3059_v13 = vshll.u32 %v7902_v34, 16 }
  0x5f   : > { %v1053_v60 = vsel %vm7670_vm9, 0, %v1052_v62  ;;  %v3063_v21 = vshrl.u32 %v7902_v34, 16  ;;  %v1255_v6 = vsel %vm7746_vm13, %v1250_v58, %v1254_v1  ;;  %v1105_v8 = vld [vmem:[#allocation2 + $0x40] sm:$0xf]  ;;  %v563_v19 = vrot.slane %v561_v54, 7 }
  0x60   : > { %1054 = vst [vmem:[#allocation2 + $0x44] sm:$0x1] %v1053_v60  ;;  %v1000_v10 = vld [vmem:[#allocation2 + $0x48] sm:$0x1]  ;;  %v1265_v12 = vsel %vm7746_vm13, %v1260_v63, %v1264_v37  ;;  %v1276_v14 = vshll.u32 %v1105_v8, 16  ;;  %v1280_v17 = vshrl.u32 %v1105_v8, 16  ;;  %v820_v28 = vsel %vm7619_vm7, %v558_v33, %v819_v4 }
  0x61   : > { %v7915_v24 = vrot.slane %v3059_v13, 5  ;;  %v3065_v25 = vrot.slane %v3063_v21, 4  ;;  %v1001_v32 = vsel %vm7625_vm8, 0, %v1000_v10  ;;  %v6155_v27 = vcombine.low %v1255_v6, %v1265_v12  ;;  %v823_v16 = vld [vmem:[#allocation2 + $0x5c] sm:$0x1] }
  0x62   : > { %1002 = vst [vmem:[#allocation2 + $0x48] sm:$0x1] %v1001_v32  ;;  %v7919_v36 = vrot.slane %v1276_v14, 5  ;;  %v1282_v53 = vrot.slane %v1280_v17, 4  ;;  %v566_v35 = vor.u32 %v564_v26, %v563_v19  ;;  %v568_v39 = vrot.slane %v563_v19, 4 }
  0x63   : > { %v3066_v40 = vor.u32 %v3065_v25, %v7915_v24  ;;  %v1055_v51 = vld [vmem:[#allocation2 + $0x50] sm:$0x1]  ;;  %v7922_v1 = vld [vmem:[#allocation2 + $0x4c] sm:$0xf]  ;;  %6824 = vmatprep.mubr.msk.bf16.mxu1 %vm1580_vm12, %v6155_v27  ;;  %v7927_v42 = vrot.slane %v570_v3, 7  ;;  %v578_v43 = vshrl.u32 %v7905_v57, 16 }
  0x64   : > { %v2917_v41 = vld [vmem:[#allocation2 + $0x3c] sm:$0xf]  ;;  %v1056_v46 = vsel %vm7670_vm9, 0, %v1055_v51  ;;  %v3083_v47 = vshll.u32 %v7922_v1, 16  ;;  %v3087_v29 = vshrl.u32 %v7922_v1, 16  ;;  %v1283_v61 = vor.u32 %v1282_v53, %v7919_v36 }
  0x65   : > { %821 = vst [vmem:[#allocation2 + $0x54] sm:$0xf] %v820_v28  ;;  %v3050_v37 = vshrl.u32 %v2917_v41, 16  ;;  %v3053_v49 = vshll.u32 %v2917_v41, 16  ;;  %v3067_v50 = vrot.slane %v3066_v40, 4  ;;  %v567_v54 = vsel %vm7612_vm6, %v559_v0, %v566_v35 }
  0x66   : > { %1057 = vst [vmem:[#allocation2 + $0x50] sm:$0x1] %v1056_v46  ;;  %v1104_v52 = vld [vmem:[#allocation2 + $0x3c] sm:$0xf]  ;;  %v7937_v58 = vrot.slane %v3083_v47, 5  ;;  %v3089_v26 = vrot.slane %v3087_v29, 4  ;;  %v824_v13 = vsel %vm7625_vm8, %v568_v39, %v823_v16  ;;  %v575_v21 = vor.u32 %v573_v59, %v7927_v42 }
  0x67   : > { %v1267_v3 = vshrl.u32 %v1104_v52, 16  ;;  %v1270_v62 = vshll.u32 %v1104_v52, 16  ;;  %822 = vst.msk [vmem:[#allocation2 + $0x58] sm:$0xf] %vm771_vm4, %v567_v54  ;;  %v7940_v63 = vld [vmem:[#allocation2 + $0x44] sm:$0x1] }
  0x68   : > { %v3052_v33 = vrot.slane %v3050_v37, 4  ;;  %v3055_v4 = vrot.slane %v3053_v49, 5  ;;  %v1132_v60 = vld [vmem:[#allocation2 + $0x44] sm:$0x1]  ;;  %v3069_v6 = vshll.u32 %v7940_v63, 16  ;;  %v3090_v0 = vor.u32 %v3089_v26, %v7937_v58 }
  0x69   : > { %v1269_v8 = vrot.slane %v1267_v3, 4  ;;  %v1272_v10 = vrot.slane %v1270_v62, 5  ;;  %825 = vst [vmem:[#allocation2 + $0x5c] sm:$0x1] %v824_v13  ;;  %v2920_v14 = vld [vmem:[#allocation2 + $0x48] sm:$0xf] }
  0x6a   : > { %v3056_v12 = vor.u32 %v3055_v4, %v3052_v33  ;;  %v1284_v17 = vrot.slane %v1283_v61, 4  ;;  %v1286_v19 = vshll.u32 %v1132_v60, 16  ;;  %v576_v25 = vrot.slane %v7927_v42, 4  ;;  %v830_v62 = vld [vmem:[#allocation2 + $0x68] sm:$0x1] }
  0x6b   : > { %v3071_v32 = vrot.slane %v3069_v6, 5  ;;  %v3074_v27 = vshrl.u32 %v2920_v14, 16  ;;  %v3077_v53 = vshll.u32 %v2920_v14, 16  ;;  %v3091_v35 = vrot.slane %v3090_v0, 4  ;;  %v1106_v33 = vld [vmem:[#allocation2 + $0x48] sm:$0xf] }
  0x6c   : > { %v3057_v39 = vrot.slane %v3056_v12, 4  ;;  %v1273_v16 = vor.u32 %v1272_v10, %v1269_v8  ;;  %v1288_v59 = vrot.slane %v1286_v19, 5  ;;  %v1003_v40 = vld [vmem:[#allocation2 + $0x54] sm:$0x1]  ;;  %v580_v51 = vrot.slane %v578_v43, 7  ;;  %v7416_v2 = vld [vmem:[#allocation2 + $0x48] sm:$0xff]  }
  0x6d   : > { %v3072_v28 = vsel %vm7746_vm13, %v3067_v50, %v3071_v32  ;;  %v7950_v41 = vld [vmem:[#allocation2 + $0x50] sm:$0x1]  ;;  %v3076_v46 = vrot.slane %v3074_v27, 4  ;;  %v3079_v47 = vrot.slane %v3077_v53, 5  ;;  %v1004_v29 = vsel %vm7625_vm8, 0, %v1003_v40 }
  0x6e   : > { %v3062_v42 = vsel %vm7746_vm13, %v3057_v39, %v7915_v24  ;;  %v3093_v61 = vshll.u32 %v7950_v41, 16  ;;  %v1274_v37 = vrot.slane %v1273_v16, 4  ;;  %v1289_v43 = vsel %vm7746_vm13, %v1284_v17, %v1288_v59  ;;  %1005 = vst [vmem:[#allocation2 + $0x54] sm:$0x1] %v1004_v29  ;;  %v7960_v49 = vld [vmem:[#allocation2 + $0x58] sm:$0xf] }
  0x6f   : > { %v826_v50 = vld [vmem:[#allocation2 + $0x60] sm:$0xf]  ;;  %v6302_v52 = vcombine.low %v3062_v42, %v3072_v28  ;;  %v3080_v54 = vor.u32 %v3079_v47, %v3076_v46  ;;  %v3107_v26 = vshll.u32 %v7960_v49, 16  ;;  %v3111_v3 = vshrl.u32 %v7960_v49, 16  ;;  %v1107_v14 = vld [vmem:[#allocation2 + $0x4c] sm:$0xf] }
  0x70   : > { %v3095_v4 = vrot.slane %v3093_v61, 5  ;;  %v1279_v24 = vsel %vm7746_vm13, %v1274_v37, %v7919_v36  ;;  %v1058_v60 = vld [vmem:[#allocation2 + $0x5c] sm:$0x1]  ;;  %v581_v13 = vshll.u32 %v7905_v57, 16  ;;  %v585_v6 = vrot.slane %v580_v51, 4 }
  0x71   : > { %6960 = vmatprep.mubr.msk.bf16.mxu0 %vm1580_vm12, %v6302_v52  ;;  %v3081_v0 = vrot.slane %v3080_v54, 4  ;;  %v6156_v8 = vcombine.low %v1279_v24, %v1289_v43  ;;  %v1059_v10 = vsel %vm7670_vm9, 0, %v1058_v60  ;;  %v7971_v12 = vrot.slane %v3107_v26, 5  ;;  %v1133_v32 = vld [vmem:[#allocation2 + $0x50] sm:$0x1] }
  0x72   : > { %v3096_v17 = vsel %vm7746_vm13, %v3091_v35, %v3095_v4  ;;  %1060 = vst [vmem:[#allocation2 + $0x5c] sm:$0x1] %v1059_v10  ;;  %v3113_v19 = vrot.slane %v3111_v3, 4  ;;  %v583_v36 = vor.u32 %v581_v13, %v580_v51  ;;  %v827_v57 = vsel %vm7619_vm7, %v575_v21, %v826_v50  ;;  %v1109_v51 = vld [vmem:[#allocation2 + $0x58] sm:$0xf] }
  0x73   : > { %v3086_v27 = vsel %vm7746_vm13, %v3081_v0, %v7937_v58  ;;  %6825 = vmatmul.mubr.msk.bf16.gmra.mrb[8].mxu1 %vm1580_vm12, %v6156_v8  ;;  %828 = vst [vmem:[#allocation2 + $0x60] sm:$0xf] %v827_v57  ;;  %v831_v53 = vsel %vm7625_vm8, %v585_v6, %v830_v62  ;;  %v1291_v39 = vshrl.u32 %v1106_v33, 16  ;;  %v1294_v16 = vshll.u32 %v1106_v33, 16  ;;  %v6231_v58 = vld [vmem:[%s9500_s3 + $0x8] sm:$0xf] }
  0x74   : > { %v6303_v35 = vcombine.low %v3086_v27, %v3096_v17  ;;  %v3114_v59 = vor.u32 %v3113_v19, %v7971_v12  ;;  %v584_v40 = vsel %vm7612_vm6, %v576_v25, %v583_v36  ;;  %832 = vst [vmem:[#allocation2 + $0x68] sm:$0x1] %v831_v53  ;;  %v1300_v21 = vshll.u32 %v1107_v14, 16  ;;  %7380 = vmatprep.subr.msk.bf16.mxu1 %vm1629_vm0, %v6231_v58 }
  0x75   : > { %v2923_v28 = vld [vmem:[#allocation2 + $0x54] sm:$0xf]  ;;  %829 = vst.msk [vmem:[#allocation2 + $0x64] sm:$0xf] %vm771_vm4, %v584_v40  ;;  %v1293_v46 = vrot.slane %v1291_v39, 4  ;;  %v1296_v47 = vrot.slane %v1294_v16, 5 }
  0x76   : > { %v1304_v29 = vshrl.u32 %v1107_v14, 16  ;;  %v1310_v42 = vshll.u32 %v1133_v32, 16  ;;  %v3700_v61 = vrot.slane %v7735_v7, 5  ;;  %6961 = vmatmul.mubr.msk.bf16.gmra.mrb[8].mxu0 %vm1580_vm12, %v6303_v35  ;;  %v3098_v25 = vshrl.u32 %v2923_v28, 16  ;;  %v1108_v50 = vld [vmem:[#allocation2 + $0x54] sm:$0xf] }
  0x77   : > { %v3101_v37 = vshll.u32 %v2923_v28, 16  ;;  %v1302_v43 = vrot.slane %v1300_v21, 5  ;;  %v3115_v52 = vrot.slane %v3114_v59, 4  ;;  %v1297_v54 = vor.u32 %v1296_v47, %v1293_v46  ;;  %v3631_v16 = vld [vmem:[#allocation2 + $0xc] sm:$0xe] }
  0x78   : > { %v1306_v26 = vrot.slane %v1304_v29, 4  ;;  %v1315_v3 = vshrl.u32 %v1108_v50, 16  ;;  %v3100_v62 = vrot.slane %v3098_v25, 4  ;;  %v1318_v4 = vshll.u32 %v1108_v50, 16  ;;  %v3632_v50 = vld [vmem:[#allocation2 + $0x18] sm:$0xe] }
  0x79   : > { %v3103_v33 = vrot.slane %v3101_v37, 5  ;;  %v1324_v24 = vshll.u32 %v1109_v51, 16  ;;  %v7993_v60 = vld [vmem:[#allocation2 + $0x5c] sm:$0x1]  ;;  %v1298_v13 = vrot.slane %v1297_v54, 4  ;;  %v1312_v0 = vrot.slane %v1310_v42, 5 }
  0x7a   : > { %v1307_v6 = vor.u32 %v1306_v26, %v1302_v43  ;;  %v1317_v8 = vrot.slane %v1315_v3, 4  ;;  %v3117_v14 = vshll.u32 %v7993_v60, 16  ;;  %v1006_v17 = vld [vmem:[#allocation2 + $0x60] sm:$0x1]  ;;  %v1320_v19 = vrot.slane %v1318_v4, 5 }
  0x7b   : > { %v3104_v10 = vor.u32 %v3103_v33, %v3100_v62  ;;  %v1326_v36 = vrot.slane %v1324_v24, 5  ;;  %v1007_v57 = vsel %vm7625_vm8, 0, %v1006_v17  ;;  %v1061_v32 = vld [vmem:[#allocation2 + $0x68] sm:$0x1]  ;;  %v1303_v27 = vsel %vm7746_vm13, %v1298_v13, %v1302_v43  ;;  %v1134_v29 = vld [vmem:[#allocation2 + $0x5c] sm:$0x1] }
  0x7c   : > { %v1308_v53 = vrot.slane %v1307_v6, 4  ;;  %v1328_v39 = vshrl.u32 %v1109_v51, 16  ;;  %v3119_v59 = vrot.slane %v3117_v14, 5  ;;  %1008 = vst [vmem:[#allocation2 + $0x60] sm:$0x1] %v1007_v57  ;;  %v1062_v40 = vsel %vm7670_vm9, 0, %v1061_v32 }
  0x7d   : > { %v3105_v35 = vrot.slane %v3104_v10, 4  ;;  %v8002_v21 = vld [vmem:[#allocation2 + $0x64] sm:$0xf]  ;;  %v1321_v58 = vor.u32 %v1320_v19, %v1317_v8  ;;  %1063 = vst [vmem:[#allocation2 + $0x68] sm:$0x1] %v1062_v40  ;;  %v1334_v24 = vshll.u32 %v1134_v29, 16 }
  0x7e   : > { %v3131_v28 = vshll.u32 %v8002_v21, 16  ;;  %v3135_v46 = vshrl.u32 %v8002_v21, 16  ;;  %v1313_v47 = vsel %vm7746_vm13, %v1308_v53, %v1312_v0  ;;  %v1330_v51 = vrot.slane %v1328_v39, 4  ;;  %v1111_v54 = vld [vmem:[#allocation2 + $0x64] sm:$0xf] }
  0x7f   : > { %v3110_v42 = vsel %vm7746_vm13, %v3105_v35, %v7971_v12  ;;  %v3120_v25 = vsel %vm7746_vm13, %v3115_v52, %v3119_v59  ;;  %v6157_v37 = vcombine.low %v1303_v27, %v1313_v47  ;;  %v1322_v43 = vrot.slane %v1321_v58, 4  ;;  %v428_v40 = vld [vmem:[%s7602_s29 + $0x44] sm:$0xf] }
  0x80   : > { %v6304_v26 = vcombine.low %v3110_v42, %v3120_v25  ;;  %v8013_v3 = vrot.slane %v3131_v28, 5  ;;  %v3137_v62 = vrot.slane %v3135_v46, 4  ;;  %v1331_v33 = vor.u32 %v1330_v51, %v1326_v36  ;;  %v8495_v20 = vld [vmem:[#allocation2 + $0x64] sm:$0xf] }
  0x81   : > { %6828 = vmatprep.mubr.msk.bf16.mxu1 %vm1580_vm12, %v6157_v37  ;;  %v1327_v4 = vsel %vm7746_vm13, %v1322_v43, %v1326_v36  ;;  %v6330_v12 = vrot.slane %v3631_v16, 9  ;;  %v3699_v52 = vrot.slane %v3697_v56, 4  ;;  %v6331_v0 = vrot.slane %v3632_v50, 9  ;;  %v427_v36 = vld [vmem:[%s7602_s29 + $0x40] sm:$0xf] }
  0x82   : > { %6964 = vmatprep.mubr.msk.bf16.mxu0 %vm1580_vm12, %v6304_v26  ;;  %v3138_v13 = vor.u32 %v3137_v62, %v8013_v3  ;;  %v1332_v6 = vrot.slane %v1331_v33, 4  ;;  %v1348_v8 = vshll.u32 %v1111_v54, 16  ;;  %v1336_v10 = vrot.slane %v1334_v24, 5  ;;  %v3633_v33 = vld [vmem:[#allocation2 + $0x24] sm:$0xe] }
  0x83   : > { %v8026_v14 = vsel %vm7812_vm1, %v6330_v12, %v3697_v56  ;;  %v8032_v17 = vsel %vm7812_vm1, %v3699_v52, %v3700_v61  ;;  %v1352_v19 = vshrl.u32 %v1111_v54, 16  ;;  %v2926_v57 = vld [vmem:[#allocation2 + $0x60] sm:$0xf]  ;;  %v8041_v18 = vsel %vm7812_vm1, %v6331_v0, %v3704_v44 }
  0x84   : > { %v3139_v32 = vrot.slane %v3138_v13, 4  ;;  %v6347_v27 = vcombine.low %v8026_v14, %v8032_v17  ;;  %v1110_v56 = vld [vmem:[#allocation2 + $0x60] sm:$0xf]  ;;  %v1350_v7 = vrot.slane %v1348_v8, 5  ;;  %v8043_v53 = vld [vmem:[#allocation2 + $0x68] sm:$0x1]  ;;  %v1337_v16 = vsel %vm7746_vm13, %v1332_v6, %v1336_v10 }
  0x85   : > { %v3122_v39 = vshrl.u32 %v2926_v57, 16  ;;  %v3125_v61 = vshll.u32 %v2926_v57, 16  ;;  %v6348_v35 = vcombine.low %v8041_v18, %v7825_v15  ;;  %v1135_v59 = vld [vmem:[#allocation2 + $0x68] sm:$0x1]  ;;  %v3141_v38 = vshll.u32 %v8043_v53, 16 }
  0x86   : > { %v6158_v58 = vcombine.low %v1327_v4, %v1337_v16  ;;  %v1339_v28 = vshrl.u32 %v1110_v56, 16  ;;  %v1342_v44 = vshll.u32 %v1110_v56, 16  ;;  %v1354_v29 = vrot.slane %v1352_v19, 4  ;;  %v833_v13 = vld [vmem:[#allocation2 + $0x6c] sm:$0xf] }
  0x87   : > { %v3124_v46 = vrot.slane %v3122_v39, 4  ;;  %v3127_v47 = vrot.slane %v3125_v61, 5  ;;  %v1358_v51 = vshll.u32 %v1135_v59, 16  ;;  %v3143_v42 = vrot.slane %v3141_v38, 5  ;;  %v837_v10 = vld [vmem:[#allocation2 + $0x74] sm:$0x1] }
  0x88   : > { %6829 = vmatmul.mubr.msk.bf16.gmra.mrb[12].mxu1 %vm1580_vm12, %v6158_v58  ;;  %v1341_v25 = vrot.slane %v1339_v28, 4  ;;  %v1344_v37 = vrot.slane %v1342_v44, 5  ;;  %v587_v43 = vshrl.u32 %v427_v36, 16  ;;  %v1355_v54 = vor.u32 %v1354_v29, %v1350_v7  ;;  %v430_v58 = vld [vmem:[%s7602_s29 + $0x4c] sm:$0xf] }
  0x89   : > { %v3128_v50 = vor.u32 %v3127_v47, %v3124_v46  ;;  %v1360_v26 = vrot.slane %v1358_v51, 5  ;;  %v590_v62 = vshll.u32 %v427_v36, 16  ;;  %v3144_v4 = vsel %vm7746_vm13, %v3139_v32, %v3143_v42  ;;  %v3634_v36 = vld [vmem:[#allocation2 + $0x30] sm:$0xe]  ;;  %v429_v32 = vld [vmem:[%s7602_s29 + $0x48] sm:$0xf] }
  0x8a   : > { %v1345_v24 = vor.u32 %v1344_v37, %v1341_v25  ;;  %v589_v12 = vrot.slane %v587_v43, 7  ;;  %v595_v52 = vshrl.u32 %v428_v40, 16  ;;  %v1356_v0 = vrot.slane %v1355_v54, 4  ;;  %v431_v28 = vld [vmem:[%s7602_s29 + $0x50] sm:$0xf] }
  0x8b   : > { %v3129_v6 = vrot.slane %v3128_v50, 4  ;;  %v598_v8 = vshll.u32 %v428_v40, 16  ;;  %v8056_v19 = vsel %vm1629_vm0, %v7833_v45, 0  ;;  %v6332_v38 = vrot.slane %v3633_v33, 9  ;;  %v840_v14 = vld [vmem:[#allocation2 + $0x78] sm:$0xf] }
  0x8c   : > { %v1346_v57 = vrot.slane %v1345_v24, 4  ;;  %v592_v56 = vor.u32 %v590_v62, %v589_v12  ;;  %v593_v39 = vrot.slane %v589_v12, 4  ;;  %v597_v61 = vrot.slane %v595_v52, 7  ;;  %v432_v62 = vld [vmem:[%s7602_s29 + $0x54] sm:$0xf] }
  0x8d   : > { %v3134_v16 = vsel %vm7746_vm13, %v3129_v6, %v8013_v3  ;;  %v1361_v59 = vsel %vm7746_vm13, %v1356_v0, %v1360_v26  ;;  %v3711_v40 = vrot.slane %v7771_v30, 5  ;;  %v3714_v25 = vrot.slane %v7820_v31, 5 }
  0x8e   : > { %v6305_v45 = vcombine.low %v3134_v16, %v3144_v4  ;;  %v1351_v44 = vsel %vm7746_vm13, %v1346_v57, %v1350_v7  ;;  %v600_v46 = vor.u32 %v598_v8, %v597_v61  ;;  %v602_v47 = vrot.slane %v597_v61, 4  ;;  %v3636_v61 = vld [vmem:[#allocation2 + $0x48] sm:$0xe] }
  0x8f   : > { %v6159_v29 = vcombine.low %v1351_v44, %v1361_v59  ;;  %v834_v51 = vsel %vm7619_vm7, %v592_v56, %v833_v13  ;;  %v8073_v3 = vsel %vm7812_vm1, %v6332_v38, %v3711_v40  ;;  %v3713_v42 = vrot.slane %v3711_v40, 4  ;;  %v847_v13 = vld [vmem:[#allocation2 + $0x84] sm:$0xf] }
  0x90   : > { %6965 = vmatmul.mubr.msk.bf16.gmra.mrb[12].mxu0 %vm1580_vm12, %v6305_v45  ;;  %v601_v30 = vsel %vm7612_vm6, %v593_v39, %v600_v46  ;;  %835 = vst [vmem:[#allocation2 + $0x6c] sm:$0xf] %v834_v51  ;;  %v838_v7 = vsel %vm7625_vm8, %v602_v47, %v837_v10  ;;  %v6333_v37 = vrot.slane %v3634_v36, 9  ;;  %v3718_v43 = vrot.slane %v7835_v48, 5  ;;  %v851_v46 = vld [vmem:[#allocation2 + $0x8c] sm:$0x1] }
  0x91   : > { %6986 = vmatprep.mubr.msk.bf16.mxu0 %vm1580_vm12, %v6347_v27  ;;  %6832 = vmatprep.mubr.msk.bf16.mxu1 %vm1580_vm12, %v6159_v29  ;;  %836 = vst.msk [vmem:[#allocation2 + $0x70] sm:$0xf] %vm771_vm4, %v601_v30  ;;  %839 = vst [vmem:[#allocation2 + $0x74] sm:$0x1] %v838_v7  ;;  %v3721_v50 = vrot.slane %v7867_v55, 5  ;;  %v604_v54 = vshrl.u32 %v429_v32, 16  ;;  %v3715_v31 = vsel %vm7812_vm1, %v3713_v42, %v3714_v25 }
  0x92   : > { %v607_v26 = vshll.u32 %v429_v32, 16  ;;  %v612_v33 = vshrl.u32 %v430_v58, 16  ;;  %v615_v4 = vshll.u32 %v430_v58, 16  ;;  %v621_v17 = vshrl.u32 %v431_v28, 16  ;;  %v3635_v27 = vld [vmem:[#allocation2 + $0x3c] sm:$0xe] }
  0x93   : > { %v6349_v24 = vcombine.low %v8073_v3, %v3715_v31  ;;  %v8095_v12 = vsel %vm7812_vm1, %v6333_v37, %v3718_v43  ;;  %v3720_v48 = vrot.slane %v3718_v43, 4  ;;  %v606_v52 = vrot.slane %v604_v54, 7  ;;  %v844_v55 = vld [vmem:[#allocation2 + $0x80] sm:$0x1]  ;;  %v6412_v32 = vld [vmem:[%s9500_s3 + $0x1c] sm:$0xf] }
  0x94   : > { %v614_v6 = vrot.slane %v612_v33, 7  ;;  %v623_v0 = vrot.slane %v621_v17, 7  ;;  %v624_v8 = vshll.u32 %v431_v28, 16  ;;  %v629_v10 = vshrl.u32 %v432_v62, 16  ;;  %v433_v37 = vld [vmem:[%s7602_s29 + $0x58] sm:$0xf] }
  0x95   : > { %v8099_v36 = vsel %vm7812_vm1, %v3720_v48, %v3721_v50  ;;  %v609_v57 = vor.u32 %v607_v26, %v606_v52  ;;  %v610_v56 = vrot.slane %v606_v52, 4  ;;  %v632_v39 = vshll.u32 %v432_v62, 16  ;;  %v434_v62 = vld [vmem:[%s7602_s29 + $0x5c] sm:$0xf] }
  0x96   : > { %v6350_v16 = vcombine.low %v8095_v12, %v8099_v36  ;;  %v617_v59 = vor.u32 %v615_v4, %v614_v6  ;;  %v619_v38 = vrot.slane %v614_v6, 4  ;;  %v626_v40 = vor.u32 %v624_v8, %v623_v0 }
  0x97   : > { %v1009_v58 = vld [vmem:[#allocation2 + $0x6c] sm:$0x1]  ;;  %v841_v28 = vsel %vm7619_vm7, %v609_v57, %v840_v14  ;;  %v627_v45 = vrot.slane %v623_v0, 4  ;;  %v631_v44 = vrot.slane %v629_v10, 7  ;;  %v6334_v47 = vrot.slane %v3635_v27, 9 }
  0x98   : > { %6987 = vmatmul.mubr.msk.bf16.vlgmr.msra.gmra.mrb[0].mxu0 %vm1580_vm12, %v6348_v35  ;;  %v1010_v29 = vsel %vm7625_vm8, 0, %v1009_v58  ;;  %v1064_v51 = vld [vmem:[#allocation2 + $0x74] sm:$0x1]  ;;  %v8114_v3 = vld [vmem:[#allocation2 + $0x70] sm:$0xf]  ;;  %v618_v42 = vsel %vm7612_vm6, %v610_v56, %v617_v59  ;;  %v845_v30 = vsel %vm7625_vm8, %v619_v38, %v844_v55  ;;  %v848_v7 = vsel %vm7619_vm7, %v626_v40, %v847_v13 }
  0x99   : > { %842 = vst [vmem:[#allocation2 + $0x78] sm:$0xf] %v841_v28  ;;  %1011 = vst [vmem:[#allocation2 + $0x6c] sm:$0x1] %v1010_v29  ;;  %v1065_v15 = vsel %vm7670_vm9, 0, %v1064_v51  ;;  %v1372_v18 = vshll.u32 %v8114_v3, 16  ;;  %7019 = vmatpush3.bf16.msra.mxu0 %v8056_v19  ;;  %6990 = vmatprep.mubr.msk.bf16.mxu0 %vm1580_vm12, %v6349_v24  ;;  %v634_v25 = vor.u32 %v632_v39, %v631_v44 }
  0x9a   : > { %v1376_v35 = vshrl.u32 %v8114_v3, 16  ;;  %843 = vst.msk [vmem:[#allocation2 + $0x7c] sm:$0xf] %vm771_vm4, %v618_v42  ;;  %846 = vst [vmem:[#allocation2 + $0x80] sm:$0x1] %v845_v30  ;;  %v636_v43 = vrot.slane %v631_v44, 4  ;;  %7386 = vmatprep.subr.msk.bf16.mxu0 %vm1629_vm0, %v6412_v32 }
  0x9b   : > { %849 = vst [vmem:[#allocation2 + $0x84] sm:$0xf] %v848_v7  ;;  %1066 = vst [vmem:[#allocation2 + $0x74] sm:$0x1] %v1065_v15  ;;  %v3725_v50 = vrot.slane %v7902_v34, 5  ;;  %v3728_v54 = vrot.slane %v7940_v63, 5  ;;  %v635_v33 = vsel %vm7612_vm6, %v627_v45, %v634_v25 }
  0x9c   : > { %v6335_v26 = vrot.slane %v3636_v61, 9  ;;  %v8134_v31 = vrot.slane %v1372_v18, 5  ;;  %v1378_v19 = vrot.slane %v1376_v35, 4  ;;  %v3732_v4 = vrot.slane %v7922_v1, 5  ;;  %850 = vst.msk [vmem:[#allocation2 + $0x88] sm:$0xf] %vm771_vm4, %v635_v33 }
  0x9d   : > { %v852_v14 = vsel %vm7625_vm8, %v636_v43, %v851_v46  ;;  %v3726_v34 = vsel %vm7812_vm1, %v6334_v47, %v3725_v50  ;;  %v3727_v63 = vrot.slane %v3725_v50, 4  ;;  %v3735_v17 = vrot.slane %v7950_v41, 5  ;;  %v854_v47 = vld [vmem:[#allocation2 + $0x90] sm:$0xf]  ;;  %v435_v15 = vld [vmem:[%s7602_s29 + $0x60] sm:$0xf] }
  0x9e   : > { %v1379_v27 = vor.u32 %v1378_v19, %v8134_v31  ;;  %853 = vst [vmem:[#allocation2 + $0x8c] sm:$0x1] %v852_v14  ;;  %v8148_v24 = vsel %vm7812_vm1, %v6335_v26, %v3732_v4  ;;  %v3734_v12 = vrot.slane %v3732_v4, 4  ;;  %v638_v1 = vshrl.u32 %v433_v37, 16  ;;  %v436_v19 = vld [vmem:[%s7602_s29 + $0x64] sm:$0xf] }
  0x9f   : > { %v3729_v48 = vsel %vm7812_vm1, %v3727_v63, %v3728_v54  ;;  %v641_v52 = vshll.u32 %v433_v37, 16  ;;  %v646_v55 = vshrl.u32 %v434_v62, 16  ;;  %v649_v13 = vshll.u32 %v434_v62, 16  ;;  %v858_v63 = vld [vmem:[#allocation2 + $0x98] sm:$0x1] }
  0xa0   : > { %v8152_v6 = vrot.slane %v1379_v27, 4  ;;  %v1012_v0 = vld [vmem:[#allocation2 + $0x78] sm:$0x1]  ;;  %v6351_v8 = vcombine.low %v3726_v34, %v3729_v48  ;;  %v3736_v41 = vsel %vm7812_vm1, %v3734_v12, %v3735_v17  ;;  %v640_v10 = vrot.slane %v638_v1, 7  ;;  %v8156_v36 = vld [vmem:[#allocation2 + $0x6c] sm:$0xf]  ;;  %6991 = vmatmul.mubr.msk.bf16.gmra.mrb[4].mxu0 %vm1580_vm12, %v6350_v16 }
  0xa1   : > { %v1013_v57 = vsel %vm7625_vm8, 0, %v1012_v0  ;;  %v1067_v56 = vld [vmem:[#allocation2 + $0x80] sm:$0x1]  ;;  %v648_v39 = vrot.slane %v646_v55, 7  ;;  %v1363_v32 = vshrl.u32 %v8156_v36, 16  ;;  %v1366_v59 = vshll.u32 %v8156_v36, 16 }
  0xa2   : > { %v1136_v61 = vld [vmem:[#allocation2 + $0x74] sm:$0x1]  ;;  %1014 = vst [vmem:[#allocation2 + $0x78] sm:$0x1] %v1013_v57  ;;  %v1068_v38 = vsel %vm7670_vm9, 0, %v1067_v56  ;;  %6994 = vmatprep.mubr.msk.bf16.mxu0 %vm1580_vm12, %v6351_v8  ;;  %v6352_v40 = vcombine.low %v8148_v24, %v3736_v41  ;;  %v643_v45 = vor.u32 %v641_v52, %v640_v10  ;;  %v644_v44 = vrot.slane %v640_v10, 4 }
  0xa3   : > { %v1382_v16 = vshll.u32 %v1136_v61, 16  ;;  %1069 = vst [vmem:[#allocation2 + $0x80] sm:$0x1] %v1068_v38  ;;  %v8167_v58 = vld [vmem:[#allocation2 + $0x7c] sm:$0xf]  ;;  %v651_v46 = vor.u32 %v649_v13, %v648_v39  ;;  %v1365_v29 = vrot.slane %v1363_v32, 4 }
  0xa4   : > { %v1015_v28 = vld [vmem:[#allocation2 + $0x84] sm:$0x1]  ;;  %v1368_v51 = vrot.slane %v1366_v59, 5  ;;  %v1396_v42 = vshll.u32 %v8167_v58, 16  ;;  %v1400_v30 = vshrl.u32 %v8167_v58, 16  ;;  %v653_v24 = vrot.slane %v648_v39, 4 }
  0xa5   : > { %v8171_v7 = vld [vmem:[#allocation2 + $0x88] sm:$0xf]  ;;  %v1384_v18 = vrot.slane %v1382_v16, 5  ;;  %v1016_v35 = vsel %vm7625_vm8, 0, %v1015_v28  ;;  %v1070_v25 = vld [vmem:[#allocation2 + $0x8c] sm:$0x1]  ;;  %v652_v34 = vsel %vm7612_vm6, %v644_v44, %v651_v46  ;;  %v855_v12 = vsel %vm7619_vm7, %v643_v45, %v854_v47 }
  0xa6   : > { %v1420_v37 = vshll.u32 %v8171_v7, 16  ;;  %v1424_v43 = vshrl.u32 %v8171_v7, 16  ;;  %v1369_v50 = vor.u32 %v1368_v51, %v1365_v29  ;;  %v8178_v54 = vrot.slane %v1396_v42, 5  ;;  %1017 = vst [vmem:[#allocation2 + $0x84] sm:$0x1] %v1016_v35 }
  0xa7   : > { %v1402_v26 = vrot.slane %v1400_v30, 4  ;;  %v1071_v62 = vsel %vm7670_vm9, 0, %v1070_v25  ;;  %v1385_v33 = vsel %vm7746_vm13, %v8152_v6, %v1384_v18  ;;  %857 = vst.msk [vmem:[#allocation2 + $0x94] sm:$0xf] %vm771_vm4, %v652_v34  ;;  %v8194_v1 = vld [vmem:[#allocation2 + $0x54] sm:$0xe]  ;;  %v859_v32 = vsel %vm7625_vm8, %v653_v24, %v858_v63 }
  0xa8   : > { %1072 = vst [vmem:[#allocation2 + $0x8c] sm:$0x1] %v1071_v62  ;;  %v8186_v4 = vrot.slane %v1420_v37, 5  ;;  %v1426_v14 = vrot.slane %v1424_v43, 4  ;;  %v1370_v17 = vrot.slane %v1369_v50, 4  ;;  %6995 = vmatmul.mubr.msk.bf16.gmra.mrb[8].mxu0 %vm1580_vm12, %v6352_v40  ;;  %v655_v55 = vshrl.u32 %v435_v15, 16 }
  0xa9   : > { %v1403_v27 = vor.u32 %v1402_v26, %v8178_v54  ;;  %v8196_v48 = vld [vmem:[#allocation2 + $0x78] sm:$0xf]  ;;  %856 = vst [vmem:[#allocation2 + $0x90] sm:$0xf] %v855_v12  ;;  %v658_v13 = vshll.u32 %v435_v15, 16  ;;  %v663_v6 = vshrl.u32 %v436_v19, 16 }
  0xaa   : > { %v1427_v52 = vor.u32 %v1426_v14, %v8186_v4  ;;  %v1375_v0 = vsel %vm7746_vm13, %v1370_v17, %v8134_v31  ;;  %v1137_v8 = vld [vmem:[#allocation2 + $0x80] sm:$0x1]  ;;  %v1387_v41 = vshrl.u32 %v8196_v48, 16  ;;  %v1390_v10 = vshll.u32 %v8196_v48, 16  ;;  %860 = vst [vmem:[#allocation2 + $0x98] sm:$0x1] %v859_v32 }
  0xab   : > { %v1404_v57 = vrot.slane %v1403_v27, 4  ;;  %v6160_v56 = vcombine.low %v1375_v0, %v1385_v33  ;;  %v1406_v39 = vshll.u32 %v1137_v8, 16  ;;  %v657_v40 = vrot.slane %v655_v55, 7  ;;  %v861_v15 = vld [vmem:[#allocation2 + $0x9c] sm:$0xf] }
  0xac   : > { %v8205_v61 = vrot.slane %v1427_v52, 4  ;;  %v1389_v59 = vrot.slane %v1387_v41, 4  ;;  %v1392_v38 = vrot.slane %v1390_v10, 5  ;;  %v665_v16 = vrot.slane %v663_v6, 7  ;;  %v865_v50 = vld [vmem:[#allocation2 + $0xa4] sm:$0x1] }
  0xad   : > { %6833 = vmatmul.mubr.msk.bf16.gmra.mrb[16].mxu1 %vm1580_vm12, %v6160_v56  ;;  %v1408_v31 = vrot.slane %v1406_v39, 5  ;;  %v8210_v28 = vld [vmem:[#allocation2 + $0x84] sm:$0xf]  ;;  %v666_v45 = vshll.u32 %v436_v19, 16  ;;  %v6336_v44 = vrot.slane %v8194_v1, 9  ;;  %v3739_v46 = vrot.slane %v7960_v49, 5 }
  0xae   : > { %v1393_v47 = vor.u32 %v1392_v38, %v1389_v59  ;;  %v1411_v51 = vshrl.u32 %v8210_v28, 16  ;;  %v1414_v42 = vshll.u32 %v8210_v28, 16  ;;  %v660_v30 = vor.u32 %v658_v13, %v657_v40  ;;  %v8218_v25 = vld [vmem:[#allocation2 + $0x94] sm:$0xf]  ;;  %v3638_v27 = vld [vmem:[#allocation2 + $0x60] sm:$0xe] }
  0xaf   : > { %v1138_v29 = vld [vmem:[#allocation2 + $0x8c] sm:$0x1]  ;;  %v1409_v18 = vsel %vm7746_vm13, %v1404_v57, %v1408_v31  ;;  %v661_v37 = vrot.slane %v657_v40, 4  ;;  %v668_v43 = vor.u32 %v666_v45, %v665_v16  ;;  %v1444_v33 = vshll.u32 %v8218_v25, 16  ;;  %v437_v41 = vld [vmem:[%s7602_s29 + $0x68] sm:$0xf] }
  0xb0   : > { %v1430_v35 = vshll.u32 %v1138_v29, 16  ;;  %v1394_v26 = vrot.slane %v1393_v47, 4  ;;  %v1413_v62 = vrot.slane %v1411_v51, 4  ;;  %v1416_v49 = vrot.slane %v1414_v42, 5  ;;  %v1018_v19 = vld [vmem:[#allocation2 + $0x90] sm:$0x1] }
  0xb1   : > { %v1019_v34 = vsel %vm7625_vm8, 0, %v1018_v19  ;;  %v1448_v63 = vshrl.u32 %v8218_v25, 16  ;;  %v669_v17 = vsel %vm7612_vm6, %v661_v37, %v668_v43  ;;  %v8229_v1 = vrot.slane %v1444_v33, 5  ;;  %v1073_v6 = vld [vmem:[#allocation2 + $0x98] sm:$0x1] }
  0xb2   : > { %v1432_v14 = vrot.slane %v1430_v35, 5  ;;  %v1399_v24 = vsel %vm7746_vm13, %v1394_v26, %v8178_v54  ;;  %v1417_v12 = vor.u32 %v1416_v49, %v1413_v62  ;;  %1020 = vst [vmem:[#allocation2 + $0x90] sm:$0x1] %v1019_v34  ;;  %v670_v52 = vrot.slane %v665_v16, 4  ;;  %864 = vst.msk [vmem:[#allocation2 + $0xa0] sm:$0xf] %vm771_vm4, %v669_v17 }
  0xb3   : > { %v6161_v55 = vcombine.low %v1399_v24, %v1409_v18  ;;  %v1450_v0 = vrot.slane %v1448_v63, 4  ;;  %v862_v8 = vsel %vm7619_vm7, %v660_v30, %v861_v15  ;;  %v1074_v10 = vsel %vm7670_vm9, 0, %v1073_v6  ;;  %v438_v16 = vld [vmem:[%s7602_s29 + $0x6c] sm:$0xf]  ;;  %v439_v34 = vld [vmem:[%s7602_s29 + $0x70] sm:$0xf] }
  0xb4   : > { %v1433_v13 = vsel %vm7746_vm13, %v8205_v61, %v1432_v14  ;;  %v1418_v54 = vrot.slane %v1417_v12, 4  ;;  %863 = vst [vmem:[#allocation2 + $0x9c] sm:$0xf] %v862_v8  ;;  %v866_v57 = vsel %vm7625_vm8, %v670_v52, %v865_v50  ;;  %v3740_v56 = vsel %vm7812_vm1, %v6336_v44, %v3739_v46  ;;  %1075 = vst [vmem:[#allocation2 + $0x98] sm:$0x1] %v1074_v10 }
  0xb5   : > { %6836 = vmatprep.mubr.msk.bf16.mxu1 %vm1580_vm12, %v6161_v55  ;;  %v1451_v39 = vor.u32 %v1450_v0, %v8229_v1  ;;  %867 = vst [vmem:[#allocation2 + $0xa4] sm:$0x1] %v866_v57  ;;  %v3741_v61 = vrot.slane %v3739_v46, 4  ;;  %v3742_v32 = vrot.slane %v7993_v60, 5  ;;  %v6337_v59 = vrot.slane %v3638_v27, 9 }
  0xb6   : > { %v1423_v38 = vsel %vm7746_vm13, %v1418_v54, %v8186_v4  ;;  %v3746_v40 = vrot.slane %v8002_v21, 5  ;;  %v672_v31 = vshrl.u32 %v437_v41, 16  ;;  %v3749_v47 = vrot.slane %v8043_v53, 5  ;;  %v868_v50 = vld [vmem:[#allocation2 + $0xa8] sm:$0xf] }
  0xb7   : > { %v6162_v45 = vcombine.low %v1423_v38, %v1433_v13  ;;  %v3743_v44 = vsel %vm7812_vm1, %v3741_v61, %v3742_v32  ;;  %v675_v29 = vshll.u32 %v437_v41, 16  ;;  %v8255_v51 = vrot.slane %v1451_v39, 4  ;;  %v872_v14 = vld [vmem:[#allocation2 + $0xb0] sm:$0x1]  ;;  %v440_v8 = vld [vmem:[%s7602_s29 + $0x74] sm:$0xf] }
  0xb8   : > { %v6353_v46 = vcombine.low %v3740_v56, %v3743_v44  ;;  %v3748_v60 = vrot.slane %v3746_v40, 4  ;;  %v674_v42 = vrot.slane %v672_v31, 7  ;;  %v3747_v21 = vsel %vm7812_vm1, %v6337_v59, %v3746_v40  ;;  %v2930_v56 = vld [vmem:[#allocation2 + $0x70] sm:$0xf]  ;;  %v3639_v59 = vld [vmem:[#allocation2 + $0x6c] sm:$0xe] }
  0xb9   : > { %6837 = vmatmul.mubr.msk.bf16.gmra.mrb[20].mxu1 %vm1580_vm12, %v6162_v45  ;;  %v8258_v30 = vld [vmem:[#allocation2 + $0x90] sm:$0xf]  ;;  %v8260_v4 = vld [vmem:[#allocation2 + $0xa0] sm:$0xf]  ;;  %v680_v15 = vshrl.u32 %v438_v16, 16  ;;  %v683_v18 = vshll.u32 %v438_v16, 16 }
  0xba   : > { %v1435_v53 = vshrl.u32 %v8258_v30, 16  ;;  %v1438_v35 = vshll.u32 %v8258_v30, 16  ;;  %v1468_v37 = vshll.u32 %v8260_v4, 16  ;;  %v1472_v43 = vshrl.u32 %v8260_v4, 16  ;;  %6998 = vmatprep.mubr.msk.bf16.mxu0 %vm1580_vm12, %v6353_v46  ;;  %v2931_v45 = vld [vmem:[#allocation2 + $0x74] sm:$0x1] }
  0xbb   : > { %v1021_v26 = vld [vmem:[#allocation2 + $0x9c] sm:$0x1]  ;;  %v3750_v62 = vsel %vm7812_vm1, %v3748_v60, %v3749_v47  ;;  %v677_v49 = vor.u32 %v675_v29, %v674_v42  ;;  %v678_v19 = vrot.slane %v674_v42, 4  ;;  %v682_v33 = vrot.slane %v680_v15, 7  ;;  %v1139_v63 = vld [vmem:[#allocation2 + $0x98] sm:$0x1] }
  0xbc   : > { %v1437_v17 = vrot.slane %v1435_v53, 4  ;;  %v1440_v27 = vrot.slane %v1438_v35, 5  ;;  %v1022_v24 = vsel %vm7625_vm8, 0, %v1021_v26  ;;  %v8274_v12 = vrot.slane %v1468_v37, 5  ;;  %v1076_v55 = vld [vmem:[#allocation2 + $0xa4] sm:$0x1] }
  0xbd   : > { %v1454_v52 = vshll.u32 %v1139_v63, 16  ;;  %1023 = vst [vmem:[#allocation2 + $0x9c] sm:$0x1] %v1022_v24  ;;  %v1474_v13 = vrot.slane %v1472_v43, 4  ;;  %v6354_v6 = vcombine.low %v3747_v21, %v3750_v62  ;;  %v685_v0 = vor.u32 %v683_v18, %v682_v33  ;;  %v875_v21 = vld [vmem:[#allocation2 + $0xb4] sm:$0xf] }
  0xbe   : > { %v1441_v41 = vor.u32 %v1440_v27, %v1437_v17  ;;  %v1077_v54 = vsel %vm7670_vm9, 0, %v1076_v55  ;;  %v687_v10 = vrot.slane %v682_v33, 4  ;;  %v869_v57 = vsel %vm7619_vm7, %v677_v49, %v868_v50  ;;  %v879_v43 = vld [vmem:[#allocation2 + $0xbc] sm:$0x1]  ;;  %v7474_v23 = vld [vmem:[#allocation2 + $0x74] sm:$0x1] }
  0xbf   : > { %v1456_v39 = vrot.slane %v1454_v52, 5  ;;  %1078 = vst [vmem:[#allocation2 + $0xa4] sm:$0x1] %v1077_v54  ;;  %6999 = vmatmul.mubr.msk.bf16.gmra.mrb[12].mxu0 %vm1580_vm12, %v6354_v6  ;;  %v686_v61 = vsel %vm7612_vm6, %v678_v19, %v685_v0  ;;  %870 = vst [vmem:[#allocation2 + $0xa8] sm:$0xf] %v869_v57  ;;  %v689_v32 = vshrl.u32 %v439_v34, 16  ;;  %v1475_v47 = vor.u32 %v1474_v13, %v8274_v12 }
  0xc0   : > { %v1442_v38 = vrot.slane %v1441_v41, 4  ;;  %871 = vst.msk [vmem:[#allocation2 + $0xac] sm:$0xf] %vm771_vm4, %v686_v61  ;;  %v873_v40 = vsel %vm7625_vm8, %v687_v10, %v872_v14  ;;  %v692_v16 = vshll.u32 %v439_v34, 16  ;;  %v697_v31 = vshrl.u32 %v440_v8, 16 }
  0xc1   : > { %v1457_v44 = vsel %vm7746_vm13, %v8255_v51, %v1456_v39  ;;  %874 = vst [vmem:[#allocation2 + $0xb0] sm:$0x1] %v873_v40  ;;  %v691_v29 = vrot.slane %v689_v32, 7  ;;  %v700_v46 = vshll.u32 %v440_v8, 16  ;;  %v6338_v15 = vrot.slane %v3639_v59, 9 }
  0xc2   : > { %v1447_v60 = vsel %vm7746_vm13, %v1442_v38, %v8229_v1  ;;  %v699_v42 = vrot.slane %v697_v31, 7  ;;  %v3753_v18 = vrot.slane %v2930_v56, 5  ;;  %v3756_v50 = vrot.slane %v2931_v45, 5  ;;  %v3640_v34 = vld [vmem:[#allocation2 + $0x78] sm:$0xe] }
  0xc3   : > { %v6163_v53 = vcombine.low %v1447_v60, %v1457_v44  ;;  %v694_v35 = vor.u32 %v692_v16, %v691_v29  ;;  %v695_v37 = vrot.slane %v691_v29, 4  ;;  %v1476_v17 = vrot.slane %v1475_v47, 4  ;;  %v8316_v39 = vld [vmem:[#allocation2 + $0x7c] sm:$0xf]  ;;  %v8320_v38 = vld [vmem:[#allocation2 + $0x80] sm:$0x1] }
  0xc4   : > { %v8294_v26 = vld [vmem:[#allocation2 + $0x9c] sm:$0xf]  ;;  %v702_v51 = vor.u32 %v700_v46, %v699_v42  ;;  %v704_v62 = vrot.slane %v699_v42, 4  ;;  %v3755_v49 = vrot.slane %v3753_v18, 4  ;;  %v3754_v14 = vsel %vm7812_vm1, %v6338_v15, %v3753_v18  ;;  %v2936_v60 = vld [vmem:[#allocation2 + $0x88] sm:$0xf] }
  0xc5   : > { %6840 = vmatprep.mubr.msk.bf16.mxu1 %vm1580_vm12, %v6163_v53  ;;  %v1459_v19 = vshrl.u32 %v8294_v26, 16  ;;  %v1462_v1 = vshll.u32 %v8294_v26, 16  ;;  %v876_v33 = vsel %vm7619_vm7, %v694_v35, %v875_v21  ;;  %v6339_v31 = vrot.slane %v3640_v34, 9  ;;  %v2937_v42 = vld [vmem:[#allocation2 + $0x8c] sm:$0x1] }
  0xc6   : > { %v1140_v63 = vld [vmem:[#allocation2 + $0xa4] sm:$0x1]  ;;  %v1024_v27 = vld [vmem:[#allocation2 + $0xa8] sm:$0x1]  ;;  %v703_v24 = vsel %vm7612_vm6, %v695_v37, %v702_v51  ;;  %877 = vst [vmem:[#allocation2 + $0xb4] sm:$0xf] %v876_v33  ;;  %v880_v52 = vsel %vm7625_vm8, %v704_v62, %v879_v43  ;;  %v3757_v55 = vsel %vm7812_vm1, %v3755_v49, %v3756_v50 }
  0xc7   : > { %v1461_v13 = vrot.slane %v1459_v19, 4  ;;  %v1464_v6 = vrot.slane %v1462_v1, 5  ;;  %v1478_v0 = vshll.u32 %v1140_v63, 16  ;;  %v1025_v8 = vsel %vm7625_vm8, 0, %v1024_v27  ;;  %v8311_v41 = vld [vmem:[#allocation2 + $0xac] sm:$0xf] }
  0xc8   : > { %878 = vst.msk [vmem:[#allocation2 + $0xb8] sm:$0xf] %vm771_vm4, %v703_v24  ;;  %881 = vst [vmem:[#allocation2 + $0xbc] sm:$0x1] %v880_v52  ;;  %v1079_v54 = vld [vmem:[#allocation2 + $0xb0] sm:$0x1]  ;;  %v6355_v56 = vcombine.low %v3754_v14, %v3757_v55 }
  0xc9   : > { %1026 = vst [vmem:[#allocation2 + $0xa8] sm:$0x1] %v1025_v8  ;;  %v1492_v10 = vshll.u32 %v8311_v41, 16  ;;  %v1496_v57 = vshrl.u32 %v8311_v41, 16  ;;  %v1465_v61 = vor.u32 %v1464_v6, %v1461_v13  ;;  %v1480_v32 = vrot.slane %v1478_v0, 5 }
  0xca   : > { %v1080_v59 = vsel %vm7670_vm9, 0, %v1079_v54  ;;  %7002 = vmatprep.mubr.msk.bf16.mxu0 %vm1580_vm12, %v6355_v56  ;;  %v3760_v47 = vrot.slane %v8316_v39, 5  ;;  %v3763_v46 = vrot.slane %v8320_v38, 5  ;;  %v3641_v21 = vld [vmem:[#allocation2 + $0x84] sm:$0xe]  ;;  %v3770_v56 = vrot.slane %v2937_v42, 5 }
  0xcb   : > { %1081 = vst [vmem:[#allocation2 + $0xb0] sm:$0x1] %v1080_v59  ;;  %v8322_v40 = vrot.slane %v1492_v10, 5  ;;  %v1498_v16 = vrot.slane %v1496_v57, 4  ;;  %v1466_v45 = vrot.slane %v1465_v61, 4  ;;  %v1481_v44 = vsel %vm7746_vm13, %v1476_v17, %v1480_v32 }
  0xcc   : > { %v3761_v53 = vsel %vm7812_vm1, %v6339_v31, %v3760_v47  ;;  %v3762_v35 = vrot.slane %v3760_v47, 4  ;;  %v3642_v37 = vld [vmem:[#allocation2 + $0x90] sm:$0xe]  ;;  %v8341_v19 = vld [vmem:[#allocation2 + $0x4] sm:$0xf]  ;;  %v6340_v6 = vrot.slane %v3641_v21, 9 }
  0xcd   : > { %v1499_v29 = vor.u32 %v1498_v16, %v8322_v40  ;;  %v1471_v15 = vsel %vm7746_vm13, %v1466_v45, %v8274_v12  ;;  %v1027_v18 = vld [vmem:[#allocation2 + $0xb4] sm:$0x1]  ;;  %v8343_v1 = vld [vmem:[#allocation2] sm:$0xf]  ;;  %v3643_v24 = vld [vmem:[#allocation2 + $0x9c] sm:$0xe] }
  0xce   : > { %v6164_v43 = vcombine.low %v1471_v15, %v1481_v44  ;;  %v1028_v51 = vsel %vm7625_vm8, 0, %v1027_v18  ;;  %v6183_v12 = vcombine.low %v8343_v1, %v8341_v19  ;;  %v2939_v33 = vld [vmem:[#allocation2 + $0x94] sm:$0xf]  ;;  %v3764_v27 = vsel %vm7812_vm1, %v3762_v35, %v3763_v46  ;;  %v2940_v0 = vld [vmem:[#allocation2 + $0x98] sm:$0x1] }
  0xcf   : > { %v8335_v50 = vrot.slane %v1499_v29, 4  ;;  %v1082_v62 = vld [vmem:[#allocation2 + $0xbc] sm:$0x1]  ;;  %v8339_v49 = vld [vmem:[#allocation2 + $0xb8] sm:$0xf]  ;;  %v6356_v13 = vcombine.low %v3761_v53, %v3764_v27  ;;  %v3767_v57 = vrot.slane %v2936_v60, 5 }
  0xd0   : > { %v8347_v14 = vld [vmem:[#allocation2 + $0xa8] sm:$0xf]  ;;  %1029 = vst [vmem:[#allocation2 + $0xb4] sm:$0x1] %v1028_v51  ;;  %v1083_v34 = vsel %vm7670_vm9, 0, %v1082_v62  ;;  %v1516_v63 = vshll.u32 %v8339_v49, 16  ;;  %6841 = vmatmul.mubr.msk.bf16.gmra.mrb[24].mxu1 %vm1580_vm12, %v6164_v43 }
  0xd1   : > { %v1520_v17 = vshrl.u32 %v8339_v49, 16  ;;  %v1483_v52 = vshrl.u32 %v8347_v14, 16  ;;  %v1486_v55 = vshll.u32 %v8347_v14, 16  ;;  %1084 = vst [vmem:[#allocation2 + $0xbc] sm:$0x1] %v1083_v34  ;;  %7003 = vmatmul.mubr.msk.bf16.gmra.mrb[16].mxu0 %vm1580_vm12, %v6356_v13  ;;  %v6341_v16 = vrot.slane %v3642_v37, 9 }
  0xd2   : > { %v8358_v8 = vld [vmem:[#allocation2 + $0xb0] sm:$0x1]  ;;  %v8360_v54 = vrot.slane %v1516_v63, 5  ;;  %v2942_v31 = vld [vmem:[#allocation2 + $0xa0] sm:$0xf]  ;;  %v3768_v44 = vsel %vm7812_vm1, %v6340_v6, %v3767_v57  ;;  %v3769_v47 = vrot.slane %v3767_v57, 4 }
  0xd3   : > { %v1522_v10 = vrot.slane %v1520_v17, 4  ;;  %v1485_v61 = vrot.slane %v1483_v52, 4  ;;  %v1488_v32 = vrot.slane %v1486_v55, 5  ;;  %v1502_v59 = vshll.u32 %v8358_v8, 16  ;;  %v2943_v60 = vld [vmem:[#allocation2 + $0xa4] sm:$0x1] }
  0xd4   : > { %v3774_v29 = vrot.slane %v2939_v33, 5  ;;  %v3777_v15 = vrot.slane %v2940_v0, 5  ;;  %v6342_v42 = vrot.slane %v3643_v24, 9  ;;  %v3771_v53 = vsel %vm7812_vm1, %v3769_v47, %v3770_v56  ;;  %v2945_v43 = vld [vmem:[#allocation2 + $0xac] sm:$0xf] }
  0xd5   : > { %v1523_v45 = vor.u32 %v1522_v10, %v8360_v54  ;;  %v1489_v46 = vor.u32 %v1488_v32, %v1485_v61  ;;  %v1504_v21 = vrot.slane %v1502_v59, 5  ;;  %v2946_v51 = vld [vmem:[#allocation2 + $0xb0] sm:$0x1]  ;;  %v3644_v62 = vld [vmem:[#allocation2 + $0xa8] sm:$0xe]  ;;  %v6357_v17 = vcombine.low %v3768_v44, %v3771_v53 }
  0xd6   : > { %v3775_v35 = vsel %vm7812_vm1, %v6341_v16, %v3774_v29  ;;  %v3776_v37 = vrot.slane %v3774_v29, 4  ;;  %v3781_v27 = vrot.slane %v2942_v31, 5  ;;  %v3784_v6 = vrot.slane %v2943_v60, 5  ;;  %v2948_v56 = vld [vmem:[#allocation2 + $0xb8] sm:$0xf] }
  0xd7   : > { %v1524_v18 = vrot.slane %v1523_v45, 4  ;;  %v1490_v34 = vrot.slane %v1489_v46, 4  ;;  %v1505_v33 = vsel %vm7746_vm13, %v8335_v50, %v1504_v21  ;;  %v8374_v63 = vld [vmem:[#allocation2 + $0xb4] sm:$0xf]  ;;  %7006 = vmatprep.mubr.msk.bf16.mxu0 %vm1580_vm12, %v6357_v17  ;;  %v3788_v44 = vrot.slane %v2945_v43, 5 }
  0xd8   : > { %v8376_v24 = vld [vmem:[#allocation2 + $0xbc] sm:$0x1]  ;;  %v1507_v52 = vshrl.u32 %v8374_v63, 16  ;;  %v1510_v55 = vshll.u32 %v8374_v63, 16  ;;  %v3778_v13 = vsel %vm7812_vm1, %v3776_v37, %v3777_v15  ;;  %v3782_v57 = vsel %vm7812_vm1, %v6342_v42, %v3781_v27  ;;  %v3645_v61 = vld [vmem:[#allocation2 + $0xb4] sm:$0xe] }
  0xd9   : > { %v1495_v0 = vsel %vm7746_vm13, %v1490_v34, %v8322_v40  ;;  %v1526_v50 = vshll.u32 %v8376_v24, 16  ;;  %v6358_v10 = vcombine.low %v3775_v35, %v3778_v13  ;;  %v3783_v31 = vrot.slane %v3781_v27, 4  ;;  %v2949_v29 = vld [vmem:[#allocation2 + $0xbc] sm:$0x1]  ;;  %v441_v42 = vld [vmem:[%s7602_s29 + $0x78] sm:$0xf] }
  0xda   : > { %v6165_v32 = vcombine.low %v1495_v0, %v1505_v33  ;;  %v1509_v59 = vrot.slane %v1507_v52, 4  ;;  %v1512_v16 = vrot.slane %v1510_v55, 5  ;;  %v6343_v40 = vrot.slane %v3644_v62, 9  ;;  %v442_v53 = vld [vmem:[%s7602_s29 + $0x7c] sm:$0xf] }
  0xdb   : > { %v1528_v45 = vrot.slane %v1526_v50, 5  ;;  %7007 = vmatmul.mubr.msk.bf16.gmra.mrb[20].mxu0 %vm1580_vm12, %v6358_v10  ;;  %v3791_v47 = vrot.slane %v2946_v51, 5  ;;  %v3785_v21 = vsel %vm7812_vm1, %v3783_v31, %v3784_v6  ;;  %v6344_v15 = vrot.slane %v3645_v61, 9  ;;  %v7447_v1 = vld [vmem:[#allocation2 + $0xc] sm:$0xf] }
  0xdc   : > { %6844 = vmatprep.mubr.msk.bf16.mxu1 %vm1580_vm12, %v6165_v32  ;;  %v1513_v46 = vor.u32 %v1512_v16, %v1509_v59  ;;  %v3795_v60 = vrot.slane %v2948_v56, 5  ;;  %v6359_v37 = vcombine.low %v3782_v57, %v3785_v21  ;;  %v3789_v62 = vsel %vm7812_vm1, %v6343_v40, %v3788_v44  ;;  %v882_v32 = vld [vmem:[#allocation2 + $0xc0] sm:$0xf]  ;;  %v886_v59 = vld [vmem:[#allocation2 + $0xc8] sm:$0x1] }
  0xdd   : > { %v1529_v35 = vsel %vm7746_vm13, %v1524_v18, %v1528_v45  ;;  %v3790_v43 = vrot.slane %v3788_v44, 4  ;;  %v3798_v17 = vrot.slane %v2949_v29, 5  ;;  %v706_v52 = vshrl.u32 %v441_v42, 16  ;;  %v8423_v29 = vld [vmem:[#allocation2 + $0x10] sm:$0xf] }
  0xde   : > { %v1514_v51 = vrot.slane %v1513_v46, 4  ;;  %v3796_v34 = vsel %vm7812_vm1, %v6344_v15, %v3795_v60  ;;  %v3797_v33 = vrot.slane %v3795_v60, 4  ;;  %7010 = vmatprep.mubr.msk.bf16.mxu0 %vm1580_vm12, %v6359_v37  ;;  %v709_v55 = vshll.u32 %v441_v42, 16  ;;  %v7448_v46 = vld [vmem:[#allocation2 + $0x18] sm:$0xf] }
  0xdf   : > { %v3792_v27 = vsel %vm7812_vm1, %v3790_v43, %v3791_v47  ;;  %v714_v13 = vshrl.u32 %v442_v53, 16  ;;  %v717_v50 = vshll.u32 %v442_v53, 16  ;;  %v708_v56 = vrot.slane %v706_v52, 7  ;;  %v8427_v21 = vld [vmem:[#allocation2 + $0x1c] sm:$0xf] }
  0xe0   : > { %v1519_v18 = vsel %vm7746_vm13, %v1514_v51, %v8360_v54  ;;  %v6360_v6 = vcombine.low %v3789_v62, %v3792_v27  ;;  %v3799_v0 = vsel %vm7812_vm1, %v3797_v33, %v3798_v17  ;;  %v6185_v15 = vcombine.low %v7448_v46, %v8427_v21  ;;  %v7450_v60 = vld [vmem:[%s9500_s3 + $0x8] sm:$0xf]  ;;  %v8437_v53 = vld [vmem:[%s9500_s3 + $0xc] sm:$0xf]  ;;  %v445_v62 = vld [vmem:[%s388_s30] sm:$0xf] }
  0xe1   : > { %v6166_v10 = vcombine.low %v1519_v18, %v1529_v35  ;;  %v6361_v57 = vcombine.low %v3796_v34, %v3799_v0  ;;  %v716_v61 = vrot.slane %v714_v13, 7  ;;  %v711_v16 = vor.u32 %v709_v55, %v708_v56  ;;  %v8450_v17 = vld [vmem:[#allocation2 + $0x28] sm:$0xf]  ;;  %v7452_v27 = vld [vmem:[#allocation2 + $0x24] sm:$0xf] }
  0xe2   : > { %v712_v31 = vrot.slane %v708_v56, 4  ;;  %v2348_v42 = vsel %vm1629_vm0, %v7450_v60, 0  ;;  %v3179_v35 = vshll.u32 %v8316_v39, 16  ;;  %v3183_v43 = vshrl.u32 %v8316_v39, 16  ;;  %v446_v55 = vld [vmem:[%s388_s30 + $0x4] sm:$0xf] }
  0xe3   : > { %6845 = vmatmul.mubr.msk.bf16.gmra.mrb[28].mxu1 %vm1580_vm12, %v6166_v10  ;;  %7011 = vmatmul.mubr.msk.bf16.gmra.mrb[24].mxu0 %vm1580_vm12, %v6360_v6  ;;  %v719_v45 = vor.u32 %v717_v50, %v716_v61  ;;  %v721_v54 = vrot.slane %v716_v61, 4  ;;  %v883_v44 = vsel %vm7619_vm7, %v711_v16, %v882_v32  ;;  %v6186_v52 = vcombine.low %v7452_v27, %v8450_v17  ;;  %v7453_v13 = vld [vmem:[#allocation2 + $0x30] sm:$0xf]  ;;  %v8453_v18 = vld [vmem:[#allocation2 + $0x34] sm:$0xf] }
  0xe4   : > { %6850 = vmatprep.mubr.msk.bf16.mxu1 %vm1580_vm12, %v6183_v12  ;;  %7014 = vmatprep.mubr.msk.bf16.mxu0 %vm1580_vm12, %v6361_v57  ;;  %884 = vst [vmem:[#allocation2 + $0xc0] sm:$0xf] %v883_v44  ;;  %v6184_v12 = vcombine.low %v7447_v1, %v8423_v29  ;;  %v6187_v6 = vcombine.low %v7453_v13, %v8453_v18  ;;  %v952_v10 = vmul.bf16 0.0, %v445_v62  ;;  %v8458_v57 = vrot.slane %v3179_v35, 5  ;;  %v8466_v1 = vld [vmem:[#allocation2 + $0x40] sm:$0xf] }
  0xe5   : > { %v720_v40 = vsel %vm7612_vm6, %v712_v31, %v719_v45  ;;  %v887_v47 = vsel %vm7625_vm8, %v721_v54, %v886_v59  ;;  %v3185_v56 = vrot.slane %v3183_v43, 4  ;;  %v953_v61 = vmul.bf16 0.0, %v446_v55  ;;  %v7460_v13 = vld [vmem:[#allocation2 + $0x14] sm:$0x1] }
  0xe6   : > { %885 = vst.msk [vmem:[#allocation2 + $0xc4] sm:$0xf] %vm771_vm4, %v720_v40  ;;  %888 = vst [vmem:[#allocation2 + $0xc8] sm:$0x1] %v887_v47  ;;  %v955_v59 = vshrl.u32 %v952_v10, 16  ;;  %v958_v16 = vshll.u32 %v952_v10, 16 }
  0xe7   : > { %9541 = vst [vmem:[#allocation6_spill] sm:$0xff] %v8458_v57  ;;  %v8462_v31 = vshrl.u32 %v953_v61, 16  ;;  %v966_v45 = vshll.u32 %v953_v61, 16  ;;  %v3186_v44 = vor.u32 %v3185_v56, %v8458_v57  ;;  %v3189_v47 = vshll.u32 %v8320_v38, 16  ;;  %v7471_v57 = vld [vmem:[#allocation2 + $0x5c] sm:$0x1] }
  0xe8   : > { %v957_v40 = vrot.slane %v955_v59, 7  ;;  %v2087_v59 = vld [vmem:[#allocation2 + $0xc] sm:$0xe] }
  0xe9   : > { %v9503_v60 = vrot.slane %v8462_v31, 7  ;;  %v8485_v10 = vrot.slane %v3186_v44, 4  ;;  %v8487_v56 = vrot.slane %v3189_v47, 5  ;;  %v7464_v44 = vld [vmem:[#allocation2 + $0x60] sm:$0xf] }
  0xea   : > { %v960_v62 = vor.u32 %v958_v16, %v957_v40  ;;  %v961_v43 = vrot.slane %v957_v40, 4  ;;  %v6191_v47 = vcombine.low %v7464_v44, %v8495_v20  ;;  %v7466_v44 = vld [vmem:[#allocation2 + $0x20] sm:$0x1] }
  0xeb   : > { %6851 = vmatmul.mubr.msk.bf16.vlgmr.msra.gmra.mrb[0].mxu1 %vm1580_vm12, %v6184_v12  ;;  %v1030_v33 = vld [vmem:[#allocation2 + $0xc0] sm:$0x1]  ;;  %v3646_v0 = vld [vmem:[#allocation2 + $0xc0] sm:$0xe]  ;;  %v7456_v12 = vld [vmem:[#allocation2 + $0x3c] sm:$0xf]  ;;  %v968_v27 = vor.u32 %v966_v45, %v9503_v60 }
  0xec   : > { %6883 = vmatpush3.bf16.msra.mxu1 %v2348_v42  ;;  %6854 = vmatprep.mubr.msk.bf16.mxu1 %vm1580_vm12, %v6185_v15  ;;  %v1031_v39 = vsel %vm7625_vm8, 0, %v1030_v33  ;;  %v6345_v32 = vrot.slane %v3646_v0, 9  ;;  %v6188_v46 = vcombine.low %v7456_v12, %v8466_v1  ;;  %v975_v42 = vld [vmem:[#allocation2 + $0xcc] sm:$0xf]  ;;  %9542 = vst [vmem:[#allocation7_spill] sm:$0xff] %v8485_v10  ;;  %9543 = vst [vmem:[#allocation8_spill] sm:$0xff] %v8487_v56 }
  0xed   : > { %v1085_v37 = vld [vmem:[#allocation2 + $0xc8] sm:$0x1]  ;;  %7381 = vmatprep.subr.msk.bf16.mxu1 %vm1629_vm0, %v8437_v53  ;;  %v2951_v34 = vld [vmem:[#allocation2 + $0xc4] sm:$0xf]  ;;  %1032 = vst [vmem:[#allocation2 + $0xc0] sm:$0x1] %v1031_v39  ;;  %v969_v16 = vsel %vm7612_vm6, %v961_v43, %v968_v27 }
  0xee   : > { %v1086_v51 = vsel %vm7670_vm9, 0, %v1085_v37  ;;  %v3802_v50 = vrot.slane %v2951_v34, 5  ;;  %v7457_v34 = vld [vmem:[#allocation2 + $0x48] sm:$0xf]  ;;  %v8473_v33 = vld [vmem:[#allocation2 + $0x4c] sm:$0xf] }
  0xef   : > { %1087 = vst [vmem:[#allocation2 + $0xc8] sm:$0x1] %v1086_v51  ;;  %v2146_v51 = vrot.slane %v8423_v29, 5  ;;  %v6189_v38 = vcombine.low %v7457_v34, %v8473_v33  ;;  %v7412_v39 = vld [vmem:[#allocation2 + $0x18] sm:$0xff]   ;;  %v2139_v12 = vrot.slane %v8341_v19, 5  ;;  %v2174_v43 = vrot.slane %v8466_v1, 5 }
  0xf0   : > { %v3804_v54 = vrot.slane %v3802_v50, 4  ;;  %v3803_v35 = vsel %vm7812_vm1, %v6345_v32, %v3802_v50  ;;  %v976_v50 = vsel %vm7619_vm7, %v960_v62, %v975_v42  ;;  %v2086_v32 = vld [vmem:[#allocation2] sm:$0xe]  ;;  %v8492_v45 = vld [vmem:[#allocation2 + $0x58] sm:$0xf]  ;;  %v2153_v42 = vrot.slane %v8427_v21, 5 }
  0xf1   : > { %977 = vst [vmem:[#allocation2 + $0xcc] sm:$0xf] %v976_v50  ;;  %978 = vst.msk [vmem:[#allocation2 + $0xd0] sm:$0xf] %vm771_vm4, %v969_v16  ;;  %v2160_v21 = vrot.slane %v8450_v17, 5  ;;  %v6215_v34 = vrot.slane %v2086_v32, 9 }
  0xf2   : > { %v4463_v27 = vld [vmem:[#allocation2 + $0x18] sm:$0xf]  ;;  %v2148_v50 = vrot.slane %v2146_v51, 4  ;;  %v8523_v17 = vsel %vm1629_vm0, %v8437_v53, 0  ;;  %v2141_v16 = vrot.slane %v2139_v12, 4  ;;  %v2191_v10 = vrot.slane %v7471_v57, 5 }
  0xf3   : > { %6855 = vmatmul.mubr.msk.bf16.gmra.mrb[4].mxu1 %vm1580_vm12, %v6186_v52  ;;  %v8478_v52 = vld [vmem:[#allocation2 + $0x8] sm:$0x1]  ;;  %v2162_v62 = vrot.slane %v2160_v21, 4  ;;  %v7467_v60 = vld [vmem:[#allocation2 + $0x2c] sm:$0x1]  ;;  %v8531_v53 = vsel %vm7812_vm1, %v6215_v34, %v2139_v12  ;;  %v4512_v12 = vshrl.u32 %v4463_v27, 16 }
  0xf4   : > { %6858 = vmatprep.mubr.msk.bf16.mxu1 %vm1580_vm12, %v6187_v6  ;;  %v2142_v55 = vrot.slane %v8478_v52, 5  ;;  %v2149_v6 = vrot.slane %v7460_v13, 5  ;;  %v7413_v13 = vld [vmem:[#allocation2 + $0x24] sm:$0xff]   ;;  %v2163_v19 = vrot.slane %v7467_v60, 5  ;;  %v4515_v34 = vshll.u32 %v4463_v27, 16 }
  0xf5   : > { %v8569_v52 = vld [vmem:[%s9500_s3 + $0x20] sm:$0xf]  ;;  %v9547_v57 = vrot.slane %v8462_v31, 7 }
  0xf6   : > { %v2952_v15 = vld [vmem:[#allocation2 + $0xc8] sm:$0x1]  ;;  %v8552_v29 = vsel %vm7812_vm1, %v2141_v16, %v2142_v55  ;;  %v8575_v55 = vsel %vm7812_vm1, %v2162_v62, %v2163_v19  ;;  %v7469_v16 = vld [vmem:[#allocation2 + $0x44] sm:$0x1] }
  0xf7   : > { %v3805_v37 = vrot.slane %v2952_v15, 5  ;;  %v2088_v15 = vld [vmem:[#allocation2 + $0x18] sm:$0xe]  ;;  %v4467_v19 = vld [vmem:[#allocation2 + $0x28] sm:$0xf] }
  0xf8   : > { %v1033_v11 = vld [vmem:[#allocation2 + $0xcc] sm:$0x1] }
  0xf9   : > { %v3806_v0 = vsel %vm7812_vm1, %v3804_v54, %v3805_v37  ;;  %v7462_v54 = vld [vmem:[#allocation2 + $0x54] sm:$0xf]  ;;  %v2089_v37 = vld [vmem:[#allocation2 + $0x24] sm:$0xe]  ;;  %v1034_v60 = vsel %vm7625_vm8, 0, %v1033_v11 }
  0xfa   : > { %v6362_v61 = vcombine.low %v3803_v35, %v3806_v0  ;;  %v6190_v40 = vcombine.low %v7462_v54, %v8492_v45  ;;  %v2155_v54 = vrot.slane %v2153_v42, 4  ;;  %v6218_v32 = vrot.slane %v2089_v37, 9  ;;  %1035 = vst [vmem:[#allocation2 + $0xcc] sm:$0x1] %v1034_v60 }
  0xfb   : > { %6859 = vmatmul.mubr.msk.bf16.gmra.mrb[8].mxu1 %vm1580_vm12, %v6188_v46  ;;  %v7465_v46 = vld [vmem:[%s9500_s3 + $0x1c] sm:$0xf]  ;;  %v2167_v37 = vrot.slane %v8453_v18, 5  ;;  %v8543_v0 = vsel %vm7812_vm1, %v2148_v50, %v2149_v6  ;;  %v2092_v6 = vld [vmem:[#allocation2 + $0x48] sm:$0xe] }
  0xfc   : > { %7015 = vmatmul.mubr.msk.bf16.gmra.mrb[28].mxu0 %vm1580_vm12, %v6362_v61  ;;  %6862 = vmatprep.mubr.msk.bf16.mxu1 %vm1580_vm12, %v6189_v38  ;;  %v4994_v35 = vsel %vm1629_vm0, %v7465_v46, 0  ;;  %v6216_v38 = vrot.slane %v2087_v59, 9  ;;  %v7414_v61 = vld [vmem:[#allocation2 + $0x30] sm:$0xff]   ;;  %v2156_v46 = vrot.slane %v7466_v44, 5  ;;  %v2091_v44 = vld [vmem:[#allocation2 + $0x3c] sm:$0xe] }
  0xfd   : > { %7020 = vmatprep.mubr.msk.bf16.mxu0 %vm1580_vm12, %v7412_v39  ;;  %v6217_v39 = vrot.slane %v2088_v15, 9  ;;  %v2090_v59 = vld [vmem:[#allocation2 + $0x30] sm:$0xe]  ;;  %v2169_v27 = vrot.slane %v2167_v37, 4  ;;  %v6220_v50 = vrot.slane %v2091_v44, 9  ;;  %v6221_v62 = vrot.slane %v2092_v6, 9 }
  0xfe   : > { %v8537_v15 = vsel %vm7812_vm1, %v6216_v38, %v2146_v51  ;;  %v8560_v1 = vsel %vm7812_vm1, %v2155_v54, %v2156_v46  ;;  %v8564_v51 = vsel %vm7812_vm1, %v6218_v32, %v2160_v21  ;;  %v2181_v21 = vrot.slane %v8473_v33, 5  ;;  %v4464_v38 = vld [vmem:[#allocation2 + $0x1c] sm:$0xf]  ;;  %v2093_v54 = vld [vmem:[#allocation2 + $0x54] sm:$0xe] }
  0xff   : > { %v8556_v18 = vsel %vm7812_vm1, %v6217_v39, %v2153_v42  ;;  %v7468_v42 = vld [vmem:[#allocation2 + $0x38] sm:$0x1]  ;;  %v2176_v39 = vrot.slane %v2174_v43, 4  ;;  %v7415_v46 = vld [vmem:[#allocation2 + $0x3c] sm:$0xff]   ;;  %v4514_v32 = vrot.slane %v4512_v12, 4  ;;  %v4525_v44 = vshrl.u32 %v4464_v38, 16 }
 0x100   : > { %v2170_v11 = vrot.slane %v7468_v42, 5  ;;  %v2183_v12 = vrot.slane %v2181_v21, 4 }
 0x102   : > { %v8595_v33 = vsel %vm7812_vm1, %v2169_v27, %v2170_v11  ;;  %v9545_v27 = vcombine.low %v8156_v36, %v8114_v3  ;;  %v4545_v36 = vshll.u32 %v4467_v19, 16 }
 0x103   : > { %6863 = vmatmul.mubr.msk.bf16.gmra.mrb[12].mxu1 %vm1580_vm12, %v6190_v40  ;;  %v6219_v40 = vrot.slane %v2090_v59, 9  ;;  %v4517_v59 = vrot.slane %v4515_v34, 5  ;;  %v7470_v34 = vld [vmem:[#allocation2 + $0x50] sm:$0x1] }
 0x104   : > { %7021 = vmatmul.mubr.msk.bf16.vlgmr.msra.gmra.mrb[0].mxu0 %vm1580_vm12, %v7413_v13  ;;  %6866 = vmatprep.mubr.msk.bf16.mxu1 %vm1580_vm12, %v6191_v47  ;;  %v2177_v13 = vrot.slane %v7469_v16, 5  ;;  %v4466_v47 = vld [vmem:[#allocation2 + $0x24] sm:$0xf]  ;;  %v2184_v6 = vrot.slane %v7470_v34, 5  ;;  %v4465_v16 = vld [vmem:[#allocation2 + $0x20] sm:$0x1]  ;;  %v8608_v34 = vsel %vm7812_vm1, %v6221_v62, %v2181_v21  ;;  %v9546_v21 = vcombine.low %v8196_v48, %v8167_v58 }
 0x105   : > { %7053 = vmatpush3.bf16.msra.mxu0 %v4994_v35  ;;  %7024 = vmatprep.mubr.msk.bf16.mxu0 %vm1580_vm12, %v7414_v61  ;;  %v4521_v61 = vshll.u32 %v4464_v38, 16  ;;  %v8591_v42 = vsel %vm7812_vm1, %v6219_v40, %v2167_v37  ;;  %v8599_v38 = vsel %vm7812_vm1, %v6220_v50, %v2174_v43  ;;  %v2188_v37 = vrot.slane %v8492_v45, 5  ;;  %v4469_v40 = vld [vmem:[#allocation2 + $0x30] sm:$0xf]  ;;  %9544 = vst [vmem:[#allocation9_spill] sm:$0xff] %v8608_v34  ;;  %v7418_v58 = vld [vmem:[#allocation2 + $0x60] sm:$0xff]  }
 0x106   : > { %7387 = vmatprep.subr.msk.bf16.mxu0 %vm1629_vm0, %v8569_v52  ;;  %v8603_v60 = vsel %vm7812_vm1, %v2176_v39, %v2177_v13  ;;  %v6222_v35 = vrot.slane %v2093_v54, 9  ;;  %v4536_v11 = vshrl.u32 %v4466_v47, 16  ;;  %v4518_v43 = vor.u32 %v4517_v59, %v4514_v32  ;;  %v4470_v45 = vld [vmem:[#allocation2 + $0x34] sm:$0xf]  ;;  %v2094_v48 = vld [vmem:[#allocation2 + $0x60] sm:$0xe] }
 0x107   : > { %v8614_v50 = vrot.slane %v4521_v61, 5  ;;  %v4527_v39 = vrot.slane %v4525_v44, 4  ;;  %v4539_v13 = vshll.u32 %v4466_v47, 16  ;;  %v8623_v54 = vrot.slane %v9547_v57, 4 }
 0x108   : > { %v8627_v3 = vsel %vm7812_vm1, %v2183_v12, %v2184_v6  ;;  %v4549_v62 = vshrl.u32 %v4467_v19, 16  ;;  %v2190_v47 = vrot.slane %v2188_v37, 4  ;;  %v4531_v32 = vshll.u32 %v4465_v16, 16 }
 0x109   : > { %9548 = vst [vmem:[#allocation10_spill] sm:$0xff] %v8623_v54  ;;  %9549 = vst [vmem:[#allocation11_spill] sm:$0xff] %v8627_v3  ;;  %v4560_v59 = vshrl.u32 %v4469_v40, 16  ;;  %v4563_v61 = vshll.u32 %v4469_v40, 16  ;;  %v4569_v31 = vshll.u32 %v4470_v45, 16  ;;  %v4573_v44 = vshrl.u32 %v4470_v45, 16 }
 0x10a   : > { %v4528_v12 = vor.u32 %v4527_v39, %v8614_v50  ;;  %v4538_v19 = vrot.slane %v4536_v11, 4  ;;  %v4541_v6 = vrot.slane %v4539_v13, 5  ;;  %v8641_v40 = vsel %vm7812_vm1, %v6222_v35, %v2188_v37  ;;  %v4472_v45 = vld [vmem:[#allocation2 + $0x3c] sm:$0xf]  ;;  %v4473_v37 = vld [vmem:[#allocation2 + $0x40] sm:$0xf] }
 0x10b   : > { %6867 = vmatmul.mubr.msk.bf16.gmra.mrb[16].mxu1 %vm1580_vm12, %v9545_v27  ;;  %v8634_v27 = vrot.slane %v4518_v43, 4  ;;  %v4551_v57 = vrot.slane %v4549_v62, 4  ;;  %v8647_v43 = vsel %vm7812_vm1, %v2190_v47, %v2191_v10  ;;  %v4533_v39 = vrot.slane %v4531_v32, 5  ;;  %v4471_v32 = vld [vmem:[#allocation2 + $0x38] sm:$0x1] }
 0x10c   : > { %7025 = vmatmul.mubr.msk.bf16.gmra.mrb[4].mxu0 %vm1580_vm12, %v7415_v46  ;;  %6870 = vmatprep.mubr.msk.bf16.mxu1 %vm1580_vm12, %v9546_v21  ;;  %v4468_v46 = vld [vmem:[#allocation2 + $0x2c] sm:$0x1]  ;;  %v8643_v21 = vrot.slane %v4545_v36, 5  ;;  %v2195_v13 = vrot.slane %v8495_v20, 5  ;;  %v4562_v56 = vrot.slane %v4560_v59, 4  ;;  %v4565_v16 = vrot.slane %v4563_v61, 5 }
 0x10d   : > { %7028 = vmatprep.mubr.msk.bf16.mxu0 %vm1580_vm12, %v7416_v2  ;;  %v7417_v2 = vld [vmem:[#allocation2 + $0x54] sm:$0xff]   ;;  %v4555_v11 = vshll.u32 %v4468_v46, 16  ;;  %v8650_v5 = vrot.slane %v4569_v31, 5  ;;  %v4575_v35 = vrot.slane %v4573_v44, 4  ;;  %v9550_v36 = vcombine.low %v8210_v28, %v8171_v7  ;;  %v2095_v28 = vld [vmem:[#allocation2 + $0x6c] sm:$0xe] }
 0x10e   : > { %v4524_v10 = vsel %vm7746_vm13, %v8634_v27, %v8614_v50  ;;  %v4529_v62 = vrot.slane %v4528_v12, 4  ;;  %v4542_v47 = vor.u32 %v4541_v6, %v4538_v19  ;;  %v6223_v20 = vrot.slane %v2094_v48, 9  ;;  %v7472_v59 = vld [vmem:[#allocation2 + $0x70] sm:$0xf]  ;;  %v7473_v19 = vld [vmem:[#allocation2 + $0x68] sm:$0x1] }
 0x10f   : > { %v9551_v46 = vcombine.low %v8258_v30, %v8218_v25  ;;  %v4552_v7 = vor.u32 %v4551_v57, %v8643_v21  ;;  %v2202_v61 = vrot.slane %v7472_v59, 5  ;;  %v4584_v31 = vshrl.u32 %v4472_v45, 16 }
 0x110   : > { %v4587_v44 = vshll.u32 %v4472_v45, 16  ;;  %v4557_v50 = vrot.slane %v4555_v11, 5  ;;  %v2197_v27 = vrot.slane %v2195_v13, 4  ;;  %v4593_v48 = vshll.u32 %v4473_v37, 16  ;;  %v4474_v11 = vld [vmem:[#allocation2 + $0x44] sm:$0x1] }
 0x111   : > { %v4597_v12 = vshrl.u32 %v4473_v37, 16  ;;  %v2198_v6 = vrot.slane %v7473_v19, 5  ;;  %v4576_v25 = vor.u32 %v4575_v35, %v8650_v5  ;;  %v4579_v30 = vshll.u32 %v4471_v32, 16  ;;  %v7420_v37 = vld [vmem:[#allocation2 + $0x78] sm:$0xff]  }
 0x112   : > { %v4534_v57 = vsel %vm7746_vm13, %v4529_v62, %v4533_v39  ;;  %v6224_v59 = vrot.slane %v2095_v28, 9  ;;  %v2205_v45 = vrot.slane %v7474_v23, 5  ;;  %v4553_v54 = vrot.slane %v4552_v7, 4  ;;  %v2096_v7 = vld [vmem:[#allocation2 + $0x78] sm:$0xe] }
 0x113   : > { %6871 = vmatmul.mubr.msk.bf16.gmra.mrb[20].mxu1 %vm1580_vm12, %v9550_v36  ;;  %v7419_v36 = vld [vmem:[#allocation2 + $0x6c] sm:$0xff]   ;;  %v4586_v3 = vrot.slane %v4584_v31, 4  ;;  %v4589_v34 = vrot.slane %v4587_v44, 5  ;;  %v8676_v35 = vrot.slane %v4593_v48, 5  ;;  %v4599_v39 = vrot.slane %v4597_v12, 4 }
 0x114   : > { %7029 = vmatmul.mubr.msk.bf16.gmra.mrb[8].mxu0 %vm1580_vm12, %v7417_v2  ;;  %6874 = vmatprep.mubr.msk.bf16.mxu1 %vm1580_vm12, %v9551_v46  ;;  %v4566_v2 = vor.u32 %v4565_v16, %v4562_v56  ;;  %v4543_v46 = vrot.slane %v4542_v47, 4  ;;  %v8674_v16 = vsel %vm7812_vm1, %v6223_v20, %v2195_v13  ;;  %v8680_v62 = vsel %vm7812_vm1, %v2197_v27, %v2198_v6  ;;  %v2097_v27 = vld [vmem:[#allocation2 + $0x84] sm:$0xe]  ;;  %v7476_v6 = vld [vmem:[#allocation2 + $0x88] sm:$0xf] }
 0x115   : > { %7032 = vmatprep.mubr.msk.bf16.mxu0 %vm1580_vm12, %v7418_v58  ;;  %v2204_v58 = vrot.slane %v2202_v61, 4  ;;  %v4577_v47 = vrot.slane %v4576_v25, 4  ;;  %v4581_v32 = vrot.slane %v4579_v30, 5  ;;  %v9552_v28 = vcombine.low %v8294_v26, %v8260_v4  ;;  %v8719_v25 = vld [vmem:[#allocation2 + $0x4c] sm:$0xf]  ;;  %v7421_v30 = vld [vmem:[#allocation2 + $0x84] sm:$0xff]  }
 0x116   : > { %v4567_v23 = vrot.slane %v4566_v2, 4  ;;  %v8686_v31 = vcombine.low %v4524_v10, %v4534_v57  ;;  %v4548_v13 = vsel %vm7746_vm13, %v4543_v46, %v8643_v21  ;;  %v8693_v20 = vsel %vm7812_vm1, %v6224_v59, %v2202_v61  ;;  %v7475_v10 = vld [vmem:[#allocation2 + $0x7c] sm:$0xf]  ;;  %9554 = vst [vmem:[#allocation12_spill] sm:$0xff] %v8719_v25  ;;  %v7477_v46 = vld [vmem:[#allocation2 + $0x80] sm:$0x1] }
 0x117   : > { %v4603_v44 = vshll.u32 %v4474_v11, 16  ;;  %v9553_v48 = vcombine.low %v8347_v14, %v8311_v41  ;;  %v4558_v4 = vsel %vm7746_vm13, %v4553_v54, %v4557_v50  ;;  %v8704_v26 = vsel %vm7812_vm1, %v2204_v58, %v2205_v45  ;;  %v4475_v54 = vld [vmem:[#allocation2 + $0x48] sm:$0xf]  ;;  %v4478_v45 = vld [vmem:[#allocation2 + $0x54] sm:$0xf] }
 0x118   : > { %v4590_v21 = vor.u32 %v4589_v34, %v4586_v3  ;;  %v2209_v61 = vrot.slane %v7475_v10, 5  ;;  %v8711_v41 = vsel %vm1629_vm0, %v8569_v52, 0  ;;  %v4600_v14 = vor.u32 %v4599_v39, %v8676_v35  ;;  %v8725_v39 = vld [vmem:[#allocation2 + $0x58] sm:$0xf]  ;;  %v4481_v10 = vld [vmem:[#allocation2 + $0x60] sm:$0xf] }
 0x119   : > { %v6225_v19 = vrot.slane %v2096_v7, 9  ;;  %v4572_v50 = vsel %vm7746_vm13, %v4567_v23, %v8650_v5  ;;  %v4582_v34 = vsel %vm7746_vm13, %v4577_v47, %v4581_v32  ;;  %v6226_v3 = vrot.slane %v2097_v27, 9  ;;  %9555 = vst [vmem:[#allocation13_spill] sm:$0xff] %v8725_v39  ;;  %v7422_v23 = vld [vmem:[#allocation2 + $0x90] sm:$0xff]  }
 0x11a   : > { %v2216_v2 = vrot.slane %v7476_v6, 5  ;;  %v4605_v57 = vrot.slane %v4603_v44, 5  ;;  %v2212_v59 = vrot.slane %v7477_v46, 5  ;;  %v4591_v58 = vrot.slane %v4590_v21, 4  ;;  %v2098_v52 = vld [vmem:[#allocation2 + $0x90] sm:$0xe] }
 0x11b   : > { %6875 = vmatmul.mubr.msk.bf16.gmra.mrb[24].mxu1 %vm1580_vm12, %v9552_v28  ;;  %v2211_v5 = vrot.slane %v2209_v61, 4  ;;  %v4608_v11 = vshrl.u32 %v4475_v54, 16  ;;  %v8727_v47 = vcombine.low %v4572_v50, %v4582_v34  ;;  %v4601_v32 = vrot.slane %v4600_v14, 4  ;;  %v8733_v28 = vld [vmem:[#allocation2 + $0x50] sm:$0x1] }
 0x11c   : > { %7033 = vmatmul.mubr.msk.bf16.gmra.mrb[12].mxu0 %vm1580_vm12, %v7419_v36  ;;  %6878 = vmatprep.mubr.msk.bf16.mxu1 %vm1580_vm12, %v9553_v48  ;;  %v8721_v36 = vcombine.low %v4548_v13, %v4558_v4  ;;  %v8731_v7 = vsel %vm7812_vm1, %v6225_v19, %v2209_v61  ;;  %9556 = vst [vmem:[#allocation14_spill] sm:$0xff] %v8733_v28  ;;  %v4617_v13 = vshll.u32 %v8719_v25, 16  ;;  %v2218_v27 = vrot.slane %v2216_v2, 4  ;;  %v7478_v48 = vld [vmem:[#allocation2 + $0x8c] sm:$0x1] }
 0x11d   : > { %7036 = vmatprep.mubr.msk.bf16.mxu0 %vm1580_vm12, %v7420_v37  ;;  %v4611_v37 = vshll.u32 %v4475_v54, 16  ;;  %v8738_v44 = vsel %vm7812_vm1, %v6226_v3, %v2216_v2  ;;  %v2219_v4 = vrot.slane %v7478_v48, 5  ;;  %v4621_v21 = vshrl.u32 %v8719_v25, 16  ;;  %v8747_v34 = vld [vmem:[#allocation2 + $0x64] sm:$0xf] }
 0x11e   : > { %v9557_v14 = vcombine.low %v8374_v63, %v8339_v49  ;;  %v4632_v61 = vshrl.u32 %v4478_v45, 16  ;;  %v4635_v19 = vshll.u32 %v4478_v45, 16  ;;  %v4641_v54 = vshll.u32 %v8725_v39, 16  ;;  %9558 = vst [vmem:[#allocation15_spill] sm:$0xff] %v8747_v34 }
 0x11f   : > { %v4645_v50 = vshrl.u32 %v8725_v39, 16  ;;  %v9559_v3 = vcombine.low %v8531_v53, %v8552_v29  ;;  %v4596_v49 = vsel %vm7746_vm13, %v4591_v58, %v8676_v35  ;;  %v8759_v63 = vsel %vm7812_vm1, %v2211_v5, %v2212_v59  ;;  %v8766_v53 = vld [vmem:[#allocation2 + $0x5c] sm:$0x1]  ;;  %v4484_v5 = vld [vmem:[#allocation2 + $0x6c] sm:$0xf] }
 0x120   : > { %v4610_v6 = vrot.slane %v4608_v11, 4  ;;  %v4613_v2 = vrot.slane %v4611_v37, 5  ;;  %v8764_v46 = vrot.slane %v4617_v13, 5  ;;  %9560 = vst [vmem:[#allocation16_spill] sm:$0xff] %v8766_v53  ;;  %v4656_v29 = vshrl.u32 %v4481_v10, 16 }
 0x121   : > { %v4659_v45 = vshll.u32 %v4481_v10, 16  ;;  %v4623_v48 = vrot.slane %v4621_v21, 4  ;;  %v4627_v35 = vshll.u32 %v8733_v28, 16  ;;  %v4665_v58 = vshll.u32 %v8747_v34, 16 }
 0x122   : > { %v4669_v59 = vshrl.u32 %v8747_v34, 16  ;;  %v4634_v11 = vrot.slane %v4632_v61, 4  ;;  %v4637_v37 = vrot.slane %v4635_v19, 5  ;;  %v8777_v21 = vsel %vm7812_vm1, %v2218_v27, %v2219_v4 }
 0x123   : > { %6879 = vmatmul.mubr.msk.bf16.gmra.mrb[28].mxu1 %vm1580_vm12, %v9557_v14  ;;  %v4647_v14 = vrot.slane %v4645_v50, 4  ;;  %v4614_v10 = vor.u32 %v4613_v2, %v4610_v6  ;;  %v4658_v12 = vrot.slane %v4656_v29, 4  ;;  %v4661_v56 = vrot.slane %v4659_v45, 5  ;;  %v7479_v2 = vld [vmem:[#allocation2 + $0x94] sm:$0xf] }
 0x124   : > { %7037 = vmatmul.mubr.msk.bf16.gmra.mrb[16].mxu0 %vm1580_vm12, %v7421_v30  ;;  %6884 = vmatprep.mubr.msk.bf16.mxu1 %vm1580_vm12, %v9559_v3  ;;  %v4606_v30 = vsel %vm7746_vm13, %v4601_v32, %v4605_v57  ;;  %v7423_v57 = vld [vmem:[#allocation2 + $0x9c] sm:$0xff]   ;;  %v7424_v32 = vld [vmem:[#allocation2 + $0xa8] sm:$0xff]   ;;  %v4651_v3 = vshll.u32 %v8766_v53, 16  ;;  %v4680_v61 = vshrl.u32 %v4484_v5, 16  ;;  %v4683_v19 = vshll.u32 %v4484_v5, 16 }
 0x125   : > { %7040 = vmatprep.mubr.msk.bf16.mxu0 %vm1580_vm12, %v7422_v23  ;;  %v8771_v23 = vrot.slane %v4641_v54, 5  ;;  %v8780_v54 = vcombine.low %v4596_v49, %v4606_v30  ;;  %v8782_v50 = vrot.slane %v4627_v35, 5  ;;  %v8784_v34 = vrot.slane %v4665_v58, 5  ;;  %v8792_v45 = vld [vmem:[#allocation2 + $0x68] sm:$0x1] }
 0x126   : > { %v4671_v39 = vrot.slane %v4669_v59, 4  ;;  %v9561_v13 = vcombine.low %v8537_v15, %v8543_v0  ;;  %v4624_v27 = vor.u32 %v4623_v48, %v8764_v46  ;;  %v4638_v4 = vor.u32 %v4637_v37, %v4634_v11  ;;  %9562 = vst [vmem:[#allocation17_spill] sm:$0xff] %v8792_v45  ;;  %v8794_v49 = vld [vmem:[#allocation2 + $0x70] sm:$0xf]  ;;  %v7480_v35 = vld [vmem:[#allocation2 + $0xa0] sm:$0xf] }
 0x127   : > { %v4648_v6 = vor.u32 %v4647_v14, %v8771_v23  ;;  %v2223_v29 = vrot.slane %v7479_v2, 5  ;;  %9563 = vst [vmem:[#allocation18_spill] sm:$0xff] %v8794_v49  ;;  %v8798_v30 = vrot.slane %v4614_v10, 4  ;;  %v8800_v0 = vrot.slane %v4651_v3, 5  ;;  %v7481_v59 = vld [vmem:[#allocation2 + $0x98] sm:$0x1] }
 0x128   : > { %v6227_v15 = vrot.slane %v2098_v52, 9  ;;  %v2230_v48 = vrot.slane %v7480_v35, 5  ;;  %v9564_v58 = vcombine.low %v8556_v18, %v8560_v1  ;;  %v2226_v5 = vrot.slane %v7481_v59, 5  ;;  %v2099_v11 = vld [vmem:[#allocation2 + $0x9c] sm:$0xe]  ;;  %v7426_v59 = vld [vmem:[#allocation2 + $0xc0] sm:$0xff]  }
 0x129   : > { %v4682_v37 = vrot.slane %v4680_v61, 4  ;;  %v4685_v14 = vrot.slane %v4683_v19, 5  ;;  %v4689_v52 = vshll.u32 %v8794_v49, 16  ;;  %v4693_v10 = vshrl.u32 %v8794_v49, 16  ;;  %v7482_v18 = vld [vmem:[%s9500_s3 + $0x10] sm:$0xf] }
 0x12a   : > { %v4625_v1 = vrot.slane %v4624_v27, 4  ;;  %v4649_v3 = vrot.slane %v4648_v6, 4  ;;  %v6228_v61 = vrot.slane %v2099_v11, 9  ;;  %v2232_v19 = vrot.slane %v2230_v48, 4  ;;  %v7483_v2 = vld [vmem:[#allocation2 + $0xa4] sm:$0x1] }
 0x12b   : > { %6885 = vmatmul.mubr.msk.bf16.vlgmr.msra.gmra.mrb[0].mxu1 %vm1580_vm12, %v9561_v13  ;;  %v4675_v13 = vshll.u32 %v8792_v45, 16  ;;  %v2233_v35 = vrot.slane %v7483_v2, 5  ;;  %v2100_v6 = vld [vmem:[#allocation2 + $0xa8] sm:$0xe]  ;;  %v7484_v49 = vld [vmem:[#allocation2 + $0xac] sm:$0xf] }
 0x12c   : > { %6917 = vmatpush3.bf16.msra.mxu1 %v8523_v17  ;;  %7041 = vmatmul.mubr.msk.bf16.gmra.mrb[20].mxu0 %vm1580_vm12, %v7423_v57  ;;  %v4662_v17 = vor.u32 %v4661_v56, %v4658_v12  ;;  %v4672_v57 = vor.u32 %v4671_v39, %v8784_v34  ;;  %v2225_v56 = vrot.slane %v2223_v29, 4  ;;  %v7425_v12 = vld [vmem:[#allocation2 + $0xb4] sm:$0xff]   ;;  %v4620_v39 = vsel %vm7746_vm13, %v8798_v30, %v8764_v46 }
 0x12d   : > { %6888 = vmatprep.mubr.msk.bf16.mxu1 %vm1580_vm12, %v9564_v58  ;;  %7044 = vmatprep.mubr.msk.bf16.mxu0 %vm1580_vm12, %v7424_v32  ;;  %v4639_v32 = vrot.slane %v4638_v4, 4  ;;  %v8819_v58 = vld [vmem:[#allocation2 + $0x74] sm:$0x1]  ;;  %v4686_v4 = vor.u32 %v4685_v14, %v4682_v37  ;;  %v2237_v45 = vrot.slane %v7484_v49, 5  ;;  %v4677_v28 = vrot.slane %v4675_v13, 5 }
 0x12e   : > { %7383 = vmatprep.subr.msk.bf16.mxu1 %vm1629_vm0, %v7482_v18  ;;  %v8823_v18 = vsel %vm7812_vm1, %v6227_v15, %v2223_v29  ;;  %v4663_v27 = vrot.slane %v4662_v17, 4  ;;  %v4673_v53 = vrot.slane %v4672_v57, 4  ;;  %v8825_v25 = vrot.slane %v4689_v52, 5  ;;  %v2101_v17 = vld [vmem:[#allocation2 + $0xb4] sm:$0xe] }
 0x12f   : > { %v4695_v46 = vrot.slane %v4693_v10, 4  ;;  %v9565_v30 = vcombine.low %v8564_v51, %v8575_v55  ;;  %v4630_v29 = vsel %vm7746_vm13, %v4625_v1, %v8782_v50  ;;  %v4644_v15 = vsel %vm7746_vm13, %v4639_v32, %v8771_v23  ;;  %v7485_v13 = vld [vmem:[#allocation2 + $0xb8] sm:$0xf] }
 0x130   : > { %v4654_v49 = vsel %vm7746_vm13, %v4649_v3, %v8800_v0  ;;  %v8842_v11 = vsel %vm7812_vm1, %v2225_v56, %v2226_v5  ;;  %v9566_v51 = vcombine.low %v8591_v42, %v8595_v33  ;;  %v8851_v55 = vsel %vm7812_vm1, %v6228_v61, %v2230_v48  ;;  %v4487_v10 = vld [vmem:[#allocation2 + $0x78] sm:$0xf]  ;;  %v4490_v56 = vld [vmem:[#allocation2 + $0x84] sm:$0xf]  ;;  %v8934_v3 = vld [vmem:[#allocation2 + $0x8c] sm:$0x1] }
 0x131   : > { %9567 = vst [vmem:[#allocation19_spill] sm:$0xff] %v8851_v55  ;;  %v8855_v23 = vsel %vm7812_vm1, %v2232_v19, %v2233_v35  ;;  %v4699_v50 = vshll.u32 %v8819_v58, 16  ;;  %v6229_v0 = vrot.slane %v2100_v6, 9  ;;  %v4668_v5 = vsel %vm7746_vm13, %v4663_v27, %v8784_v34  ;;  %v8887_v19 = vld [vmem:[#allocation2 + $0x88] sm:$0xf] }
 0x132   : > { %9568 = vst [vmem:[#allocation20_spill] sm:$0xff] %v8855_v23  ;;  %v8862_v33 = vrot.slane %v4686_v4, 4  ;;  %v2239_v42 = vrot.slane %v2237_v45, 4  ;;  %v2240_v37 = vrot.slane %v8358_v8, 5  ;;  %v4678_v48 = vsel %vm7746_vm13, %v4673_v53, %v4677_v28  ;;  %v8876_v8 = vld [vmem:[#allocation2 + $0x7c] sm:$0xf] }
 0x133   : > { %6889 = vmatmul.mubr.msk.bf16.gmra.mrb[4].mxu1 %vm1580_vm12, %v9565_v30  ;;  %v4696_v14 = vor.u32 %v4695_v46, %v8825_v25  ;;  %v6230_v57 = vrot.slane %v2101_v17, 9  ;;  %v2244_v52 = vrot.slane %v7485_v13, 5  ;;  %v8870_v32 = vcombine.low %v4620_v39, %v4630_v29  ;;  %v7427_v28 = vld [vmem:[#allocation2 + $0xcc] sm:$0xff]   ;;  %9569 = vst [vmem:[#allocation21_spill] sm:$0xff] %v8887_v19  ;;  %v8899_v6 = vld [vmem:[#allocation2 + $0x94] sm:$0xf] }
 0x134   : > { %7045 = vmatmul.mubr.msk.bf16.gmra.mrb[24].mxu0 %vm1580_vm12, %v7425_v12  ;;  %6892 = vmatprep.mubr.msk.bf16.mxu1 %vm1580_vm12, %v9566_v51  ;;  %v8872_v34 = vcombine.low %v4644_v15, %v4654_v49  ;;  %v8880_v12 = vrot.slane %v4699_v50, 5  ;;  %v8884_v61 = vsel %vm7812_vm1, %v6229_v0, %v2237_v45  ;;  %v8889_v2 = vcombine.low %v4668_v5, %v4678_v48  ;;  %v4493_v4 = vld [vmem:[#allocation2 + $0x90] sm:$0xf]  ;;  %v4496_v15 = vld [vmem:[#allocation2 + $0x9c] sm:$0xf] }
 0x135   : > { %7048 = vmatprep.mubr.msk.bf16.mxu0 %vm1580_vm12, %v7426_v59  ;;  %v8897_v59 = vsel %vm7812_vm1, %v2239_v42, %v2240_v37  ;;  %v4704_v27 = vshrl.u32 %v4487_v10, 16  ;;  %9570 = vst [vmem:[#allocation22_spill] sm:$0xff] %v8899_v6  ;;  %v8901_v45 = vrot.slane %v4696_v14, 4  ;;  %v8905_v46 = vsel %vm7812_vm1, %v6230_v57, %v2244_v52  ;;  %v8915_v5 = vld [vmem:[#allocation2 + $0xa0] sm:$0xf]  ;;  %v9573_v42 = vld [vmem:[#allocation9_spill] sm:$0xff] }
 0x136   : > { %v8907_v30 = vrot.slane %v2244_v52, 4  ;;  %v4707_v29 = vshll.u32 %v4487_v10, 16  ;;  %v9571_v49 = vcombine.low %v8599_v38, %v8603_v60  ;;  %v4713_v17 = vshll.u32 %v8876_v8, 16  ;;  %9572 = vst [vmem:[#allocation23_spill] sm:$0xff] %v8915_v5  ;;  %v9574_v37 = vld [vmem:[#allocation11_spill] sm:$0xff] }
 0x137   : > { %v4717_v51 = vshrl.u32 %v8876_v8, 16  ;;  %v4728_v50 = vshrl.u32 %v4490_v56, 16  ;;  %v4731_v0 = vshll.u32 %v4490_v56, 16  ;;  %v9575_v48 = vcombine.low %v9573_v42, %v9574_v37  ;;  %9577 = vst [vmem:[#allocation11_spill] sm:$0xff] %v8934_v3 }
 0x138   : > { %v4737_v14 = vshll.u32 %v8887_v19, 16  ;;  %v4741_v60 = vshrl.u32 %v8887_v19, 16  ;;  %v4752_v38 = vshrl.u32 %v4493_v4, 16  ;;  %v4755_v57 = vshll.u32 %v4493_v4, 16 }
 0x139   : > { %v4761_v13 = vshll.u32 %v8899_v6, 16  ;;  %v4765_v52 = vshrl.u32 %v8899_v6, 16  ;;  %v4776_v10 = vshrl.u32 %v4496_v15, 16  ;;  %v4779_v56 = vshll.u32 %v4496_v15, 16  ;;  %v8938_v6 = vld [vmem:[#allocation2 + $0x98] sm:$0x1] }
 0x13a   : > { %v4709_v42 = vrot.slane %v4707_v29, 5  ;;  %v4785_v37 = vshll.u32 %v8915_v5, 16  ;;  %v8932_v53 = vrot.slane %v4713_v17, 5  ;;  %v4719_v4 = vrot.slane %v4717_v51, 4  ;;  %9578 = vst [vmem:[#allocation24_spill] sm:$0xff] %v8938_v6 }
 0x13b   : > { %6893 = vmatmul.mubr.msk.bf16.gmra.mrb[8].mxu1 %vm1580_vm12, %v9571_v49  ;;  %v4706_v49 = vrot.slane %v4704_v27, 4  ;;  %v4733_v1 = vrot.slane %v4731_v0, 5  ;;  %v8936_v35 = vrot.slane %v4737_v14, 5  ;;  %v4743_v39 = vrot.slane %v4741_v60, 4  ;;  %v979_v14 = vld [vmem:[#allocation2 + $0xd4] sm:$0x1] }
 0x13c   : > { %7049 = vmatmul.mubr.msk.bf16.gmra.mrb[28].mxu0 %vm1580_vm12, %v7427_v28  ;;  %6896 = vmatprep.mubr.msk.bf16.mxu1 %vm1580_vm12, %v9575_v48  ;;  %v8928_v28 = vld [vmem:[#allocation2 + $0x80] sm:$0x1]  ;;  %v4789_v48 = vshrl.u32 %v8915_v5, 16  ;;  %v4754_v15 = vrot.slane %v4752_v38, 4  ;;  %v4757_v19 = vrot.slane %v4755_v57, 5  ;;  %v8940_v27 = vrot.slane %v4761_v13, 5 }
 0x13d   : > { %7054 = vmatprep.mubr.msk.bf16.mxu0 %vm1580_vm12, %v8686_v31  ;;  %9576 = vst [vmem:[#allocation9_spill] sm:$0xff] %v8928_v28  ;;  %v4730_v31 = vrot.slane %v4728_v50, 4  ;;  %v4767_v29 = vrot.slane %v4765_v52, 4  ;;  %v4778_v23 = vrot.slane %v4776_v10, 4  ;;  %v4781_v55 = vrot.slane %v4779_v56, 5 }
 0x13e   : > { %v4499_v5 = vld [vmem:[#allocation2 + $0xa8] sm:$0xf]  ;;  %v4723_v51 = vshll.u32 %v8928_v28, 16  ;;  %v8947_v50 = vrot.slane %v4785_v37, 5  ;;  %v4791_v0 = vrot.slane %v4789_v48, 4  ;;  %v9579_v60 = vcombine.low %v8641_v40, %v8647_v43 }
 0x13f   : > { %v4710_v38 = vor.u32 %v4709_v42, %v4706_v49  ;;  %v4720_v57 = vor.u32 %v4719_v4, %v8932_v53  ;;  %v4734_v13 = vor.u32 %v4733_v1, %v4730_v31  ;;  %v4747_v52 = vshll.u32 %v8934_v3, 16  ;;  %v8955_v10 = vld [vmem:[#allocation2 + $0xa4] sm:$0x1]  ;;  %v8957_v56 = vld [vmem:[#allocation2 + $0xac] sm:$0xf]  ;;  %v9582_v4 = vld [vmem:[#allocation10_spill] sm:$0xff] }
 0x140   : > { %9580 = vst [vmem:[#allocation25_spill] sm:$0xff] %v8955_v10  ;;  %v9581_v37 = vcombine.low %v8674_v16, %v8680_v62  ;;  %v4744_v40 = vor.u32 %v4743_v39, %v8936_v35  ;;  %v4758_v43 = vor.u32 %v4757_v19, %v4754_v15  ;;  %v4800_v49 = vshrl.u32 %v4499_v5, 16  ;;  %v8978_v3 = vld [vmem:[#allocation2 + $0xb0] sm:$0x1] }
 0x141   : > { %v4803_v42 = vshll.u32 %v4499_v5, 16  ;;  %v4768_v1 = vor.u32 %v4767_v29, %v8940_v27  ;;  %v4771_v48 = vshll.u32 %v8938_v6, 16  ;;  %v980_v16 = vsel %vm7625_vm8, %v9582_v4, %v979_v14 }
 0x142   : > { %v4792_v62 = vor.u32 %v4791_v0, %v8947_v50  ;;  %v4795_v39 = vshll.u32 %v8955_v10, 16  ;;  %v4809_v19 = vshll.u32 %v8957_v56, 16  ;;  %981 = vst [vmem:[#allocation2 + $0xd4] sm:$0x1] %v980_v16  ;;  %v4711_v5 = vrot.slane %v4710_v38, 4 }
 0x143   : > { %6897 = vmatmul.mubr.msk.bf16.gmra.mrb[12].mxu1 %vm1580_vm12, %v9579_v60  ;;  %v4725_v15 = vrot.slane %v4723_v51, 5  ;;  %v4735_v29 = vrot.slane %v4734_v13, 4  ;;  %v4745_v60 = vrot.slane %v4744_v40, 4  ;;  %v4759_v17 = vrot.slane %v4758_v43, 4  ;;  %v4502_v0 = vld [vmem:[#allocation2 + $0xb4] sm:$0xf] }
 0x144   : > { %7055 = vmatmul.mubr.msk.bf16.vlgmr.msra.gmra.mrb[0].mxu0 %vm1580_vm12, %v8721_v36  ;;  %6900 = vmatprep.mubr.msk.bf16.mxu1 %vm1580_vm12, %v9581_v37  ;;  %v4782_v36 = vor.u32 %v4781_v55, %v4778_v23  ;;  %v4749_v37 = vrot.slane %v4747_v52, 5  ;;  %v4802_v55 = vrot.slane %v4800_v49, 4  ;;  %v4805_v23 = vrot.slane %v4803_v42, 5 }
 0x145   : > { %7087 = vmatpush3.bf16.msra.mxu0 %v8711_v41  ;;  %7058 = vmatprep.mubr.msk.bf16.mxu0 %vm1580_vm12, %v8727_v47  ;;  %v4813_v41 = vshrl.u32 %v8957_v56, 16  ;;  %v4721_v47 = vrot.slane %v4720_v57, 4  ;;  %v4769_v31 = vrot.slane %v4768_v1, 4  ;;  %v4773_v14 = vrot.slane %v4771_v48, 5 }
 0x146   : > { %v4783_v4 = vrot.slane %v4782_v36, 4  ;;  %v4793_v6 = vrot.slane %v4792_v62, 4  ;;  %v4797_v10 = vrot.slane %v4795_v39, 5  ;;  %v8980_v28 = vrot.slane %v4809_v19, 5 }
 0x147   : > { %v4815_v16 = vrot.slane %v4813_v41, 4  ;;  %v9584_v51 = vcombine.low %v8693_v20, %v8704_v26  ;;  %v9585_v38 = vrot.slane %v8376_v24, 5  ;;  %v4716_v13 = vsel %vm7746_vm13, %v4711_v5, %v8932_v53  ;;  %v9001_v26 = vld [vmem:[#allocation2 + $0xb8] sm:$0xf] }
 0x148   : > { %v4726_v52 = vsel %vm7746_vm13, %v4721_v47, %v4725_v15  ;;  %v4740_v20 = vsel %vm7746_vm13, %v4735_v29, %v8936_v35  ;;  %v9586_v24 = vcombine.low %v8731_v7, %v8759_v63  ;;  %v4750_v53 = vsel %vm7746_vm13, %v4745_v60, %v4749_v37  ;;  %v9060_v15 = vld [vmem:[#allocation2 + $0xbc] sm:$0x1] }
 0x149   : > { %v8991_v57 = vsel %vm7812_vm1, %v8907_v30, %v9585_v38  ;;  %v4806_v30 = vor.u32 %v4805_v23, %v4802_v55  ;;  %v4824_v40 = vshrl.u32 %v4502_v0, 16  ;;  %v4827_v43 = vshll.u32 %v4502_v0, 16  ;;  %v1088_v49 = vld [vmem:[#allocation2 + $0xd4] sm:$0x1]  ;;  %v9590_v55 = vld [vmem:[#allocation12_spill] sm:$0xff]  ;;  %v9593_v38 = vld [vmem:[#allocation13_spill] sm:$0xff] }
 0x14a   : > { %v4764_v35 = vsel %vm7746_vm13, %v4759_v17, %v8940_v27  ;;  %v4788_v7 = vsel %vm7746_vm13, %v4783_v4, %v8947_v50  ;;  %v4819_v63 = vshll.u32 %v8978_v3, 16  ;;  %v4798_v42 = vsel %vm7746_vm13, %v4793_v6, %v4797_v10  ;;  %v5193_v17 = vld [vmem:[#allocation2 + $0x48] sm:$0xe]  ;;  %v5195_v4 = vld [vmem:[#allocation2 + $0x60] sm:$0xe] }
 0x14b   : > { %6901 = vmatmul.mubr.msk.bf16.gmra.mrb[16].mxu1 %vm1580_vm12, %v9584_v51  ;;  %v4816_v1 = vor.u32 %v4815_v16, %v8980_v28  ;;  %v1089_v27 = vsel %vm7670_vm9, 0, %v1088_v49  ;;  %v9588_v36 = vsel %vm7746_vm13, %v8901_v45, %v8880_v12  ;;  %v9589_v50 = vsel %vm7746_vm13, %v8862_v33, %v8825_v25  ;;  %v5194_v25 = vld [vmem:[#allocation2 + $0x54] sm:$0xe]  ;;  %v9597_v49 = vld [vmem:[#allocation17_spill] sm:$0xff] }
 0x14c   : > { %7059 = vmatmul.mubr.msk.bf16.gmra.mrb[4].mxu0 %vm1580_vm12, %v8780_v54  ;;  %6904 = vmatprep.mubr.msk.bf16.mxu1 %vm1580_vm12, %v9586_v24  ;;  %v4774_v54 = vsel %vm7746_vm13, %v4769_v31, %v4773_v14  ;;  %v9038_v62 = vcombine.low %v9589_v50, %v9588_v36  ;;  %v6246_v6 = vcombine.low %v8884_v61, %v8897_v59  ;;  %v9048_v41 = vrot.slane %v4806_v30, 4  ;;  %v9591_v31 = vld [vmem:[#allocation14_spill] sm:$0xff]  ;;  %v5196_v24 = vld [vmem:[#allocation2 + $0x6c] sm:$0xe]  ;;  %v4505_v30 = vld [vmem:[#allocation2 + $0xc0] sm:$0xf] }
 0x14d   : > { %7062 = vmatprep.mubr.msk.bf16.mxu0 %vm1580_vm12, %v8870_v32  ;;  %v4833_v32 = vshll.u32 %v9001_v26, 16  ;;  %v6247_v10 = vcombine.low %v8905_v46, %v8991_v57  ;;  %v9044_v39 = vcombine.low %v4716_v13, %v4726_v52  ;;  %1090 = vst [vmem:[#allocation2 + $0xd4] sm:$0x1] %v1089_v27  ;;  %v9046_v19 = vcombine.low %v4740_v20, %v4750_v53  ;;  %v9594_v52 = vld [vmem:[#allocation16_spill] sm:$0xff] }
 0x14e   : > { %v9050_v12 = vrot.slane %v4824_v40, 4  ;;  %v9052_v45 = vrot.slane %v4827_v43, 5  ;;  %v9054_v33 = vcombine.low %v4764_v35, %v4774_v54  ;;  %v9056_v5 = vcombine.low %v4788_v7, %v4798_v42  ;;  %v9596_v7 = vld [vmem:[#allocation15_spill] sm:$0xff]  ;;  %v5198_v50 = vld [vmem:[#allocation2 + $0x84] sm:$0xe] }
 0x14f   : > { %v9058_v47 = vrot.slane %v4819_v63, 5  ;;  %v6449_v29 = vrot.slane %v5193_v17, 9  ;;  %v9062_v60 = vrot.slane %v4816_v1, 4  ;;  %v9064_v37 = vrot.slane %v4833_v32, 5  ;;  %v5197_v32 = vld [vmem:[#allocation2 + $0x78] sm:$0xe] }
 0x150   : > { %v5283_v23 = vrot.slane %v9590_v55, 5  ;;  %v5286_v14 = vrot.slane %v9591_v31, 5  ;;  %v9592_v0 = vcombine.low %v8738_v44, %v8777_v21  ;;  %v4837_v16 = vshrl.u32 %v9001_v26, 16  ;;  %v9598_v17 = vld [vmem:[#allocation18_spill] sm:$0xff]  ;;  %v9118_v55 = vld [vmem:[#allocation2 + $0xc4] sm:$0xf] }
 0x151   : > { %v6450_v51 = vrot.slane %v5194_v25, 9  ;;  %v5290_v13 = vrot.slane %v9593_v38, 5  ;;  %v5293_v20 = vrot.slane %v9594_v52, 5  ;;  %v9595_v53 = vcombine.low %v8823_v18, %v8842_v11  ;;  %v9599_v38 = vld [vmem:[#allocation9_spill] sm:$0xff] }
 0x152   : > { %v4812_v44 = vsel %vm7746_vm13, %v9048_v41, %v8980_v28  ;;  %v4830_v21 = vor.u32 %v9052_v45, %v9050_v12  ;;  %v9089_v40 = vsel %vm7812_vm1, %v6449_v29, %v5283_v23  ;;  %v5285_v43 = vrot.slane %v5283_v23, 4 }
 0x153   : > { %6905 = vmatmul.mubr.msk.bf16.gmra.mrb[20].mxu1 %vm1580_vm12, %v9592_v0  ;;  %v4843_v18 = vshll.u32 %v9060_v15, 16  ;;  %v9096_v11 = vsel %vm7812_vm1, %v6450_v51, %v5290_v13  ;;  %v6451_v35 = vrot.slane %v5195_v4, 9  ;;  %v5297_v63 = vrot.slane %v9596_v7, 5 }
 0x154   : > { %7063 = vmatmul.mubr.msk.bf16.gmra.mrb[8].mxu0 %vm1580_vm12, %v8872_v34  ;;  %6908 = vmatprep.mubr.msk.bf16.mxu1 %vm1580_vm12, %v9595_v53  ;;  %v5292_v34 = vrot.slane %v5290_v13, 4  ;;  %v9100_v54 = vsel %vm7812_vm1, %v5285_v43, %v5286_v14  ;;  %v5300_v42 = vrot.slane %v9597_v49, 5  ;;  %v6452_v1 = vrot.slane %v5196_v24, 9  ;;  %v4508_v49 = vld [vmem:[#allocation2 + $0xcc] sm:$0xf] }
 0x155   : > { %7066 = vmatprep.mubr.msk.bf16.mxu0 %vm1580_vm12, %v8889_v2  ;;  %v4848_v48 = vshrl.u32 %v4505_v30, 16  ;;  %v6466_v2 = vcombine.low %v9089_v40, %v9100_v54  ;;  %v5304_v36 = vrot.slane %v9598_v17, 5  ;;  %v9115_v45 = vsel %vm7812_vm1, %v6451_v35, %v5297_v63  ;;  %v7496_v40 = vld [vmem:[#allocation2 + $0x88] sm:$0xf] }
 0x156   : > { %v9108_v27 = vsel %vm7812_vm1, %v5292_v34, %v5293_v20  ;;  %v5299_v25 = vrot.slane %v5297_v63, 4  ;;  %v5307_v29 = vrot.slane %v8819_v58, 5  ;;  %v4851_v23 = vshll.u32 %v4505_v30, 16  ;;  %v9600_v20 = vld [vmem:[#allocation19_spill] sm:$0xff]  ;;  %v9601_v58 = vld [vmem:[#allocation20_spill] sm:$0xff]  ;;  %v9603_v34 = vld [vmem:[#allocation21_spill] sm:$0xff] }
 0x157   : > { %v6467_v12 = vcombine.low %v9096_v11, %v9108_v27  ;;  %v9122_v31 = vsel %vm7812_vm1, %v6452_v1, %v5304_v36  ;;  %v5306_v14 = vrot.slane %v5304_v36, 4  ;;  %v6453_v4 = vrot.slane %v5197_v32, 9  ;;  %v2932_v36 = vld [vmem:[#allocation2 + $0x78] sm:$0xf] }
 0x158   : > { %v9126_v0 = vsel %vm7812_vm1, %v5299_v25, %v5300_v42  ;;  %v5311_v51 = vrot.slane %v8876_v8, 5  ;;  %v5314_v13 = vrot.slane %v9599_v38, 5  ;;  %v6454_v52 = vrot.slane %v5198_v50, 9 }
 0x159   : > { %v9602_v24 = vcombine.low %v9600_v20, %v9601_v58  ;;  %v4839_v53 = vrot.slane %v4837_v16, 4  ;;  %v6468_v30 = vcombine.low %v9115_v45, %v9126_v0  ;;  %v9138_v43 = vsel %vm7812_vm1, %v5306_v14, %v5307_v29  ;;  %v9606_v20 = vld [vmem:[#allocation7_spill] sm:$0xff]  ;;  %v7497_v0 = vld [vmem:[#allocation2 + $0x8c] sm:$0x1] }
 0x15a   : > { %v5318_v35 = vrot.slane %v9603_v34, 5  ;;  %v4857_v8 = vshll.u32 %v9118_v55, 16  ;;  %v6469_v16 = vcombine.low %v9122_v31, %v9138_v43  ;;  %v9152_v7 = vsel %vm7812_vm1, %v6453_v4, %v5311_v51  ;;  %v5199_v4 = vld [vmem:[#allocation2 + $0x90] sm:$0xe]  ;;  %v9191_v34 = vld [vmem:[#allocation2 + $0xc8] sm:$0x1] }
 0x15b   : > { %6909 = vmatmul.mubr.msk.bf16.gmra.mrb[24].mxu1 %vm1580_vm12, %v9602_v24  ;;  %v5313_v63 = vrot.slane %v5311_v51, 4  ;;  %v4822_v1 = vsel %vm7746_vm13, %v9062_v60, %v9058_v47  ;;  %v4850_v32 = vrot.slane %v4848_v48, 4  ;;  %v4853_v17 = vrot.slane %v4851_v23, 5  ;;  %v7428_v47 = vld [vmem:[#allocation2 + $0xc] sm:$0xff]   ;;  %v5200_v24 = vld [vmem:[#allocation2 + $0x9c] sm:$0xe] }
 0x15c   : > { %7067 = vmatmul.mubr.msk.bf16.gmra.mrb[12].mxu0 %vm1580_vm12, %v9038_v62  ;;  %6912 = vmatprep.mubr.msk.bf16.mxu1 %vm1580_vm12, %v6246_v6  ;;  %v4861_v62 = vshrl.u32 %v9118_v55, 16  ;;  %v9159_v61 = vsel %vm7812_vm1, %v6454_v52, %v5318_v35  ;;  %v5320_v59 = vrot.slane %v5318_v35, 4  ;;  %v9604_v6 = vld [vmem:[#allocation11_spill] sm:$0xff]  ;;  %v9170_v50 = vrot.slane %v4830_v21, 4  ;;  %v9183_v23 = vld [vmem:[#allocation2 + $0xd0] sm:$0xf] }
 0x15d   : > { %7070 = vmatprep.mubr.msk.bf16.mxu0 %vm1580_vm12, %v9044_v39  ;;  %v5321_v42 = vrot.slane %v9604_v6, 5  ;;  %v9168_v39 = vsel %vm7812_vm1, %v5313_v63, %v5314_v13  ;;  %v9172_v25 = vrot.slane %v4843_v18, 5  ;;  %v4840_v60 = vor.u32 %v4839_v53, %v9064_v37  ;;  %v9605_v52 = vld [vmem:[#allocation8_spill] sm:$0xff]  ;;  %v9607_v63 = vld [vmem:[#allocation22_spill] sm:$0xff] }
 0x15e   : > { %v6470_v29 = vcombine.low %v9152_v7, %v9168_v39  ;;  %v9181_v48 = vrot.slane %v4857_v8, 5  ;;  %v4872_v51 = vshrl.u32 %v4508_v49, 16  ;;  %v4863_v18 = vrot.slane %v4861_v62, 4  ;;  %v7501_v39 = vld [vmem:[#allocation2 + $0xa4] sm:$0x1] }
 0x15f   : > { %v9178_v14 = vsel %vm7812_vm1, %v5320_v59, %v5321_v42  ;;  %v3170_v38 = vshrl.u32 %v2932_v36, 16  ;;  %v3173_v13 = vshll.u32 %v2932_v36, 16  ;;  %v3192_v58 = vsel %vm7746_vm13, %v9606_v20, %v9605_v52  ;;  %v9608_v36 = vld [vmem:[#allocation24_spill] sm:$0xff]  ;;  %v9610_v20 = vld [vmem:[#allocation25_spill] sm:$0xff] }
 0x160   : > { %v4854_v53 = vor.u32 %v4853_v17, %v4850_v32  ;;  %v4875_v35 = vshll.u32 %v4508_v49, 16  ;;  %v6455_v8 = vrot.slane %v5199_v4, 9  ;;  %v5325_v59 = vrot.slane %v9607_v63, 5  ;;  %v7429_v63 = vld [vmem:[#allocation2 + $0x18] sm:$0xff]  }
 0x161   : > { %v4881_v62 = vshll.u32 %v9183_v23, 16  ;;  %v3172_v6 = vrot.slane %v3170_v38, 4  ;;  %v3175_v42 = vrot.slane %v3173_v13, 5  ;;  %v5328_v21 = vrot.slane %v9608_v36, 5  ;;  %v9609_v38 = vld [vmem:[#allocation23_spill] sm:$0xff] }
 0x162   : > { %v4885_v49 = vshrl.u32 %v9183_v23, 16  ;;  %v9206_v32 = vsel %vm7812_vm1, %v6455_v8, %v5325_v59  ;;  %v5327_v46 = vrot.slane %v5325_v59, 4  ;;  %v6456_v57 = vrot.slane %v5200_v24, 9 }
 0x163   : > { %6913 = vmatmul.mubr.msk.bf16.gmra.mrb[28].mxu1 %vm1580_vm12, %v6247_v10  ;;  %v4864_v10 = vor.u32 %v4863_v18, %v9181_v48  ;;  %v4867_v17 = vshll.u32 %v9191_v34, 16  ;;  %v3176_v4 = vor.u32 %v3175_v42, %v3172_v6  ;;  %v4841_v13 = vrot.slane %v4840_v60, 4  ;;  %v7430_v42 = vld [vmem:[#allocation2 + $0x24] sm:$0xff]  }
 0x164   : > { %7071 = vmatmul.mubr.msk.bf16.gmra.mrb[16].mxu0 %vm1580_vm12, %v9046_v19  ;;  %6918 = vmatprep.mubr.msk.bf16.mxu1 %vm1580_vm12, %v7428_v47  ;;  %v5332_v19 = vrot.slane %v9609_v38, 5  ;;  %v4874_v47 = vrot.slane %v4872_v51, 4  ;;  %v9215_v52 = vsel %vm7812_vm1, %v5327_v46, %v5328_v21  ;;  %v5335_v8 = vrot.slane %v9610_v20, 5  ;;  %v9611_v46 = vld [vmem:[#allocation6_spill] sm:$0xff]  ;;  %v5201_v38 = vld [vmem:[#allocation2 + $0xa8] sm:$0xe] }
 0x165   : > { %7074 = vmatprep.mubr.msk.bf16.mxu0 %vm1580_vm12, %v9054_v33  ;;  %v4855_v24 = vrot.slane %v4854_v53, 4  ;;  %v4877_v59 = vrot.slane %v4875_v35, 5  ;;  %v3177_v36 = vrot.slane %v3176_v4, 4  ;;  %v6472_v33 = vcombine.low %v9206_v32, %v9215_v52  ;;  %v9234_v4 = vld [vmem:[#allocation2 + $0xd4] sm:$0x1] }
 0x166   : > { %v9220_v18 = vrot.slane %v4881_v62, 5  ;;  %v4887_v6 = vrot.slane %v4885_v49, 4  ;;  %v9224_v60 = vsel %vm7812_vm1, %v6456_v57, %v5332_v19  ;;  %v5334_v51 = vrot.slane %v5332_v19, 4  ;;  %v7431_v20 = vld [vmem:[#allocation2 + $0x30] sm:$0xff]   ;;  %v2950_v52 = vld [vmem:[#allocation2 + $0xc0] sm:$0xf] }
 0x167   : > { %v6425_v21 = vcombine.low %v4812_v44, %v4822_v1  ;;  %v4865_v53 = vrot.slane %v4864_v10, 4  ;;  %v4869_v35 = vrot.slane %v4867_v17, 5  ;;  %v3182_v62 = vsel %vm7746_vm13, %v3177_v36, %v9611_v46  ;;  %v9612_v1 = vld [vmem:[#allocation3_spill] sm:$0xff] }
 0x168   : > { %v9236_v49 = vcombine.low %v3182_v62, %v3192_v58  ;;  %v9240_v57 = vsel %vm7812_vm1, %v5334_v51, %v5335_v8  ;;  %v4836_v28 = vsel %vm7746_vm13, %v9170_v50, %v9064_v37  ;;  %v4878_v41 = vor.u32 %v4877_v59, %v4874_v47  ;;  %v5202_v47 = vld [vmem:[#allocation2 + $0xb4] sm:$0xe]  ;;  %v7432_v59 = vld [vmem:[#allocation2 + $0x3c] sm:$0xff]  }
 0x169   : > { %v6473_v44 = vcombine.low %v9224_v60, %v9240_v57  ;;  %v4846_v58 = vsel %vm7746_vm13, %v4841_v13, %v9172_v25  ;;  %v4860_v10 = vsel %vm7746_vm13, %v4855_v24, %v9181_v48  ;;  %v4888_v17 = vor.u32 %v4887_v6, %v9220_v18  ;;  %v7486_v25 = vld [vmem:[#allocation2 + $0x1c] sm:$0xf] }
 0x16a   : > { %v4870_v37 = vsel %vm7746_vm13, %v4865_v53, %v4869_v35  ;;  %v4891_v50 = vshll.u32 %v9234_v4, 16  ;;  %v5339_v19 = vrot.slane %v8957_v56, 5  ;;  %v5255_v13 = vrot.slane %v7486_v25, 5 }
 0x16b   : > { %6919 = vmatmul.mubr.msk.bf16.vlgmr.msra.gmra.mrb[0].mxu1 %vm1580_vm12, %v7429_v63  ;;  %v6426_v8 = vcombine.low %v4836_v28, %v4846_v58  ;;  %v4879_v48 = vrot.slane %v4878_v41, 4  ;;  %v5189_v63 = vld [vmem:[#allocation2 + $0x18] sm:$0xe]  ;;  %v6427_v36 = vcombine.low %v4860_v10, %v4870_v37  ;;  %v5342_v51 = vrot.slane %v8978_v3, 5  ;;  %v5190_v10 = vld [vmem:[#allocation2 + $0x24] sm:$0xe] }
 0x16c   : > { %7121 = vmatpush3.bf16.msra.mxu1 %v9612_v1  ;;  %7075 = vmatmul.mubr.msk.bf16.gmra.mrb[20].mxu0 %vm1580_vm12, %v9056_v5  ;;  %v6457_v5 = vrot.slane %v5201_v38, 9  ;;  %v5341_v24 = vrot.slane %v5339_v19, 4  ;;  %v4893_v53 = vrot.slane %v4891_v50, 5  ;;  %v5346_v56 = vrot.slane %v9001_v26, 5  ;;  %v7487_v38 = vld [vmem:[#allocation2 + $0x20] sm:$0x1] }
 0x16d   : > { %6922 = vmatprep.mubr.msk.bf16.mxu1 %vm1580_vm12, %v7430_v42  ;;  %7078 = vmatprep.mubr.msk.bf16.mxu0 %vm1580_vm12, %v6425_v21  ;;  %v6458_v42 = vrot.slane %v5202_v47, 9  ;;  %v4889_v21 = vrot.slane %v4888_v17, 4  ;;  %v5349_v35 = vrot.slane %v9060_v15, 5  ;;  %v6445_v46 = vrot.slane %v5189_v63, 9  ;;  %v7488_v17 = vld [vmem:[#allocation2 + $0x28] sm:$0xf] }
 0x16e   : > { %v9267_v6 = vsel %vm7812_vm1, %v6457_v5, %v5339_v19  ;;  %v5257_v62 = vrot.slane %v5255_v13, 4  ;;  %v5258_v28 = vrot.slane %v7487_v38, 5  ;;  %v9274_v41 = vsel %vm7812_vm1, %v5341_v24, %v5342_v51  ;;  %v7489_v47 = vld [vmem:[#allocation2 + $0x34] sm:$0xf] }
 0x16f   : > { %v6474_v3 = vcombine.low %v9267_v6, %v9274_v41  ;;  %v9281_v1 = vsel %vm7812_vm1, %v6458_v42, %v5346_v56  ;;  %v5348_v26 = vrot.slane %v5346_v56, 4  ;;  %v4884_v15 = vsel %vm7746_vm13, %v4879_v48, %v9220_v18  ;;  %v5191_v48 = vld [vmem:[#allocation2 + $0x30] sm:$0xe]  ;;  %v7434_v24 = vld [vmem:[#allocation2 + $0x54] sm:$0xff]  }
 0x170   : > { %v4894_v58 = vsel %vm7746_vm13, %v4889_v21, %v4893_v53  ;;  %v5262_v37 = vrot.slane %v7488_v17, 5  ;;  %v5256_v5 = vsel %vm7812_vm1, %v6445_v46, %v5255_v13  ;;  %v5259_v19 = vsel %vm7812_vm1, %v5257_v62, %v5258_v28  ;;  %v7490_v21 = vld [vmem:[#allocation2 + $0x2c] sm:$0x1]  ;;  %v7491_v46 = vld [vmem:[#allocation2 + $0x38] sm:$0x1] }
 0x171   : > { %v9293_v50 = vsel %vm7812_vm1, %v5348_v26, %v5349_v35  ;;  %v5269_v25 = vrot.slane %v7489_v47, 5  ;;  %v6428_v63 = vcombine.low %v4884_v15, %v4894_v58  ;;  %v6462_v51 = vcombine.low %v5256_v5, %v5259_v19  ;;  %v5192_v17 = vld [vmem:[#allocation2 + $0x3c] sm:$0xe] }
 0x172   : > { %v6475_v18 = vcombine.low %v9281_v1, %v9293_v50  ;;  %v5264_v42 = vrot.slane %v5262_v37, 4  ;;  %v5265_v53 = vrot.slane %v7490_v21, 5  ;;  %v6447_v56 = vrot.slane %v5191_v48, 9  ;;  %v7435_v48 = vld [vmem:[#allocation2 + $0x60] sm:$0xff]  }
 0x173   : > { %6923 = vmatmul.mubr.msk.bf16.gmra.mrb[4].mxu1 %vm1580_vm12, %v7431_v20  ;;  %v5203_v20 = vld [vmem:[#allocation2 + $0xc0] sm:$0xe]  ;;  %v5271_v35 = vrot.slane %v5269_v25, 4  ;;  %v5272_v62 = vrot.slane %v7491_v46, 5  ;;  %v5353_v38 = vrot.slane %v9118_v55, 5  ;;  %v5356_v28 = vrot.slane %v9191_v34, 5 }
 0x174   : > { %7079 = vmatmul.mubr.msk.bf16.gmra.mrb[24].mxu0 %vm1580_vm12, %v6426_v8  ;;  %6926 = vmatprep.mubr.msk.bf16.mxu1 %vm1580_vm12, %v7432_v59  ;;  %v7433_v8 = vld [vmem:[#allocation2 + $0x48] sm:$0xff]   ;;  %v6446_v59 = vrot.slane %v5190_v10, 9  ;;  %v6459_v13 = vrot.slane %v5203_v20, 9  ;;  %v5266_v55 = vsel %vm7812_vm1, %v5264_v42, %v5265_v53  ;;  %v7492_v34 = vld [vmem:[#allocation2 + $0x40] sm:$0xf]  ;;  %v5360_v19 = vrot.slane %v9183_v23, 5 }
 0x175   : > { %7082 = vmatprep.mubr.msk.bf16.mxu0 %vm1580_vm12, %v6427_v36  ;;  %v5204_v36 = vld [vmem:[#allocation2 + $0xcc] sm:$0xe]  ;;  %v5355_v10 = vrot.slane %v5353_v38, 4  ;;  %v5276_v5 = vrot.slane %v7492_v34, 5  ;;  %v5363_v47 = vrot.slane %v9234_v4, 5  ;;  %v5273_v20 = vsel %vm7812_vm1, %v5271_v35, %v5272_v62  ;;  %v7437_v62 = vld [vmem:[#allocation2 + $0x78] sm:$0xff]  }
 0x176   : > { %v6460_v26 = vrot.slane %v5204_v36, 9  ;;  %v5263_v15 = vsel %vm7812_vm1, %v6446_v59, %v5262_v37  ;;  %v9310_v58 = vsel %vm7812_vm1, %v6459_v13, %v5353_v38  ;;  %v5270_v37 = vsel %vm7812_vm1, %v6447_v56, %v5269_v25  ;;  %v7436_v59 = vld [vmem:[#allocation2 + $0x6c] sm:$0xff]   ;;  %v7493_v42 = vld [vmem:[#allocation2 + $0x44] sm:$0x1] }
 0x177   : > { %v5362_v23 = vrot.slane %v5360_v19, 4  ;;  %v6463_v4 = vcombine.low %v5263_v15, %v5266_v55  ;;  %v6448_v36 = vrot.slane %v5192_v17, 9  ;;  %v6464_v25 = vcombine.low %v5270_v37, %v5273_v20  ;;  %v2929_v46 = vld [vmem:[#allocation2 + $0x6c] sm:$0xf]  ;;  %v7440_v37 = vld [vmem:[#allocation2 + $0x9c] sm:$0xff]  }
 0x178   : > { %v5279_v21 = vrot.slane %v7493_v42, 5  ;;  %v3149_v15 = vshll.u32 %v2929_v46, 16  ;;  %v2935_v20 = vld [vmem:[#allocation2 + $0x84] sm:$0xf]  ;;  %v3203_v54 = vshll.u32 %v7496_v40, 16 }
 0x179   : > { %v9333_v53 = vsel %vm7812_vm1, %v5362_v23, %v5363_v47  ;;  %v5277_v56 = vsel %vm7812_vm1, %v6448_v36, %v5276_v5  ;;  %v7439_v47 = vld [vmem:[#allocation2 + $0x90] sm:$0xff]   ;;  %v3194_v36 = vshrl.u32 %v2935_v20, 16 }
 0x17a   : > { %v3151_v34 = vrot.slane %v3149_v15, 5  ;;  %v2938_v42 = vld [vmem:[#allocation2 + $0x90] sm:$0xf]  ;;  %v9362_v27 = vrot.slane %v3203_v54, 5 }
 0x17b   : > { %6927 = vmatmul.mubr.msk.bf16.gmra.mrb[8].mxu1 %vm1580_vm12, %v7433_v8  ;;  %v9323_v8 = vsel %vm7812_vm1, %v5355_v10, %v5356_v28  ;;  %v7438_v28 = vld [vmem:[#allocation2 + $0x84] sm:$0xff]   ;;  %v7494_v10 = vld [vmem:[#allocation2 + $0x70] sm:$0xf] }
 0x17c   : > { %7083 = vmatmul.mubr.msk.bf16.gmra.mrb[28].mxu0 %vm1580_vm12, %v6428_v63  ;;  %6930 = vmatprep.mubr.msk.bf16.mxu1 %vm1580_vm12, %v7434_v24  ;;  %v6476_v63 = vcombine.low %v9310_v58, %v9323_v8  ;;  %v9329_v24 = vsel %vm7812_vm1, %v6460_v26, %v5360_v19  ;;  %v3146_v26 = vshrl.u32 %v2929_v46, 16  ;;  %v3155_v55 = vshll.u32 %v7494_v10, 16  ;;  %v7442_v46 = vld [vmem:[#allocation2 + $0xb4] sm:$0xff]  }
 0x17d   : > { %7088 = vmatprep.mubr.msk.bf16.mxu0 %vm1580_vm12, %v6462_v51  ;;  %v5278_v51 = vrot.slane %v5276_v5, 4  ;;  %v6477_v13 = vcombine.low %v9329_v24, %v9333_v53  ;;  %v3159_v17 = vshrl.u32 %v7494_v10, 16  ;;  %v7498_v10 = vld [vmem:[#allocation2 + $0x94] sm:$0xf] }
 0x17e   : > { %v3148_v9 = vrot.slane %v3146_v26, 4  ;;  %v3157_v5 = vrot.slane %v3155_v55, 5  ;;  %v2941_v26 = vld [vmem:[#allocation2 + $0x9c] sm:$0xf]  ;;  %v3227_v55 = vshll.u32 %v7498_v10, 16 }
 0x17f   : > { %v5280_v35 = vsel %vm7812_vm1, %v5278_v51, %v5279_v21  ;;  %v3161_v19 = vrot.slane %v3159_v17, 4  ;;  %v3231_v17 = vshrl.u32 %v7498_v10, 16 }
 0x180   : > { %v6465_v38 = vcombine.low %v5277_v56, %v5280_v35  ;;  %v7441_v35 = vld [vmem:[#allocation2 + $0xa8] sm:$0xff]  }
 0x181   : > { %v3162_v23 = vor.u32 %v3161_v19, %v3157_v5  ;;  %v7499_v19 = vld [vmem:[#allocation2 + $0xa0] sm:$0xf]  ;;  %v3233_v31 = vrot.slane %v3231_v17, 4 }
 0x183   : > { %6931 = vmatmul.mubr.msk.bf16.gmra.mrb[12].mxu1 %vm1580_vm12, %v7435_v48  ;;  %v3152_v48 = vor.u32 %v3151_v34, %v3148_v9  ;;  %v3163_v21 = vrot.slane %v3162_v23, 4  ;;  %v3242_v9 = vshrl.u32 %v2941_v26, 16  ;;  %v3245_v34 = vshll.u32 %v2941_v26, 16 }
 0x184   : > { %7089 = vmatmul.mubr.msk.bf16.vlgmr.msra.gmra.mrb[0].mxu0 %vm1580_vm12, %v6463_v4  ;;  %6934 = vmatprep.mubr.msk.bf16.mxu1 %vm1580_vm12, %v7436_v59  ;;  %v7495_v4 = vld [vmem:[#allocation2 + $0x74] sm:$0x1] }
 0x185   : > { %7092 = vmatprep.mubr.msk.bf16.mxu0 %vm1580_vm12, %v6464_v25  ;;  %v3165_v59 = vshll.u32 %v7495_v4, 16  ;;  %v3197_v25 = vshll.u32 %v2935_v20, 16  ;;  %v3153_v51 = vrot.slane %v3152_v48, 4  ;;  %v7443_v4 = vld [vmem:[#allocation2 + $0xc0] sm:$0xff]   ;;  %v3244_v43 = vrot.slane %v3242_v9, 4 }
 0x187   : > { %v3167_v56 = vrot.slane %v3165_v59, 5  ;;  %v3199_v11 = vrot.slane %v3197_v25, 5  ;;  %v3158_v15 = vsel %vm7746_vm13, %v3153_v51, %v3157_v5  ;;  %v9379_v25 = vrot.slane %v3227_v55, 5 }
 0x189   : > { %v3168_v45 = vsel %vm7746_vm13, %v3163_v21, %v3167_v56  ;;  %v7500_v56 = vld [vmem:[#allocation2 + $0x98] sm:$0x1]  ;;  %v3234_v7 = vor.u32 %v3233_v31, %v9379_v25 }
 0x18a   : > { %v6306_v59 = vcombine.low %v3158_v15, %v3168_v45  ;;  %v9613_v45 = vcombine.low %v9159_v61, %v9178_v14  ;;  %v7503_v14 = vld [vmem:[#allocation2 + $0xb8] sm:$0xf] }
 0x18b   : > { %6935 = vmatmul.mubr.msk.bf16.gmra.mrb[16].mxu1 %vm1580_vm12, %v7437_v62  ;;  %v3196_v62 = vrot.slane %v3194_v36, 4  ;;  %v3299_v9 = vshll.u32 %v7503_v14, 16 }
 0x18c   : > { %7093 = vmatmul.mubr.msk.bf16.gmra.mrb[4].mxu0 %vm1580_vm12, %v6465_v38  ;;  %6938 = vmatprep.mubr.msk.bf16.mxu1 %vm1580_vm12, %v7438_v28  ;;  %v3218_v38 = vshrl.u32 %v2938_v42, 16  ;;  %v3221_v28 = vshll.u32 %v2938_v42, 16 }
 0x18d   : > { %7096 = vmatprep.mubr.msk.bf16.mxu0 %vm1580_vm12, %v6466_v2  ;;  %v3207_v2 = vshrl.u32 %v7496_v40, 16  ;;  %v3200_v5 = vor.u32 %v3199_v11, %v3196_v62  ;;  %v2947_v11 = vld [vmem:[#allocation2 + $0xb4] sm:$0xf]  ;;  %v3301_v31 = vrot.slane %v3299_v9, 5 }
 0x18e   : > { %v3220_v48 = vrot.slane %v3218_v38, 4  ;;  %v3223_v23 = vrot.slane %v3221_v28, 5  ;;  %v7502_v28 = vld [vmem:[#allocation2 + $0xac] sm:$0xf]  ;;  %v3290_v17 = vshrl.u32 %v2947_v11, 16  ;;  %v3293_v61 = vshll.u32 %v2947_v11, 16 }
 0x18f   : > { %v3201_v51 = vrot.slane %v3200_v5, 4  ;;  %v3275_v26 = vshll.u32 %v7502_v28, 16  ;;  %v3279_v15 = vshrl.u32 %v7502_v28, 16 }
 0x190   : > { %v3224_v21 = vor.u32 %v3223_v23, %v3220_v48 }
 0x191   : > { %v3277_v48 = vrot.slane %v3275_v26, 5  ;;  %v3281_v23 = vrot.slane %v3279_v15, 4 }
 0x192   : > { %v3225_v10 = vrot.slane %v3224_v21, 4 }
 0x193   : > { %6939 = vmatmul.mubr.msk.bf16.gmra.mrb[20].mxu1 %vm1580_vm12, %v7439_v47  ;;  %v3251_v47 = vshll.u32 %v7499_v19, 16  ;;  %v3282_v21 = vor.u32 %v3281_v23, %v3277_v48 }
 0x194   : > { %7097 = vmatmul.mubr.msk.bf16.gmra.mrb[8].mxu0 %vm1580_vm12, %v6467_v12  ;;  %6942 = vmatprep.mubr.msk.bf16.mxu1 %vm1580_vm12, %v7440_v37  ;;  %v3209_v12 = vrot.slane %v3207_v2, 4  ;;  %v3255_v37 = vshrl.u32 %v7499_v19, 16  ;;  %v2944_v2 = vld [vmem:[#allocation2 + $0xa8] sm:$0xf]  ;;  %v3235_v19 = vrot.slane %v3234_v7, 4 }
 0x195   : > { %7100 = vmatprep.mubr.msk.bf16.mxu0 %vm1580_vm12, %v6468_v30  ;;  %v3213_v30 = vshll.u32 %v7497_v0, 16  ;;  %v9381_v40 = vrot.slane %v3251_v47, 5  ;;  %v3269_v62 = vshll.u32 %v2944_v2, 16  ;;  %v3206_v0 = vsel %vm7746_vm13, %v3201_v51, %v9362_v27 }
 0x196   : > { %v3210_v20 = vor.u32 %v3209_v12, %v9362_v27  ;;  %v3257_v54 = vrot.slane %v3255_v37, 4 }
 0x197   : > { %v3215_v36 = vrot.slane %v3213_v30, 5  ;;  %v3271_v5 = vrot.slane %v3269_v62, 5 }
 0x198   : > { %v3211_v42 = vrot.slane %v3210_v20, 4  ;;  %v3258_v38 = vor.u32 %v3257_v54, %v9381_v40 }
 0x19a   : > { %v3216_v30 = vsel %vm7746_vm13, %v3211_v42, %v3215_v36  ;;  %v3259_v20 = vrot.slane %v3258_v38, 4  ;;  %v3295_v36 = vrot.slane %v3293_v61, 5 }
 0x19b   : > { %6943 = vmatmul.mubr.msk.bf16.gmra.mrb[24].mxu1 %vm1580_vm12, %v7441_v35  ;;  %v3237_v35 = vshll.u32 %v7500_v56, 16  ;;  %v3317_v56 = vshll.u32 %v2950_v52, 16 }
 0x19c   : > { %7101 = vmatmul.mubr.msk.bf16.gmra.mrb[12].mxu0 %vm1580_vm12, %v6469_v16  ;;  %6946 = vmatprep.mubr.msk.bf16.mxu1 %vm1580_vm12, %v7442_v46  ;;  %v3247_v16 = vrot.slane %v3245_v34, 5  ;;  %v3266_v46 = vshrl.u32 %v2944_v2, 16  ;;  %v3303_v34 = vshrl.u32 %v7503_v14, 16 }
 0x19d   : > { %7104 = vmatprep.mubr.msk.bf16.mxu0 %vm1580_vm12, %v6470_v29  ;;  %v3261_v29 = vshll.u32 %v7501_v39, 16  ;;  %v3239_v55 = vrot.slane %v3237_v35, 5  ;;  %v7505_v35 = vld [vmem:[#allocation2 + $0xc4] sm:$0xf]  ;;  %v3319_v38 = vrot.slane %v3317_v56, 5 }
 0x19e   : > { %v3248_v12 = vor.u32 %v3247_v16, %v3244_v43  ;;  %v3268_v37 = vrot.slane %v3266_v46, 4  ;;  %v3305_v32 = vrot.slane %v3303_v34, 4  ;;  %v7504_v16 = vld [vmem:[#allocation2 + $0xb0] sm:$0x1]  ;;  %v3327_v7 = vshrl.u32 %v7505_v35, 16 }
 0x19f   : > { %v3263_v47 = vrot.slane %v3261_v29, 5  ;;  %v3240_v43 = vsel %vm7746_vm13, %v3235_v19, %v3239_v55  ;;  %v3285_v54 = vshll.u32 %v7504_v16, 16  ;;  %v7506_v29 = vld [vmem:[#allocation2 + $0xbc] sm:$0x1] }
 0x1a0   : > { %v3249_v27 = vrot.slane %v3248_v12, 4  ;;  %v3272_v42 = vor.u32 %v3271_v5, %v3268_v37  ;;  %v3306_v39 = vor.u32 %v3305_v32, %v3301_v31  ;;  %v3309_v46 = vshll.u32 %v7506_v29, 16 }
 0x1a1   : > { %v3264_v51 = vsel %vm7746_vm13, %v3259_v20, %v3263_v47  ;;  %v3287_v11 = vrot.slane %v3285_v54, 5  ;;  %v3329_v26 = vrot.slane %v3327_v7, 4 }
 0x1a2   : > { %v3254_v2 = vsel %vm7746_vm13, %v3249_v27, %v9381_v40  ;;  %v3273_v57 = vrot.slane %v3272_v42, 4 }
 0x1a3   : > { %6947 = vmatmul.mubr.msk.bf16.gmra.mrb[28].mxu1 %vm1580_vm12, %v7443_v4  ;;  %v6308_v4 = vcombine.low %v3206_v0, %v3216_v30  ;;  %v6310_v60 = vcombine.low %v3254_v2, %v3264_v51  ;;  %v3311_v0 = vrot.slane %v3309_v46, 5 }
 0x1a4   : > { %7105 = vmatmul.mubr.msk.bf16.gmra.mrb[16].mxu0 %vm1580_vm12, %v9613_v45  ;;  %6968 = vmatprep.mubr.msk.bf16.mxu1 %vm1580_vm12, %v6306_v59  ;;  %v3292_v59 = vrot.slane %v3290_v17, 4  ;;  %v3307_v45 = vrot.slane %v3306_v39, 4  ;;  %v3278_v6 = vsel %vm7746_vm13, %v3273_v57, %v3277_v48 }
 0x1a5   : > { %7108 = vmatprep.mubr.msk.bf16.mxu0 %vm1580_vm12, %v6472_v33  ;;  %v3230_v33 = vsel %vm7746_vm13, %v3225_v10, %v9379_v25  ;;  %v3314_v25 = vshrl.u32 %v2950_v52, 16  ;;  %v7507_v10 = vld [vmem:[#allocation2 + $0xc8] sm:$0x1] }
 0x1a6   : > { %v3296_v40 = vor.u32 %v3295_v36, %v3292_v59  ;;  %v6309_v62 = vcombine.low %v3230_v33, %v3240_v43  ;;  %v3333_v55 = vshll.u32 %v7507_v10, 16  ;;  %v3312_v1 = vsel %vm7746_vm13, %v3307_v45, %v3311_v0 }
 0x1a7   : > { %v3316_v12 = vrot.slane %v3314_v25, 4 }
 0x1a8   : > { %v3297_v15 = vrot.slane %v3296_v40, 4  ;;  %v3335_v9 = vrot.slane %v3333_v55, 5 }
 0x1aa   : > { %v3302_v17 = vsel %vm7746_vm13, %v3297_v15, %v3301_v31 }
 0x1ab   : > { %6969 = vmatmul.mubr.msk.bf16.vlgmr.msra.gmra.mrb[16].mxu1 %vm1580_vm12, %v9236_v49  ;;  %v3323_v49 = vshll.u32 %v7505_v35, 16 }
 0x1ac   : > { %7109 = vmatmul.mubr.msk.bf16.gmra.mrb[20].mxu0 %vm1580_vm12, %v6473_v44  ;;  %6972 = vmatprep.mubr.msk.bf16.mxu1 %vm1580_vm12, %v6308_v4  ;;  %v3283_v44 = vrot.slane %v3282_v21, 4 }
 0x1ad   : > { %7112 = vmatprep.mubr.msk.bf16.mxu0 %vm1580_vm12, %v6474_v3  ;;  %v3325_v28 = vrot.slane %v3323_v49, 5  ;;  %v3320_v3 = vor.u32 %v3319_v38, %v3316_v12 }
 0x1ae   : > { %v3288_v41 = vsel %vm7746_vm13, %v3283_v44, %v3287_v11 }
 0x1af   : > { %v3330_v30 = vor.u32 %v3329_v26, %v3325_v28  ;;  %v6311_v50 = vcombine.low %v3278_v6, %v3288_v41  ;;  %v3321_v61 = vrot.slane %v3320_v3, 4 }
 0x1b1   : > { %v3331_v14 = vrot.slane %v3330_v30, 4  ;;  %v3326_v58 = vsel %vm7746_vm13, %v3321_v61, %v3325_v28 }
 0x1b3   : > { %6973 = vmatmul.mubr.msk.bf16.gmra.mrb[20].mxu1 %vm1580_vm12, %v6309_v62  ;;  %v3336_v8 = vsel %vm7746_vm13, %v3331_v14, %v3335_v9 }
 0x1b4   : > { %7113 = vmatmul.mubr.msk.bf16.gmra.mrb[24].mxu0 %vm1580_vm12, %v6475_v18  ;;  %6976 = vmatprep.mubr.msk.bf16.mxu1 %vm1580_vm12, %v6310_v60  ;;  %v6312_v18 = vcombine.low %v3302_v17, %v3312_v1 }
 0x1b5   : > { %7116 = vmatprep.mubr.msk.bf16.mxu0 %vm1580_vm12, %v6476_v63  ;;  %v6313_v63 = vcombine.low %v3326_v58, %v3336_v8 }
 0x1bb   : > { %6977 = vmatmul.mubr.msk.bf16.gmra.mrb[24].mxu1 %vm1580_vm12, %v6311_v50 }
 0x1bc   : > { %7117 = vmatmul.mubr.msk.bf16.gmra.mrb[28].mxu0 %vm1580_vm12, %v6477_v13  ;;  %6980 = vmatprep.mubr.msk.bf16.mxu1 %vm1580_vm12, %v6312_v18 }
 0x1c3   : > { %6981 = vmatmul.mubr.msk.bf16.gmra.mrb[28].mxu1 %vm1580_vm12, %v6313_v63 }
 0x23e   : > { %v6920_v34 = vpop.f32.mrb[0].mxu1 }
 0x23f   : > { %v2746_v19 = vpop.f32.mrb[1].mxu1 }
 0x240   : > { %v6921_v47 = vpop.f32.mrb[2].mxu1 }
 0x241   : > { %v2749_v37 = vpop.f32.mrb[3].mxu1 }
 0x246   : > { %v6924_v5 = vpop.f32.mrb[4].mxu1 }
 0x247   : > { %v2762_v27 = vpop.f32.mrb[5].mxu1 }
 0x248   : > { %v6925_v24 = vpop.f32.mrb[6].mxu1 }
 0x249   : > { %v2765_v53 = vpop.f32.mrb[7].mxu1 }
 0x24e   : > { %v6928_v13 = vpop.f32.mrb[8].mxu1 }
 0x24f   : > { %v2778_v20 = vpop.f32.mrb[9].mxu1 }
 0x250   : > { %v6929_v48 = vpop.f32.mrb[10].mxu1 }
 0x251   : > { %v2781_v23 = vpop.f32.mrb[11].mxu1 }
 0x256   : > { %v9450_v4 = vpop.f32.mrb[12].mxu1 }
 0x257   : > { %v9452_v22 = vpop.f32.mrb[13].mxu1  ;;  %v7090_v59 = vpop.f32.mrb[0].mxu0 }
 0x258   : > { %v9454_v36 = vpop.f32.mrb[14].mxu1  ;;  %v7122_v31 = vadd.f32 %v7090_v59, %v6920_v34  ;;  %v5500_v32 = vpop.f32.mrb[1].mxu0 }
 0x259   : > { %v9456_v52 = vpop.f32.mrb[15].mxu1  ;;  %v7123_v33 = vadd.f32 %v5500_v32, %v2746_v19  ;;  %v7091_v43 = vpop.f32.mrb[2].mxu0 }
 0x25a   : > { %v7124_v16 = vadd.f32 %v7091_v43, %v6921_v47  ;;  %v5503_v54 = vpop.f32.mrb[3].mxu0 }
 0x25b   : > { %v7125_v2 = vadd.f32 %v5503_v54, %v2749_v37 }
 0x25c   : > { %v5660_v51 = vpack.c.bf16 %v7124_v16, %v7122_v31 }
 0x25d   : > { %v5659_v42 = vpack.c.bf16 %v7125_v2, %v7123_v33 }
 0x25e   : > { %6646 = vst [vmem:[%s9462_s14 + $0x8] sm:$0xff] %v5660_v51   ;;  %v5821_v21 = vunpack.c.l.bf16 %v5660_v51  ;;  %v5822_v49 = vunpack.c.h.bf16 %v5660_v51 }
 0x25f   : > { %6569 = vst [vmem:[%s9462_s14] sm:$0xff] %v5659_v42   ;;  %v5819_v25 = vunpack.c.l.bf16 %v5659_v42  ;;  %v5820_v56 = vunpack.c.h.bf16 %v5659_v42  ;;  %v7094_v35 = vpop.f32.mrb[4].mxu0 }
 0x260   : > { %v7126_v7 = vadd.f32 %v7094_v35, %v6924_v5  ;;  %v5516_v40 = vpop.f32.mrb[5].mxu0  ;;  %v5891_v11 = vmul.f32 %v5821_v21, %v5821_v21  ;;  %v5892_v15 = vmul.f32 %v5822_v49, %v5822_v49 }
 0x261   : > { %v5851_v39 = vadd.f32 %v5820_v56, %v5819_v25  ;;  %v5889_v29 = vmul.f32 %v5819_v25, %v5819_v25  ;;  %v5890_v46 = vmul.f32 %v5820_v56, %v5820_v56  ;;  %v7127_v62 = vadd.f32 %v5516_v40, %v2762_v27  ;;  %v7095_v60 = vpop.f32.mrb[6].mxu0 }
 0x262   : > { %v7128_v57 = vadd.f32 %v7095_v60, %v6925_v24  ;;  %v5519_v44 = vpop.f32.mrb[7].mxu0 }
 0x263   : > { %v5852_v12 = vadd.f32 %v5851_v39, %v5821_v21  ;;  %v5921_v38 = vadd.f32 %v5890_v46, %v5889_v29  ;;  %v7129_v28 = vadd.f32 %v5519_v44, %v2765_v53 }
 0x264   : > { %v5662_v26 = vpack.c.bf16 %v7128_v57, %v7126_v7 }
 0x265   : > { %v5922_v45 = vadd.f32 %v5921_v38, %v5891_v11  ;;  %v5661_v0 = vpack.c.bf16 %v7129_v28, %v7127_v62  ;;  %v5853_v6 = vadd.f32 %v5852_v12, %v5822_v49 }
 0x266   : > { %6648 = vst [vmem:[%s9462_s14 + $0x18] sm:$0xff] %v5662_v26   ;;  %v5825_v1 = vunpack.c.l.bf16 %v5662_v26  ;;  %v5826_v9 = vunpack.c.h.bf16 %v5662_v26 }
 0x267   : > { %6647 = vst [vmem:[%s9462_s14 + $0x10] sm:$0xff] %v5661_v0   ;;  %v5823_v41 = vunpack.c.l.bf16 %v5661_v0  ;;  %v5824_v3 = vunpack.c.h.bf16 %v5661_v0  ;;  %v5923_v30 = vadd.f32 %v5922_v45, %v5892_v15  ;;  %v7098_v10 = vpop.f32.mrb[8].mxu0 }
 0x268   : > { %v7130_v55 = vadd.f32 %v7098_v10, %v6928_v13  ;;  %v5532_v17 = vpop.f32.mrb[9].mxu0  ;;  %v5895_v5 = vmul.f32 %v5825_v1, %v5825_v1  ;;  %v5896_v13 = vmul.f32 %v5826_v9, %v5826_v9 }
 0x269   : > { %v5854_v50 = vadd.f32 %v5853_v6, %v5823_v41  ;;  %v5893_v18 = vmul.f32 %v5823_v41, %v5823_v41  ;;  %v7131_v61 = vadd.f32 %v5532_v17, %v2778_v20  ;;  %v7099_v14 = vpop.f32.mrb[10].mxu0  ;;  %v5894_v34 = vmul.f32 %v5824_v3, %v5824_v3 }
 0x26a   : > { %v7132_v58 = vadd.f32 %v7099_v14, %v6929_v48  ;;  %v5535_v8 = vpop.f32.mrb[11].mxu0 }
 0x26b   : > { %v5855_v63 = vadd.f32 %v5854_v50, %v5824_v3  ;;  %v5924_v19 = vadd.f32 %v5923_v30, %v5893_v18  ;;  %v7133_v47 = vadd.f32 %v5535_v8, %v2781_v23 }
 0x26c   : > { %v5664_v37 = vpack.c.bf16 %v7132_v58, %v7130_v55 }
 0x26d   : > { %v5856_v27 = vadd.f32 %v5855_v63, %v5825_v1  ;;  %v5925_v24 = vadd.f32 %v5924_v19, %v5894_v34  ;;  %v5663_v53 = vpack.c.bf16 %v7133_v47, %v7131_v61 }
 0x26e   : > { %6650 = vst [vmem:[%s9462_s14 + $0x28] sm:$0xff] %v5664_v37   ;;  %v5829_v16 = vunpack.c.l.bf16 %v5664_v37  ;;  %v5830_v42 = vunpack.c.h.bf16 %v5664_v37 }
 0x26f   : > { %v5926_v59 = vadd.f32 %v5925_v24, %v5895_v5  ;;  %6649 = vst [vmem:[%s9462_s14 + $0x20] sm:$0xff] %v5663_v53   ;;  %v5827_v31 = vunpack.c.l.bf16 %v5663_v53  ;;  %v5828_v20 = vunpack.c.h.bf16 %v5663_v53  ;;  %v5857_v32 = vadd.f32 %v5856_v27, %v5826_v9  ;;  %v7102_v33 = vpop.f32.mrb[12].mxu0 }
 0x270   : > { %v7134_v48 = vadd.f32 %v7102_v33, %v9450_v4  ;;  %v5548_v43 = vpop.f32.mrb[13].mxu0  ;;  %v5899_v39 = vmul.f32 %v5829_v16, %v5829_v16  ;;  %v5900_v60 = vmul.f32 %v5830_v42, %v5830_v42 }
 0x271   : > { %v5858_v54 = vadd.f32 %v5857_v32, %v5827_v31  ;;  %v5897_v2 = vmul.f32 %v5827_v31, %v5827_v31  ;;  %v5927_v23 = vadd.f32 %v5926_v59, %v5896_v13  ;;  %v7103_v51 = vpop.f32.mrb[14].mxu0  ;;  %v7135_v21 = vadd.f32 %v5548_v43, %v9452_v22 }
 0x272   : > { %v7136_v25 = vadd.f32 %v7103_v51, %v9454_v36  ;;  %v5551_v56 = vpop.f32.mrb[15].mxu0  ;;  %v5898_v49 = vmul.f32 %v5828_v20, %v5828_v20 }
 0x273   : > { %v5859_v35 = vadd.f32 %v5858_v54, %v5828_v20  ;;  %v5928_v7 = vadd.f32 %v5927_v23, %v5897_v2  ;;  %v7137_v40 = vadd.f32 %v5551_v56, %v9456_v52 }
 0x274   : > { %v5666_v4 = vpack.c.bf16 %v7136_v25, %v7134_v48 }
 0x275   : > { %v5860_v29 = vadd.f32 %v5859_v35, %v5829_v16  ;;  %v5929_v46 = vadd.f32 %v5928_v7, %v5898_v49  ;;  %v5665_v62 = vpack.c.bf16 %v7137_v40, %v7135_v21 }
 0x276   : > { %6652 = vst [vmem:[%s9462_s14 + $0x38] sm:$0xff] %v5666_v4   ;;  %v5833_v38 = vunpack.c.l.bf16 %v5666_v4  ;;  %v5834_v0 = vunpack.c.h.bf16 %v5666_v4 }
 0x277   : > { %v5930_v57 = vadd.f32 %v5929_v46, %v5899_v39  ;;  %6651 = vst [vmem:[%s9462_s14 + $0x30] sm:$0xff] %v5665_v62   ;;  %v5831_v44 = vunpack.c.l.bf16 %v5665_v62  ;;  %v5832_v11 = vunpack.c.h.bf16 %v5665_v62  ;;  %v5861_v22 = vadd.f32 %v5860_v29, %v5830_v42  ;;  %v7106_v12 = vpop.f32.mrb[16].mxu0 }
 0x278   : > { %v5564_v36 = vpop.f32.mrb[17].mxu0  ;;  %v5903_v30 = vmul.f32 %v5833_v38, %v5833_v38  ;;  %v5904_v1 = vmul.f32 %v5834_v0, %v5834_v0 }
 0x279   : > { %v5862_v28 = vadd.f32 %v5861_v22, %v5831_v44  ;;  %v5901_v26 = vmul.f32 %v5831_v44, %v5831_v44  ;;  %v5931_v15 = vadd.f32 %v5930_v57, %v5900_v60  ;;  %v7107_v45 = vpop.f32.mrb[18].mxu0  ;;  %v5902_v41 = vmul.f32 %v5832_v11, %v5832_v11 }
 0x27a   : > { %v5567_v52 = vpop.f32.mrb[19].mxu0 }
 0x27b   : > { %v5863_v6 = vadd.f32 %v5862_v28, %v5832_v11  ;;  %v5932_v3 = vadd.f32 %v5931_v15, %v5901_v26 }
 0x27d   : > { %v5864_v10 = vadd.f32 %v5863_v6, %v5833_v38  ;;  %v5933_v55 = vadd.f32 %v5932_v3, %v5902_v41 }
 0x27e   : > { %v6970_v17 = vpop.f32.mrb[16].mxu1 }
 0x27f   : > { %v5934_v50 = vadd.f32 %v5933_v55, %v5903_v30  ;;  %v7138_v18 = vadd.f32 %v7106_v12, %v6970_v17  ;;  %v3536_v61 = vpop.f32.mrb[17].mxu1  ;;  %v5865_v14 = vadd.f32 %v5864_v10, %v5834_v0  ;;  %v7110_v9 = vpop.f32.mrb[20].mxu0 }
 0x280   : > { %v7139_v58 = vadd.f32 %v5564_v36, %v3536_v61  ;;  %v6971_v8 = vpop.f32.mrb[18].mxu1  ;;  %v5580_v63 = vpop.f32.mrb[21].mxu0 }
 0x281   : > { %v7140_v34 = vadd.f32 %v7107_v45, %v6971_v8  ;;  %v3539_v19 = vpop.f32.mrb[19].mxu1  ;;  %v5935_v47 = vadd.f32 %v5934_v50, %v5904_v1  ;;  %v7111_v37 = vpop.f32.mrb[22].mxu0 }
 0x282   : > { %v7141_v5 = vadd.f32 %v5567_v52, %v3539_v19  ;;  %v5583_v27 = vpop.f32.mrb[23].mxu0 }
 0x283   : > { %v5668_v24 = vpack.c.bf16 %v7140_v34, %v7138_v18 }
 0x284   : > { %v5667_v53 = vpack.c.bf16 %v7141_v5, %v7139_v58 }
 0x285   : > { %6654 = vst [vmem:[%s9462_s14 + $0x48] sm:$0xff] %v5668_v24   ;;  %v5837_v48 = vunpack.c.l.bf16 %v5668_v24  ;;  %v5838_v51 = vunpack.c.h.bf16 %v5668_v24 }
 0x286   : > { %6653 = vst [vmem:[%s9462_s14 + $0x40] sm:$0xff] %v5667_v53   ;;  %v5835_v13 = vunpack.c.l.bf16 %v5667_v53  ;;  %v5836_v59 = vunpack.c.h.bf16 %v5667_v53  ;;  %v6974_v31 = vpop.f32.mrb[20].mxu1 }
 0x287   : > { %v7142_v20 = vadd.f32 %v7110_v9, %v6974_v31  ;;  %v3552_v32 = vpop.f32.mrb[21].mxu1  ;;  %v7114_v33 = vpop.f32.mrb[24].mxu0  ;;  %v5907_v39 = vmul.f32 %v5837_v48, %v5837_v48  ;;  %v5908_v60 = vmul.f32 %v5838_v51, %v5838_v51 }
 0x288   : > { %v5866_v43 = vadd.f32 %v5865_v14, %v5835_v13  ;;  %v5905_v16 = vmul.f32 %v5835_v13, %v5835_v13  ;;  %v7143_v54 = vadd.f32 %v5580_v63, %v3552_v32  ;;  %v6975_v2 = vpop.f32.mrb[22].mxu1  ;;  %v5596_v23 = vpop.f32.mrb[25].mxu0  ;;  %v5906_v35 = vmul.f32 %v5836_v59, %v5836_v59 }
 0x289   : > { %v7144_v42 = vadd.f32 %v7111_v37, %v6975_v2  ;;  %v3555_v21 = vpop.f32.mrb[23].mxu1  ;;  %v7115_v25 = vpop.f32.mrb[26].mxu0 }
 0x28a   : > { %v5867_v56 = vadd.f32 %v5866_v43, %v5836_v59  ;;  %v5936_v49 = vadd.f32 %v5935_v47, %v5905_v16  ;;  %v7145_v7 = vadd.f32 %v5583_v27, %v3555_v21  ;;  %v5599_v40 = vpop.f32.mrb[27].mxu0 }
 0x28b   : > { %v5670_v4 = vpack.c.bf16 %v7144_v42, %v7142_v20 }
 0x28c   : > { %v5868_v29 = vadd.f32 %v5867_v56, %v5837_v48  ;;  %v5937_v46 = vadd.f32 %v5936_v49, %v5906_v35  ;;  %v5669_v62 = vpack.c.bf16 %v7145_v7, %v7143_v54 }
 0x28d   : > { %6656 = vst [vmem:[%s9462_s14 + $0x58] sm:$0xff] %v5670_v4   ;;  %v5841_v26 = vunpack.c.l.bf16 %v5670_v4  ;;  %v5842_v41 = vunpack.c.h.bf16 %v5670_v4 }
 0x28e   : > { %v5938_v57 = vadd.f32 %v5937_v46, %v5907_v39  ;;  %6655 = vst [vmem:[%s9462_s14 + $0x50] sm:$0xff] %v5669_v62   ;;  %v5839_v44 = vunpack.c.l.bf16 %v5669_v62  ;;  %v5840_v11 = vunpack.c.h.bf16 %v5669_v62  ;;  %v5869_v22 = vadd.f32 %v5868_v29, %v5838_v51  ;;  %v6978_v12 = vpop.f32.mrb[24].mxu1 }
 0x28f   : > { %v7146_v36 = vadd.f32 %v7114_v33, %v6978_v12  ;;  %v3568_v38 = vpop.f32.mrb[25].mxu1  ;;  %v7118_v28 = vpop.f32.mrb[28].mxu0  ;;  %v5911_v9 = vmul.f32 %v5841_v26, %v5841_v26  ;;  %v5912_v34 = vmul.f32 %v5842_v41, %v5842_v41 }
 0x290   : > { %v5870_v15 = vadd.f32 %v5869_v22, %v5839_v44  ;;  %v5909_v45 = vmul.f32 %v5839_v44, %v5839_v44  ;;  %v5939_v52 = vadd.f32 %v5938_v57, %v5908_v60  ;;  %v6979_v0 = vpop.f32.mrb[26].mxu1  ;;  %v5612_v6 = vpop.f32.mrb[29].mxu0  ;;  %v7147_v3 = vadd.f32 %v5596_v23, %v3568_v38 }
 0x291   : > { %v7148_v30 = vadd.f32 %v7115_v25, %v6979_v0  ;;  %v3571_v10 = vpop.f32.mrb[27].mxu1  ;;  %v7119_v55 = vpop.f32.mrb[30].mxu0  ;;  %v5910_v1 = vmul.f32 %v5840_v11, %v5840_v11 }
 0x292   : > { %v5871_v17 = vadd.f32 %v5870_v15, %v5840_v11  ;;  %v5940_v50 = vadd.f32 %v5939_v52, %v5909_v45  ;;  %v7149_v18 = vadd.f32 %v5599_v40, %v3571_v10  ;;  %v5615_v61 = vpop.f32.mrb[31].mxu0 }
 0x293   : > { %v5672_v14 = vpack.c.bf16 %v7148_v30, %v7146_v36 }
 0x294   : > { %v5872_v58 = vadd.f32 %v5871_v17, %v5841_v26  ;;  %v5941_v8 = vadd.f32 %v5940_v50, %v5910_v1  ;;  %v5671_v63 = vpack.c.bf16 %v7149_v18, %v7147_v3 }
 0x295   : > { %6658 = vst [vmem:[%s9462_s14 + $0x68] sm:$0xff] %v5672_v14   ;;  %v5845_v13 = vunpack.c.l.bf16 %v5672_v14  ;;  %v5846_v33 = vunpack.c.h.bf16 %v5672_v14 }
 0x296   : > { %v5942_v19 = vadd.f32 %v5941_v8, %v5911_v9  ;;  %6657 = vst [vmem:[%s9462_s14 + $0x60] sm:$0xff] %v5671_v63   ;;  %v5843_v47 = vunpack.c.l.bf16 %v5671_v63  ;;  %v5844_v37 = vunpack.c.h.bf16 %v5671_v63  ;;  %v5873_v5 = vadd.f32 %v5872_v58, %v5842_v41  ;;  %v6982_v27 = vpop.f32.mrb[28].mxu1 }
 0x297   : > { %v7150_v24 = vadd.f32 %v7118_v28, %v6982_v27  ;;  %v3584_v53 = vpop.f32.mrb[29].mxu1  ;;  %v5915_v21 = vmul.f32 %v5845_v13, %v5845_v13  ;;  %v5916_v49 = vmul.f32 %v5846_v33, %v5846_v33 }
 0x298   : > { %v5874_v59 = vadd.f32 %v5873_v5, %v5843_v47  ;;  %v5913_v31 = vmul.f32 %v5843_v47, %v5843_v47  ;;  %v5943_v20 = vadd.f32 %v5942_v19, %v5912_v34  ;;  %v6983_v32 = vpop.f32.mrb[30].mxu1  ;;  %v7151_v48 = vadd.f32 %v5612_v6, %v3584_v53 }
 0x299   : > { %v7152_v43 = vadd.f32 %v7119_v55, %v6983_v32  ;;  %v3587_v16 = vpop.f32.mrb[31].mxu1  ;;  %v5914_v2 = vmul.f32 %v5844_v37, %v5844_v37 }
 0x29a   : > { %v5875_v54 = vadd.f32 %v5874_v59, %v5844_v37  ;;  %v5944_v23 = vadd.f32 %v5943_v20, %v5913_v31  ;;  %v7153_v51 = vadd.f32 %v5615_v61, %v3587_v16 }
 0x29b   : > { %v5674_v42 = vpack.c.bf16 %v7152_v43, %v7150_v24 }
 0x29c   : > { %v5876_v25 = vadd.f32 %v5875_v54, %v5845_v13  ;;  %v5945_v56 = vadd.f32 %v5944_v23, %v5914_v2  ;;  %v5673_v35 = vpack.c.bf16 %v7153_v51, %v7151_v48 }
 0x29d   : > { %6660 = vst [vmem:[%s9462_s14 + $0x78] sm:$0xff] %v5674_v42   ;;  %v5849_v29 = vunpack.c.l.bf16 %v5674_v42  ;;  %v5850_v57 = vunpack.c.h.bf16 %v5674_v42 }
 0x29e   : > { %v5946_v7 = vadd.f32 %v5945_v56, %v5915_v21  ;;  %6659 = vst [vmem:[%s9462_s14 + $0x70] sm:$0xff] %v5673_v35   ;;  %v5847_v40 = vunpack.c.l.bf16 %v5673_v35  ;;  %v5848_v4 = vunpack.c.h.bf16 %v5673_v35  ;;  %v5877_v39 = vadd.f32 %v5876_v25, %v5846_v33 }
 0x29f   : > { %v5919_v12 = vmul.f32 %v5849_v29, %v5849_v29  ;;  %v5920_v28 = vmul.f32 %v5850_v57, %v5850_v57 }
 0x2a0   : > { %v5878_v46 = vadd.f32 %v5877_v39, %v5847_v40  ;;  %v5917_v62 = vmul.f32 %v5847_v40, %v5847_v40  ;;  %v5947_v60 = vadd.f32 %v5946_v7, %v5916_v49  ;;  %v5918_v11 = vmul.f32 %v5848_v4, %v5848_v4 }
 0x2a2   : > { %v5879_v44 = vadd.f32 %v5878_v46, %v5848_v4  ;;  %v5948_v22 = vadd.f32 %v5947_v60, %v5917_v62 }
 0x2a4   : > { %v5880_v36 = vadd.f32 %v5879_v44, %v5849_v29  ;;  %v5949_v38 = vadd.f32 %v5948_v22, %v5918_v11 }
 0x2a6   : > { %v5881_v26 = vadd.f32 %v5880_v36, %v5850_v57  ;;  %v5950_v15 = vadd.f32 %v5949_v38, %v5919_v12 }
 0x2a8   : > { %v5882_v45 = vrot.slane %v5881_v26, 4  ;;  %v5951_v52 = vadd.f32 %v5950_v15, %v5920_v28 }
 0x2aa   : > { %v5883_v0 = vadd.f32 %v5882_v45, %v5881_v26  ;;  %v5952_v6 = vrot.slane %v5951_v52, 4 }
 0x2ac   : > { %v5884_v41 = vrot.slane %v5883_v0, 2  ;;  %v5953_v3 = vadd.f32 %v5952_v6, %v5951_v52 }
 0x2ae   : > { %v5885_v30 = vadd.f32 %v5884_v41, %v5883_v0  ;;  %v5954_v10 = vrot.slane %v5953_v3, 2 }
 0x2b0   : > { %v5886_v55 = vrot.slane %v5885_v30, 1  ;;  %v5955_v17 = vadd.f32 %v5954_v10, %v5953_v3 }
 0x2b2   : > { %v5887_v1 = vadd.f32 %v5886_v55, %v5885_v30  ;;  %v5956_v50 = vrot.slane %v5955_v17, 1 }
 0x2b4   : > { %v5957_v18 = vadd.f32 %v5956_v50, %v5955_v17  ;;  %5959 = vst [vmem:[%s409_s17] sm:$0x1] %v5887_v1 }
 0x2b6   : > { %5960 = vst [vmem:[%s409_s17 + $0x1] sm:$0x1] %v5957_v18 }
 0x2b7 PF: > { %s16_s20 = sadd.s32 1, %s7530_s20   ;;  %s9614_s18 = smov %s7526_s19 }
 0x2b8   : > { %p13_p5 = scmp.ge.s32.totalorder %s16_s20, 4   ;;  %s9615_s19 = smov %s9617_s21 }
 0x2ba   :  { %15 = sbr.rel (!%p13_p5) target bundleno = 2 (0x2), region = 97 }

// kernel: double_conv.4
= control target key start
LH: loop header
LB: loop body
LE: loop exit
PB: predicated region body
PF: predicated region fallthrough
CT: control target
= control target key end

     0   :  { %s8632_s24 = smov 0   ;;  %s8634_s25 = smov 0   ;;  %s10754_s0 = inlined_call_operand.vmem [shape: bf16[2,256,128], index: 0, kind: input, shape index: {}, may-alias: {0,1,2}]   ;;  %s10755_s1 = inlined_call_operand.vmem [shape: bf16[2,256,128], index: 1, kind: input, shape index: {}, may-alias: {0,1,2}]   ;;  %s10756_s2 = inlined_call_operand.vmem [shape: bf16[2,256,128], index: 2, kind: input, shape index: {}, may-alias: {0,1,2}]   ;;  %s10757_s3 = inlined_call_operand.vmem [shape: f32[1,128], index: 3, kind: input, shape index: {}]   ;;  %s10758_s4 = inlined_call_operand.vmem [shape: f32[1,128], index: 4, kind: input, shape index: {}]   ;;  %s10759_s5 = inlined_call_operand.vmem [shape: bf16[3,3,128,128], index: 5, kind: input, shape index: {}]   ;;  %s10760_s6 = inlined_call_operand.vmem [shape: bf16[2,256,128], index: 6, kind: output, shape index: {0}]   ;;  %s10761_s7 = inlined_call_operand.vmem [shape: f32[2,1,2,128], index: 7, kind: output, shape index: {1}]  }
   0x1   :  { %s8636_s26 = smov 0  }
   0x2 LB: > { %s30_s27 = sadd.s32 1, %s8586_s25  ;;  %p6699_p0 = scmp.ge.s32.totalorder %s8590_s26, 1  ;;  %s8590_s26 = sphi %s8636_s26, %s18_s26   ;;  %s8586_s25 = sphi %s8634_s25, %s10848_s25   ;;  %s8582_s24 = sphi %s8632_s24, %s10847_s24  }
   0x3   : > { %p32_p1 = scmp.ge.s32.totalorder %s30_s27, 2  ;;  %p329_p2 = scmp.lt.s32.totalorder %s8590_s26, 3 }
   0x5   : > { %s10850_s27 = smov (%p32_p1, %s30_s27), 0  ;;  %p330_p3 = pnand %p6699_p0, %p329_p2 }
   0x7   : > { %333 = sbr.rel (%p330_p3) target bundleno = 734 (0x2de), region = 44 }
   0xe   : > { %v8369_v0 = vld [vmem:[%s10759_s5 + $0x100] sm:$0xff]   ;;  %v8371_v2 = vld [vmem:[%s10759_s5 + $0x108] sm:$0xff]   ;;  %p403_p4 = scmp.lt.s32.totalorder %s8582_s24, 1  ;;  %v8373_v4 = vld [vmem:[%s10759_s5 + $0x110] sm:$0xff]   ;;  %vm1082_vm0 = vcmask 1043456   ;;  %vm1089_vm1 = vcmask 1040384  }
   0xf   : > { %v8370_v1 = vld [vmem:[%s10759_s5 + $0x40] sm:$0xff]   ;;  %7833 = vmatprep.subr.bf16.mxu0 %v8369_v0  ;;  %v8372_v3 = vld [vmem:[%s10759_s5 + $0x48] sm:$0xff]   ;;  %v8374_v5 = vld [vmem:[%s10759_s5 + $0x50] sm:$0xff]   ;;  %vm758_vm2 = vsmask.f32 256  ;;  %vm2506_vm12 = vcmask 1042432  }
  0x10   : > { %7834 = vmatpush3.bf16.msra.mxu0 %v8369_v0  ;;  %7641 = vmatprep.subr.bf16.mxu1 %v8370_v1  ;;  %s10852_s24 = smov (!%p403_p4, %s8582_s24), 1  ;;  %v8375_v6 = vld [vmem:[%s10759_s5 + $0x118] sm:$0xff]   ;;  %v8377_v8 = vld [vmem:[%s10759_s5 + $0x120] sm:$0xff]   ;;  %v8379_v10 = vld [vmem:[%s10759_s5 + $0x128] sm:$0xff]   ;;  %vm759_vm3 = vsmask.f32 4368 }
  0x11   : > { %7642 = vmatpush3.bf16.msra.mxu1 %v8370_v1  ;;  %7835 = vmatprep.subr.bf16.mxu0 %v8371_v2  ;;  %v8376_v7 = vld [vmem:[%s10759_s5 + $0x58] sm:$0xff]   ;;  %s8677_s21 = sshll.u32 %s10852_s24, 7  ;;  %v8378_v9 = vld [vmem:[%s10759_s5 + $0x60] sm:$0xff]   ;;  %v8380_v13 = vld [vmem:[%s10759_s5 + $0x68] sm:$0xff]   ;;  %vm1083_vm4 = vsmask.f32 7938 }
  0x12   : > { %7643 = vmatprep.subr.bf16.mxu1 %v8372_v3  ;;  %s8689_s9 = scalar_lea.vmem %s10754_s0, %s8677_s21  ;;  %v8697_v11 = vld [vmem:[%s10757_s3] ss:$0 sm:$0xff]  ;;  %s424_s20 = scalar_lea.vmem %s10755_s1, %s8677_s21  ;;  %v8381_v20 = vld [vmem:[%s10759_s5 + $0x130] sm:$0xff]   ;;  %v8383_v29 = vld [vmem:[%s10759_s5 + $0x138] sm:$0xff]   ;;  %vm1476_vm9 = vsmask.f32 3328 }
  0x13   : > { %v7243_v12 = vld [vmem:[%s8689_s9] sm:$0xff]   ;;  %v7395_v19 = vld [vmem:[%s8689_s9 + $0x8] sm:$0xff]   ;;  %v8382_v23 = vld [vmem:[%s10759_s5 + $0x70] sm:$0xff]   ;;  %vm1477_vm10 = vsmask.f32 7440  ;;  %vm2507_vm13 = vcmask 1046532   ;;  %s10719_s17 = scalar_lea.vmem %s10760_s6, %s8677_s21 }
  0x14   : > { %7836 = vmatpush3.bf16.msra.mxu0 %v8371_v2  ;;  %v7244_v14 = vunpack.c.l.bf16 %v7243_v12  ;;  %v7245_v15 = vunpack.c.h.bf16 %v7243_v12  ;;  %v8706_v16 = vld [vmem:[%s10758_s4] ss:$0 sm:$0xff]  ;;  %v7248_v21 = vunpack.c.l.bf16 %v7395_v19  ;;  %v7249_v22 = vunpack.c.h.bf16 %v7395_v19  ;;  %v8384_v36 = vld [vmem:[%s10759_s5 + $0x78] sm:$0xff]   ;;  %v7396_v41 = vld [vmem:[%s8689_s9 + $0x10] sm:$0xff]  }
  0x15   : > { %7644 = vmatpush3.bf16.msra.mxu1 %v8372_v3  ;;  %7837 = vmatprep.subr.bf16.mxu0 %v8373_v4  ;;  %v7307_v28 = vld [vmem:[%s424_s20] sm:$0xff]   ;;  %v7252_v44 = vunpack.c.l.bf16 %v7396_v41  ;;  %v7253_v45 = vunpack.c.h.bf16 %v7396_v41  ;;  %vm8738_vm5 = vmor %vm758_vm2, %vm759_vm3  ;;  %v8743_v51 = vld [vmem:[%s8689_s9 + $0x18] sm:$0xff]  }
  0x16   : > { %7645 = vmatprep.subr.bf16.mxu1 %v8374_v5  ;;  %v538_v17 = vmul.f32 %v7244_v14, %v8697_v11  ;;  %v539_v18 = vmul.f32 %v7245_v15, %v8697_v11  ;;  %v540_v26 = vmul.f32 %v7248_v21, %v8697_v11  ;;  %v541_v27 = vmul.f32 %v7249_v22, %v8697_v11  ;;  %v1085_v52 = vld [vmem:[#allocation2 + $0xc] sm:$0xf]  ;;  %v1091_v53 = vld [vmem:[#allocation2 + $0x14] sm:$0x1]  ;;  %v8748_v56 = vld [vmem:[%s10759_s5 + $0x140] sm:$0xff]  }
  0x17   : > { %v7308_v32 = vunpack.c.l.bf16 %v7307_v28  ;;  %v7309_v33 = vunpack.c.h.bf16 %v7307_v28  ;;  %v8754_v58 = vld [vmem:[%s10759_s5] sm:$0xff]   ;;  %v7256_v59 = vunpack.c.l.bf16 %v8743_v51  ;;  %vm8759_vm6 = vmand %vm1082_vm0, %vm1083_vm4  ;;  %v542_v0 = vmul.f32 %v7252_v44, %v8697_v11  ;;  %v1094_v19 = vld [vmem:[#allocation2 + $0x18] sm:$0xf] }
  0x18   : > { %7838 = vmatpush3.bf16.msra.mxu0 %v8373_v4  ;;  %v576_v24 = vadd.f32 %v8706_v16, %v538_v17  ;;  %v577_v25 = vadd.f32 %v8706_v16, %v539_v18  ;;  %v578_v34 = vadd.f32 %v8706_v16, %v540_v26  ;;  %v579_v35 = vadd.f32 %v8706_v16, %v541_v27  ;;  %vm8767_vm7 = vmand %vm1089_vm1, %vm758_vm2  ;;  %v8431_v46 = vld [vmem:[%s10759_s5 + $0x1c8] sm:$0xff]  }
  0x19   : > { %7646 = vmatpush3.bf16.msra.mxu1 %v8374_v5  ;;  %7839 = vmatprep.subr.bf16.mxu0 %v8375_v6  ;;  %v660_v39 = vmul.f32 %v7308_v32, %v8697_v11  ;;  %v661_v40 = vmul.f32 %v7309_v33, %v8697_v11  ;;  %v543_v21 = vmul.f32 %v7253_v45, %v8697_v11  ;;  %vm8800_vm8 = vmand %vm1089_vm1, %vm1083_vm4 }
  0x1a   : > { %7647 = vmatprep.subr.bf16.mxu1 %v8376_v7  ;;  %v608_v30 = vmax.f32 %v576_v24, 0.0  ;;  %v609_v31 = vmax.f32 %v577_v25, 0.0  ;;  %v610_v42 = vmax.f32 %v578_v34, 0.0  ;;  %v611_v43 = vmax.f32 %v579_v35, 0.0  ;;  %vm8870_vm11 = vmor %vm1476_vm9, %vm1477_vm10 }
  0x1b   : > { %v662_v57 = vadd.f32 %v8706_v16, %v660_v39  ;;  %v663_v63 = vadd.f32 %v8706_v16, %v661_v40  ;;  %v580_v27 = vadd.f32 %v8706_v16, %v542_v0  ;;  %v581_v28 = vadd.f32 %v8706_v16, %v543_v21  ;;  %v8793_v39 = vld [vmem:[%s8689_s9 + $0x28] sm:$0xff]   ;;  %vm9197_vm14 = vmor %vm2506_vm12, %vm2507_vm13 }
  0x1c   : > { %7840 = vmatpush3.bf16.msra.mxu0 %v8375_v6  ;;  %v7178_v37 = vpack.c.bf16 %v608_v30, %v608_v30  ;;  %v7179_v38 = vpack.c.bf16 %v609_v31, %v609_v31  ;;  %v7180_v54 = vpack.c.bf16 %v610_v42, %v610_v42  ;;  %v7181_v55 = vpack.c.bf16 %v611_v43, %v611_v43  ;;  %v7398_v30 = vld [vmem:[%s8689_s9 + $0x20] sm:$0xff]  }
  0x1d   : > { %7648 = vmatpush3.bf16.msra.mxu1 %v8376_v7  ;;  %7841 = vmatprep.subr.bf16.mxu0 %v8377_v8  ;;  %v665_v14 = vmax.f32 %v663_v63, 0.0  ;;  %v544_v34 = vmul.f32 %v7256_v59, %v8697_v11  ;;  %v7260_v41 = vunpack.c.l.bf16 %v7398_v30  ;;  %v7261_v42 = vunpack.c.h.bf16 %v7398_v30 }
  0x1e   : > { %7649 = vmatprep.subr.bf16.mxu1 %v8378_v9  ;;  %v762_v47 = vshrl.u32 %v7178_v37, 16  ;;  %v765_v48 = vshll.u32 %v7178_v37, 16  ;;  %v770_v49 = vshrl.u32 %v7179_v38, 16  ;;  %v773_v50 = vshll.u32 %v7179_v38, 16 }
  0x1f   : > { %v779_v2 = vshrl.u32 %v7180_v54, 16  ;;  %v782_v3 = vshll.u32 %v7180_v54, 16  ;;  %v787_v4 = vshrl.u32 %v7181_v55, 16  ;;  %v790_v5 = vshll.u32 %v7181_v55, 16 }
  0x20   : > { %7842 = vmatpush3.bf16.msra.mxu0 %v8377_v8  ;;  %v764_v60 = vrot.slane %v762_v47, 7  ;;  %v772_v61 = vrot.slane %v770_v49, 7  ;;  %v613_v37 = vmax.f32 %v581_v28, 0.0  ;;  %v8796_v40 = vadd.f32 %v8706_v16, %v544_v34 }
  0x21   : > { %7650 = vmatpush3.bf16.msra.mxu1 %v8378_v9  ;;  %7843 = vmatprep.subr.bf16.mxu0 %v8379_v10  ;;  %v789_v12 = vrot.slane %v787_v4, 7  ;;  %v10780_v43 = vmov 0  ;;  %v547_v59 = vmul.f32 %v7261_v42, %v8697_v11 }
  0x22   : > { %7651 = vmatprep.subr.bf16.mxu1 %v8380_v13  ;;  %v767_v6 = vor.u32 %v765_v48, %v764_v60  ;;  %v768_v7 = vrot.slane %v764_v60, 4  ;;  %v775_v8 = vor.u32 %v773_v50, %v772_v61  ;;  %v777_v9 = vrot.slane %v772_v61, 4 }
  0x23   : > { %v792_v24 = vor.u32 %v790_v5, %v789_v12  ;;  %v794_v25 = vrot.slane %v789_v12, 4  ;;  %v10781_v43 = vsel %vm8800_vm8, 4294967295, %v10780_v43  ;;  %v8806_v48 = vpack.c.bf16 %v613_v37, %v613_v37  ;;  %v1255_v12 = vld [vmem:[#allocation2] sm:$0xf] }
  0x24   : > { %7844 = vmatpush3.bf16.msra.mxu0 %v8379_v10  ;;  %v781_v10 = vrot.slane %v779_v2, 7  ;;  %v776_v15 = vsel %vm8738_vm5, %v768_v7, %v775_v8  ;;  %v1086_v17 = vsel %vm8759_vm6, %v767_v6, %v1085_v52  ;;  %v1092_v18 = vsel %vm8767_vm7, %v777_v9, %v1091_v53  ;;  %10782 = vst [vmem:[#allocation3_spill] sm:$0xff] %v10781_v43 }
  0x25   : > { %7652 = vmatpush3.bf16.msra.mxu1 %v8380_v13  ;;  %7845 = vmatprep.subr.bf16.mxu0 %v8381_v20  ;;  %v664_v13 = vmax.f32 %v662_v57, 0.0  ;;  %1087 = vst [vmem:[#allocation2 + $0xc] sm:$0xf] %v1086_v17  ;;  %1088 = vst [vmem:[#allocation2 + $0x10] sm:$0xf] %v776_v15  ;;  %v614_v49 = vmax.f32 %v8796_v40, 0.0  ;;  %v7264_v50 = vunpack.c.l.bf16 %v8793_v39  ;;  %v546_v57 = vmul.f32 %v7260_v41, %v8697_v11 }
  0x26   : > { %7653 = vmatprep.subr.bf16.mxu1 %v8382_v23  ;;  %1093 = vst [vmem:[#allocation2 + $0x14] sm:$0x1] %v1092_v18  ;;  %v784_v22 = vor.u32 %v782_v3, %v781_v10  ;;  %v7265_v60 = vunpack.c.h.bf16 %v8793_v39 }
  0x27   : > { %v666_v26 = vpack.c.bf16 %v665_v14, %v664_v13  ;;  %v1259_v13 = vld [vmem:[#allocation2 + $0x8] sm:$0x1]  ;;  %v8826_v14 = vmul.f32 %v7264_v50, %v8697_v11 }
  0x28   : > { %7846 = vmatpush3.bf16.msra.mxu0 %v8381_v20  ;;  %v1098_v20 = vld [vmem:[#allocation2 + $0x20] sm:$0x1]  ;;  %v1095_v32 = vsel %vm8759_vm6, %v784_v22, %v1094_v19 }
  0x29   : > { %7654 = vmatpush3.bf16.msra.mxu1 %v8382_v23  ;;  %7847 = vmatprep.subr.bf16.mxu0 %v8383_v29  ;;  %v785_v23 = vrot.slane %v781_v10, 4  ;;  %v1099_v33 = vsel %vm8767_vm7, %v794_v25, %v1098_v20  ;;  %1096 = vst [vmem:[#allocation2 + $0x18] sm:$0xf] %v1095_v32  ;;  %v1229_v35 = vmul.bf16 0.0, %v666_v26 }
  0x2a   : > { %7655 = vmatprep.subr.bf16.mxu1 %v8384_v36  ;;  %1100 = vst [vmem:[#allocation2 + $0x20] sm:$0x1] %v1099_v33 }
  0x2b   : > { %v793_v31 = vsel %vm8738_vm5, %v785_v23, %v792_v24  ;;  %v6743_v44 = vcombine.low %v1229_v35, %v1229_v35  ;;  %v6744_v45 = vcombine.high %v1229_v35, %v1229_v35 }
  0x2c   : > { %7848 = vmatpush3.bf16.msra.mxu0 %v8383_v29  ;;  %v7257_v29 = vunpack.c.h.bf16 %v8743_v51  ;;  %1097 = vst [vmem:[#allocation2 + $0x1c] sm:$0xf] %v793_v31  ;;  %v8811_v51 = vld [vmem:[%s8689_s9 + $0x30] sm:$0xff]   ;;  %v1303_v52 = vld [vmem:[#allocation2 + $0xc] sm:$0x1] }
  0x2d   : > { %7656 = vmatpush3.bf16.msra.mxu1 %v8384_v36  ;;  %7881 = vmatprep.subr.bf16.mxu0 %v8748_v56  ;;  %v612_v36 = vmax.f32 %v580_v27, 0.0  ;;  %v1358_v53 = vld [vmem:[#allocation2 + $0x14] sm:$0x1]  ;;  %v3334_v54 = vld [vmem:[#allocation2 + $0x10] sm:$0xf]  ;;  %v1304_v61 = vsel %vm8767_vm7, 0, %v1303_v52  ;;  %v7268_v15 = vunpack.c.l.bf16 %v8811_v51  ;;  %v7269_v50 = vunpack.c.h.bf16 %v8811_v51 }
  0x2e   : > { %7689 = vmatprep.subr.bf16.mxu1 %v8754_v58  ;;  %v545_v38 = vmul.f32 %v7257_v29, %v8697_v11  ;;  %v1359_v63 = vsel %vm8800_vm8, 0, %v1358_v53  ;;  %v3391_v0 = vshll.u32 %v3334_v54, 16  ;;  %v3395_v2 = vshrl.u32 %v3334_v54, 16  ;;  %1305 = vst [vmem:[#allocation2 + $0xc] sm:$0x1] %v1304_v61 }
  0x2f   : > { %v8804_v47 = vpack.c.bf16 %v612_v36, %v612_v36  ;;  %1360 = vst [vmem:[#allocation2 + $0x14] sm:$0x1] %v1359_v63  ;;  %v1236_v3 = vshrl.u32 %v6743_v44, 16  ;;  %v1239_v4 = vshll.u32 %v6743_v44, 16  ;;  %v1244_v5 = vshrl.u32 %v6744_v45, 16 }
  0x30   : > { %v8814_v55 = vadd.f32 %v8706_v16, %v545_v38  ;;  %v1247_v6 = vshll.u32 %v6744_v45, 16  ;;  %v8823_v7 = vrot.slane %v3391_v0, 5  ;;  %v3397_v8 = vrot.slane %v3395_v2, 4  ;;  %v1306_v9 = vld [vmem:[#allocation2 + $0x18] sm:$0x1] }
  0x31   : > { %v1361_v10 = vld [vmem:[#allocation2 + $0x20] sm:$0x1]  ;;  %v1307_v17 = vsel %vm8767_vm7, 0, %v1306_v9  ;;  %v1238_v20 = vrot.slane %v1236_v3, 7  ;;  %v1246_v21 = vrot.slane %v1244_v5, 7  ;;  %v8856_v44 = vpack.c.bf16 %v614_v49, %v614_v49 }
  0x32   : > { %v1362_v18 = vsel %vm8800_vm8, 0, %v1361_v10  ;;  %v3398_v22 = vor.u32 %v3397_v8, %v8823_v7  ;;  %1308 = vst [vmem:[#allocation2 + $0x18] sm:$0x1] %v1307_v17  ;;  %v1415_v26 = vld [vmem:[#allocation2 + $0x10] sm:$0xf]  ;;  %v8859_v45 = vadd.f32 %v8706_v16, %v546_v57  ;;  %v8864_v61 = vadd.f32 %v8706_v16, %v547_v59 }
  0x33   : > { %v8833_v19 = vld [vmem:[#allocation2 + $0x1c] sm:$0xf]  ;;  %1363 = vst [vmem:[#allocation2 + $0x20] sm:$0x1] %v1362_v18  ;;  %v1241_v27 = vor.u32 %v1239_v4, %v1238_v20  ;;  %v1242_v28 = vrot.slane %v1238_v20, 4  ;;  %v1249_v29 = vor.u32 %v1247_v6, %v1246_v21  ;;  %v1251_v30 = vrot.slane %v1246_v21, 4 }
  0x34   : > { %v3415_v23 = vshll.u32 %v8833_v19, 16  ;;  %v3419_v24 = vshrl.u32 %v8833_v19, 16  ;;  %v4160_v25 = vrot.slane %v8833_v19, 5  ;;  %v8839_v31 = vrot.slane %v3398_v22, 4 }
  0x35   : > { %v1250_v35 = vsel %vm8738_vm5, %v1242_v28, %v1249_v29  ;;  %v1256_v36 = vsel %vm8759_vm6, %v1241_v27, %v1255_v12  ;;  %v1260_v37 = vsel %vm8767_vm7, %v1251_v30, %v1259_v13  ;;  %v1513_v38 = vshll.u32 %v1415_v26, 16  ;;  %v3333_v39 = vld [vmem:[#allocation2 + $0xc] sm:$0xf] }
  0x36   : > { %v8841_v32 = vrot.slane %v3415_v23, 5  ;;  %v3421_v33 = vrot.slane %v3419_v24, 4  ;;  %v8845_v34 = vrot.slane %v4160_v25, 4  ;;  %v8853_v40 = vld [vmem:[#allocation2 + $0x14] sm:$0x1]  ;;  %v3382_v52 = vshrl.u32 %v3333_v39, 16 }
  0x37   : > { %1257 = vst [vmem:[#allocation2] sm:$0xf] %v1256_v36  ;;  %1258 = vst [vmem:[#allocation2 + $0x4] sm:$0xf] %v1250_v35  ;;  %v1414_v42 = vld [vmem:[#allocation2 + $0xc] sm:$0xf]  ;;  %v549_v3 = vmul.f32 %v7265_v60, %v8697_v11  ;;  %v8884_v35 = vadd.f32 %v8706_v16, %v8826_v14 }
  0x38   : > { %v3422_v41 = vor.u32 %v3421_v33, %v8841_v32  ;;  %1261 = vst [vmem:[#allocation2 + $0x8] sm:$0x1] %v1260_v37  ;;  %v3385_v53 = vshll.u32 %v3333_v39, 16  ;;  %v3401_v54 = vshll.u32 %v8853_v40, 16  ;;  %v4156_v63 = vrot.slane %v8853_v40, 5 }
  0x39   : > { %v1504_v0 = vshrl.u32 %v1414_v42, 16  ;;  %v1507_v2 = vshll.u32 %v1414_v42, 16  ;;  %v3384_v49 = vrot.slane %v3382_v52, 4  ;;  %v3336_v57 = vld [vmem:[#allocation2 + $0x18] sm:$0xf]  ;;  %v1517_v6 = vshrl.u32 %v1415_v26, 16 }
  0x3a   : > { %v3387_v4 = vrot.slane %v3385_v53, 5  ;;  %v3403_v5 = vrot.slane %v3401_v54, 5  ;;  %v8874_v9 = vld [vmem:[#allocation2 + $0x20] sm:$0x1]  ;;  %v3406_v59 = vshrl.u32 %v3336_v57, 16  ;;  %v3409_v10 = vshll.u32 %v3336_v57, 16 }
  0x3b   : > { %v1506_v12 = vrot.slane %v1504_v0, 4  ;;  %v1509_v13 = vrot.slane %v1507_v2, 5  ;;  %v3423_v18 = vrot.slane %v3422_v41, 4  ;;  %v3425_v60 = vshll.u32 %v8874_v9, 16  ;;  %v1461_v23 = vld [vmem:[#allocation2 + $0x14] sm:$0x1] }
  0x3c   : > { %v3388_v17 = vor.u32 %v3387_v4, %v3384_v49  ;;  %v8877_v20 = vrot.slane %v1513_v38, 5  ;;  %v3408_v21 = vrot.slane %v3406_v59, 4  ;;  %v3411_v22 = vrot.slane %v3409_v10, 5 }
  0x3d   : > { %v1510_v24 = vor.u32 %v1509_v13, %v1506_v12  ;;  %v1519_v26 = vrot.slane %v1517_v6, 4  ;;  %v3404_v28 = vsel %vm8870_vm11, %v8839_v31, %v3403_v5  ;;  %v3427_v29 = vrot.slane %v3425_v60, 5  ;;  %v8387_v6 = vld [vmem:[%s10759_s5 + $0x148] sm:$0xff]   ;;  %v1101_v60 = vld [vmem:[#allocation2 + $0x24] sm:$0xf] }
  0x3e   : > { %v3389_v27 = vrot.slane %v3388_v17, 4  ;;  %v1300_v30 = vld [vmem:[#allocation2] sm:$0x1]  ;;  %v3412_v36 = vor.u32 %v3411_v22, %v3408_v21  ;;  %v1413_v39 = vld [vmem:[#allocation2 + $0x4] sm:$0xf]  ;;  %v8894_v14 = vadd.f32 %v8706_v16, %v549_v3  ;;  %v1523_v5 = vshll.u32 %v1461_v23, 16 }
  0x3f   : > { %v1355_v33 = vld [vmem:[#allocation2 + $0x8] sm:$0x1]  ;;  %v1301_v37 = vsel %vm8767_vm7, 0, %v1300_v30  ;;  %v1511_v41 = vrot.slane %v1510_v24, 4  ;;  %v1489_v42 = vshll.u32 %v1413_v39, 16  ;;  %v1493_v52 = vshrl.u32 %v1413_v39, 16 }
  0x40   : > { %v1356_v38 = vsel %vm8800_vm8, 0, %v1355_v33  ;;  %v3394_v31 = vsel %vm8870_vm11, %v3389_v27, %v8823_v7  ;;  %1302 = vst [vmem:[#allocation2] sm:$0x1] %v1301_v37  ;;  %v3413_v54 = vrot.slane %v3412_v36, 4  ;;  %v3428_v0 = vsel %vm8870_vm11, %v3423_v18, %v3427_v29 }
  0x41   : > { %1357 = vst [vmem:[#allocation2 + $0x8] sm:$0x1] %v1356_v38  ;;  %v6923_v53 = vcombine.low %v3394_v31, %v3404_v28  ;;  %v1520_v2 = vor.u32 %v1519_v26, %v8877_v20  ;;  %v8899_v49 = vrot.slane %v1489_v42, 5  ;;  %v1495_v4 = vrot.slane %v1493_v52, 4  ;;  %v1105_v26 = vld [vmem:[#allocation2 + $0x2c] sm:$0x1] }
  0x42   : > { %v1516_v7 = vsel %vm8870_vm11, %v1511_v41, %v8877_v20  ;;  %v3418_v3 = vsel %vm8870_vm11, %v3413_v54, %v8841_v32  ;;  %v796_v59 = vshrl.u32 %v8804_v47, 16  ;;  %v799_v10 = vshll.u32 %v8804_v47, 16  ;;  %v1108_v52 = vld [vmem:[#allocation2 + $0x30] sm:$0xf] }
  0x43   : > { %7849 = vmatprep.mubr.bf16.mxu0 %v6923_v53  ;;  %v1521_v57 = vrot.slane %v1520_v2, 4  ;;  %v6924_v12 = vcombine.low %v3418_v3, %v3428_v0  ;;  %v1496_v13 = vor.u32 %v1495_v4, %v8899_v49  ;;  %v1525_v17 = vrot.slane %v1523_v5, 5  ;;  %v1417_v53 = vld [vmem:[#allocation2 + $0x1c] sm:$0xf]  ;;  %v1416_v4 = vld [vmem:[#allocation2 + $0x18] sm:$0xf] }
  0x44   : > { %v804_v18 = vshrl.u32 %v8806_v48, 16  ;;  %v798_v20 = vrot.slane %v796_v59, 7  ;;  %v807_v21 = vshll.u32 %v8806_v48, 16  ;;  %v615_v32 = vmax.f32 %v8814_v55, 0.0  ;;  %v1112_v59 = vld [vmem:[#allocation2 + $0x38] sm:$0x1] }
  0x45   : > { %v813_v22 = vshrl.u32 %v8856_v44, 16  ;;  %7850 = vmatmul.mubr.bf16.vlgmr.msra.gmra.mrb[0].mxu0 %v6924_v12  ;;  %v8917_v23 = vrot.slane %v1496_v13, 4  ;;  %v1526_v47 = vsel %vm8870_vm11, %v1521_v57, %v1525_v17  ;;  %v8924_v27 = vmul.f32 %v7268_v15, %v8697_v11  ;;  %v8388_v15 = vld [vmem:[%s10759_s5 + $0x150] sm:$0xff]  }
  0x46   : > { %v806_v24 = vrot.slane %v804_v18, 7  ;;  %7882 = vmatpush3.bf16.msra.mxu0 %v8748_v56  ;;  %v801_v55 = vor.u32 %v799_v10, %v798_v20  ;;  %v802_v29 = vrot.slane %v798_v20, 4  ;;  %v7185_v30 = vpack.c.bf16 %v615_v32, %v615_v32  ;;  %v8390_v10 = vld [vmem:[%s10759_s5 + $0x158] sm:$0xff]   ;;  %v1462_v18 = vld [vmem:[#allocation2 + $0x20] sm:$0x1] }
  0x47   : > { %v1412_v48 = vld [vmem:[#allocation2] sm:$0xf]  ;;  %v816_v33 = vshll.u32 %v8856_v44, 16  ;;  %v8928_v39 = vcombine.low %v1516_v7, %v1526_v47  ;;  %7883 = vmatprep.subr.bf16.mxu0 %v8387_v6  ;;  %v815_v42 = vrot.slane %v813_v22, 7  ;;  %v1528_v20 = vshrl.u32 %v1416_v4, 16 }
  0x48   : > { %v1460_v28 = vld [vmem:[#allocation2 + $0x8] sm:$0x1]  ;;  %v1480_v36 = vshrl.u32 %v1412_v48, 16  ;;  %v1483_v37 = vshll.u32 %v1412_v48, 16  ;;  %v809_v41 = vor.u32 %v807_v21, %v806_v24  ;;  %v811_v31 = vrot.slane %v806_v24, 4 }
  0x49   : > { %v1499_v38 = vshll.u32 %v1460_v28, 16  ;;  %v1102_v56 = vsel %vm8759_vm6, %v801_v55, %v1101_v60  ;;  %v821_v2 = vshrl.u32 %v7185_v30, 16  ;;  %v818_v3 = vor.u32 %v816_v33, %v815_v42 }
  0x4a   : > { %v1482_v54 = vrot.slane %v1480_v36, 4  ;;  %v1485_v44 = vrot.slane %v1483_v37, 5  ;;  %1103 = vst [vmem:[#allocation2 + $0x24] sm:$0xf] %v1102_v56  ;;  %7884 = vmatpush3.bf16.msra.mxu0 %v8387_v6  ;;  %v810_v7 = vsel %vm8738_vm5, %v802_v29, %v809_v41  ;;  %v1106_v5 = vsel %vm8767_vm7, %v811_v31, %v1105_v26  ;;  %v8391_v37 = vld [vmem:[%s10759_s5 + $0x160] sm:$0xff]  }
  0x4b   : > { %v1501_v0 = vrot.slane %v1499_v38, 5  ;;  %v819_v57 = vrot.slane %v815_v42, 4  ;;  %1104 = vst [vmem:[#allocation2 + $0x28] sm:$0xf] %v810_v7  ;;  %1107 = vst [vmem:[#allocation2 + $0x2c] sm:$0x1] %v1106_v5  ;;  %7885 = vmatprep.subr.bf16.mxu0 %v8388_v15  ;;  %v1109_v60 = vsel %vm8759_vm6, %v818_v3, %v1108_v52 }
  0x4c   : > { %v1486_v12 = vor.u32 %v1485_v44, %v1482_v54  ;;  %v823_v6 = vrot.slane %v821_v2, 7  ;;  %v824_v17 = vshll.u32 %v7185_v30, 16  ;;  %v1531_v21 = vshll.u32 %v1416_v4, 16  ;;  %1110 = vst [vmem:[#allocation2 + $0x30] sm:$0xf] %v1109_v60  ;;  %v8968_v44 = vld [vmem:[%s10759_s5 + $0x168] sm:$0xff]  }
  0x4d   : > { %v1502_v13 = vsel %vm8870_vm11, %v8917_v23, %v1501_v0  ;;  %v1537_v32 = vshll.u32 %v1417_v53, 16  ;;  %v1541_v26 = vshrl.u32 %v1417_v53, 16  ;;  %v1530_v48 = vrot.slane %v1528_v20, 4 }
  0x4e   : > { %v1487_v22 = vrot.slane %v1486_v12, 4  ;;  %v826_v47 = vor.u32 %v824_v17, %v823_v6  ;;  %v828_v24 = vrot.slane %v823_v6, 4  ;;  %7886 = vmatpush3.bf16.msra.mxu0 %v8388_v15  ;;  %v1533_v23 = vrot.slane %v1531_v21, 5  ;;  %v8394_v21 = vld [vmem:[%s10759_s5 + $0x170] sm:$0xff]  }
  0x4f   : > { %v1539_v28 = vrot.slane %v1537_v32, 5  ;;  %v1547_v55 = vshll.u32 %v1462_v18, 16  ;;  %v1543_v36 = vrot.slane %v1541_v26, 4  ;;  %7887 = vmatprep.subr.bf16.mxu0 %v8390_v10  ;;  %v616_v56 = vmax.f32 %v8859_v45, 0.0 }
  0x50   : > { %v1492_v29 = vsel %vm8870_vm11, %v1487_v22, %v8899_v49  ;;  %v827_v30 = vsel %vm8738_vm5, %v819_v57, %v826_v47  ;;  %v1113_v33 = vsel %vm8767_vm7, %v828_v24, %v1112_v59  ;;  %v1534_v41 = vor.u32 %v1533_v23, %v1530_v48  ;;  %v8389_v49 = vld [vmem:[%s10759_s5 + $0x8] sm:$0xff]  }
  0x51   : > { %v6763_v38 = vcombine.low %v1492_v29, %v1502_v13  ;;  %v1309_v15 = vld [vmem:[#allocation2 + $0x24] sm:$0x1]  ;;  %1111 = vst [vmem:[#allocation2 + $0x34] sm:$0xf] %v827_v30  ;;  %1114 = vst [vmem:[#allocation2 + $0x38] sm:$0x1] %v1113_v33  ;;  %v1544_v52 = vor.u32 %v1543_v36, %v1539_v28  ;;  %v8972_v45 = vpack.c.bf16 %v616_v56, %v616_v56 }
  0x52   : > { %v1549_v31 = vrot.slane %v1547_v55, 5  ;;  %v1310_v42 = vsel %vm8767_vm7, 0, %v1309_v15  ;;  %v617_v53 = vmax.f32 %v8864_v61, 0.0  ;;  %v618_v54 = vmax.f32 %v8884_v35, 0.0  ;;  %v1364_v0 = vld [vmem:[#allocation2 + $0x2c] sm:$0x1]  ;;  %7888 = vmatpush3.bf16.msra.mxu0 %v8390_v10 }
  0x53   : > { %7657 = vmatprep.mubr.bf16.mxu1 %v6763_v38  ;;  %1311 = vst [vmem:[#allocation2 + $0x24] sm:$0x1] %v1310_v42  ;;  %v8970_v2 = vld [vmem:[#allocation2 + $0x28] sm:$0xf]  ;;  %v1535_v4 = vrot.slane %v1534_v41, 4  ;;  %v619_v7 = vmax.f32 %v8894_v14, 0.0  ;;  %v551_v61 = vmul.f32 %v7269_v50, %v8697_v11  ;;  %7889 = vmatprep.subr.bf16.mxu0 %v8391_v37  ;;  %v9027_v41 = vadd.f32 %v8706_v16, %v8924_v27 }
  0x54   : > { %7658 = vmatmul.mubr.bf16.vlgmr.msra.gmra.mrb[0].mxu1 %v8928_v39  ;;  %v1365_v35 = vsel %vm8800_vm8, 0, %v1364_v0  ;;  %v3439_v5 = vshll.u32 %v8970_v2, 16  ;;  %v3443_v3 = vshrl.u32 %v8970_v2, 16  ;;  %v1545_v57 = vrot.slane %v1544_v52, 4  ;;  %v1419_v59 = vld [vmem:[#allocation2 + $0x28] sm:$0xf] }
  0x55   : > { %7690 = vmatpush3.bf16.msra.mxu1 %v8754_v58  ;;  %1366 = vst [vmem:[#allocation2 + $0x2c] sm:$0x1] %v1365_v35  ;;  %v1312_v14 = vld [vmem:[#allocation2 + $0x30] sm:$0x1]  ;;  %v1540_v51 = vsel %vm8870_vm11, %v1535_v4, %v1539_v28  ;;  %v1561_v11 = vshll.u32 %v1419_v59, 16  ;;  %v1565_v50 = vshrl.u32 %v1419_v59, 16  ;;  %v8986_v39 = vpack.c.bf16 %v617_v53, %v617_v53 }
  0x56   : > { %v8988_v10 = vrot.slane %v3439_v5, 5  ;;  %v3445_v12 = vrot.slane %v3443_v3, 4  ;;  %v1313_v13 = vsel %vm8767_vm7, 0, %v1312_v14  ;;  %v1550_v6 = vsel %vm8870_vm11, %v1545_v57, %v1549_v31  ;;  %7691 = vmatprep.subr.bf16.mxu1 %v8389_v49  ;;  %v8392_v58 = vld [vmem:[%s10759_s5 + $0x10] sm:$0xff]   ;;  %7890 = vmatpush3.bf16.msra.mxu0 %v8391_v37  ;;  %v8395_v30 = vld [vmem:[%s10759_s5 + $0x18] sm:$0xff]  }
  0x57   : > { %1314 = vst [vmem:[#allocation2 + $0x30] sm:$0x1] %v1313_v13  ;;  %v6765_v17 = vcombine.low %v1540_v51, %v1550_v6  ;;  %v8997_v18 = vrot.slane %v1561_v11, 5  ;;  %v1567_v60 = vrot.slane %v1565_v50, 4  ;;  %v830_v20 = vshrl.u32 %v8972_v45, 16  ;;  %7891 = vmatprep.subr.bf16.mxu0 %v8968_v44  ;;  %v8396_v31 = vld [vmem:[%s10759_s5 + $0x178] sm:$0xff]  }
  0x58   : > { %v3446_v32 = vor.u32 %v3445_v12, %v8988_v10  ;;  %v1367_v22 = vld [vmem:[#allocation2 + $0x38] sm:$0x1]  ;;  %v9004_v47 = vld [vmem:[#allocation2 + $0x34] sm:$0xf]  ;;  %v833_v24 = vshll.u32 %v8972_v45, 16  ;;  %v838_v26 = vshrl.u32 %v8986_v39, 16  ;;  %v9008_v48 = vpack.c.bf16 %v618_v54, %v618_v54 }
  0x59   : > { %v1368_v23 = vsel %vm8800_vm8, 0, %v1367_v22  ;;  %v3463_v28 = vshll.u32 %v9004_v47, 16  ;;  %v3467_v55 = vshrl.u32 %v9004_v47, 16  ;;  %7661 = vmatprep.mubr.bf16.mxu1 %v6765_v17  ;;  %v1568_v29 = vor.u32 %v1567_v60, %v8997_v18  ;;  %7692 = vmatpush3.bf16.msra.mxu1 %v8389_v49  ;;  %v1115_v13 = vld [vmem:[#allocation2 + $0x3c] sm:$0xf] }
  0x5a   : > { %v3339_v33 = vld [vmem:[#allocation2 + $0x24] sm:$0xf]  ;;  %v9019_v36 = vrot.slane %v3446_v32, 4  ;;  %1369 = vst [vmem:[#allocation2 + $0x38] sm:$0x1] %v1368_v23  ;;  %v9021_v38 = vrot.slane %v830_v20, 7  ;;  %v9023_v15 = vpack.c.bf16 %v619_v7, %v619_v7  ;;  %7693 = vmatprep.subr.bf16.mxu1 %v8392_v58  ;;  %7892 = vmatpush3.bf16.msra.mxu0 %v8968_v44  ;;  %v9039_v27 = vadd.f32 %v8706_v16, %v551_v61 }
  0x5b   : > { %v1418_v37 = vld [vmem:[#allocation2 + $0x24] sm:$0xf]  ;;  %v3430_v49 = vshrl.u32 %v3339_v33, 16  ;;  %v3433_v56 = vshll.u32 %v3339_v33, 16  ;;  %v9032_v42 = vrot.slane %v3463_v28, 5  ;;  %v3469_v52 = vrot.slane %v3467_v55, 4  ;;  %7893 = vmatprep.subr.bf16.mxu0 %v8394_v21 }
  0x5c   : > { %v9035_v53 = vld [vmem:[#allocation2 + $0x2c] sm:$0x1]  ;;  %v1552_v0 = vshrl.u32 %v1418_v37, 16  ;;  %v1555_v4 = vshll.u32 %v1418_v37, 16  ;;  %v835_v45 = vor.u32 %v833_v24, %v9021_v38  ;;  %v8397_v44 = vld [vmem:[%s10759_s5 + $0x20] sm:$0xff]   ;;  %v1569_v51 = vrot.slane %v1568_v29, 4 }
  0x5d   : > { %v1463_v54 = vld [vmem:[#allocation2 + $0x2c] sm:$0x1]  ;;  %v3432_v7 = vrot.slane %v3430_v49, 4  ;;  %v3435_v35 = vrot.slane %v3433_v56, 5  ;;  %v3449_v5 = vshll.u32 %v9035_v53, 16  ;;  %v3470_v3 = vor.u32 %v3469_v52, %v9032_v42  ;;  %7694 = vmatpush3.bf16.msra.mxu1 %v8392_v58  ;;  %v9050_v20 = vld [vmem:[%s10759_s5 + $0x180] sm:$0xff]  }
  0x5e   : > { %v3342_v57 = vld [vmem:[#allocation2 + $0x30] sm:$0xf]  ;;  %v1554_v59 = vrot.slane %v1552_v0, 4  ;;  %v1557_v14 = vrot.slane %v1555_v4, 5  ;;  %v1571_v11 = vshll.u32 %v1463_v54, 16  ;;  %7695 = vmatprep.subr.bf16.mxu1 %v8395_v30  ;;  %7894 = vmatpush3.bf16.msra.mxu0 %v8394_v21  ;;  %v836_v58 = vrot.slane %v9021_v38, 4 }
  0x5f   : > { %v3436_v16 = vor.u32 %v3435_v35, %v3432_v7  ;;  %v3451_v61 = vrot.slane %v3449_v5, 5  ;;  %v3454_v50 = vshrl.u32 %v3342_v57, 16  ;;  %v3457_v12 = vshll.u32 %v3342_v57, 16  ;;  %7895 = vmatprep.subr.bf16.mxu0 %v8396_v31  ;;  %v1119_v37 = vld [vmem:[#allocation2 + $0x44] sm:$0x1] }
  0x60   : > { %v3471_v6 = vrot.slane %v3470_v3, 4  ;;  %v1558_v17 = vor.u32 %v1557_v14, %v1554_v59  ;;  %v1573_v60 = vrot.slane %v1571_v11, 5  ;;  %v840_v33 = vrot.slane %v838_v26, 7  ;;  %v1420_v4 = vld [vmem:[#allocation2 + $0x30] sm:$0xf] }
  0x61   : > { %v3437_v32 = vrot.slane %v3436_v16, 4  ;;  %v3452_v22 = vsel %vm8870_vm11, %v9019_v36, %v3451_v61  ;;  %v9055_v24 = vld [vmem:[#allocation2 + $0x38] sm:$0x1]  ;;  %v3456_v23 = vrot.slane %v3454_v50, 4  ;;  %v3459_v21 = vrot.slane %v3457_v12, 5  ;;  %7696 = vmatpush3.bf16.msra.mxu1 %v8395_v30  ;;  %v8399_v36 = vld [vmem:[%s10759_s5 + $0x28] sm:$0xff]  }
  0x62   : > { %v3473_v28 = vshll.u32 %v9055_v24, 16  ;;  %v1559_v55 = vrot.slane %v1558_v17, 4  ;;  %v1574_v29 = vsel %vm8870_vm11, %v1569_v51, %v1573_v60  ;;  %7697 = vmatprep.subr.bf16.mxu1 %v8397_v44  ;;  %v841_v49 = vshll.u32 %v8986_v39, 16  ;;  %7896 = vmatpush3.bf16.msra.mxu0 %v8396_v31  ;;  %v1421_v7 = vld [vmem:[#allocation2 + $0x34] sm:$0xf] }
  0x63   : > { %v3442_v38 = vsel %vm8870_vm11, %v3437_v32, %v8988_v10  ;;  %v3460_v30 = vor.u32 %v3459_v21, %v3456_v23  ;;  %v1116_v56 = vsel %vm8759_vm6, %v835_v45, %v1115_v13  ;;  %v845_v0 = vrot.slane %v840_v33, 4  ;;  %7929 = vmatprep.subr.bf16.mxu0 %v9050_v20  ;;  %v1122_v57 = vld [vmem:[#allocation2 + $0x48] sm:$0xf]  ;;  %v8401_v59 = vld [vmem:[%s10759_s5 + $0x30] sm:$0xff]   ;;  %v1464_v50 = vld [vmem:[#allocation2 + $0x38] sm:$0x1] }
  0x64   : > { %v6925_v52 = vcombine.low %v3442_v38, %v3452_v22  ;;  %v3475_v54 = vrot.slane %v3473_v28, 5  ;;  %v1564_v26 = vsel %vm8870_vm11, %v1559_v55, %v8997_v18  ;;  %1117 = vst [vmem:[#allocation2 + $0x3c] sm:$0xf] %v1116_v56  ;;  %v843_v5 = vor.u32 %v841_v49, %v840_v33  ;;  %v1126_v11 = vld [vmem:[#allocation2 + $0x50] sm:$0x1]  ;;  %v7401_v33 = vld [vmem:[%s8689_s9 + $0x38] sm:$0xff]  }
  0x65   : > { %v3461_v10 = vrot.slane %v3460_v30, 4  ;;  %v6766_v35 = vcombine.low %v1564_v26, %v1574_v29  ;;  %v847_v39 = vshrl.u32 %v9008_v48, 16  ;;  %7698 = vmatpush3.bf16.msra.mxu1 %v8397_v44  ;;  %v1120_v45 = vsel %vm8767_vm7, %v845_v0, %v1119_v37 }
  0x66   : > { %7853 = vmatprep.mubr.bf16.mxu0 %v6925_v52  ;;  %v3476_v31 = vsel %vm8870_vm11, %v3471_v6, %v3475_v54  ;;  %v850_v18 = vshll.u32 %v9008_v48, 16  ;;  %v855_v3 = vshrl.u32 %v9023_v15, 16  ;;  %7699 = vmatprep.subr.bf16.mxu1 %v8399_v36  ;;  %v844_v14 = vsel %vm8738_vm5, %v836_v58, %v843_v5  ;;  %1121 = vst [vmem:[#allocation2 + $0x44] sm:$0x1] %v1120_v45 }
  0x67   : > { %v3466_v44 = vsel %vm8870_vm11, %v3461_v10, %v9032_v42  ;;  %7662 = vmatmul.mubr.bf16.gmra.mrb[4].mxu1 %v6766_v35  ;;  %v849_v51 = vrot.slane %v847_v39, 7  ;;  %v858_v48 = vshll.u32 %v9023_v15, 16  ;;  %1118 = vst [vmem:[#allocation2 + $0x40] sm:$0xf] %v844_v14  ;;  %v1576_v12 = vshrl.u32 %v1420_v4, 16 }
  0x68   : > { %v6926_v16 = vcombine.low %v3466_v44, %v3476_v31  ;;  %v857_v61 = vrot.slane %v855_v3, 7  ;;  %v1579_v13 = vshll.u32 %v1420_v4, 16  ;;  %v1585_v60 = vshll.u32 %v1421_v7, 16 }
  0x69   : > { %v852_v6 = vor.u32 %v850_v18, %v849_v51  ;;  %v853_v17 = vrot.slane %v849_v51, 4  ;;  %v1589_v42 = vshrl.u32 %v1421_v7, 16  ;;  %7700 = vmatpush3.bf16.msra.mxu1 %v8399_v36  ;;  %v1578_v22 = vrot.slane %v1576_v12, 4 }
  0x6a   : > { %7854 = vmatmul.mubr.bf16.gmra.mrb[4].mxu0 %v6926_v16  ;;  %v860_v32 = vor.u32 %v858_v48, %v857_v61  ;;  %v862_v58 = vrot.slane %v857_v61, 4  ;;  %v1581_v23 = vrot.slane %v1579_v13, 5  ;;  %7701 = vmatprep.subr.bf16.mxu1 %v8401_v59  ;;  %v1587_v28 = vrot.slane %v1585_v60, 5 }
  0x6b   : > { %v1315_v15 = vld [vmem:[#allocation2 + $0x3c] sm:$0x1]  ;;  %v1123_v21 = vsel %vm8759_vm6, %v852_v6, %v1122_v57  ;;  %v1591_v55 = vrot.slane %v1589_v42, 4  ;;  %v1595_v29 = vshll.u32 %v1464_v50, 16  ;;  %v620_v52 = vmax.f32 %v9027_v41, 0.0 }
  0x6c   : > { %v1316_v37 = vsel %vm8767_vm7, 0, %v1315_v15  ;;  %v861_v36 = vsel %vm8738_vm5, %v853_v17, %v860_v32  ;;  %1124 = vst [vmem:[#allocation2 + $0x48] sm:$0xf] %v1123_v21  ;;  %v1127_v38 = vsel %vm8767_vm7, %v862_v58, %v1126_v11  ;;  %v1582_v30 = vor.u32 %v1581_v23, %v1578_v22  ;;  %v9129_v22 = vld [vmem:[%s10757_s3] ss:$0 sm:$0xff] }
  0x6d   : > { %1317 = vst [vmem:[#allocation2 + $0x3c] sm:$0x1] %v1316_v37  ;;  %1125 = vst [vmem:[#allocation2 + $0x4c] sm:$0xf] %v861_v36  ;;  %v1592_v49 = vor.u32 %v1591_v55, %v1587_v28  ;;  %v1597_v56 = vrot.slane %v1595_v29, 5  ;;  %v621_v54 = vmax.f32 %v9039_v27, 0.0  ;;  %7702 = vmatpush3.bf16.msra.mxu1 %v8401_v59  ;;  %v7272_v7 = vunpack.c.l.bf16 %v7401_v33 }
  0x6e   : > { %1128 = vst [vmem:[#allocation2 + $0x50] sm:$0x1] %v1127_v38  ;;  %v4163_v26 = vrot.slane %v8874_v9, 5  ;;  %v1370_v0 = vld [vmem:[#allocation2 + $0x44] sm:$0x1]  ;;  %v1583_v4 = vrot.slane %v1582_v30, 4  ;;  %v7273_v10 = vunpack.c.h.bf16 %v7401_v33  ;;  %v7190_v45 = vpack.c.bf16 %v620_v52, %v620_v52 }
  0x6f   : > { %v1371_v35 = vsel %vm8800_vm8, 0, %v1370_v0  ;;  %v9105_v5 = vld [vmem:[#allocation2 + $0x40] sm:$0xf]  ;;  %v1593_v39 = vrot.slane %v1592_v49, 4  ;;  %v9107_v18 = vpack.c.bf16 %v621_v54, %v621_v54  ;;  %v552_v23 = vmul.f32 %v9129_v22, %v7272_v7 }
  0x70   : > { %v1423_v31 = vld [vmem:[#allocation2 + $0x40] sm:$0xf]  ;;  %1372 = vst [vmem:[#allocation2 + $0x44] sm:$0x1] %v1371_v35  ;;  %v3487_v41 = vshll.u32 %v9105_v5, 16  ;;  %v3491_v27 = vshrl.u32 %v9105_v5, 16  ;;  %v1588_v3 = vsel %vm8870_vm11, %v1583_v4, %v1587_v28  ;;  %v553_v15 = vmul.f32 %v9129_v22, %v7273_v10 }
  0x71   : > { %v1609_v57 = vshll.u32 %v1423_v31, 16  ;;  %v1598_v59 = vsel %vm8870_vm11, %v1593_v39, %v1597_v56  ;;  %v1613_v44 = vshrl.u32 %v1423_v31, 16  ;;  %v864_v14 = vshrl.u32 %v7190_v45, 16  ;;  %v9146_v4 = vld [vmem:[%s10758_s4] ss:$0 sm:$0xff] }
  0x72   : > { %v867_v51 = vshll.u32 %v7190_v45, 16  ;;  %v9115_v48 = vrot.slane %v3487_v41, 5  ;;  %v3493_v11 = vrot.slane %v3491_v27, 4  ;;  %v6767_v16 = vcombine.low %v1588_v3, %v1598_v59 }
  0x73   : > { %v9117_v61 = vrot.slane %v1609_v57, 5  ;;  %v1318_v50 = vld [vmem:[#allocation2 + $0x48] sm:$0x1]  ;;  %v1615_v12 = vrot.slane %v1613_v44, 4  ;;  %v9119_v13 = vrot.slane %v864_v14, 7  ;;  %v872_v6 = vshrl.u32 %v9107_v18, 16 }
  0x74   : > { %v875_v17 = vshll.u32 %v9107_v18, 16  ;;  %v3345_v60 = vld [vmem:[#allocation2 + $0x3c] sm:$0xf]  ;;  %v3494_v42 = vor.u32 %v3493_v11, %v9115_v48  ;;  %v1319_v32 = vsel %vm8767_vm7, 0, %v1318_v50  ;;  %7665 = vmatprep.mubr.bf16.mxu1 %v6767_v16  ;;  %v9135_v29 = vld [vmem:[#allocation2 + $0x4c] sm:$0xf]  ;;  %v590_v7 = vadd.f32 %v9146_v4, %v552_v23 }
  0x75   : > { %v1373_v58 = vld [vmem:[#allocation2 + $0x50] sm:$0x1]  ;;  %v3478_v21 = vshrl.u32 %v3345_v60, 16  ;;  %v3481_v28 = vshll.u32 %v3345_v60, 16  ;;  %1320 = vst [vmem:[#allocation2 + $0x48] sm:$0x1] %v1319_v32  ;;  %v1616_v33 = vor.u32 %v1615_v12, %v9117_v61  ;;  %v869_v49 = vor.u32 %v867_v51, %v9119_v13 }
  0x76   : > { %v1374_v55 = vsel %vm8800_vm8, 0, %v1373_v58  ;;  %v3495_v37 = vrot.slane %v3494_v42, 4  ;;  %v3511_v36 = vshll.u32 %v9135_v29, 16  ;;  %v3515_v38 = vshrl.u32 %v9135_v29, 16  ;;  %v1422_v30 = vld [vmem:[#allocation2 + $0x3c] sm:$0xf] }
  0x77   : > { %1375 = vst [vmem:[#allocation2 + $0x50] sm:$0x1] %v1374_v55  ;;  %v9141_v56 = vld [vmem:[#allocation2 + $0x44] sm:$0x1]  ;;  %v3480_v52 = vrot.slane %v3478_v21, 4  ;;  %v3483_v54 = vrot.slane %v3481_v28, 5  ;;  %v591_v10 = vadd.f32 %v9146_v4, %v553_v15 }
  0x78   : > { %v1465_v0 = vld [vmem:[#allocation2 + $0x44] sm:$0x1]  ;;  %v3497_v35 = vshll.u32 %v9141_v56, 16  ;;  %v9151_v39 = vrot.slane %v3511_v36, 5  ;;  %v3517_v31 = vrot.slane %v3515_v38, 4  ;;  %v1600_v45 = vshrl.u32 %v1422_v30, 16 }
  0x79   : > { %v3484_v18 = vor.u32 %v3483_v54, %v3480_v52  ;;  %v1603_v41 = vshll.u32 %v1422_v30, 16  ;;  %v1617_v27 = vrot.slane %v1616_v33, 4  ;;  %v1619_v3 = vshll.u32 %v1465_v0, 16  ;;  %v1129_v57 = vld [vmem:[#allocation2 + $0x54] sm:$0xf] }
  0x7a   : > { %v3499_v59 = vrot.slane %v3497_v35, 5  ;;  %v3518_v44 = vor.u32 %v3517_v31, %v9151_v39  ;;  %v1602_v14 = vrot.slane %v1600_v45, 4  ;;  %v870_v51 = vrot.slane %v9119_v13, 4  ;;  %v1133_v23 = vld [vmem:[#allocation2 + $0x5c] sm:$0x1] }
  0x7b   : > { %v3485_v11 = vrot.slane %v3484_v18, 4  ;;  %v1605_v16 = vrot.slane %v1603_v41, 5  ;;  %v1621_v50 = vrot.slane %v1619_v3, 5  ;;  %v874_v12 = vrot.slane %v872_v6, 7 }
  0x7c   : > { %v3500_v60 = vsel %vm8870_vm11, %v3495_v37, %v3499_v59  ;;  %v3348_v42 = vld [vmem:[#allocation2 + $0x48] sm:$0xf]  ;;  %v3519_v32 = vrot.slane %v3518_v44, 4  ;;  %v1130_v58 = vsel %vm8759_vm6, %v869_v49, %v1129_v57  ;;  %v622_v15 = vmax.f32 %v590_v7, 0.0  ;;  %v1425_v7 = vld [vmem:[#allocation2 + $0x4c] sm:$0xf] }
  0x7d   : > { %v3490_v21 = vsel %vm8870_vm11, %v3485_v11, %v9115_v48  ;;  %v3502_v13 = vshrl.u32 %v3348_v42, 16  ;;  %v3505_v55 = vshll.u32 %v3348_v42, 16  ;;  %v1606_v33 = vor.u32 %v1605_v16, %v1602_v14  ;;  %1131 = vst [vmem:[#allocation2 + $0x54] sm:$0xf] %v1130_v58  ;;  %v1424_v6 = vld [vmem:[#allocation2 + $0x48] sm:$0xf] }
  0x7e   : > { %v9162_v28 = vld [vmem:[#allocation2 + $0x50] sm:$0x1]  ;;  %v6927_v36 = vcombine.low %v3490_v21, %v3500_v60  ;;  %v1622_v38 = vsel %vm8870_vm11, %v1617_v27, %v1621_v50  ;;  %v877_v30 = vor.u32 %v875_v17, %v874_v12  ;;  %v879_v0 = vrot.slane %v874_v12, 4  ;;  %v1140_v21 = vld [vmem:[#allocation2 + $0x68] sm:$0x1] }
  0x7f   : > { %v3521_v37 = vshll.u32 %v9162_v28, 16  ;;  %v3504_v49 = vrot.slane %v3502_v13, 4  ;;  %v3507_v52 = vrot.slane %v3505_v55, 5  ;;  %v1607_v54 = vrot.slane %v1606_v33, 4  ;;  %v1466_v14 = vld [vmem:[#allocation2 + $0x50] sm:$0x1] }
  0x80   : > { %7857 = vmatprep.mubr.bf16.mxu0 %v6927_v36  ;;  %v878_v35 = vsel %vm8738_vm5, %v870_v51, %v877_v30  ;;  %v623_v31 = vmax.f32 %v591_v10, 0.0  ;;  %v7192_v45 = vpack.c.bf16 %v622_v15, %v622_v15  ;;  %v1134_v17 = vsel %vm8767_vm7, %v879_v0, %v1133_v23  ;;  %v8403_v10 = vld [vmem:[%s10759_s5 + $0x38] sm:$0xff]  }
  0x81   : > { %v3523_v48 = vrot.slane %v3521_v37, 5  ;;  %v3508_v18 = vor.u32 %v3507_v52, %v3504_v49  ;;  %v1612_v41 = vsel %vm8870_vm11, %v1607_v54, %v9117_v61  ;;  %1132 = vst [vmem:[#allocation2 + $0x58] sm:$0xf] %v878_v35  ;;  %v1624_v27 = vshrl.u32 %v1424_v6, 16  ;;  %1135 = vst [vmem:[#allocation2 + $0x5c] sm:$0x1] %v1134_v17  ;;  %7703 = vmatprep.subr.bf16.mxu1 %v8403_v10 }
  0x82   : > { %v6768_v57 = vcombine.low %v1612_v41, %v1622_v38  ;;  %v7193_v59 = vpack.c.bf16 %v623_v31, %v623_v31  ;;  %v881_v44 = vshrl.u32 %v7192_v45, 16  ;;  %v884_v11 = vshll.u32 %v7192_v45, 16  ;;  %v1136_v61 = vld [vmem:[#allocation2 + $0x60] sm:$0xf]  ;;  %7704 = vmatpush3.bf16.msra.mxu1 %v8403_v10  ;;  %v4087_v54 = vld [vmem:[#allocation2 + $0xc] sm:$0xe] }
  0x83   : > { %v3524_v3 = vsel %vm8870_vm11, %v3519_v32, %v3523_v48  ;;  %v3509_v51 = vrot.slane %v3508_v18, 4  ;;  %v1626_v16 = vrot.slane %v1624_v27, 4  ;;  %v1627_v50 = vshll.u32 %v1424_v6, 16  ;;  %v4088_v31 = vld [vmem:[#allocation2 + $0x18] sm:$0xe] }
  0x84   : > { %7666 = vmatmul.mubr.bf16.gmra.mrb[8].mxu1 %v6768_v57  ;;  %v1321_v12 = vld [vmem:[#allocation2 + $0x54] sm:$0x1]  ;;  %v883_v60 = vrot.slane %v881_v44, 7  ;;  %v889_v42 = vshrl.u32 %v7193_v59, 16  ;;  %v892_v58 = vshll.u32 %v7193_v59, 16  ;;  %v1633_v32 = vshll.u32 %v1425_v7, 16 }
  0x85   : > { %v3514_v23 = vsel %vm8870_vm11, %v3509_v51, %v9151_v39  ;;  %v1322_v15 = vsel %vm8767_vm7, 0, %v1321_v12  ;;  %v1629_v13 = vrot.slane %v1627_v50, 5  ;;  %v1637_v55 = vshrl.u32 %v1425_v7, 16 }
  0x86   : > { %v6928_v33 = vcombine.low %v3514_v23, %v3524_v3  ;;  %1323 = vst [vmem:[#allocation2 + $0x54] sm:$0x1] %v1322_v15  ;;  %v886_v6 = vor.u32 %v884_v11, %v883_v60  ;;  %v887_v36 = vrot.slane %v883_v60, 4  ;;  %v891_v37 = vrot.slane %v889_v42, 7  ;;  %v8491_v42 = vld [vmem:[#allocation2 + $0x10] sm:$0xf] }
  0x87   : > { %v1630_v38 = vor.u32 %v1629_v13, %v1626_v16  ;;  %v1635_v30 = vrot.slane %v1633_v32, 5  ;;  %v1639_v49 = vrot.slane %v1637_v55, 4  ;;  %v1643_v52 = vshll.u32 %v1466_v14, 16  ;;  %v8406_v16 = vld [vmem:[%s10759_s5 + $0x80] sm:$0xff]  }
  0x88   : > { %7858 = vmatmul.mubr.bf16.gmra.mrb[8].mxu0 %v6928_v33  ;;  %v9184_v0 = vld [vmem:[#allocation2 + $0x58] sm:$0xf]  ;;  %v894_v39 = vor.u32 %v892_v58, %v891_v37  ;;  %v896_v48 = vrot.slane %v891_v37, 4  ;;  %v1137_v35 = vsel %vm8759_vm6, %v886_v6, %v1136_v61  ;;  %v1376_v45 = vld [vmem:[#allocation2 + $0x5c] sm:$0x1]  ;;  %v6947_v60 = vrot.slane %v4087_v54, 9  ;;  %7737 = vmatprep.subr.bf16.mxu1 %v8406_v16 }
  0x89   : > { %v1427_v7 = vld [vmem:[#allocation2 + $0x58] sm:$0xf]  ;;  %v3535_v18 = vshll.u32 %v9184_v0, 16  ;;  %v3539_v41 = vshrl.u32 %v9184_v0, 16  ;;  %1138 = vst [vmem:[#allocation2 + $0x60] sm:$0xf] %v1137_v35  ;;  %v1640_v27 = vor.u32 %v1639_v49, %v1635_v30  ;;  %v9216_v55 = vsel %vm9197_vm14, %v8845_v34, %v4163_v26 }
  0x8a   : > { %v1631_v17 = vrot.slane %v1630_v38, 4  ;;  %v1377_v3 = vsel %vm8800_vm8, 0, %v1376_v45  ;;  %v895_v57 = vsel %vm8738_vm5, %v887_v36, %v894_v39  ;;  %v1141_v59 = vsel %vm8767_vm7, %v896_v48, %v1140_v21  ;;  %v9219_v54 = vld [vmem:[%s8689_s9 + $0x40] sm:$0xff]  }
  0x8b   : > { %v1645_v44 = vrot.slane %v1643_v52, 5  ;;  %1378 = vst [vmem:[#allocation2 + $0x5c] sm:$0x1] %v1377_v3  ;;  %v9201_v10 = vrot.slane %v3535_v18, 5  ;;  %v3541_v51 = vrot.slane %v3539_v41, 4  ;;  %v1641_v61 = vrot.slane %v1640_v27, 4 }
  0x8c   : > { %1139 = vst [vmem:[#allocation2 + $0x64] sm:$0xf] %v895_v57  ;;  %1142 = vst [vmem:[#allocation2 + $0x68] sm:$0x1] %v1141_v59  ;;  %v1636_v11 = vsel %vm8870_vm11, %v1631_v17, %v1635_v30  ;;  %v1657_v50 = vshll.u32 %v1427_v7, 16  ;;  %v1661_v12 = vshrl.u32 %v1427_v7, 16  ;;  %v7276_v57 = vunpack.c.l.bf16 %v9219_v54 }
  0x8d   : > { %v4153_v58 = vrot.slane %v8491_v42, 5  ;;  %v3351_v32 = vld [vmem:[#allocation2 + $0x54] sm:$0xf]  ;;  %v3542_v23 = vor.u32 %v3541_v51, %v9201_v10  ;;  %v1646_v15 = vsel %vm8870_vm11, %v1641_v61, %v1645_v44  ;;  %v6948_v13 = vrot.slane %v4088_v31, 9 }
  0x8e   : > { %v1426_v21 = vld [vmem:[#allocation2 + $0x54] sm:$0xf]  ;;  %v3526_v33 = vshrl.u32 %v3351_v32, 16  ;;  %v3529_v6 = vshll.u32 %v3351_v32, 16  ;;  %v6769_v36 = vcombine.low %v1636_v11, %v1646_v15  ;;  %v1659_v49 = vrot.slane %v1657_v50, 5 }
  0x8f   : > { %v1648_v37 = vshrl.u32 %v1426_v21, 16  ;;  %v3543_v38 = vrot.slane %v3542_v23, 4  ;;  %v1651_v30 = vshll.u32 %v1426_v21, 16  ;;  %v1663_v52 = vrot.slane %v1661_v12, 4 }
  0x90   : > { %v3528_v39 = vrot.slane %v3526_v33, 4  ;;  %v3531_v48 = vrot.slane %v3529_v6, 5  ;;  %v1324_v35 = vld [vmem:[#allocation2 + $0x60] sm:$0x1]  ;;  %7669 = vmatprep.mubr.bf16.mxu1 %v6769_v36  ;;  %v9223_v34 = vsel %vm9197_vm14, %v6947_v60, %v4153_v58  ;;  %v4155_v45 = vrot.slane %v4153_v58, 4 }
  0x91   : > { %v1650_v9 = vrot.slane %v1648_v37, 4  ;;  %v1325_v26 = vsel %vm8767_vm7, 0, %v1324_v35  ;;  %v1653_v7 = vrot.slane %v1651_v30, 5  ;;  %v1664_v31 = vor.u32 %v1663_v52, %v1659_v49 }
  0x92   : > { %v9227_v18 = vld [vmem:[#allocation2 + $0x5c] sm:$0x1]  ;;  %v3532_v41 = vor.u32 %v3531_v48, %v3528_v39  ;;  %1326 = vst [vmem:[#allocation2 + $0x60] sm:$0x1] %v1325_v26  ;;  %v9235_v3 = vsel %vm9197_vm14, %v6948_v13, %v4160_v25  ;;  %v7277_v59 = vunpack.c.h.bf16 %v9219_v54  ;;  %v9250_v23 = vsel %vm9197_vm14, %v4155_v45, %v4156_v63  ;;  %v4089_v54 = vld [vmem:[#allocation2 + $0x24] sm:$0xe] }
  0x93   : > { %v1379_v17 = vld [vmem:[#allocation2 + $0x68] sm:$0x1]  ;;  %v9229_v27 = vld [vmem:[#allocation2 + $0x64] sm:$0xf]  ;;  %v3545_v44 = vshll.u32 %v9227_v18, 16  ;;  %v1654_v19 = vor.u32 %v1653_v7, %v1650_v9  ;;  %v1665_v12 = vrot.slane %v1664_v31, 4  ;;  %v6979_v33 = vcombine.low %v9223_v34, %v9250_v23 }
  0x94   : > { %v1380_v51 = vsel %vm8800_vm8, 0, %v1379_v17  ;;  %v3559_v11 = vshll.u32 %v9229_v27, 16  ;;  %v3563_v61 = vshrl.u32 %v9229_v27, 16  ;;  %v1467_v16 = vld [vmem:[#allocation2 + $0x5c] sm:$0x1]  ;;  %v3533_v50 = vrot.slane %v3532_v41, 4 }
  0x95   : > { %1381 = vst [vmem:[#allocation2 + $0x68] sm:$0x1] %v1380_v51  ;;  %v1667_v25 = vshll.u32 %v1467_v16, 16  ;;  %v1429_v60 = vld [vmem:[#allocation2 + $0x64] sm:$0xf]  ;;  %v3547_v42 = vrot.slane %v3545_v44, 5  ;;  %v6980_v40 = vcombine.low %v9235_v3, %v9216_v55  ;;  %v554_v26 = vmul.f32 %v9129_v22, %v7276_v57 }
  0x96   : > { %v9244_v58 = vrot.slane %v3559_v11, 5  ;;  %v3565_v32 = vrot.slane %v3563_v61, 4  ;;  %v3538_v15 = vsel %vm8870_vm11, %v3533_v50, %v9201_v10  ;;  %v1655_v21 = vrot.slane %v1654_v19, 4 }
  0x97   : > { %v1669_v13 = vrot.slane %v1667_v25, 5  ;;  %v3548_v6 = vsel %vm8870_vm11, %v3543_v38, %v3547_v42  ;;  %v1681_v37 = vshll.u32 %v1429_v60, 16  ;;  %v1685_v52 = vshrl.u32 %v1429_v60, 16 }
  0x98   : > { %v3566_v36 = vor.u32 %v3565_v32, %v9244_v58  ;;  %v6929_v63 = vcombine.low %v3538_v15, %v3548_v6  ;;  %v1660_v30 = vsel %vm8870_vm11, %v1655_v21, %v1659_v49  ;;  %v555_v51 = vmul.f32 %v9129_v22, %v7277_v59 }
  0x99   : > { %v1670_v10 = vsel %vm8870_vm11, %v1665_v12, %v1669_v13  ;;  %v3354_v39 = vld [vmem:[#allocation2 + $0x60] sm:$0xf]  ;;  %v1683_v38 = vrot.slane %v1681_v37, 5  ;;  %v1687_v44 = vrot.slane %v1685_v52, 4  ;;  %v592_v11 = vadd.f32 %v9146_v4, %v554_v26 }
  0x9a   : > { %v3567_v48 = vrot.slane %v3566_v36, 4  ;;  %v6770_v35 = vcombine.low %v1660_v30, %v1670_v10  ;;  %v1428_v9 = vld [vmem:[#allocation2 + $0x60] sm:$0xf]  ;;  %7861 = vmatprep.mubr.bf16.mxu0 %v6929_v63  ;;  %v3550_v7 = vshrl.u32 %v3354_v39, 16  ;;  %v3553_v31 = vshll.u32 %v3354_v39, 16 }
  0x9b   : > { %v1672_v45 = vshrl.u32 %v1428_v9, 16  ;;  %v1675_v41 = vshll.u32 %v1428_v9, 16  ;;  %v6949_v61 = vrot.slane %v4089_v54, 9  ;;  %v1688_v25 = vor.u32 %v1687_v44, %v1683_v38  ;;  %v4090_v63 = vld [vmem:[#allocation2 + $0x30] sm:$0xe] }
  0x9c   : > { %v9267_v17 = vld [vmem:[#allocation2 + $0x68] sm:$0x1]  ;;  %7670 = vmatmul.mubr.bf16.gmra.mrb[12].mxu1 %v6770_v35  ;;  %v3552_v16 = vrot.slane %v3550_v7, 4  ;;  %v3555_v50 = vrot.slane %v3553_v31, 5  ;;  %v593_v42 = vadd.f32 %v9146_v4, %v555_v51  ;;  %v624_v21 = vmax.f32 %v592_v11, 0.0 }
  0x9d   : > { %v1468_v49 = vld [vmem:[#allocation2 + $0x68] sm:$0x1]  ;;  %v3569_v19 = vshll.u32 %v9267_v17, 16  ;;  %v1674_v57 = vrot.slane %v1672_v45, 4  ;;  %v1677_v12 = vrot.slane %v1675_v41, 5  ;;  %v4167_v13 = vrot.slane %v8970_v2, 5 }
  0x9e   : > { %v1691_v60 = vshll.u32 %v1468_v49, 16  ;;  %v3556_v32 = vor.u32 %v3555_v50, %v3552_v16  ;;  %v1689_v59 = vrot.slane %v1688_v25, 4  ;;  %v625_v37 = vmax.f32 %v593_v42, 0.0  ;;  %v1143_v11 = vld [vmem:[#allocation2 + $0x6c] sm:$0xf] }
  0x9f   : > { %v3571_v15 = vrot.slane %v3569_v19, 5  ;;  %v1678_v6 = vor.u32 %v1677_v12, %v1674_v57  ;;  %v7194_v52 = vpack.c.bf16 %v624_v21, %v624_v21  ;;  %v9278_v54 = vsel %vm9197_vm14, %v6949_v61, %v4167_v13  ;;  %v1147_v50 = vld [vmem:[#allocation2 + $0x74] sm:$0x1]  ;;  %v4091_v21 = vld [vmem:[#allocation2 + $0x3c] sm:$0xe] }
  0xa0   : > { %v1693_v36 = vrot.slane %v1691_v60, 5  ;;  %v3557_v30 = vrot.slane %v3556_v32, 4  ;;  %v7195_v2 = vpack.c.bf16 %v625_v37, %v625_v37  ;;  %v4169_v9 = vrot.slane %v4167_v13, 4  ;;  %v7404_v60 = vld [vmem:[%s8689_s9 + $0x50] sm:$0xff]  }
  0xa1   : > { %v3572_v10 = vsel %vm8870_vm11, %v3567_v48, %v3571_v15  ;;  %v1679_v39 = vrot.slane %v1678_v6, 4  ;;  %v898_v7 = vshrl.u32 %v7194_v52, 16  ;;  %v901_v31 = vshll.u32 %v7194_v52, 16  ;;  %v7403_v48 = vld [vmem:[%s8689_s9 + $0x48] sm:$0xff]  }
  0xa2   : > { %v1694_v35 = vsel %vm8870_vm11, %v1689_v59, %v1693_v36  ;;  %v3562_v26 = vsel %vm8870_vm11, %v3557_v30, %v9244_v58  ;;  %v4170_v45 = vrot.slane %v9035_v53, 5  ;;  %v906_v44 = vshrl.u32 %v7195_v2, 16  ;;  %v4092_v36 = vld [vmem:[#allocation2 + $0x48] sm:$0xe] }
  0xa3   : > { %v6930_v41 = vcombine.low %v3562_v26, %v3572_v10  ;;  %v1684_v49 = vsel %vm8870_vm11, %v1679_v39, %v1683_v38  ;;  %v909_v51 = vshll.u32 %v7195_v2, 16  ;;  %v900_v16 = vrot.slane %v898_v7, 7  ;;  %v8400_v2 = vld [vmem:[%s10759_s5 + $0x188] sm:$0xff]  }
  0xa4   : > { %v6771_v61 = vcombine.low %v1684_v49, %v1694_v35  ;;  %v4171_v19 = vsel %vm9197_vm14, %v4169_v9, %v4170_v45  ;;  %v6950_v58 = vrot.slane %v4090_v63, 9  ;;  %v908_v57 = vrot.slane %v906_v44, 7 }
  0xa5   : > { %7862 = vmatmul.mubr.bf16.gmra.mrb[12].mxu0 %v6930_v41  ;;  %v6981_v53 = vcombine.low %v9278_v54, %v4171_v19  ;;  %v4174_v12 = vrot.slane %v9004_v47, 5  ;;  %v4177_v25 = vrot.slane %v9055_v24, 5  ;;  %v903_v38 = vor.u32 %v901_v31, %v900_v16 }
  0xa6   : > { %7897 = vmatprep.mubr.bf16.mxu0 %v6979_v33  ;;  %7673 = vmatprep.mubr.bf16.mxu1 %v6771_v61  ;;  %v904_v42 = vrot.slane %v900_v16, 4  ;;  %v7280_v32 = vunpack.c.l.bf16 %v7403_v48  ;;  %v7281_v15 = vunpack.c.h.bf16 %v7403_v48  ;;  %v911_v13 = vor.u32 %v909_v51, %v908_v57 }
  0xa7   : > { %v913_v6 = vrot.slane %v908_v57, 4  ;;  %v9300_v59 = vsel %vm9197_vm14, %v6950_v58, %v4174_v12  ;;  %v4176_v47 = vrot.slane %v4174_v12, 4  ;;  %v1144_v24 = vsel %vm8759_vm6, %v903_v38, %v1143_v11  ;;  %v1150_v38 = vld [vmem:[#allocation2 + $0x78] sm:$0xf] }
  0xa8   : > { %v556_v34 = vmul.f32 %v9129_v22, %v7280_v32  ;;  %v557_v23 = vmul.f32 %v9129_v22, %v7281_v15  ;;  %v7284_v33 = vunpack.c.l.bf16 %v7404_v60  ;;  %v912_v37 = vsel %vm8738_vm5, %v904_v42, %v911_v13  ;;  %1145 = vst [vmem:[#allocation2 + $0x6c] sm:$0xf] %v1144_v24 }
  0xa9   : > { %v1148_v63 = vsel %vm8767_vm7, %v913_v6, %v1147_v50  ;;  %v9312_v30 = vsel %vm9197_vm14, %v4176_v47, %v4177_v25  ;;  %v7285_v10 = vunpack.c.h.bf16 %v7404_v60  ;;  %1146 = vst [vmem:[#allocation2 + $0x70] sm:$0xf] %v912_v37  ;;  %v6951_v26 = vrot.slane %v4091_v21, 9  ;;  %v1154_v47 = vld [vmem:[#allocation2 + $0x80] sm:$0x1] }
  0xaa   : > { %1149 = vst [vmem:[#allocation2 + $0x74] sm:$0x1] %v1148_v63  ;;  %v6982_v52 = vcombine.low %v9300_v59, %v9312_v30  ;;  %v594_v54 = vadd.f32 %v9146_v4, %v556_v34  ;;  %v595_v39 = vadd.f32 %v9146_v4, %v557_v23  ;;  %v558_v35 = vmul.f32 %v9129_v22, %v7284_v33  ;;  %v8404_v33 = vld [vmem:[%s10759_s5 + $0x198] sm:$0xff]  }
  0xab   : > { %v559_v9 = vmul.f32 %v9129_v22, %v7285_v10  ;;  %v4181_v7 = vrot.slane %v9105_v5, 5  ;;  %v4184_v31 = vrot.slane %v9141_v56, 5  ;;  %v6952_v49 = vrot.slane %v4092_v36, 9 }
  0xac   : > { %v626_v45 = vmax.f32 %v594_v54, 0.0  ;;  %v627_v48 = vmax.f32 %v595_v39, 0.0  ;;  %v596_v41 = vadd.f32 %v9146_v4, %v558_v35  ;;  %v4188_v61 = vrot.slane %v9135_v29, 5  ;;  %v1157_v54 = vld [vmem:[#allocation2 + $0x84] sm:$0xf] }
  0xad   : > { %7898 = vmatmul.mubr.bf16.vlgmr.msra.gmra.mrb[0].mxu0 %v6980_v40  ;;  %v597_v44 = vadd.f32 %v9146_v4, %v559_v9  ;;  %v4182_v51 = vsel %vm9197_vm14, %v6951_v26, %v4181_v7  ;;  %v4183_v11 = vrot.slane %v4181_v7, 4  ;;  %v4191_v50 = vrot.slane %v9162_v28, 5  ;;  %v1161_v26 = vld [vmem:[#allocation2 + $0x8c] sm:$0x1]  ;;  %v7405_v7 = vld [vmem:[%s8689_s9 + $0x58] sm:$0xff]  }
  0xae   : > { %7930 = vmatpush3.bf16.msra.mxu0 %v9050_v20  ;;  %7901 = vmatprep.mubr.bf16.mxu0 %v6981_v53  ;;  %v7196_v5 = vpack.c.bf16 %v626_v45, %v626_v45  ;;  %v7197_v56 = vpack.c.bf16 %v627_v48, %v627_v48  ;;  %v628_v16 = vmax.f32 %v596_v41, 0.0  ;;  %v9339_v3 = vsel %vm9197_vm14, %v6952_v49, %v4188_v61  ;;  %v8402_v20 = vld [vmem:[%s10759_s5 + $0x190] sm:$0xff]   ;;  %v7406_v49 = vld [vmem:[%s8689_s9 + $0x60] sm:$0xff]  }
  0xaf   : > { %7931 = vmatprep.subr.bf16.mxu0 %v8400_v2  ;;  %v629_v19 = vmax.f32 %v597_v44, 0.0  ;;  %v4185_v55 = vsel %vm9197_vm14, %v4183_v11, %v4184_v31  ;;  %v4190_v40 = vrot.slane %v4188_v61, 4  ;;  %v1327_v29 = vld [vmem:[#allocation2 + $0x6c] sm:$0x1]  ;;  %v9364_v61 = vld [vmem:[#allocation2 + $0x54] sm:$0xe] }
  0xb0   : > { %v915_v58 = vshrl.u32 %v7196_v5, 16  ;;  %v918_v57 = vshll.u32 %v7196_v5, 16  ;;  %v923_v53 = vshrl.u32 %v7197_v56, 16  ;;  %v926_v12 = vshll.u32 %v7197_v56, 16  ;;  %v1431_v60 = vld [vmem:[#allocation2 + $0x70] sm:$0xf] }
  0xb1   : > { %v1328_v28 = vsel %vm8767_vm7, 0, %v1327_v29  ;;  %v1382_v25 = vld [vmem:[#allocation2 + $0x74] sm:$0x1]  ;;  %v7198_v42 = vpack.c.bf16 %v628_v16, %v628_v16  ;;  %v7199_v32 = vpack.c.bf16 %v629_v19, %v629_v19  ;;  %v6983_v15 = vcombine.low %v4182_v51, %v4185_v55  ;;  %v8407_v5 = vld [vmem:[%s10759_s5 + $0x1a0] sm:$0xff]  }
  0xb2   : > { %1329 = vst [vmem:[#allocation2 + $0x6c] sm:$0x1] %v1328_v28  ;;  %v1383_v21 = vsel %vm8800_vm8, 0, %v1382_v25  ;;  %v1705_v13 = vshll.u32 %v1431_v60, 16  ;;  %v1709_v6 = vshrl.u32 %v1431_v60, 16  ;;  %v917_v59 = vrot.slane %v915_v58, 7  ;;  %7932 = vmatpush3.bf16.msra.mxu0 %v8400_v2 }
  0xb3   : > { %1384 = vst [vmem:[#allocation2 + $0x74] sm:$0x1] %v1383_v21  ;;  %v925_v36 = vrot.slane %v923_v53, 7  ;;  %v932_v24 = vshrl.u32 %v7198_v42, 16  ;;  %v935_v34 = vshll.u32 %v7198_v42, 16  ;;  %v940_v23 = vshrl.u32 %v7199_v32, 16  ;;  %7933 = vmatprep.subr.bf16.mxu0 %v8402_v20 }
  0xb4   : > { %v9351_v37 = vrot.slane %v1705_v13, 5  ;;  %v1711_v63 = vrot.slane %v1709_v6, 4  ;;  %v920_v30 = vor.u32 %v918_v57, %v917_v59  ;;  %v921_v10 = vrot.slane %v917_v59, 4 }
  0xb5   : > { %7902 = vmatmul.mubr.bf16.gmra.mrb[4].mxu0 %v6982_v52  ;;  %v928_v39 = vor.u32 %v926_v12, %v925_v36  ;;  %v930_v35 = vrot.slane %v925_v36, 4  ;;  %v934_v2 = vrot.slane %v932_v24, 7  ;;  %v942_v9 = vrot.slane %v940_v23, 7 }
  0xb6   : > { %v1712_v31 = vor.u32 %v1711_v63, %v9351_v37  ;;  %v1151_v45 = vsel %vm8759_vm6, %v920_v30, %v1150_v38  ;;  %v943_v48 = vshll.u32 %v7199_v32, 16  ;;  %7905 = vmatprep.mubr.bf16.mxu0 %v6983_v15  ;;  %v4192_v41 = vsel %vm9197_vm14, %v4190_v40, %v4191_v50  ;;  %7934 = vmatpush3.bf16.msra.mxu0 %v8402_v20  ;;  %v8411_v32 = vld [vmem:[%s10759_s5 + $0x1a8] sm:$0xff]  }
  0xb7   : > { %v929_v52 = vsel %vm8738_vm5, %v921_v10, %v928_v39  ;;  %1152 = vst [vmem:[#allocation2 + $0x78] sm:$0xf] %v1151_v45  ;;  %v1155_v44 = vsel %vm8767_vm7, %v930_v35, %v1154_v47  ;;  %v937_v51 = vor.u32 %v935_v34, %v934_v2  ;;  %v938_v11 = vrot.slane %v934_v2, 4  ;;  %7935 = vmatprep.subr.bf16.mxu0 %v8404_v33  ;;  %v8415_v10 = vld [vmem:[%s10759_s5 + $0x1b0] sm:$0xff]  }
  0xb8   : > { %v9369_v56 = vrot.slane %v1712_v31, 4  ;;  %1153 = vst [vmem:[#allocation2 + $0x7c] sm:$0xf] %v929_v52  ;;  %1156 = vst [vmem:[#allocation2 + $0x80] sm:$0x1] %v1155_v44  ;;  %v945_v16 = vor.u32 %v943_v48, %v942_v9  ;;  %v947_v50 = vrot.slane %v942_v9, 4  ;;  %v6984_v19 = vcombine.low %v9339_v3, %v4192_v41 }
  0xb9   : > { %v1430_v55 = vld [vmem:[#allocation2 + $0x6c] sm:$0xf]  ;;  %v1158_v40 = vsel %vm8759_vm6, %v937_v51, %v1157_v54  ;;  %v7288_v20 = vunpack.c.l.bf16 %v7405_v7  ;;  %v7289_v29 = vunpack.c.h.bf16 %v7405_v7  ;;  %v7292_v58 = vunpack.c.l.bf16 %v7406_v49 }
  0xba   : > { %v1469_v57 = vld [vmem:[#allocation2 + $0x74] sm:$0x1]  ;;  %v1696_v53 = vshrl.u32 %v1430_v55, 16  ;;  %v1699_v12 = vshll.u32 %v1430_v55, 16  ;;  %v946_v28 = vsel %vm8738_vm5, %v938_v11, %v945_v16  ;;  %1159 = vst [vmem:[#allocation2 + $0x84] sm:$0xf] %v1158_v40  ;;  %v1162_v25 = vsel %vm8767_vm7, %v947_v50, %v1161_v26  ;;  %7936 = vmatpush3.bf16.msra.mxu0 %v8404_v33 }
  0xbb   : > { %v1715_v60 = vshll.u32 %v1469_v57, 16  ;;  %1160 = vst [vmem:[#allocation2 + $0x88] sm:$0xf] %v946_v28  ;;  %1163 = vst [vmem:[#allocation2 + $0x8c] sm:$0x1] %v1162_v25  ;;  %v560_v3 = vmul.f32 %v9129_v22, %v7288_v20  ;;  %v561_v38 = vmul.f32 %v9129_v22, %v7289_v29  ;;  %v7293_v42 = vunpack.c.h.bf16 %v7406_v49  ;;  %7937 = vmatprep.subr.bf16.mxu0 %v8407_v5 }
  0xbc   : > { %v1698_v15 = vrot.slane %v1696_v53, 4  ;;  %v1701_v21 = vrot.slane %v1699_v12, 5  ;;  %v562_v13 = vmul.f32 %v9129_v22, %v7292_v58  ;;  %v6953_v6 = vrot.slane %v9364_v61, 9  ;;  %v1164_v53 = vld [vmem:[#allocation2 + $0x90] sm:$0xf] }
  0xbd   : > { %v1717_v59 = vrot.slane %v1715_v60, 5  ;;  %7906 = vmatmul.mubr.bf16.gmra.mrb[8].mxu0 %v6984_v19  ;;  %v598_v47 = vadd.f32 %v9146_v4, %v560_v3  ;;  %v599_v36 = vadd.f32 %v9146_v4, %v561_v38  ;;  %v563_v24 = vmul.f32 %v9129_v22, %v7293_v42 }
  0xbe   : > { %v1702_v34 = vor.u32 %v1701_v21, %v1698_v15  ;;  %v1330_v23 = vld [vmem:[#allocation2 + $0x78] sm:$0x1]  ;;  %v600_v33 = vadd.f32 %v9146_v4, %v562_v13  ;;  %v4195_v63 = vrot.slane %v9184_v0, 5  ;;  %v4198_v30 = vrot.slane %v9227_v18, 5  ;;  %7938 = vmatpush3.bf16.msra.mxu0 %v8407_v5 }
  0xbf   : > { %v1718_v54 = vsel %vm8870_vm11, %v9369_v56, %v1717_v59  ;;  %v1331_v22 = vsel %vm8767_vm7, 0, %v1330_v23  ;;  %v1385_v39 = vld [vmem:[#allocation2 + $0x80] sm:$0x1]  ;;  %v9399_v35 = vld [vmem:[#allocation2 + $0x7c] sm:$0xf]  ;;  %v630_v2 = vmax.f32 %v598_v47, 0.0  ;;  %v601_v9 = vadd.f32 %v9146_v4, %v563_v24  ;;  %7939 = vmatprep.subr.bf16.mxu0 %v8411_v32 }
  0xc0   : > { %v1703_v26 = vrot.slane %v1702_v34, 4  ;;  %1332 = vst [vmem:[#allocation2 + $0x78] sm:$0x1] %v1331_v22  ;;  %v1386_v7 = vsel %vm8800_vm8, 0, %v1385_v39  ;;  %v1729_v31 = vshll.u32 %v9399_v35, 16  ;;  %v1733_v45 = vshrl.u32 %v9399_v35, 16 }
  0xc1   : > { %1387 = vst [vmem:[#allocation2 + $0x80] sm:$0x1] %v1386_v7  ;;  %v1333_v48 = vld [vmem:[#allocation2 + $0x84] sm:$0x1]  ;;  %v631_v41 = vmax.f32 %v599_v36, 0.0  ;;  %v7200_v49 = vpack.c.bf16 %v630_v2, %v630_v2  ;;  %v632_v52 = vmax.f32 %v600_v33, 0.0 }
  0xc2   : > { %v633_v44 = vmax.f32 %v601_v9, 0.0  ;;  %v1708_v4 = vsel %vm8870_vm11, %v1703_v26, %v9351_v37  ;;  %v9409_v51 = vrot.slane %v1729_v31, 5  ;;  %v1735_v11 = vrot.slane %v1733_v45, 4  ;;  %v1388_v56 = vld [vmem:[#allocation2 + $0x8c] sm:$0x1]  ;;  %7940 = vmatpush3.bf16.msra.mxu0 %v8411_v32  ;;  %v8419_v37 = vld [vmem:[%s10759_s5 + $0x1b8] sm:$0xff]  }
  0xc3   : > { %v1334_v5 = vsel %vm8767_vm7, 0, %v1333_v48  ;;  %v6772_v16 = vcombine.low %v1708_v4, %v1718_v54  ;;  %v1389_v50 = vsel %vm8800_vm8, 0, %v1388_v56  ;;  %v9415_v19 = vld [vmem:[#allocation2 + $0x88] sm:$0xf]  ;;  %v7201_v55 = vpack.c.bf16 %v631_v41, %v631_v41  ;;  %7941 = vmatprep.subr.bf16.mxu0 %v8415_v10  ;;  %v8425_v36 = vld [vmem:[%s10759_s5 + $0x1c0] sm:$0xff]  }
  0xc4   : > { %1335 = vst [vmem:[#allocation2 + $0x84] sm:$0x1] %v1334_v5  ;;  %v949_v40 = vshrl.u32 %v7200_v49, 16  ;;  %v1736_v20 = vor.u32 %v1735_v11, %v9409_v51  ;;  %1390 = vst [vmem:[#allocation2 + $0x8c] sm:$0x1] %v1389_v50  ;;  %v1753_v29 = vshll.u32 %v9415_v19, 16  ;;  %v7202_v60 = vpack.c.bf16 %v632_v52, %v632_v52 }
  0xc5   : > { %v1757_v58 = vshrl.u32 %v9415_v19, 16  ;;  %v952_v57 = vshll.u32 %v7200_v49, 16  ;;  %7674 = vmatmul.mubr.bf16.gmra.mrb[16].mxu1 %v6772_v16  ;;  %v957_v28 = vshrl.u32 %v7201_v55, 16  ;;  %v960_v25 = vshll.u32 %v7201_v55, 16  ;;  %v1168_v9 = vld [vmem:[#allocation2 + $0x98] sm:$0x1] }
  0xc6   : > { %v951_v12 = vrot.slane %v949_v40, 7  ;;  %v1737_v3 = vrot.slane %v1736_v20, 4  ;;  %v9423_v38 = vrot.slane %v1753_v29, 5  ;;  %v9425_v32 = vpack.c.bf16 %v633_v44, %v633_v44  ;;  %7942 = vmatpush3.bf16.msra.mxu0 %v8415_v10  ;;  %v1171_v50 = vld [vmem:[#allocation2 + $0x9c] sm:$0xf] }
  0xc7   : > { %v1759_v42 = vrot.slane %v1757_v58, 4  ;;  %v9427_v15 = vld [vmem:[#allocation2 + $0x78] sm:$0xf]  ;;  %v959_v59 = vrot.slane %v957_v28, 7  ;;  %v966_v47 = vshrl.u32 %v7202_v60, 16  ;;  %7943 = vmatprep.subr.bf16.mxu0 %v8419_v37  ;;  %v969_v54 = vshll.u32 %v7202_v60, 16 }
  0xc8   : > { %v954_v21 = vor.u32 %v952_v57, %v951_v12  ;;  %v955_v13 = vrot.slane %v951_v12, 4  ;;  %v1470_v24 = vld [vmem:[#allocation2 + $0x80] sm:$0x1]  ;;  %v1720_v34 = vshrl.u32 %v9427_v15, 16  ;;  %v1723_v23 = vshll.u32 %v9427_v15, 16 }
  0xc9   : > { %v1760_v33 = vor.u32 %v1759_v42, %v9423_v38  ;;  %v1739_v10 = vshll.u32 %v1470_v24, 16  ;;  %v962_v22 = vor.u32 %v960_v25, %v959_v59  ;;  %v964_v39 = vrot.slane %v959_v59, 4  ;;  %v4094_v29 = vld [vmem:[#allocation2 + $0x60] sm:$0xe]  ;;  %v7407_v59 = vld [vmem:[%s8689_s9 + $0x68] sm:$0xff]  }
  0xca   : > { %v1165_v2 = vsel %vm8759_vm6, %v954_v21, %v1164_v53  ;;  %v1722_v26 = vrot.slane %v1720_v34, 4  ;;  %v1725_v7 = vrot.slane %v1723_v23, 5  ;;  %v968_v48 = vrot.slane %v966_v47, 7  ;;  %7944 = vmatpush3.bf16.msra.mxu0 %v8419_v37  ;;  %v1175_v24 = vld [vmem:[#allocation2 + $0xa4] sm:$0x1] }
  0xcb   : > { %v9437_v31 = vld [vmem:[#allocation2 + $0x84] sm:$0xf]  ;;  %v1761_v45 = vrot.slane %v1760_v33, 4  ;;  %1166 = vst [vmem:[#allocation2 + $0x90] sm:$0xf] %v1165_v2  ;;  %v1741_v41 = vrot.slane %v1739_v10, 5  ;;  %v963_v4 = vsel %vm8738_vm5, %v955_v13, %v962_v22  ;;  %7977 = vmatprep.subr.bf16.mxu0 %v8425_v36  ;;  %v1169_v56 = vsel %vm8767_vm7, %v964_v39, %v1168_v9 }
  0xcc   : > { %v1471_v49 = vld [vmem:[#allocation2 + $0x8c] sm:$0x1]  ;;  %v1744_v52 = vshrl.u32 %v9437_v31, 16  ;;  %v1747_v44 = vshll.u32 %v9437_v31, 16  ;;  %v1726_v11 = vor.u32 %v1725_v7, %v1722_v26  ;;  %1167 = vst [vmem:[#allocation2 + $0x94] sm:$0xf] %v963_v4  ;;  %v971_v16 = vor.u32 %v969_v54, %v968_v48 }
  0xcd   : > { %v1763_v5 = vshll.u32 %v1471_v49, 16  ;;  %v1742_v55 = vsel %vm8870_vm11, %v1737_v3, %v1741_v41  ;;  %1170 = vst [vmem:[#allocation2 + $0x98] sm:$0x1] %v1169_v56  ;;  %v972_v20 = vrot.slane %v968_v48, 4  ;;  %v974_v53 = vshrl.u32 %v9425_v32, 16  ;;  %v7408_v33 = vld [vmem:[%s8689_s9 + $0x70] sm:$0xff]  }
  0xce   : > { %v1746_v40 = vrot.slane %v1744_v52, 4  ;;  %v1749_v37 = vrot.slane %v1747_v44, 5  ;;  %v1727_v58 = vrot.slane %v1726_v11, 4  ;;  %v977_v12 = vshll.u32 %v9425_v32, 16  ;;  %v4095_v22 = vld [vmem:[#allocation2 + $0x6c] sm:$0xe] }
  0xcf   : > { %v1765_v57 = vrot.slane %v1763_v5, 5  ;;  %v1172_v25 = vsel %vm8759_vm6, %v971_v16, %v1171_v50  ;;  %v4196_v60 = vsel %vm9197_vm14, %v6953_v6, %v4195_v63  ;;  %v4197_v3 = vrot.slane %v4195_v63, 4  ;;  %v3358_v41 = vld [vmem:[#allocation2 + $0x70] sm:$0xf]  ;;  %v3359_v11 = vld [vmem:[#allocation2 + $0x74] sm:$0x1] }
  0xd0   : > { %v1750_v28 = vor.u32 %v1749_v37, %v1746_v40  ;;  %v1732_v42 = vsel %vm8870_vm11, %v1727_v58, %v9409_v51  ;;  %v976_v21 = vrot.slane %v974_v53, 7  ;;  %1173 = vst [vmem:[#allocation2 + $0x9c] sm:$0xf] %v1172_v25  ;;  %v6954_v13 = vrot.slane %v4094_v29, 9  ;;  %v9496_v56 = vld [vmem:[%s10757_s3] ss:$0 sm:$0xff] }
  0xd1   : > { %v1766_v32 = vsel %vm8870_vm11, %v1761_v45, %v1765_v57  ;;  %v6773_v47 = vcombine.low %v1732_v42, %v1742_v55  ;;  %v4199_v0 = vsel %vm9197_vm14, %v4197_v3, %v4198_v30  ;;  %v4202_v6 = vrot.slane %v9229_v27, 5  ;;  %v9506_v57 = vld [vmem:[%s10758_s4] ss:$0 sm:$0xff] }
  0xd2   : > { %v1751_v61 = vrot.slane %v1750_v28, 4  ;;  %v1336_v36 = vld [vmem:[#allocation2 + $0x90] sm:$0x1]  ;;  %v979_v51 = vor.u32 %v977_v12, %v976_v21  ;;  %v981_v34 = vrot.slane %v976_v21, 4  ;;  %v6985_v23 = vcombine.low %v4196_v60, %v4199_v0 }
  0xd3   : > { %v1337_v63 = vsel %vm8767_vm7, 0, %v1336_v36  ;;  %7677 = vmatprep.mubr.bf16.mxu1 %v6773_v47  ;;  %v9476_v10 = vld [vmem:[#allocation2 + $0x94] sm:$0xf]  ;;  %v4203_v18 = vsel %vm9197_vm14, %v6954_v13, %v4202_v6  ;;  %v4204_v30 = vrot.slane %v4202_v6, 4  ;;  %v4205_v27 = vrot.slane %v9267_v17, 5 }
  0xd4   : > { %v1756_v54 = vsel %vm8870_vm11, %v1751_v61, %v9423_v38  ;;  %1338 = vst [vmem:[#allocation2 + $0x90] sm:$0x1] %v1337_v63  ;;  %v1391_v2 = vld [vmem:[#allocation2 + $0x98] sm:$0x1]  ;;  %v1777_v9 = vshll.u32 %v9476_v10, 16  ;;  %v1781_v26 = vshrl.u32 %v9476_v10, 16  ;;  %v980_v7 = vsel %vm8738_vm5, %v972_v20, %v979_v51  ;;  %7909 = vmatprep.mubr.bf16.mxu0 %v6985_v23 }
  0xd5   : > { %v6774_v39 = vcombine.low %v1756_v54, %v1766_v32  ;;  %v1392_v38 = vsel %vm8800_vm8, 0, %v1391_v2  ;;  %1174 = vst [vmem:[#allocation2 + $0xa0] sm:$0xf] %v980_v7  ;;  %v1176_v45 = vsel %vm8767_vm7, %v981_v34, %v1175_v24  ;;  %v4206_v17 = vsel %vm9197_vm14, %v4204_v30, %v4205_v27 }
  0xd6   : > { %v7296_v48 = vunpack.c.l.bf16 %v7407_v59  ;;  %1393 = vst [vmem:[#allocation2 + $0x98] sm:$0x1] %v1392_v38  ;;  %v9491_v49 = vrot.slane %v1777_v9, 5  ;;  %v1783_v52 = vrot.slane %v1781_v26, 4  ;;  %1177 = vst [vmem:[#allocation2 + $0xa4] sm:$0x1] %v1176_v45  ;;  %v6986_v44 = vcombine.low %v4203_v18, %v4206_v17 }
  0xd7   : > { %7678 = vmatmul.mubr.bf16.gmra.mrb[20].mxu1 %v6774_v39  ;;  %v7297_v4 = vunpack.c.h.bf16 %v7407_v59  ;;  %v1339_v5 = vld [vmem:[#allocation2 + $0x9c] sm:$0x1]  ;;  %v7300_v50 = vunpack.c.l.bf16 %v7408_v33  ;;  %v7301_v55 = vunpack.c.h.bf16 %v7408_v33  ;;  %v6955_v40 = vrot.slane %v4095_v22, 9 }
  0xd8   : > { %v564_v16 = vmul.f32 %v9496_v56, %v7296_v48  ;;  %v1784_v37 = vor.u32 %v1783_v52, %v9491_v49  ;;  %v1340_v20 = vsel %vm8767_vm7, 0, %v1339_v5  ;;  %7910 = vmatmul.mubr.bf16.gmra.mrb[12].mxu0 %v6986_v44  ;;  %v4209_v58 = vrot.slane %v3358_v41, 5 }
  0xd9   : > { %v565_v29 = vmul.f32 %v9496_v56, %v7297_v4  ;;  %1341 = vst [vmem:[#allocation2 + $0x9c] sm:$0x1] %v1340_v20  ;;  %v566_v12 = vmul.f32 %v9496_v56, %v7300_v50  ;;  %v567_v28 = vmul.f32 %v9496_v56, %v7301_v55  ;;  %v4212_v25 = vrot.slane %v3359_v11, 5  ;;  %v1178_v55 = vld [vmem:[#allocation2 + $0xa8] sm:$0xf] }
  0xda   : > { %v602_v53 = vadd.f32 %v9506_v57, %v564_v16  ;;  %v4210_v42 = vsel %vm9197_vm14, %v6955_v40, %v4209_v58  ;;  %v4211_v32 = vrot.slane %v4209_v58, 4  ;;  %v1785_v59 = vrot.slane %v1784_v37, 4 }
  0xdb   : > { %v9511_v60 = vld [vmem:[#allocation2 + $0x90] sm:$0xf]  ;;  %v603_v3 = vadd.f32 %v9506_v57, %v565_v29  ;;  %v604_v24 = vadd.f32 %v9506_v57, %v566_v12  ;;  %v605_v0 = vadd.f32 %v9506_v57, %v567_v28 }
  0xdc   : > { %v1768_v21 = vshrl.u32 %v9511_v60, 16  ;;  %v1771_v13 = vshll.u32 %v9511_v60, 16  ;;  %v634_v47 = vmax.f32 %v602_v53, 0.0  ;;  %v9518_v61 = vld [vmem:[#allocation2 + $0xa0] sm:$0xf]  ;;  %v4213_v6 = vsel %vm9197_vm14, %v4211_v32, %v4212_v25 }
  0xdd   : > { %v635_v36 = vmax.f32 %v603_v3, 0.0  ;;  %v1472_v63 = vld [vmem:[#allocation2 + $0x98] sm:$0x1]  ;;  %v1394_v23 = vld [vmem:[#allocation2 + $0xa4] sm:$0x1]  ;;  %v6987_v54 = vcombine.low %v4210_v42, %v4213_v6  ;;  %v1801_v27 = vshll.u32 %v9518_v61, 16 }
  0xde   : > { %v1770_v51 = vrot.slane %v1768_v21, 4  ;;  %v1773_v34 = vrot.slane %v1771_v13, 5  ;;  %v7204_v33 = vpack.c.bf16 %v634_v47, %v634_v47  ;;  %v1787_v18 = vshll.u32 %v1472_v63, 16  ;;  %v1182_v3 = vld [vmem:[#allocation2 + $0xb0] sm:$0x1] }
  0xdf   : > { %v1395_v30 = vsel %vm8800_vm8, 0, %v1394_v23  ;;  %v1805_v22 = vshrl.u32 %v9518_v61, 16  ;;  %v7205_v2 = vpack.c.bf16 %v635_v36, %v635_v36  ;;  %7913 = vmatprep.mubr.bf16.mxu0 %v6987_v54  ;;  %v1803_v45 = vrot.slane %v1801_v27, 5  ;;  %v4096_v63 = vld [vmem:[#allocation2 + $0x78] sm:$0xe] }
  0xe0   : > { %v1774_v39 = vor.u32 %v1773_v34, %v1770_v51  ;;  %1396 = vst [vmem:[#allocation2 + $0xa4] sm:$0x1] %v1395_v30  ;;  %v983_v9 = vshrl.u32 %v7204_v33, 16  ;;  %v986_v26 = vshll.u32 %v7204_v33, 16  ;;  %v1789_v7 = vrot.slane %v1787_v18, 5 }
  0xe1   : > { %v9528_v38 = vld [vmem:[#allocation2 + $0x9c] sm:$0xf]  ;;  %v1807_v17 = vrot.slane %v1805_v22, 4  ;;  %v636_v48 = vmax.f32 %v604_v24, 0.0  ;;  %v991_v16 = vshrl.u32 %v7205_v2, 16  ;;  %v994_v50 = vshll.u32 %v7205_v2, 16 }
  0xe2   : > { %v1775_v41 = vrot.slane %v1774_v39, 4  ;;  %v1792_v52 = vshrl.u32 %v9528_v38, 16  ;;  %v1795_v44 = vshll.u32 %v9528_v38, 16  ;;  %v985_v4 = vrot.slane %v983_v9, 7  ;;  %v9545_v30 = vld [vmem:[#allocation2 + $0x7c] sm:$0xf] }
  0xe3   : > { %v1790_v11 = vsel %vm8870_vm11, %v1785_v59, %v1789_v7  ;;  %v1808_v5 = vor.u32 %v1807_v17, %v1803_v45  ;;  %v993_v12 = vrot.slane %v991_v16, 7  ;;  %v637_v42 = vmax.f32 %v605_v0, 0.0  ;;  %v1185_v22 = vld [vmem:[#allocation2 + $0xb4] sm:$0xf]  ;;  %v9547_v39 = vld [vmem:[#allocation2 + $0x80] sm:$0x1] }
  0xe4   : > { %v1780_v40 = vsel %vm8870_vm11, %v1775_v41, %v9491_v49  ;;  %v1794_v37 = vrot.slane %v1792_v52, 4  ;;  %v1797_v20 = vrot.slane %v1795_v44, 5  ;;  %v988_v29 = vor.u32 %v986_v26, %v985_v4  ;;  %v3364_v52 = vld [vmem:[#allocation2 + $0x88] sm:$0xf]  ;;  %v4097_v44 = vld [vmem:[#allocation2 + $0x84] sm:$0xe] }
  0xe5   : > { %v6775_v58 = vcombine.low %v1780_v40, %v1790_v11  ;;  %v989_v53 = vrot.slane %v985_v4, 4  ;;  %v7206_v32 = vpack.c.bf16 %v636_v48, %v636_v48  ;;  %v1809_v13 = vrot.slane %v1808_v5, 4  ;;  %v1189_v48 = vld [vmem:[#allocation2 + $0xbc] sm:$0x1] }
  0xe6   : > { %v1798_v28 = vor.u32 %v1797_v20, %v1794_v37  ;;  %v1179_v25 = vsel %vm8759_vm6, %v988_v29, %v1178_v55  ;;  %v996_v59 = vor.u32 %v994_v50, %v993_v12  ;;  %v998_v47 = vrot.slane %v993_v12, 4  ;;  %v3365_v55 = vld [vmem:[#allocation2 + $0x8c] sm:$0x1]  ;;  %v3367_v29 = vld [vmem:[#allocation2 + $0x94] sm:$0xf] }
  0xe7   : > { %7681 = vmatprep.mubr.bf16.mxu1 %v6775_v58  ;;  %v1473_v21 = vld [vmem:[#allocation2 + $0xa4] sm:$0x1]  ;;  %1180 = vst [vmem:[#allocation2 + $0xa8] sm:$0xf] %v1179_v25  ;;  %v7207_v24 = vpack.c.bf16 %v637_v42, %v637_v42  ;;  %v1000_v6 = vshrl.u32 %v7206_v32, 16  ;;  %v1003_v23 = vshll.u32 %v7206_v32, 16 }
  0xe8   : > { %v1799_v49 = vrot.slane %v1798_v28, 4  ;;  %v1811_v36 = vshll.u32 %v1473_v21, 16  ;;  %v997_v51 = vsel %vm8738_vm5, %v989_v53, %v996_v59  ;;  %v1183_v34 = vsel %vm8767_vm7, %v998_v47, %v1182_v3  ;;  %v4098_v58 = vld [vmem:[#allocation2 + $0x90] sm:$0xe]  ;;  %v3368_v25 = vld [vmem:[#allocation2 + $0x98] sm:$0x1] }
  0xe9   : > { %1181 = vst [vmem:[#allocation2 + $0xac] sm:$0xf] %v997_v51  ;;  %1184 = vst [vmem:[#allocation2 + $0xb0] sm:$0x1] %v1183_v34  ;;  %v1002_v54 = vrot.slane %v1000_v6, 7  ;;  %v1008_v18 = vshrl.u32 %v7207_v24, 16 }
  0xea   : > { %v1804_v0 = vsel %vm8870_vm11, %v1799_v49, %v1803_v45  ;;  %v1813_v33 = vrot.slane %v1811_v36, 5  ;;  %v1011_v27 = vshll.u32 %v7207_v24, 16  ;;  %v6956_v2 = vrot.slane %v4096_v63, 9  ;;  %v4099_v3 = vld [vmem:[#allocation2 + $0x9c] sm:$0xe] }
  0xeb   : > { %v1005_v26 = vor.u32 %v1003_v23, %v1002_v54  ;;  %v1006_v7 = vrot.slane %v1002_v54, 4  ;;  %v1010_v17 = vrot.slane %v1008_v18, 7  ;;  %v4216_v41 = vrot.slane %v9545_v30, 5  ;;  %v3370_v47 = vld [vmem:[#allocation2 + $0xa0] sm:$0xf] }
  0xec   : > { %v1814_v9 = vsel %vm8870_vm11, %v1809_v13, %v1813_v33  ;;  %v4219_v50 = vrot.slane %v9547_v39, 5  ;;  %v6957_v28 = vrot.slane %v4097_v44, 9  ;;  %v4223_v13 = vrot.slane %v3364_v52, 5  ;;  %v3371_v49 = vld [vmem:[#allocation2 + $0xa4] sm:$0x1] }
  0xed   : > { %v6776_v45 = vcombine.low %v1804_v0, %v1814_v9  ;;  %v1013_v11 = vor.u32 %v1011_v27, %v1010_v17  ;;  %v1015_v5 = vrot.slane %v1010_v17, 4  ;;  %v1186_v16 = vsel %vm8759_vm6, %v1005_v26, %v1185_v22 }
  0xee   : > { %v1342_v4 = vld [vmem:[#allocation2 + $0xa8] sm:$0x1]  ;;  %1187 = vst [vmem:[#allocation2 + $0xb4] sm:$0xf] %v1186_v16  ;;  %v4217_v37 = vsel %vm9197_vm14, %v6956_v2, %v4216_v41  ;;  %v4218_v20 = vrot.slane %v4216_v41, 4  ;;  %v4226_v59 = vrot.slane %v3365_v55, 5  ;;  %v4224_v34 = vsel %vm9197_vm14, %v6957_v28, %v4223_v13 }
  0xef   : > { %7682 = vmatmul.mubr.bf16.gmra.mrb[24].mxu1 %v6776_v45  ;;  %v1343_v40 = vsel %vm8767_vm7, 0, %v1342_v4  ;;  %v1014_v53 = vsel %vm8738_vm5, %v1006_v7, %v1013_v11  ;;  %v1190_v12 = vsel %vm8767_vm7, %v1015_v5, %v1189_v48  ;;  %v4100_v51 = vld [vmem:[#allocation2 + $0xa8] sm:$0xe]  ;;  %v4225_v23 = vrot.slane %v4223_v13, 4 }
  0xf0   : > { %1344 = vst [vmem:[#allocation2 + $0xa8] sm:$0x1] %v1343_v40  ;;  %v1397_v42 = vld [vmem:[#allocation2 + $0xb0] sm:$0x1]  ;;  %v9563_v32 = vld [vmem:[#allocation2 + $0xac] sm:$0xf]  ;;  %v4220_v21 = vsel %vm9197_vm14, %v4218_v20, %v4219_v50 }
  0xf1   : > { %1188 = vst [vmem:[#allocation2 + $0xb8] sm:$0xf] %v1014_v53  ;;  %1191 = vst [vmem:[#allocation2 + $0xbc] sm:$0x1] %v1190_v12  ;;  %v1398_v36 = vsel %vm8800_vm8, 0, %v1397_v42  ;;  %v1825_v24 = vshll.u32 %v9563_v32, 16  ;;  %v6988_v63 = vcombine.low %v4217_v37, %v4220_v21  ;;  %v4227_v2 = vsel %vm9197_vm14, %v4225_v23, %v4226_v59 }
  0xf2   : > { %v1829_v6 = vshrl.u32 %v9563_v32, 16  ;;  %1399 = vst [vmem:[#allocation2 + $0xb0] sm:$0x1] %v1398_v36  ;;  %v6958_v0 = vrot.slane %v4098_v58, 9  ;;  %v4230_v33 = vrot.slane %v3367_v29, 5  ;;  %v4233_v27 = vrot.slane %v3368_v25, 5 }
  0xf3   : > { %v9573_v54 = vrot.slane %v1825_v24, 5  ;;  %7914 = vmatmul.mubr.bf16.gmra.mrb[16].mxu0 %v6988_v63  ;;  %v3373_v22 = vld [vmem:[#allocation2 + $0xac] sm:$0xf]  ;;  %v6959_v7 = vrot.slane %v4099_v3, 9  ;;  %v6989_v45 = vcombine.low %v4224_v34, %v4227_v2  ;;  %v4237_v41 = vrot.slane %v3370_v47, 5  ;;  %v7409_v23 = vld [vmem:[%s8689_s9 + $0x78] sm:$0xff]  }
  0xf4   : > { %v1831_v18 = vrot.slane %v1829_v6, 4  ;;  %v4231_v9 = vsel %vm9197_vm14, %v6958_v0, %v4230_v33  ;;  %v4232_v26 = vrot.slane %v4230_v33, 4  ;;  %v4240_v52 = vrot.slane %v3371_v49, 5  ;;  %s7176_s9 = sadd.s32 120, %s8677_s21  ;;  %s6708_s21 = sshll.u32 %s10852_s24, 1 }
  0xf5   : > { %v1345_v48 = vld [vmem:[#allocation2 + $0xb4] sm:$0x1]  ;;  %v6960_v5 = vrot.slane %v4100_v51, 9  ;;  %v4244_v16 = vrot.slane %v3373_v22, 5  ;;  %7917 = vmatprep.mubr.bf16.mxu0 %v6989_v45  ;;  %v4101_v29 = vld [vmem:[#allocation2 + $0xb4] sm:$0xe]  ;;  %v4238_v12 = vsel %vm9197_vm14, %v6959_v7, %v4237_v41  ;;  %v7305_v45 = vunpack.c.h.bf16 %v7409_v23  ;;  %s442_s28 = scalar_lea.vmem %s10756_s2, %s7176_s9  ;;  %s464_s20 = scalar_lea.vmem %s10761_s7, %s6708_s21 }
  0xf6   : > { %v1832_v17 = vor.u32 %v1831_v18, %v9573_v54  ;;  %v1346_v4 = vsel %vm8767_vm7, 0, %v1345_v48  ;;  %v4234_v11 = vsel %vm9197_vm14, %v4232_v26, %v4233_v27  ;;  %v4239_v28 = vrot.slane %v4237_v41, 4 }
  0xf7   : > { %v9580_v44 = vld [vmem:[#allocation2 + $0xa8] sm:$0xf]  ;;  %1347 = vst [vmem:[#allocation2 + $0xb4] sm:$0x1] %v1346_v4  ;;  %v6990_v20 = vcombine.low %v4231_v9, %v4234_v11  ;;  %v4246_v24 = vrot.slane %v4244_v16, 4  ;;  %v6961_v18 = vrot.slane %v4101_v29, 9  ;;  %v4245_v2 = vsel %vm9197_vm14, %v6960_v5, %v4244_v16 }
  0xf8   : > { %v1816_v50 = vshrl.u32 %v9580_v44, 16  ;;  %v1819_v55 = vshll.u32 %v9580_v44, 16  ;;  %v1833_v40 = vrot.slane %v1832_v17, 4  ;;  %v1400_v37 = vld [vmem:[#allocation2 + $0xbc] sm:$0x1]  ;;  %v4241_v49 = vsel %vm9197_vm14, %v4239_v28, %v4240_v52 }
  0xf9   : > { %v1401_v58 = vsel %vm8800_vm8, 0, %v1400_v37  ;;  %v9590_v53 = vld [vmem:[#allocation2 + $0xb8] sm:$0xf]  ;;  %v1474_v3 = vld [vmem:[#allocation2 + $0xb0] sm:$0x1]  ;;  %v6991_v34 = vcombine.low %v4238_v12, %v4241_v49  ;;  %v7304_v48 = vunpack.c.l.bf16 %v7409_v23  ;;  %v569_v28 = vmul.f32 %v9496_v56, %v7305_v45 }
  0xfa   : > { %v3376_v25 = vld [vmem:[#allocation2 + $0xb8] sm:$0xf]  ;;  %v1818_v42 = vrot.slane %v1816_v50, 4  ;;  %v1821_v21 = vrot.slane %v1819_v55, 5  ;;  %1402 = vst [vmem:[#allocation2 + $0xbc] sm:$0x1] %v1401_v58 }
  0xfb   : > { %v1849_v13 = vshll.u32 %v9590_v53, 16  ;;  %v1853_v59 = vshrl.u32 %v9590_v53, 16  ;;  %v1835_v47 = vshll.u32 %v1474_v3, 16  ;;  %v3374_v36 = vld [vmem:[#allocation2 + $0xb0] sm:$0x1]  ;;  %7918 = vmatmul.mubr.bf16.gmra.mrb[20].mxu0 %v6990_v20  ;;  %v4251_v9 = vrot.slane %v3376_v25, 5 }
  0xfc   : > { %v1822_v6 = vor.u32 %v1821_v21, %v1818_v42  ;;  %v4247_v33 = vrot.slane %v3374_v36, 5  ;;  %7921 = vmatprep.mubr.bf16.mxu0 %v6991_v34  ;;  %v8495_v34 = vld [vmem:[#allocation2] sm:$0xf] }
  0xfd   : > { %v1851_v63 = vrot.slane %v1849_v13, 5  ;;  %v1855_v51 = vrot.slane %v1853_v59, 4  ;;  %v1837_v0 = vrot.slane %v1835_v47, 5  ;;  %v4253_v37 = vrot.slane %v4251_v9, 4 }
  0xfe   : > { %v1823_v27 = vrot.slane %v1822_v6, 4  ;;  %v9603_v7 = vld [vmem:[#allocation2 + $0xb4] sm:$0xf]  ;;  %v4248_v17 = vsel %vm9197_vm14, %v4246_v24, %v4247_v33  ;;  %v607_v59 = vadd.f32 %v9506_v57, %v569_v28 }
  0xff   : > { %v1856_v22 = vor.u32 %v1855_v51, %v1851_v63  ;;  %v1838_v26 = vsel %vm8870_vm11, %v1833_v40, %v1837_v0  ;;  %v1840_v52 = vshrl.u32 %v9603_v7, 16  ;;  %v1843_v4 = vshll.u32 %v9603_v7, 16  ;;  %v9624_v51 = vld [vmem:[#allocation2 + $0x4] sm:$0xf] }
 0x100   : > { %v1828_v41 = vsel %vm8870_vm11, %v1823_v27, %v9573_v54  ;;  %v6992_v50 = vcombine.low %v4245_v2, %v4248_v17  ;;  %v4252_v40 = vsel %vm9197_vm14, %v6961_v18, %v4251_v9  ;;  %v568_v54 = vmul.f32 %v9496_v56, %v7304_v48  ;;  %v9628_v48 = vld [vmem:[#allocation2 + $0x10] sm:$0xf] }
 0x101   : > { %v1857_v11 = vrot.slane %v1856_v22, 4  ;;  %v6777_v5 = vcombine.low %v1828_v41, %v1838_v26  ;;  %v1475_v16 = vld [vmem:[#allocation2 + $0xbc] sm:$0x1]  ;;  %v1842_v20 = vrot.slane %v1840_v52, 4  ;;  %v1845_v29 = vrot.slane %v1843_v4, 5 }
 0x102   : > { %v3377_v55 = vld [vmem:[#allocation2 + $0xbc] sm:$0x1]  ;;  %v1859_v58 = vshll.u32 %v1475_v16, 16  ;;  %v606_v13 = vadd.f32 %v9506_v57, %v568_v54  ;;  %v639_v24 = vmax.f32 %v607_v59, 0.0  ;;  %v6787_v23 = vcombine.low %v8495_v34, %v9624_v51  ;;  %v1192_v41 = vld [vmem:[#allocation2 + $0xc0] sm:$0xf] }
 0x103   : > { %v4254_v12 = vrot.slane %v3377_v55, 5  ;;  %7685 = vmatprep.mubr.bf16.mxu1 %v6777_v5  ;;  %v1846_v25 = vor.u32 %v1845_v29, %v1842_v20  ;;  %7922 = vmatmul.mubr.bf16.gmra.mrb[24].mxu0 %v6992_v50  ;;  %v1196_v52 = vld [vmem:[#allocation2 + $0xc8] sm:$0x1]  ;;  %v9634_v50 = vld [vmem:[#allocation2 + $0x1c] sm:$0xf]  ;;  %v8500_v54 = vld [vmem:[%s10759_s5 + $0x80] sm:$0xff]  }
 0x104   : > { %v1861_v3 = vrot.slane %v1859_v58, 5  ;;  %v638_v36 = vmax.f32 %v606_v13, 0.0  ;;  %v7209_v18 = vpack.c.bf16 %v639_v24, %v639_v24  ;;  %v8499_v55 = vld [vmem:[#allocation2 + $0x18] sm:$0xf]  ;;  %v8502_v13 = vld [vmem:[#allocation2 + $0x24] sm:$0xf] }
 0x105   : > { %v4255_v42 = vsel %vm9197_vm14, %v4253_v37, %v4254_v12  ;;  %v1847_v47 = vrot.slane %v1846_v25, 4  ;;  %v8410_v37 = vld [vmem:[%s10759_s5 + $0x88] sm:$0xff]   ;;  %v7311_v12 = vld [vmem:[%s442_s28] sm:$0xff]   ;;  %v8414_v25 = vld [vmem:[%s10759_s5 + $0x90] sm:$0xff]  }
 0x106   : > { %v6993_v21 = vcombine.low %v4252_v40, %v4255_v42  ;;  %v1862_v49 = vsel %vm8870_vm11, %v1857_v11, %v1861_v3  ;;  %v7208_v33 = vpack.c.bf16 %v638_v36, %v638_v36  ;;  %v1025_v2 = vshrl.u32 %v7209_v18, 16  ;;  %v9657_v36 = vld [vmem:[#allocation2 + $0x34] sm:$0xf] }
 0x107   : > { %v1852_v6 = vsel %vm8870_vm11, %v1847_v47, %v1851_v63  ;;  %v1028_v9 = vshll.u32 %v7209_v18, 16  ;;  %v8497_v63 = vld [vmem:[#allocation2 + $0xc] sm:$0xf]  ;;  %v6789_v40 = vcombine.low %v8499_v55, %v9634_v50  ;;  %v7312_v28 = vunpack.c.l.bf16 %v7311_v12  ;;  %v9681_v55 = vld [vmem:[#allocation2 + $0x14] sm:$0x1] }
 0x108   : > { %7925 = vmatprep.mubr.bf16.mxu0 %v6993_v21  ;;  %v6778_v0 = vcombine.low %v1852_v6, %v1862_v49  ;;  %v1017_v27 = vshrl.u32 %v7208_v33, 16  ;;  %v1020_v22 = vshll.u32 %v7208_v33, 16  ;;  %v1027_v17 = vrot.slane %v1025_v2, 7  ;;  %v9653_v21 = vld [vmem:[#allocation2 + $0x28] sm:$0xf] }
 0x109   : > { %v6788_v45 = vcombine.low %v8497_v63, %v9628_v48  ;;  %v7313_v3 = vunpack.c.h.bf16 %v7311_v12  ;;  %v671_v42 = vmul.f32 %v9496_v56, %v7312_v28  ;;  %v6790_v59 = vcombine.low %v8502_v13, %v9653_v21  ;;  %v8503_v49 = vld [vmem:[#allocation2 + $0x30] sm:$0xf]  ;;  %v8430_v12 = vld [vmem:[%s10759_s5 + $0xa8] sm:$0xff]  }
 0x10a   : > { %7686 = vmatmul.mubr.bf16.gmra.mrb[28].mxu1 %v6778_v0  ;;  %v1019_v26 = vrot.slane %v1017_v27, 7  ;;  %v1030_v5 = vor.u32 %v1028_v9, %v1027_v17  ;;  %v1032_v16 = vrot.slane %v1027_v17, 4  ;;  %v6791_v24 = vcombine.low %v8503_v49, %v9657_v36  ;;  %v8418_v0 = vld [vmem:[%s10759_s5 + $0x98] sm:$0xff]   ;;  %v8512_v49 = vld [vmem:[#allocation2 + $0x54] sm:$0xf] }
 0x10b   : > { %7705 = vmatprep.mubr.bf16.mxu1 %v6787_v23  ;;  %v672_v47 = vmul.f32 %v9496_v56, %v7313_v3  ;;  %v673_v6 = vadd.f32 %v9506_v57, %v671_v42  ;;  %v3607_v18 = vshll.u32 %v9545_v30, 16  ;;  %v3611_v56 = vshrl.u32 %v9545_v30, 16 }
 0x10c   : > { %v1022_v4 = vor.u32 %v1020_v22, %v1019_v26  ;;  %v1023_v11 = vrot.slane %v1019_v26, 4  ;;  %v1197_v58 = vsel %vm8767_vm7, %v1032_v16, %v1196_v52  ;;  %v9678_v52 = vld [vmem:[#allocation2 + $0x40] sm:$0xf] }
 0x10d   : > { %1198 = vst [vmem:[#allocation2 + $0xc8] sm:$0x1] %v1197_v58  ;;  %v674_v33 = vadd.f32 %v9506_v57, %v672_v47  ;;  %v675_v2 = vmax.f32 %v673_v6, 0.0  ;;  %v8424_v57 = vld [vmem:[%s10759_s5 + $0xa0] sm:$0xff]   ;;  %v9696_v47 = vld [vmem:[#allocation2 + $0x58] sm:$0xf] }
 0x10e   : > { %v1031_v20 = vsel %vm8738_vm5, %v1023_v11, %v1030_v5  ;;  %v1193_v29 = vsel %vm8759_vm6, %v1022_v4, %v1192_v41  ;;  %v9676_v41 = vrot.slane %v3611_v56, 4  ;;  %v8506_v4 = vld [vmem:[#allocation2 + $0x3c] sm:$0xf]  ;;  %v2458_v6 = vld [vmem:[#allocation2] sm:$0xe] }
 0x10f   : > { %1194 = vst [vmem:[#allocation2 + $0xc0] sm:$0xf] %v1193_v29  ;;  %1195 = vst [vmem:[#allocation2 + $0xc4] sm:$0xf] %v1031_v20  ;;  %v676_v26 = vmax.f32 %v674_v33, 0.0  ;;  %v6792_v11 = vcombine.low %v8506_v4, %v9678_v52 }
 0x110   : > { %v8508_v20 = vld [vmem:[#allocation2 + $0x48] sm:$0xf]  ;;  %v9684_v29 = vld [vmem:[#allocation2 + $0x4c] sm:$0xf]  ;;  %v9701_v56 = vld [vmem:[#allocation2 + $0x64] sm:$0xf] }
 0x111   : > { %v677_v30 = vpack.c.bf16 %v676_v26, %v675_v2  ;;  %v6793_v58 = vcombine.low %v8508_v20, %v9684_v29  ;;  %v2511_v2 = vrot.slane %v9624_v51, 5  ;;  %v8436_v51 = vld [vmem:[%s10759_s5 + $0xb0] sm:$0xff]  }
 0x112   : > { %7706 = vmatmul.mubr.bf16.vlgmr.msra.gmra.mrb[0].mxu1 %v6788_v45  ;;  %v9674_v45 = vrot.slane %v3607_v18, 5  ;;  %v8421_v18 = vld [vmem:[#allocation2 + $0x18] sm:$0xff]  }
 0x113   : > { %7738 = vmatpush3.bf16.msra.mxu1 %v8500_v54  ;;  %7709 = vmatprep.mubr.bf16.mxu1 %v6789_v40  ;;  %v1266_v16 = vmul.bf16 0.0, %v677_v30  ;;  %v2521_v40 = vrot.slane %v9681_v55, 5  ;;  %v9707_v30 = vld [vmem:[#allocation2 + $0x70] sm:$0xf] }
 0x114   : > { %7739 = vmatprep.subr.bf16.mxu1 %v8410_v37  ;;  %v1403_v34 = vld [vmem:[#allocation2 + $0xc8] sm:$0x1]  ;;  %10787 = vst [vmem:[#allocation4_spill] sm:$0xff] %v9674_v45  ;;  %v3614_v42 = vor.u32 %v9676_v41, %v9674_v45 }
 0x115   : > { %v1404_v27 = vsel %vm8800_vm8, 0, %v1403_v34  ;;  %v6745_v54 = vcombine.low %v1266_v16, %v1266_v16  ;;  %v6746_v28 = vcombine.high %v1266_v16, %v1266_v16  ;;  %v1293_v16 = vld [vmem:[#allocation2 + $0xcc] sm:$0xf] }
 0x116   : > { %v3379_v23 = vld [vmem:[#allocation2 + $0xc4] sm:$0xf]  ;;  %v1348_v22 = vld [vmem:[#allocation2 + $0xc0] sm:$0x1]  ;;  %1405 = vst [vmem:[#allocation2 + $0xc8] sm:$0x1] %v1404_v27 }
 0x117   : > { %7740 = vmatpush3.bf16.msra.mxu1 %v8410_v37  ;;  %v1349_v9 = vsel %vm8767_vm7, 0, %v1348_v22  ;;  %v4102_v17 = vld [vmem:[#allocation2 + $0xc0] sm:$0xe]  ;;  %v4258_v63 = vrot.slane %v3379_v23, 5  ;;  %v1276_v33 = vshll.u32 %v6745_v54, 16  ;;  %v1284_v26 = vshll.u32 %v6746_v28, 16 }
 0x118   : > { %7741 = vmatprep.subr.bf16.mxu1 %v8414_v25  ;;  %1350 = vst [vmem:[#allocation2 + $0xc0] sm:$0x1] %v1349_v9  ;;  %v6962_v5 = vrot.slane %v4102_v17, 9  ;;  %v8514_v27 = vld [vmem:[#allocation2 + $0x60] sm:$0xf]  ;;  %v1281_v9 = vshrl.u32 %v6746_v28, 16 }
 0x119   : > { %v4260_v37 = vrot.slane %v4258_v63, 4  ;;  %v6795_v22 = vcombine.low %v8514_v27, %v9701_v56  ;;  %v2513_v27 = vrot.slane %v2511_v2, 4  ;;  %v9743_v28 = vld [vmem:[#allocation2 + $0x18] sm:$0xf] }
 0x11a   : > { %7710 = vmatmul.mubr.bf16.gmra.mrb[4].mxu1 %v6790_v59  ;;  %v4259_v34 = vsel %vm9197_vm14, %v6962_v5, %v4258_v63  ;;  %v9709_v63 = vld [vmem:[#allocation2 + $0x6c] sm:$0xf] }
 0x11b   : > { %7713 = vmatprep.mubr.bf16.mxu1 %v6791_v24  ;;  %7742 = vmatpush3.bf16.msra.mxu1 %v8414_v25  ;;  %v9690_v25 = vld [vmem:[#allocation2 + $0x8] sm:$0x1]  ;;  %v6794_v24 = vcombine.low %v8512_v49, %v9696_v47 }
 0x11c   : > { %7743 = vmatprep.subr.bf16.mxu1 %v8418_v0  ;;  %v2514_v3 = vrot.slane %v9690_v25, 5 }
 0x11d   : > { %v3380_v59 = vld [vmem:[#allocation2 + $0xc8] sm:$0x1] }
 0x11e   : > { %v4261_v23 = vrot.slane %v3380_v59, 5  ;;  %v2518_v59 = vrot.slane %v9628_v48, 5  ;;  %v8442_v48 = vld [vmem:[%s10759_s5 + $0xb8] sm:$0xff]  }
 0x11f   : > { %7744 = vmatpush3.bf16.msra.mxu1 %v8418_v0  ;;  %v1273_v0 = vshrl.u32 %v6745_v54, 16  ;;  %v9720_v54 = vrot.slane %v1281_v9, 7  ;;  %v2546_v9 = vrot.slane %v9678_v52, 5  ;;  %v9756_v52 = vsel %vm9197_vm14, %v2513_v27, %v2514_v3 }
 0x120   : > { %7745 = vmatprep.subr.bf16.mxu1 %v8424_v57  ;;  %v4262_v17 = vsel %vm9197_vm14, %v4260_v37, %v4261_v23 }
 0x121   : > { %v1275_v5 = vrot.slane %v1273_v0, 7  ;;  %v6994_v20 = vcombine.low %v4259_v34, %v4262_v17  ;;  %v2460_v0 = vld [vmem:[#allocation2 + $0x18] sm:$0xe]  ;;  %v2525_v34 = vrot.slane %v9634_v50, 5  ;;  %v1286_v17 = vor.u32 %v1284_v26, %v9720_v54  ;;  %v8422_v26 = vld [vmem:[#allocation2 + $0x24] sm:$0xff]  }
 0x122   : > { %7714 = vmatmul.mubr.bf16.gmra.mrb[8].mxu1 %v6792_v11 }
 0x123   : > { %7717 = vmatprep.mubr.bf16.mxu1 %v6793_v58  ;;  %7746 = vmatpush3.bf16.msra.mxu1 %v8424_v57  ;;  %v2459_v57 = vld [vmem:[#allocation2 + $0xc] sm:$0xe]  ;;  %v6811_v58 = vrot.slane %v2458_v6, 9  ;;  %v1278_v49 = vor.u32 %v1276_v33, %v1275_v5  ;;  %v1279_v23 = vrot.slane %v1275_v5, 4  ;;  %v2532_v33 = vrot.slane %v9653_v21, 5  ;;  %v8427_v21 = vld [vmem:[#allocation2 + $0x30] sm:$0xff]  }
 0x124   : > { %7747 = vmatprep.subr.bf16.mxu1 %v8430_v12  ;;  %7926 = vmatmul.mubr.bf16.gmra.mrb[28].mxu0 %v6994_v20  ;;  %v6812_v13 = vrot.slane %v2459_v57, 9  ;;  %v2462_v57 = vld [vmem:[#allocation2 + $0x30] sm:$0xe]  ;;  %v2539_v5 = vrot.slane %v9657_v36, 5  ;;  %v2463_v20 = vld [vmem:[#allocation2 + $0x3c] sm:$0xe] }
 0x125   : > { %7945 = vmatprep.mubr.bf16.mxu0 %v8421_v18  ;;  %v1294_v50 = vsel %vm8759_vm6, %v1278_v49, %v1293_v16  ;;  %v1287_v6 = vsel %vm8738_vm5, %v1279_v23, %v1286_v17  ;;  %v9747_v62 = vsel %vm9197_vm14, %v6811_v58, %v2511_v2  ;;  %v2520_v16 = vrot.slane %v2518_v59, 4  ;;  %v8517_v18 = vld [vmem:[#allocation2 + $0x20] sm:$0x1]  ;;  %v4976_v36 = vld [vmem:[#allocation2 + $0x1c] sm:$0xf] }
 0x126   : > { %1295 = vst [vmem:[#allocation2 + $0xcc] sm:$0xf] %v1294_v50  ;;  %v6813_v49 = vrot.slane %v2460_v0, 9  ;;  %v2528_v37 = vrot.slane %v8517_v18, 5  ;;  %1296 = vst [vmem:[#allocation2 + $0xd0] sm:$0xf] %v1287_v6  ;;  %v9765_v2 = vsel %vm9197_vm14, %v6812_v13, %v2518_v59 }
 0x127   : > { %7748 = vmatpush3.bf16.msra.mxu1 %v8430_v12  ;;  %v2461_v12 = vld [vmem:[#allocation2 + $0x24] sm:$0xe]  ;;  %v2534_v23 = vrot.slane %v2532_v33, 4  ;;  %v6815_v25 = vrot.slane %v2462_v57, 9  ;;  %v8519_v17 = vld [vmem:[#allocation2 + $0x38] sm:$0x1]  ;;  %v9773_v13 = vsel %vm9197_vm14, %v2520_v16, %v2521_v40 }
 0x128   : > { %7749 = vmatprep.subr.bf16.mxu1 %v8436_v51  ;;  %v6814_v58 = vrot.slane %v2461_v12, 9  ;;  %v2542_v6 = vrot.slane %v8519_v17, 5  ;;  %v2541_v3 = vrot.slane %v2539_v5, 4  ;;  %v6816_v27 = vrot.slane %v2463_v20, 9  ;;  %v8520_v18 = vld [vmem:[#allocation2 + $0x44] sm:$0x1] }
 0x129   : > { %v2548_v50 = vrot.slane %v2546_v9, 4  ;;  %v2549_v11 = vrot.slane %v8520_v18, 5  ;;  %v5024_v59 = vshrl.u32 %v9743_v28, 16  ;;  %v5027_v12 = vshll.u32 %v9743_v28, 16  ;;  %v8521_v28 = vld [vmem:[%s10759_s5 + $0x1c0] sm:$0xff]   ;;  %v8433_v18 = vld [vmem:[#allocation2 + $0x48] sm:$0xff]  }
 0x12a   : > { %7718 = vmatmul.mubr.bf16.gmra.mrb[12].mxu1 %v6794_v24  ;;  %v9761_v24 = vld [vmem:[%s10759_s5 + $0xc0] sm:$0xff]   ;;  %v9779_v57 = vsel %vm9197_vm14, %v6813_v49, %v2525_v34  ;;  %v5033_v55 = vshll.u32 %v4976_v36, 16  ;;  %v5037_v17 = vshrl.u32 %v4976_v36, 16  ;;  %v9788_v40 = vrot.slane %v3614_v42, 4 }
 0x12b   : > { %7721 = vmatprep.mubr.bf16.mxu1 %v6795_v22  ;;  %7750 = vmatpush3.bf16.msra.mxu1 %v8436_v51  ;;  %v2527_v22 = vrot.slane %v2525_v34, 4  ;;  %v8518_v51 = vld [vmem:[#allocation2 + $0x2c] sm:$0x1]  ;;  %v9795_v34 = vsel %vm9197_vm14, %v6814_v58, %v2532_v33  ;;  %v4978_v42 = vld [vmem:[#allocation2 + $0x24] sm:$0xf]  ;;  %v9811_v33 = vsel %vm9197_vm14, %v2541_v3, %v2542_v6  ;;  %v2553_v16 = vrot.slane %v9684_v29, 5 }
 0x12c   : > { %7751 = vmatprep.subr.bf16.mxu1 %v8442_v48  ;;  %v2535_v0 = vrot.slane %v8518_v51, 5  ;;  %7946 = vmatmul.mubr.bf16.vlgmr.msra.gmra.mrb[0].mxu0 %v8422_v26  ;;  %v2464_v51 = vld [vmem:[#allocation2 + $0x48] sm:$0xe]  ;;  %10788 = vst [vmem:[#allocation5_spill] sm:$0xff] %v9788_v40  ;;  %v8437_v26 = vld [vmem:[%s10759_s5 + $0x1d0] sm:$0xff]   ;;  %v10789_v49 = vcombine.low %v9709_v63, %v9707_v30  ;;  %v8428_v36 = vld [vmem:[#allocation2 + $0x3c] sm:$0xff]  }
 0x12d   : > { %v9783_v20 = vsel %vm9197_vm14, %v2527_v22, %v2528_v37  ;;  %7978 = vmatpush3.bf16.msra.mxu0 %v8521_v28  ;;  %7949 = vmatprep.mubr.bf16.mxu0 %v8427_v21  ;;  %v1351_v41 = vld [vmem:[#allocation2 + $0xcc] sm:$0x1]  ;;  %v9815_v21 = vsel %vm9197_vm14, %v6816_v27, %v2546_v9  ;;  %v9825_v22 = vsel %vm9197_vm14, %v2548_v50, %v2549_v11  ;;  %v6817_v58 = vrot.slane %v2464_v51, 9  ;;  %v4979_v9 = vld [vmem:[#allocation2 + $0x28] sm:$0xf]  ;;  %v8443_v11 = vld [vmem:[%s10759_s5 + $0x1d8] sm:$0xff]  }
 0x12e   : > { %v9799_v37 = vsel %vm9197_vm14, %v2534_v23, %v2535_v0  ;;  %7979 = vmatprep.subr.bf16.mxu0 %v8431_v46  ;;  %v5026_v23 = vrot.slane %v5024_v59, 4  ;;  %v5029_v0 = vrot.slane %v5027_v12, 5  ;;  %v4977_v6 = vld [vmem:[#allocation2 + $0x20] sm:$0x1]  ;;  %v9830_v29 = vrot.slane %v5033_v55, 5 }
 0x12f   : > { %7752 = vmatpush3.bf16.msra.mxu1 %v8442_v48  ;;  %v9803_v48 = vsel %vm9197_vm14, %v6815_v25, %v2539_v5  ;;  %v1352_v5 = vsel %vm8767_vm7, 0, %v1351_v41  ;;  %v10790_v25 = vcombine.low %v9427_v15, %v9399_v35  ;;  %v5039_v3 = vrot.slane %v5037_v17, 4  ;;  %v4981_v12 = vld [vmem:[#allocation2 + $0x30] sm:$0xf]  ;;  %v4982_v41 = vld [vmem:[#allocation2 + $0x34] sm:$0xf] }
 0x130   : > { %7785 = vmatprep.subr.bf16.mxu1 %v9761_v24  ;;  %1353 = vst [vmem:[#allocation2 + $0xcc] sm:$0x1] %v1352_v5  ;;  %v5048_v63 = vshrl.u32 %v4978_v42, 16  ;;  %v5051_v27 = vshll.u32 %v4978_v42, 16  ;;  %v8522_v51 = vld [vmem:[#allocation2 + $0x50] sm:$0x1]  ;;  %v9847_v5 = vsel %vm9197_vm14, %v6817_v58, %v2553_v16  ;;  %v5030_v15 = vor.u32 %v5029_v0, %v5026_v23 }
 0x131   : > { %7980 = vmatpush3.bf16.msra.mxu0 %v8431_v46  ;;  %v2555_v46 = vrot.slane %v2553_v16, 4  ;;  %v2556_v55 = vrot.slane %v8522_v51, 5  ;;  %v5057_v17 = vshll.u32 %v4979_v9, 16  ;;  %v5061_v28 = vshrl.u32 %v4979_v9, 16  ;;  %v4980_v9 = vld [vmem:[#allocation2 + $0x2c] sm:$0x1] }
 0x132   : > { %7722 = vmatmul.mubr.bf16.gmra.mrb[16].mxu1 %v10789_v49  ;;  %7981 = vmatprep.subr.bf16.mxu0 %v8437_v26  ;;  %v2465_v49 = vld [vmem:[#allocation2 + $0x54] sm:$0xe]  ;;  %v5043_v35 = vshll.u32 %v4977_v6, 16  ;;  %v5040_v59 = vor.u32 %v5039_v3, %v9830_v29  ;;  %v9851_v50 = vrot.slane %v5048_v63, 4  ;;  %v9853_v51 = vrot.slane %v5051_v27, 5 }
 0x133   : > { %7725 = vmatprep.mubr.bf16.mxu1 %v10790_v25  ;;  %v2560_v25 = vrot.slane %v9696_v47, 5  ;;  %v5072_v42 = vshrl.u32 %v4981_v12, 16  ;;  %v5075_v4 = vshll.u32 %v4981_v12, 16  ;;  %v5081_v45 = vshll.u32 %v4982_v41, 16  ;;  %v8434_v58 = vld [vmem:[#allocation2 + $0x54] sm:$0xff]   ;;  %v8448_v47 = vld [vmem:[%s10759_s5 + $0x1e0] sm:$0xff]  }
 0x134   : > { %7950 = vmatmul.mubr.bf16.gmra.mrb[4].mxu0 %v8428_v36  ;;  %v5085_v16 = vshrl.u32 %v4982_v41, 16  ;;  %v9860_v36 = vsel %vm9197_vm14, %v2555_v46, %v2556_v55  ;;  %v6818_v23 = vrot.slane %v2465_v49, 9  ;;  %v9862_v0 = vrot.slane %v5057_v17, 5  ;;  %v8523_v63 = vld [vmem:[#allocation2 + $0x5c] sm:$0x1]  ;;  %v8439_v55 = vld [vmem:[#allocation2 + $0x60] sm:$0xff]  }
 0x135   : > { %7953 = vmatprep.mubr.bf16.mxu0 %v8433_v18  ;;  %7982 = vmatpush3.bf16.msra.mxu0 %v8437_v26  ;;  %v5063_v6 = vrot.slane %v5061_v28, 4  ;;  %v10791_v26 = vcombine.low %v9437_v31, %v9415_v19  ;;  %v2562_v3 = vrot.slane %v2560_v25, 4  ;;  %v2563_v27 = vrot.slane %v8523_v63, 5  ;;  %v2466_v18 = vld [vmem:[#allocation2 + $0x60] sm:$0xe] }
 0x136   : > { %7983 = vmatprep.subr.bf16.mxu0 %v8443_v11  ;;  %v2567_v12 = vrot.slane %v9701_v56, 5  ;;  %v2574_v41 = vrot.slane %v9707_v30, 5  ;;  %v10792_v46 = vcombine.low %v9511_v60, %v9476_v10  ;;  %v9872_v17 = vrot.slane %v5030_v15, 4  ;;  %v2467_v31 = vld [vmem:[#allocation2 + $0x6c] sm:$0xe] }
 0x137   : > { %v9874_v28 = vrot.slane %v5040_v59, 4  ;;  %v9876_v49 = vrot.slane %v5043_v35, 5  ;;  %v5054_v19 = vor.u32 %v9853_v51, %v9851_v50  ;;  %v5077_v56 = vrot.slane %v5075_v4, 5  ;;  %v4984_v40 = vld [vmem:[#allocation2 + $0x3c] sm:$0xf]  ;;  %v8452_v10 = vld [vmem:[%s10759_s5 + $0x1e8] sm:$0xff]  }
 0x138   : > { %v9880_v63 = vrot.slane %v5081_v45, 5  ;;  %v5087_v30 = vrot.slane %v5085_v16, 4  ;;  %v5064_v60 = vor.u32 %v5063_v6, %v9862_v0  ;;  %v5067_v59 = vshll.u32 %v4980_v9, 16  ;;  %v8524_v15 = vld [vmem:[#allocation2 + $0x68] sm:$0x1] }
 0x139   : > { %7984 = vmatpush3.bf16.msra.mxu0 %v8443_v11  ;;  %v6819_v35 = vrot.slane %v2466_v18, 9  ;;  %v4983_v50 = vld [vmem:[#allocation2 + $0x38] sm:$0x1]  ;;  %v2569_v51 = vrot.slane %v2567_v12, 4  ;;  %v6820_v11 = vrot.slane %v2467_v31, 9  ;;  %v9888_v16 = vsel %vm9197_vm14, %v6818_v23, %v2560_v25  ;;  %v8456_v25 = vld [vmem:[%s10759_s5 + $0x1f0] sm:$0xff]  }
 0x13a   : > { %7726 = vmatmul.mubr.bf16.gmra.mrb[20].mxu1 %v10791_v26  ;;  %v5074_v26 = vrot.slane %v5072_v42, 4  ;;  %7985 = vmatprep.subr.bf16.mxu0 %v8448_v47  ;;  %v2576_v42 = vrot.slane %v2574_v41, 4  ;;  %v8525_v4 = vld [vmem:[#allocation2 + $0x74] sm:$0x1]  ;;  %v9892_v43 = vsel %vm9197_vm14, %v2562_v3, %v2563_v27  ;;  %v5096_v6 = vshrl.u32 %v4984_v40, 16 }
 0x13b   : > { %7729 = vmatprep.mubr.bf16.mxu1 %v10792_v46  ;;  %v2570_v46 = vrot.slane %v8524_v15, 5  ;;  %v2577_v45 = vrot.slane %v8525_v4, 5  ;;  %v5099_v9 = vshll.u32 %v4984_v40, 16  ;;  %v5036_v18 = vsel %vm8870_vm11, %v9872_v17, %v9830_v29  ;;  %v4985_v4 = vld [vmem:[#allocation2 + $0x40] sm:$0xf] }
 0x13c   : > { %7954 = vmatmul.mubr.bf16.gmra.mrb[8].mxu0 %v8434_v58  ;;  %v5078_v31 = vor.u32 %v5077_v56, %v5074_v26  ;;  %v5088_v58 = vor.u32 %v5087_v30, %v9880_v63  ;;  %v5091_v15 = vshll.u32 %v4983_v50, 16  ;;  %v5046_v40 = vsel %vm8870_vm11, %v9874_v28, %v9876_v49  ;;  %v4986_v27 = vld [vmem:[#allocation2 + $0x44] sm:$0x1]  ;;  %v8440_v49 = vld [vmem:[#allocation2 + $0x6c] sm:$0xff]  }
 0x13d   : > { %7957 = vmatprep.mubr.bf16.mxu0 %v8439_v55  ;;  %7986 = vmatpush3.bf16.msra.mxu0 %v8448_v47  ;;  %v5055_v47 = vrot.slane %v5054_v19, 4  ;;  %v5065_v23 = vrot.slane %v5064_v60, 4  ;;  %v5069_v3 = vrot.slane %v5067_v59, 5  ;;  %v10793_v29 = vcombine.low %v9528_v38, %v9518_v61  ;;  %v8445_v38 = vld [vmem:[#allocation2 + $0x78] sm:$0xff]  }
 0x13e   : > { %7987 = vmatprep.subr.bf16.mxu0 %v8452_v10  ;;  %v9911_v55 = vsel %vm9197_vm14, %v6819_v35, %v2567_v12  ;;  %v9915_v17 = vsel %vm9197_vm14, %v2569_v51, %v2570_v46  ;;  %v9919_v26 = vsel %vm9197_vm14, %v6820_v11, %v2574_v41  ;;  %v9923_v28 = vsel %vm9197_vm14, %v2576_v42, %v2577_v45  ;;  %v2468_v46 = vld [vmem:[#allocation2 + $0x78] sm:$0xe]  ;;  %v8526_v51 = vld [vmem:[#allocation2 + $0x7c] sm:$0xf] }
 0x13f   : > { %10794 = vst [vmem:[#allocation6_spill] sm:$0xff] %v9923_v28  ;;  %v10795_v61 = vcombine.low %v9580_v44, %v9563_v32  ;;  %v5098_v12 = vrot.slane %v5096_v6, 4  ;;  %v5101_v19 = vrot.slane %v5099_v9, 5  ;;  %v5105_v56 = vshll.u32 %v4985_v4, 16  ;;  %v8460_v32 = vld [vmem:[%s10759_s5 + $0x1f8] sm:$0xff]  }
 0x140   : > { %v5109_v30 = vshrl.u32 %v4985_v4, 16  ;;  %v5079_v60 = vrot.slane %v5078_v31, 4  ;;  %v5089_v59 = vrot.slane %v5088_v58, 4  ;;  %v5093_v35 = vrot.slane %v5091_v15, 5  ;;  %v4987_v31 = vld [vmem:[#allocation2 + $0x48] sm:$0xf] }
 0x141   : > { %7988 = vmatpush3.bf16.msra.mxu0 %v8452_v10  ;;  %v5115_v41 = vshll.u32 %v4986_v27, 16  ;;  %v5060_v44 = vsel %vm8870_vm11, %v5055_v47, %v9862_v0  ;;  %v5070_v10 = vsel %vm8870_vm11, %v5065_v23, %v5069_v3  ;;  %v2581_v11 = vrot.slane %v8526_v51, 5  ;;  %v9946_v58 = vld [vmem:[#allocation2 + $0x4c] sm:$0xf]  ;;  %v4990_v23 = vld [vmem:[#allocation2 + $0x54] sm:$0xf] }
 0x142   : > { %7730 = vmatmul.mubr.bf16.gmra.mrb[24].mxu1 %v10793_v29  ;;  %7989 = vmatprep.subr.bf16.mxu0 %v8456_v25  ;;  %v9940_v45 = vcombine.low %v5036_v18, %v5046_v40  ;;  %10796 = vst [vmem:[#allocation7_spill] sm:$0xff] %v9946_v58  ;;  %v5102_v0 = vor.u32 %v5101_v19, %v5098_v12  ;;  %v9948_v15 = vrot.slane %v5105_v56, 5  ;;  %v5111_v4 = vrot.slane %v5109_v30, 4  ;;  %v9955_v40 = vld [vmem:[%s10759_s5 + $0x200] sm:$0xff]   ;;  %v9964_v56 = vld [vmem:[#allocation2 + $0x58] sm:$0xf] }
 0x143   : > { %7733 = vmatprep.mubr.bf16.mxu1 %v10795_v61  ;;  %v6821_v47 = vrot.slane %v2468_v46, 9  ;;  %v9950_v18 = vcombine.low %v5060_v44, %v5070_v10  ;;  %v5084_v3 = vsel %vm8870_vm11, %v5079_v60, %v9880_v63  ;;  %v5094_v27 = vsel %vm8870_vm11, %v5089_v59, %v5093_v35  ;;  %10797 = vst [vmem:[#allocation8_spill] sm:$0xff] %v9964_v56  ;;  %v8449_v44 = vld [vmem:[#allocation2 + $0x90] sm:$0xff]  }
 0x144   : > { %7958 = vmatmul.mubr.bf16.gmra.mrb[12].mxu0 %v8440_v49  ;;  %v9962_v29 = vrot.slane %v5115_v41, 5  ;;  %v2469_v49 = vld [vmem:[#allocation2 + $0x84] sm:$0xe]  ;;  %v2583_v61 = vrot.slane %v2581_v11, 4  ;;  %v5120_v12 = vshrl.u32 %v4987_v31, 16  ;;  %v5123_v19 = vshll.u32 %v4987_v31, 16 }
 0x145   : > { %7961 = vmatprep.mubr.bf16.mxu0 %v8445_v38  ;;  %7990 = vmatpush3.bf16.msra.mxu0 %v8456_v25  ;;  %v8527_v25 = vld [vmem:[#allocation2 + $0x80] sm:$0x1]  ;;  %v10798_v30 = vcombine.low %v9603_v7, %v9590_v53  ;;  %v5129_v63 = vshll.u32 %v9946_v58, 16  ;;  %v5133_v60 = vshrl.u32 %v9946_v58, 16  ;;  %v5144_v59 = vshrl.u32 %v4990_v23, 16  ;;  %v8446_v41 = vld [vmem:[#allocation2 + $0x84] sm:$0xff]  }
 0x146   : > { %7991 = vmatprep.subr.bf16.mxu0 %v8460_v32  ;;  %v2584_v38 = vrot.slane %v8527_v25, 5  ;;  %v5147_v35 = vshll.u32 %v4990_v23, 16  ;;  %v10799_v46 = vcombine.low %v9747_v62, %v9756_v52  ;;  %v9974_v10 = vcombine.low %v5084_v3, %v5094_v27  ;;  %v4993_v7 = vld [vmem:[#allocation2 + $0x60] sm:$0xf]  ;;  %v8528_v23 = vld [vmem:[#allocation2 + $0x88] sm:$0xf] }
 0x147   : > { %v9976_v51 = vrot.slane %v5102_v0, 4  ;;  %v5112_v31 = vor.u32 %v5111_v4, %v9948_v15  ;;  %v9981_v53 = vsel %vm9197_vm14, %v6821_v47, %v2581_v11  ;;  %v6822_v25 = vrot.slane %v2469_v49, 9  ;;  %v9985_v52 = vld [vmem:[#allocation2 + $0x64] sm:$0xf]  ;;  %v9992_v4 = vld [vmem:[#allocation2 + $0x8c] sm:$0x1] }
 0x148   : > { %10800 = vst [vmem:[#allocation9_spill] sm:$0xff] %v9981_v53  ;;  %v5153_v9 = vshll.u32 %v9964_v56, 16  ;;  %v5157_v62 = vshrl.u32 %v9964_v56, 16  ;;  %10801 = vst [vmem:[#allocation10_spill] sm:$0xff] %v9985_v52  ;;  %v9990_v0 = vsel %vm9197_vm14, %v2583_v61, %v2584_v38  ;;  %v5122_v47 = vrot.slane %v5120_v12, 4  ;;  %v8451_v12 = vld [vmem:[%s10759_s5 + $0xc8] sm:$0xff]  }
 0x149   : > { %7992 = vmatpush3.bf16.msra.mxu0 %v8460_v32  ;;  %10802 = vst [vmem:[#allocation11_spill] sm:$0xff] %v9990_v0  ;;  %v9995_v32 = vld [vmem:[#allocation2 + $0x50] sm:$0x1]  ;;  %v5125_v3 = vrot.slane %v5123_v19, 5  ;;  %v9997_v27 = vrot.slane %v5129_v63, 5  ;;  %v5135_v49 = vrot.slane %v5133_v60, 4  ;;  %v10805_v11 = vcombine.low %v9765_v2, %v9773_v13 }
 0x14a   : > { %7734 = vmatmul.mubr.bf16.gmra.mrb[28].mxu1 %v10798_v30  ;;  %v2588_v30 = vrot.slane %v8528_v23, 5  ;;  %8025 = vmatprep.subr.bf16.mxu0 %v9955_v40  ;;  %10803 = vst [vmem:[#allocation12_spill] sm:$0xff] %v9995_v32  ;;  %v5146_v23 = vrot.slane %v5144_v59, 4  ;;  %v5149_v6 = vrot.slane %v5147_v35, 5  ;;  %v5168_v42 = vshrl.u32 %v4993_v7, 16 }
 0x14b   : > { %7753 = vmatprep.mubr.bf16.mxu1 %v10799_v46  ;;  %v9999_v46 = vld [vmem:[#allocation2 + $0x5c] sm:$0x1]  ;;  %v5171_v50 = vshll.u32 %v4993_v7, 16  ;;  %v5177_v61 = vshll.u32 %v9985_v52, 16  ;;  %v5181_v38 = vshrl.u32 %v9985_v52, 16  ;;  %v10010_v63 = vrot.slane %v5112_v31, 4 }
 0x14c   : > { %10804 = vst [vmem:[#allocation13_spill] sm:$0xff] %v9999_v46  ;;  %7962 = vmatmul.mubr.bf16.gmra.mrb[16].mxu0 %v8446_v41  ;;  %v10012_v60 = vrot.slane %v5153_v9, 5  ;;  %v5159_v59 = vrot.slane %v5157_v62, 4  ;;  %v5126_v41 = vor.u32 %v5125_v3, %v5122_v47  ;;  %v5163_v7 = vshll.u32 %v9999_v46, 16  ;;  %v8450_v52 = vld [vmem:[#allocation2 + $0x9c] sm:$0xff]  }
 0x14d   : > { %7965 = vmatprep.mubr.bf16.mxu0 %v8449_v44  ;;  %v5139_v44 = vshll.u32 %v9995_v32, 16  ;;  %v10023_v31 = vsel %vm9197_vm14, %v6822_v25, %v2588_v30  ;;  %v5136_v9 = vor.u32 %v5135_v49, %v9997_v27  ;;  %v5150_v62 = vor.u32 %v5149_v6, %v5146_v23  ;;  %v2470_v19 = vld [vmem:[#allocation2 + $0x90] sm:$0xe]  ;;  %v8530_v56 = vld [vmem:[#allocation2 + $0x94] sm:$0xf]  ;;  %v8453_v25 = vld [vmem:[#allocation2 + $0xa8] sm:$0xff]  }
 0x14e   : > { %v2595_v35 = vrot.slane %v8530_v56, 5  ;;  %v10806_v47 = vcombine.low %v9779_v57, %v9783_v20  ;;  %v2471_v3 = vld [vmem:[#allocation2 + $0x9c] sm:$0xe]  ;;  %v5170_v2 = vrot.slane %v5168_v42, 4  ;;  %v5173_v13 = vrot.slane %v5171_v50, 5  ;;  %v8455_v6 = vld [vmem:[%s10759_s5 + $0xd0] sm:$0xff]  }
 0x14f   : > { %v5183_v46 = vrot.slane %v5181_v38, 4  ;;  %v2590_v56 = vrot.slane %v2588_v30, 4  ;;  %v5160_v57 = vor.u32 %v5159_v59, %v10012_v60  ;;  %v8531_v20 = vld [vmem:[#allocation2 + $0xa0] sm:$0xf]  ;;  %v10040_v50 = vld [vmem:[#allocation2 + $0x68] sm:$0x1] }
 0x150   : > { %v2602_v42 = vrot.slane %v8531_v20, 5  ;;  %v10042_v49 = vrot.slane %v5126_v41, 4  ;;  %v5141_v23 = vrot.slane %v5139_v44, 5  ;;  %v6823_v38 = vrot.slane %v2470_v19, 9  ;;  %v8532_v0 = vld [vmem:[#allocation2 + $0x98] sm:$0x1] }
 0x151   : > { %v5137_v32 = vrot.slane %v5136_v9, 4  ;;  %v2597_v58 = vrot.slane %v2595_v35, 4  ;;  %v2598_v53 = vrot.slane %v8532_v0, 5  ;;  %v6824_v28 = vrot.slane %v2471_v3, 9  ;;  %v10048_v41 = vld [vmem:[#allocation2 + $0x70] sm:$0xf] }
 0x152   : > { %7754 = vmatmul.mubr.bf16.vlgmr.msra.gmra.mrb[0].mxu1 %v10805_v11  ;;  %v10030_v11 = vrot.slane %v5177_v61, 5  ;;  %v10044_v61 = vrot.slane %v5163_v7, 5  ;;  %v5174_v30 = vor.u32 %v5173_v13, %v5170_v2  ;;  %v5187_v59 = vshll.u32 %v10040_v50, 16  ;;  %v8459_v19 = vld [vmem:[%s10759_s5 + $0xd8] sm:$0xff]   ;;  %v8533_v0 = vld [vmem:[#allocation2 + $0xa4] sm:$0x1] }
 0x153   : > { %7786 = vmatpush3.bf16.msra.mxu1 %v9761_v24  ;;  %7757 = vmatprep.mubr.bf16.mxu1 %v10806_v47  ;;  %v5118_v24 = vsel %vm8870_vm11, %v10010_v63, %v9962_v29  ;;  %v4996_v47 = vld [vmem:[#allocation2 + $0x6c] sm:$0xf]  ;;  %v5151_v29 = vrot.slane %v5150_v62, 4  ;;  %v5161_v44 = vrot.slane %v5160_v57, 4  ;;  %v2604_v7 = vrot.slane %v2602_v42, 4  ;;  %v8454_v20 = vld [vmem:[#allocation2 + $0xb4] sm:$0xff]  }
 0x154   : > { %7787 = vmatprep.subr.bf16.mxu1 %v8451_v12  ;;  %7966 = vmatmul.mubr.bf16.gmra.mrb[20].mxu0 %v8450_v52  ;;  %v5184_v63 = vor.u32 %v5183_v46, %v10030_v11  ;;  %v2605_v9 = vrot.slane %v8533_v0, 5  ;;  %v5192_v52 = vshrl.u32 %v4996_v47, 16  ;;  %v5132_v62 = vsel %vm8870_vm11, %v10042_v49, %v9997_v27 }
 0x155   : > { %7969 = vmatprep.mubr.bf16.mxu0 %v8453_v25  ;;  %v10065_v3 = vsel %vm9197_vm14, %v6823_v38, %v2595_v35  ;;  %v5195_v2 = vshll.u32 %v4996_v47, 16  ;;  %v10808_v13 = vcombine.low %v9795_v34, %v9799_v37  ;;  %v10074_v25 = vsel %vm9197_vm14, %v2597_v58, %v2598_v53  ;;  %v2472_v35 = vld [vmem:[#allocation2 + $0xa8] sm:$0xe] }
 0x156   : > { %v5201_v27 = vshll.u32 %v10048_v41, 16  ;;  %v5205_v57 = vshrl.u32 %v10048_v41, 16  ;;  %v10809_v49 = vcombine.low %v9803_v48, %v9811_v33  ;;  %v10085_v34 = vsel %vm9197_vm14, %v6824_v28, %v2602_v42 }
 0x157   : > { %7788 = vmatpush3.bf16.msra.mxu1 %v8451_v12  ;;  %v10807_v12 = vrot.slane %v9992_v4, 5  ;;  %v5142_v4 = vsel %vm8870_vm11, %v5137_v32, %v5141_v23  ;;  %v5175_v37 = vrot.slane %v5174_v30, 4  ;;  %v5185_v58 = vrot.slane %v5184_v63, 4  ;;  %v8457_v32 = vld [vmem:[#allocation2 + $0xc0] sm:$0xff]   ;;  %v8534_v30 = vld [vmem:[#allocation2 + $0xac] sm:$0xf] }
 0x158   : > { %7789 = vmatprep.subr.bf16.mxu1 %v8455_v6  ;;  %v5189_v53 = vrot.slane %v5187_v59, 5  ;;  %v8461_v23 = vld [vmem:[%s10759_s5 + $0xe0] sm:$0xff]   ;;  %v5156_v38 = vsel %vm8870_vm11, %v5151_v29, %v10012_v60  ;;  %v5166_v48 = vsel %vm8870_vm11, %v5161_v44, %v10044_v61  ;;  %v10098_v33 = vsel %vm9197_vm14, %v2604_v7, %v2605_v9  ;;  %v5008_v61 = vld [vmem:[#allocation2 + $0x9c] sm:$0xf] }
 0x159   : > { %v10057_v46 = vsel %vm9197_vm14, %v2590_v56, %v10807_v12  ;;  %v10076_v56 = vld [vmem:[#allocation2 + $0x74] sm:$0x1]  ;;  %v5194_v28 = vrot.slane %v5192_v52, 4  ;;  %v6825_v47 = vrot.slane %v2472_v35, 9  ;;  %v2609_v63 = vrot.slane %v8534_v30, 5 }
 0x15a   : > { %7758 = vmatmul.mubr.bf16.gmra.mrb[4].mxu1 %v10808_v13  ;;  %v5211_v42 = vshll.u32 %v10076_v56, 16  ;;  %v10810_v60 = vsel %vm8870_vm11, %v9976_v51, %v9948_v15  ;;  %v10110_v59 = vrot.slane %v5201_v27, 5  ;;  %v5207_v44 = vrot.slane %v5205_v57, 4  ;;  %v5002_v35 = vld [vmem:[#allocation2 + $0x84] sm:$0xf] }
 0x15b   : > { %7761 = vmatprep.mubr.bf16.mxu1 %v10809_v49  ;;  %7790 = vmatpush3.bf16.msra.mxu1 %v8455_v6  ;;  %v5197_v6 = vrot.slane %v5195_v2, 5  ;;  %v10106_v29 = vcombine.low %v10810_v60, %v5118_v24  ;;  %v10811_v7 = vshll.u32 %v9547_v39, 16  ;;  %v10116_v9 = vcombine.low %v5132_v62, %v5142_v4  ;;  %v10123_v24 = vld [vmem:[#allocation2 + $0xb4] sm:$0xe]  ;;  %v8463_v39 = vld [vmem:[%s10759_s5 + $0xe8] sm:$0xff]  }
 0x15c   : > { %7791 = vmatprep.subr.bf16.mxu1 %v8459_v19  ;;  %7970 = vmatmul.mubr.bf16.gmra.mrb[24].mxu0 %v8454_v20  ;;  %v5180_v15 = vsel %vm8870_vm11, %v5175_v37, %v10030_v11  ;;  %v5190_v51 = vsel %vm8870_vm11, %v5185_v58, %v5189_v53  ;;  %v4999_v62 = vld [vmem:[#allocation2 + $0x78] sm:$0xf]  ;;  %v10135_v2 = vld [vmem:[#allocation2 + $0x7c] sm:$0xf]  ;;  %v10137_v4 = vrot.slane %v5211_v42, 5  ;;  %v10141_v27 = vsel %vm9197_vm14, %v6825_v47, %v2609_v63 }
 0x15d   : > { %v10114_v0 = vrot.slane %v10811_v7, 5  ;;  %7973 = vmatprep.mubr.bf16.mxu0 %v8457_v32  ;;  %v5198_v13 = vor.u32 %v5197_v6, %v5194_v28  ;;  %v2611_v57 = vrot.slane %v2609_v63, 4  ;;  %v10143_v20 = vld [vmem:[#allocation2 + $0x88] sm:$0xf]  ;;  %v10814_v49 = vcombine.low %v9815_v21, %v9825_v22  ;;  %v8535_v53 = vld [vmem:[#allocation2 + $0xb0] sm:$0x1] }
 0x15e   : > { %10813 = vst [vmem:[#allocation15_spill] sm:$0xff] %v10143_v20  ;;  %v10148_v37 = vcombine.low %v5180_v15, %v5190_v51  ;;  %v5208_v58 = vor.u32 %v5207_v44, %v10110_v59  ;;  %v2612_v32 = vrot.slane %v8535_v53, 5  ;;  %v10152_v28 = vld [vmem:[#allocation2 + $0x94] sm:$0xf]  ;;  %v8458_v6 = vld [vmem:[#allocation2 + $0xcc] sm:$0xff]   ;;  %v10816_v42 = vcombine.low %v9847_v5, %v9860_v36 }
 0x15f   : > { %10812 = vst [vmem:[#allocation14_spill] sm:$0xff] %v10114_v0  ;;  %7792 = vmatpush3.bf16.msra.mxu1 %v8459_v19  ;;  %v10129_v19 = vcombine.low %v5156_v38, %v5166_v48  ;;  %v6826_v38 = vrot.slane %v10123_v24, 9  ;;  %v5005_v48 = vld [vmem:[#allocation2 + $0x90] sm:$0xf]  ;;  %10815 = vst [vmem:[#allocation16_spill] sm:$0xff] %v10152_v28  ;;  %v5216_v47 = vshrl.u32 %v4999_v62, 16 }
 0x160   : > { %7793 = vmatprep.subr.bf16.mxu1 %v8461_v23  ;;  %v5219_v21 = vshll.u32 %v4999_v62, 16  ;;  %v5225_v22 = vshll.u32 %v10135_v2, 16  ;;  %v5229_v30 = vshrl.u32 %v10135_v2, 16  ;;  %v8465_v63 = vld [vmem:[%s10759_s5 + $0xf0] sm:$0xff]   ;;  %v5240_v60 = vshrl.u32 %v5002_v35, 16 }
 0x161   : > { %v5243_v44 = vshll.u32 %v5002_v35, 16  ;;  %v5249_v7 = vshll.u32 %v10143_v20, 16  ;;  %v5253_v15 = vshrl.u32 %v10143_v20, 16  ;;  %v5264_v5 = vshrl.u32 %v5005_v48, 16  ;;  %v8467_v35 = vld [vmem:[%s10759_s5 + $0xf8] sm:$0xff]  }
 0x162   : > { %7762 = vmatmul.mubr.bf16.gmra.mrb[8].mxu1 %v10814_v49  ;;  %v5267_v36 = vshll.u32 %v5005_v48, 16  ;;  %v5277_v51 = vshrl.u32 %v10152_v28, 16  ;;  %v10166_v24 = vrot.slane %v5198_v13, 4  ;;  %v10168_v62 = vrot.slane %v5208_v58, 4  ;;  %v8536_v53 = vld [vmem:[#allocation2 + $0xb8] sm:$0xf] }
 0x163   : > { %7765 = vmatprep.mubr.bf16.mxu1 %v10816_v42  ;;  %7794 = vmatpush3.bf16.msra.mxu1 %v8461_v23  ;;  %v5273_v23 = vshll.u32 %v10152_v28, 16  ;;  %v10172_v49 = vsel %vm9197_vm14, %v2611_v57, %v2612_v32  ;;  %v2616_v42 = vrot.slane %v8536_v53, 5  ;;  %v10177_v11 = vld [vmem:[#allocation2 + $0x80] sm:$0x1]  ;;  %v5218_v48 = vrot.slane %v5216_v47, 4 }
 0x164   : > { %7795 = vmatprep.subr.bf16.mxu1 %v8463_v39  ;;  %7974 = vmatmul.mubr.bf16.gmra.mrb[28].mxu0 %v8458_v6  ;;  %v5221_v12 = vrot.slane %v5219_v21, 5  ;;  %v10179_v13 = vrot.slane %v5225_v22, 5  ;;  %v5231_v58 = vrot.slane %v5229_v30, 4  ;;  %v10182_v57 = vld [vmem:[#allocation2 + $0x8c] sm:$0x1]  ;;  %v5242_v32 = vrot.slane %v5240_v60, 4 }
 0x165   : > { %7993 = vmatprep.mubr.bf16.mxu0 %v9940_v45  ;;  %v5245_v52 = vrot.slane %v5243_v44, 5  ;;  %v10184_v28 = vrot.slane %v5249_v7, 5  ;;  %v5255_v53 = vrot.slane %v5253_v15, 4  ;;  %v10186_v0 = vld [vmem:[#allocation2 + $0x98] sm:$0x1]  ;;  %v5266_v6 = vrot.slane %v5264_v5, 4 }
 0x166   : > { %v10188_v47 = vrot.slane %v5273_v23, 5  ;;  %v5279_v21 = vrot.slane %v5277_v51, 4  ;;  %v10817_v22 = vcombine.low %v9888_v16, %v9892_v43  ;;  %v8537_v30 = vld [vmem:[#allocation2 + $0xbc] sm:$0x1]  ;;  %v5288_v44 = vshrl.u32 %v5008_v61, 16 }
 0x167   : > { %7796 = vmatpush3.bf16.msra.mxu1 %v8463_v39  ;;  %v5269_v39 = vrot.slane %v5267_v36, 5  ;;  %v2619_v60 = vrot.slane %v8537_v30, 5  ;;  %v5291_v7 = vshll.u32 %v5008_v61, 16  ;;  %v1297_v20 = vld [vmem:[#allocation2 + $0xd4] sm:$0x1]  ;;  %v10818_v15 = vcombine.low %v9911_v55, %v9915_v17 }
 0x168   : > { %7797 = vmatprep.subr.bf16.mxu1 %v8465_v63  ;;  %v5204_v5 = vsel %vm8870_vm11, %v10166_v24, %v10110_v59  ;;  %v10204_v43 = vsel %vm9197_vm14, %v6826_v38, %v2616_v42  ;;  %v5222_v16 = vor.u32 %v5221_v12, %v5218_v48  ;;  %v5235_v36 = vshll.u32 %v10177_v11, 16  ;;  %v10207_v23 = vld [vmem:[#allocation2 + $0xa0] sm:$0xf]  ;;  %v8464_v59 = vld [vmem:[%s10759_s5 + $0x208] sm:$0xff]  }
 0x169   : > { %v5232_v61 = vor.u32 %v5231_v58, %v10179_v13  ;;  %v5246_v55 = vor.u32 %v5245_v52, %v5242_v32  ;;  %v5256_v17 = vor.u32 %v5255_v53, %v10184_v28  ;;  %v5270_v51 = vor.u32 %v5269_v39, %v5266_v6 }
 0x16a   : > { %7766 = vmatmul.mubr.bf16.gmra.mrb[12].mxu1 %v10817_v22  ;;  %v5280_v38 = vor.u32 %v5279_v21, %v10188_v47  ;;  %v5283_v12 = vshll.u32 %v10186_v0, 16  ;;  %v10819_v24 = vrot.slane %v9720_v54, 4  ;;  %v5290_v58 = vrot.slane %v5288_v44, 4  ;;  %v5011_v22 = vld [vmem:[#allocation2 + $0xa8] sm:$0xf] }
 0x16b   : > { %7769 = vmatprep.mubr.bf16.mxu1 %v10818_v15  ;;  %7798 = vmatpush3.bf16.msra.mxu1 %v8465_v63  ;;  %v5259_v63 = vshll.u32 %v10182_v57, 16  ;;  %v5293_v52 = vrot.slane %v5291_v7, 5  ;;  %v5297_v32 = vshll.u32 %v10207_v23, 16  ;;  %v5301_v53 = vshrl.u32 %v10207_v23, 16  ;;  %v10230_v7 = vld [vmem:[#allocation2 + $0xac] sm:$0xf] }
 0x16c   : > { %7799 = vmatprep.subr.bf16.mxu1 %v8467_v35  ;;  %v1298_v48 = vsel %vm8767_vm7, %v10819_v24, %v1297_v20  ;;  %7994 = vmatmul.mubr.bf16.vlgmr.msra.gmra.mrb[0].mxu0 %v9950_v18  ;;  %v5214_v6 = vsel %vm8870_vm11, %v10168_v62, %v10137_v4  ;;  %v2618_v39 = vrot.slane %v2616_v42, 4  ;;  %v5223_v54 = vrot.slane %v5222_v16, 4  ;;  %v8466_v18 = vld [vmem:[%s10759_s5 + $0x210] sm:$0xff]   ;;  %v10238_v4 = vld [vmem:[%s10759_s5 + $0x100] sm:$0xff]   ;;  %v10823_v24 = vld [vmem:[#allocation11_spill] sm:$0xff] }
 0x16d   : > { %1299 = vst [vmem:[#allocation2 + $0xd4] sm:$0x1] %v1298_v48  ;;  %v5237_v1 = vrot.slane %v5235_v36, 5  ;;  %8026 = vmatpush3.bf16.msra.mxu0 %v9955_v40  ;;  %7997 = vmatprep.mubr.bf16.mxu0 %v9974_v10  ;;  %v5233_v20 = vrot.slane %v5232_v61, 4  ;;  %v5247_v21 = vrot.slane %v5246_v55, 4  ;;  %v5257_v30 = vrot.slane %v5256_v17, 4 }
 0x16e   : > { %v5261_v44 = vrot.slane %v5259_v63, 5  ;;  %8027 = vmatprep.subr.bf16.mxu0 %v8464_v59  ;;  %v5271_v40 = vrot.slane %v5270_v51, 4  ;;  %v5281_v10 = vrot.slane %v5280_v38, 4  ;;  %v5285_v62 = vrot.slane %v5283_v12, 5  ;;  %v10820_v42 = vld [vmem:[#allocation6_spill] sm:$0xff]  ;;  %v10822_v63 = vld [vmem:[#allocation9_spill] sm:$0xff] }
 0x16f   : > { %7800 = vmatpush3.bf16.msra.mxu1 %v8467_v35  ;;  %v5312_v35 = vshrl.u32 %v5011_v22, 16  ;;  %v10821_v15 = vcombine.low %v9919_v26, %v10820_v42  ;;  %v10244_v16 = vld [vmem:[#allocation2 + $0xa4] sm:$0x1]  ;;  %v5294_v36 = vor.u32 %v5293_v52, %v5290_v58  ;;  %v10246_v61 = vrot.slane %v5297_v32, 5  ;;  %v8468_v12 = vld [vmem:[%s10759_s5 + $0x218] sm:$0xff]  }
 0x170   : > { %8073 = vmatprep.subr.bf16.mxu1 %v10238_v4  ;;  %v5303_v55 = vrot.slane %v5301_v53, 4  ;;  %v5315_v17 = vshll.u32 %v5011_v22, 16  ;;  %v10824_v48 = vcombine.low %v10822_v63, %v10823_v24  ;;  %v10251_v45 = vcombine.low %v5204_v5, %v5214_v6  ;;  %v10271_v52 = vld [vmem:[#allocation2 + $0xb0] sm:$0x1]  ;;  %v5733_v6 = vld [vmem:[#allocation2 + $0x48] sm:$0xe] }
 0x171   : > { %v10255_v51 = vsel %vm9197_vm14, %v2618_v39, %v2619_v60  ;;  %v5228_v26 = vsel %vm8870_vm11, %v5223_v54, %v10179_v13  ;;  %v5321_v38 = vshll.u32 %v10230_v7, 16  ;;  %8028 = vmatpush3.bf16.msra.mxu0 %v8464_v59  ;;  %v5238_v58 = vsel %vm8870_vm11, %v5233_v20, %v5237_v1  ;;  %v10287_v20 = vld [vmem:[#allocation2 + $0xb4] sm:$0xf] }
 0x172   : > { %7770 = vmatmul.mubr.bf16.gmra.mrb[16].mxu1 %v10821_v15  ;;  %v5252_v5 = vsel %vm8870_vm11, %v5247_v21, %v10184_v28  ;;  %v5262_v60 = vsel %vm8870_vm11, %v5257_v30, %v5261_v44  ;;  %v5325_v13 = vshrl.u32 %v10230_v7, 16  ;;  %8029 = vmatprep.subr.bf16.mxu0 %v8466_v18  ;;  %v5276_v59 = vsel %vm8870_vm11, %v5271_v40, %v10188_v47  ;;  %v10826_v15 = vld [vmem:[#allocation7_spill] sm:$0xff] }
 0x173   : > { %7773 = vmatprep.mubr.bf16.mxu1 %v10824_v48  ;;  %v5286_v32 = vsel %vm8870_vm11, %v5281_v10, %v5285_v62  ;;  %v5307_v53 = vshll.u32 %v10244_v16, 16  ;;  %v10280_v22 = vrot.slane %v5312_v35, 4  ;;  %v10282_v39 = vrot.slane %v5294_v36, 4  ;;  %v5734_v36 = vld [vmem:[#allocation2 + $0x54] sm:$0xe] }
 0x174   : > { %v1406_v28 = vld [vmem:[#allocation2 + $0xd4] sm:$0x1]  ;;  %v5304_v54 = vor.u32 %v5303_v55, %v10246_v61  ;;  %v10285_v1 = vrot.slane %v5315_v17, 5  ;;  %7998 = vmatmul.mubr.bf16.gmra.mrb[4].mxu0 %v10106_v29  ;;  %v6858_v30 = vcombine.low %v10204_v43, %v10255_v51  ;;  %v10294_v44 = vcombine.low %v5228_v26, %v5238_v58  ;;  %v8470_v55 = vld [vmem:[%s10759_s5 + $0x220] sm:$0xff]   ;;  %v5020_v43 = vld [vmem:[#allocation2 + $0xcc] sm:$0xf] }
 0x175   : > { %v1407_v47 = vsel %vm8800_vm8, 0, %v1406_v28  ;;  %v10296_v40 = vcombine.low %v5252_v5, %v5262_v60  ;;  %v10298_v10 = vrot.slane %v5321_v38, 5  ;;  %8001 = vmatprep.mubr.bf16.mxu0 %v10116_v9  ;;  %8030 = vmatpush3.bf16.msra.mxu0 %v8466_v18  ;;  %v10301_v62 = vrot.slane %v5325_v13, 4  ;;  %v10827_v18 = vld [vmem:[#allocation12_spill] sm:$0xff]  ;;  %v5736_v28 = vld [vmem:[#allocation2 + $0x6c] sm:$0xe] }
 0x176   : > { %1408 = vst [vmem:[#allocation2 + $0xd4] sm:$0x1] %v1407_v47  ;;  %v5331_v35 = vshll.u32 %v10271_v52, 16  ;;  %v7087_v42 = vrot.slane %v5733_v6, 9  ;;  %v5823_v29 = vrot.slane %v10826_v15, 5  ;;  %8031 = vmatprep.subr.bf16.mxu0 %v8468_v12  ;;  %v10308_v17 = vcombine.low %v5276_v59, %v5286_v32  ;;  %v10830_v32 = vld [vmem:[#allocation8_spill] sm:$0xff] }
 0x177   : > { %v10310_v63 = vrot.slane %v5307_v53, 5  ;;  %v5336_v9 = vshrl.u32 %v10287_v20, 16  ;;  %v5826_v24 = vrot.slane %v10827_v18, 5  ;;  %v5735_v48 = vld [vmem:[#allocation2 + $0x60] sm:$0xe]  ;;  %v10828_v26 = vcombine.low %v10023_v31, %v10057_v46  ;;  %v10832_v15 = vld [vmem:[#allocation10_spill] sm:$0xff] }
 0x178   : > { %v5300_v38 = vsel %vm8870_vm11, %v10282_v39, %v10246_v61  ;;  %v10321_v58 = vrot.slane %v5304_v54, 4  ;;  %v5318_v5 = vor.u32 %v10285_v1, %v10280_v22  ;;  %v5339_v60 = vshll.u32 %v10287_v20, 16  ;;  %v10338_v54 = vld [vmem:[#allocation2 + $0xb8] sm:$0xf]  ;;  %v10831_v1 = vld [vmem:[#allocation13_spill] sm:$0xff] }
 0x179   : > { %v10829_v13 = vcombine.low %v10065_v3, %v10074_v25  ;;  %v10331_v31 = vsel %vm9197_vm14, %v7087_v42, %v5823_v29  ;;  %v5825_v46 = vrot.slane %v5823_v29, 4  ;;  %v7088_v59 = vrot.slane %v5734_v36, 9  ;;  %8032 = vmatpush3.bf16.msra.mxu0 %v8468_v12  ;;  %v8473_v20 = vld [vmem:[%s10759_s5 + $0x228] sm:$0xff]   ;;  %v5742_v61 = vld [vmem:[#allocation2 + $0xb4] sm:$0xe] }
 0x17a   : > { %7774 = vmatmul.mubr.bf16.gmra.mrb[20].mxu1 %v10828_v26  ;;  %v5830_v53 = vrot.slane %v10830_v32, 5  ;;  %v5328_v6 = vor.u32 %v10301_v62, %v10298_v10  ;;  %v10336_v22 = vrot.slane %v5331_v35, 5  ;;  %v5833_v3 = vrot.slane %v10831_v1, 5  ;;  %8033 = vmatprep.subr.bf16.mxu0 %v8470_v55  ;;  %v5737_v35 = vld [vmem:[#allocation2 + $0x78] sm:$0xe] }
 0x17b   : > { %7777 = vmatprep.mubr.bf16.mxu1 %v10829_v13  ;;  %v7089_v25 = vrot.slane %v5735_v48, 9  ;;  %v10344_v21 = vrot.slane %v5336_v9, 4  ;;  %v10348_v12 = vsel %vm9197_vm14, %v5825_v46, %v5826_v24  ;;  %v5837_v29 = vrot.slane %v10832_v15, 5  ;;  %v5738_v13 = vld [vmem:[#allocation2 + $0x84] sm:$0xe] }
 0x17c   : > { %v10352_v47 = vsel %vm9197_vm14, %v7088_v59, %v5830_v53  ;;  %v5832_v62 = vrot.slane %v5830_v53, 4  ;;  %v5840_v36 = vrot.slane %v10040_v50, 5  ;;  %v7090_v18 = vrot.slane %v5736_v28, 9  ;;  %8002 = vmatmul.mubr.bf16.gmra.mrb[8].mxu0 %v10129_v19 }
 0x17d   : > { %v5345_v9 = vshll.u32 %v10338_v54, 16  ;;  %v5844_v48 = vrot.slane %v10048_v41, 5  ;;  %v5847_v26 = vrot.slane %v10076_v56, 5  ;;  %8005 = vmatprep.mubr.bf16.mxu0 %v10148_v37  ;;  %8034 = vmatpush3.bf16.msra.mxu0 %v8470_v55  ;;  %v10371_v19 = vsel %vm9197_vm14, %v7089_v25, %v5837_v29  ;;  %v8476_v41 = vld [vmem:[%s10759_s5 + $0x230] sm:$0xff]  }
 0x17e   : > { %v10362_v24 = vsel %vm9197_vm14, %v5832_v62, %v5833_v3  ;;  %v5839_v46 = vrot.slane %v5837_v29, 4  ;;  %v7091_v59 = vrot.slane %v5737_v35, 9  ;;  %8035 = vmatprep.subr.bf16.mxu0 %v8473_v20  ;;  %v10373_v32 = vrot.slane %v5318_v5, 4  ;;  %v10834_v3 = vld [vmem:[#allocation15_spill] sm:$0xff]  ;;  %v10836_v35 = vld [vmem:[#allocation14_spill] sm:$0xff] }
 0x17f   : > { %v10380_v56 = vsel %vm9197_vm14, %v7090_v18, %v5844_v48  ;;  %v5846_v37 = vrot.slane %v5844_v48, 4  ;;  %v5851_v55 = vrot.slane %v10135_v2, 5  ;;  %v10833_v53 = vcombine.low %v10085_v34, %v10098_v33  ;;  %v10399_v34 = vld [vmem:[#allocation2 + $0xbc] sm:$0x1]  ;;  %v10418_v18 = vld [vmem:[#allocation2 + $0xc4] sm:$0xf] }
 0x180   : > { %v10388_v28 = vsel %vm9197_vm14, %v5839_v46, %v5840_v36  ;;  %v5854_v5 = vrot.slane %v10177_v11, 5  ;;  %v7092_v1 = vrot.slane %v5738_v13, 9  ;;  %v5858_v25 = vrot.slane %v10834_v3, 5 }
 0x181   : > { %v10835_v62 = vcombine.low %v10141_v27, %v10172_v49  ;;  %v5310_v2 = vsel %vm8870_vm11, %v10321_v58, %v10310_v63  ;;  %v10401_v33 = vrot.slane %v5339_v60, 5  ;;  %v10407_v11 = vsel %vm9197_vm14, %v5846_v37, %v5847_v26  ;;  %8036 = vmatpush3.bf16.msra.mxu0 %v8473_v20  ;;  %v5017_v49 = vld [vmem:[#allocation2 + $0xc0] sm:$0xf]  ;;  %v8479_v20 = vld [vmem:[%s10759_s5 + $0x238] sm:$0xff]  }
 0x182   : > { %7778 = vmatmul.mubr.bf16.gmra.mrb[24].mxu1 %v10833_v53  ;;  %v5349_v27 = vshrl.u32 %v10338_v54, 16  ;;  %v10414_v29 = vsel %vm9197_vm14, %v7091_v59, %v5851_v55  ;;  %v5853_v60 = vrot.slane %v5851_v55, 4  ;;  %v10416_v36 = vrot.slane %v5328_v6, 4  ;;  %8037 = vmatprep.subr.bf16.mxu0 %v8476_v41  ;;  %v3360_v55 = vld [vmem:[#allocation2 + $0x78] sm:$0xf]  ;;  %v8469_v53 = vld [vmem:[#allocation2 + $0xc] sm:$0xff]  }
 0x183   : > { %7781 = vmatprep.mubr.bf16.mxu1 %v10835_v62  ;;  %v10425_v48 = vsel %vm9197_vm14, %v7092_v1, %v5858_v25  ;;  %v5860_v26 = vrot.slane %v5858_v25, 4  ;;  %v5861_v13 = vrot.slane %v10182_v57, 5  ;;  %v10432_v46 = vrot.slane %v5345_v9, 5  ;;  %v5739_v25 = vld [vmem:[#allocation2 + $0x90] sm:$0xe] }
 0x184   : > { %v5355_v59 = vshll.u32 %v10399_v34, 16  ;;  %v10437_v37 = vsel %vm9197_vm14, %v5853_v60, %v5854_v5  ;;  %8006 = vmatmul.mubr.bf16.gmra.mrb[12].mxu0 %v10251_v45  ;;  %v5342_v57 = vor.u32 %v10401_v33, %v10344_v21  ;;  %v5360_v1 = vshrl.u32 %v5017_v49, 16  ;;  %v5740_v21 = vld [vmem:[#allocation2 + $0x9c] sm:$0xe] }
 0x185   : > { %v10446_v9 = vsel %vm9197_vm14, %v5860_v26, %v5861_v13  ;;  %8009 = vmatprep.mubr.bf16.mxu0 %v10294_v44  ;;  %v5351_v5 = vrot.slane %v5349_v27, 4  ;;  %8038 = vmatpush3.bf16.msra.mxu0 %v8476_v41  ;;  %v5363_v62 = vshll.u32 %v5017_v49, 16  ;;  %v5369_v45 = vshll.u32 %v10418_v18, 16  ;;  %v10837_v26 = vld [vmem:[#allocation5_spill] sm:$0xff]  ;;  %v10838_v27 = vld [vmem:[#allocation16_spill] sm:$0xff] }
 0x186   : > { %v5373_v33 = vshrl.u32 %v10418_v18, 16  ;;  %8039 = vmatprep.subr.bf16.mxu0 %v8479_v20  ;;  %v3598_v3 = vshrl.u32 %v3360_v55, 16  ;;  %v3601_v15 = vshll.u32 %v3360_v55, 16  ;;  %v3620_v13 = vsel %vm8870_vm11, %v10837_v26, %v10836_v35  ;;  %v10466_v55 = vld [vmem:[#allocation2 + $0xc8] sm:$0x1] }
 0x187   : > { %v5334_v44 = vsel %vm8870_vm11, %v10416_v36, %v10336_v22  ;;  %v7093_v41 = vrot.slane %v5739_v25, 9  ;;  %v5865_v49 = vrot.slane %v10838_v27, 5  ;;  %v5868_v60 = vrot.slane %v10186_v0, 5 }
 0x188   : > { %v5362_v50 = vrot.slane %v5360_v1, 4  ;;  %v3600_v42 = vrot.slane %v3598_v3, 4  ;;  %v3603_v35 = vrot.slane %v3601_v15, 5  ;;  %v7094_v26 = vrot.slane %v5740_v21, 9  ;;  %v8471_v15 = vld [vmem:[#allocation2 + $0x18] sm:$0xff]  }
 0x189   : > { %v5365_v6 = vrot.slane %v5363_v62, 5  ;;  %8040 = vmatpush3.bf16.msra.mxu0 %v8479_v20  ;;  %v10470_v51 = vsel %vm9197_vm14, %v7093_v41, %v5865_v49  ;;  %v5872_v22 = vrot.slane %v10207_v23, 5  ;;  %v10473_v36 = vrot.slane %v5369_v45, 5  ;;  %v8472_v45 = vld [vmem:[#allocation2 + $0x24] sm:$0xff]  }
 0x18a   : > { %7782 = vmatmul.mubr.bf16.gmra.mrb[28].mxu1 %v6858_v30  ;;  %v5867_v30 = vrot.slane %v5865_v49, 4  ;;  %v5375_v0 = vrot.slane %v5373_v33, 4  ;;  %v3604_v25 = vor.u32 %v3603_v35, %v3600_v42  ;;  %v5875_v1 = vrot.slane %v10244_v16, 5  ;;  %v10839_v35 = vld [vmem:[#allocation4_spill] sm:$0xff] }
 0x18b   : > { %7801 = vmatprep.mubr.bf16.mxu1 %v8469_v53  ;;  %v10475_v53 = vld [vmem:[#allocation2 + $0xd0] sm:$0xf]  ;;  %v5352_v3 = vor.u32 %v5351_v5, %v10432_v46  ;;  %v10485_v62 = vsel %vm9197_vm14, %v7094_v26, %v5872_v22  ;;  %v5874_v23 = vrot.slane %v5872_v22, 4  ;;  %v5379_v21 = vshll.u32 %v10466_v55, 16 }
 0x18c   : > { %v10481_v20 = vsel %vm9197_vm14, %v5867_v30, %v5868_v60  ;;  %8010 = vmatmul.mubr.bf16.gmra.mrb[16].mxu0 %v10296_v40  ;;  %v5384_v42 = vshrl.u32 %v5020_v43, 16  ;;  %v3605_v33 = vrot.slane %v3604_v25, 4  ;;  %v5387_v5 = vshll.u32 %v5020_v43, 16 }
 0x18d   : > { %v7125_v16 = vcombine.low %v10470_v51, %v10481_v20  ;;  %8013 = vmatprep.mubr.bf16.mxu0 %v10308_v17  ;;  %v5393_v60 = vshll.u32 %v10475_v53, 16  ;;  %v5397_v41 = vshrl.u32 %v10475_v53, 16  ;;  %v10496_v27 = vsel %vm9197_vm14, %v5874_v23, %v5875_v1  ;;  %v5741_v1 = vld [vmem:[#allocation2 + $0xa8] sm:$0xe]  ;;  %v8475_v23 = vld [vmem:[#allocation2 + $0x3c] sm:$0xff]  }
 0x18e   : > { %v5366_v40 = vor.u32 %v5365_v6, %v5362_v50  ;;  %v5376_v49 = vor.u32 %v5375_v0, %v10473_v36  ;;  %v3610_v26 = vsel %vm8870_vm11, %v3605_v33, %v10839_v35  ;;  %v7126_v30 = vcombine.low %v10485_v62, %v10496_v27 }
 0x18f   : > { %v5343_v17 = vrot.slane %v5342_v57, 4  ;;  %v5353_v43 = vrot.slane %v5352_v3, 4  ;;  %v5357_v22 = vrot.slane %v5355_v59, 5  ;;  %v10506_v25 = vcombine.low %v3610_v26, %v3620_v13 }
 0x190   : > { %v7070_v50 = vcombine.low %v5300_v38, %v5310_v2  ;;  %v10840_v6 = vsel %vm8870_vm11, %v10373_v32, %v10298_v10  ;;  %v5381_v57 = vrot.slane %v5379_v21, 5  ;;  %v5386_v63 = vrot.slane %v5384_v42, 4  ;;  %v10529_v2 = vld [vmem:[#allocation2 + $0xd4] sm:$0x1] }
 0x191   : > { %v7071_v59 = vcombine.low %v10840_v6, %v5334_v44  ;;  %v5389_v58 = vrot.slane %v5387_v5, 5  ;;  %v10527_v13 = vrot.slane %v5393_v60, 5  ;;  %v5399_v0 = vrot.slane %v5397_v41, 4  ;;  %v8474_v32 = vld [vmem:[#allocation2 + $0x30] sm:$0xff]  }
 0x192   : > { %7802 = vmatmul.mubr.bf16.vlgmr.msra.gmra.mrb[0].mxu1 %v8471_v15  ;;  %v5367_v39 = vrot.slane %v5366_v40, 4  ;;  %v5377_v38 = vrot.slane %v5376_v49, 4  ;;  %v7095_v15 = vrot.slane %v5741_v1, 9  ;;  %v5879_v10 = vrot.slane %v10230_v7, 5 }
 0x193   : > { %8081 = vmatpush3.bf16.msra.mxu1 %v10238_v4  ;;  %7805 = vmatprep.mubr.bf16.mxu1 %v8472_v45  ;;  %v8539_v4 = vld [vmem:[%s10759_s5 + $0x108] sm:$0xff]   ;;  %v5348_v44 = vsel %vm8870_vm11, %v5343_v17, %v10432_v46  ;;  %v5358_v3 = vsel %vm8870_vm11, %v5353_v43, %v5357_v22  ;;  %v8540_v45 = vld [vmem:[#allocation2 + $0x1c] sm:$0xf]  ;;  %v5882_v7 = vrot.slane %v10271_v52, 5  ;;  %v8541_v46 = vld [vmem:[%s10759_s5 + $0x110] sm:$0xff]   ;;  %v5390_v5 = vor.u32 %v5389_v58, %v5386_v63 }
 0x194   : > { %8074 = vmatprep.subr.bf16.mxu1 %v8539_v4  ;;  %8014 = vmatmul.mubr.bf16.gmra.mrb[20].mxu0 %v7070_v50  ;;  %v5795_v21 = vrot.slane %v8540_v45, 5  ;;  %v10539_v42 = vsel %vm9197_vm14, %v7095_v15, %v5879_v10  ;;  %v5881_v33 = vrot.slane %v5879_v10, 4  ;;  %v5400_v60 = vor.u32 %v5399_v0, %v10527_v13  ;;  %v5729_v17 = vld [vmem:[#allocation2 + $0x18] sm:$0xe]  ;;  %v5743_v15 = vld [vmem:[#allocation2 + $0xc0] sm:$0xe] }
 0x195   : > { %8017 = vmatprep.mubr.bf16.mxu0 %v7071_v59  ;;  %v5403_v41 = vshll.u32 %v10529_v2, 16  ;;  %v7096_v40 = vrot.slane %v5742_v61, 9  ;;  %v5372_v49 = vsel %vm8870_vm11, %v5367_v39, %v10473_v36  ;;  %v5382_v35 = vsel %vm8870_vm11, %v5377_v38, %v5381_v57  ;;  %v8477_v39 = vld [vmem:[#allocation2 + $0x48] sm:$0xff]   ;;  %v8478_v10 = vld [vmem:[#allocation2 + $0x54] sm:$0xff]  }
 0x196   : > { %v10554_v52 = vsel %vm9197_vm14, %v5881_v33, %v5882_v7  ;;  %v5886_v26 = vrot.slane %v10338_v54, 5  ;;  %v5889_v22 = vrot.slane %v10399_v34, 5  ;;  %v7072_v1 = vcombine.low %v5348_v44, %v5358_v3  ;;  %v8542_v54 = vld [vmem:[%s10759_s5 + $0x118] sm:$0xff]   ;;  %v8543_v34 = vld [vmem:[#allocation2 + $0x20] sm:$0x1] }
 0x197   : > { %8082 = vmatpush3.bf16.msra.mxu1 %v8539_v4  ;;  %v7127_v43 = vcombine.low %v10539_v42, %v10554_v52  ;;  %v7073_v6 = vcombine.low %v5372_v49, %v5382_v35  ;;  %v5391_v59 = vrot.slane %v5390_v5, 4  ;;  %v5401_v57 = vrot.slane %v5400_v60, 4  ;;  %v8545_v33 = vld [vmem:[%s10759_s5 + $0x120] sm:$0xff]   ;;  %v5731_v7 = vld [vmem:[#allocation2 + $0x30] sm:$0xe] }
 0x198   : > { %8075 = vmatprep.subr.bf16.mxu1 %v8541_v46  ;;  %v10562_v36 = vsel %vm9197_vm14, %v7096_v40, %v5886_v26  ;;  %v5888_v50 = vrot.slane %v5886_v26, 4  ;;  %v5405_v4 = vrot.slane %v5403_v41, 5  ;;  %v7083_v63 = vrot.slane %v5729_v17, 9  ;;  %v8546_v41 = vld [vmem:[#allocation2 + $0x34] sm:$0xf] }
 0x199   : > { %v5797_v58 = vrot.slane %v5795_v21, 4  ;;  %v5798_v0 = vrot.slane %v8543_v34, 5  ;;  %v5396_v44 = vsel %vm8870_vm11, %v5391_v59, %v10527_v13  ;;  %v5809_v13 = vrot.slane %v8546_v41, 5  ;;  %v8547_v35 = vld [vmem:[#allocation2 + $0x2c] sm:$0x1] }
 0x19a   : > { %7806 = vmatmul.mubr.bf16.gmra.mrb[4].mxu1 %v8474_v32  ;;  %v10569_v61 = vsel %vm9197_vm14, %v5888_v50, %v5889_v22  ;;  %v5730_v32 = vld [vmem:[#allocation2 + $0x24] sm:$0xe]  ;;  %v5406_v3 = vsel %vm8870_vm11, %v5401_v57, %v5405_v4  ;;  %v5796_v5 = vsel %vm9197_vm14, %v7083_v63, %v5795_v21  ;;  %v7097_v40 = vrot.slane %v5743_v15, 9  ;;  %v8548_v57 = vld [vmem:[%s10759_s5 + $0x128] sm:$0xff]   ;;  %v8549_v63 = vld [vmem:[#allocation2 + $0x38] sm:$0x1] }
 0x19b   : > { %7809 = vmatprep.mubr.bf16.mxu1 %v8475_v23  ;;  %8083 = vmatpush3.bf16.msra.mxu1 %v8541_v46  ;;  %v7128_v38 = vcombine.low %v10562_v36, %v10569_v61  ;;  %v8544_v23 = vld [vmem:[#allocation2 + $0x28] sm:$0xf]  ;;  %v5744_v46 = vld [vmem:[#allocation2 + $0xcc] sm:$0xe]  ;;  %v5799_v60 = vsel %vm9197_vm14, %v5797_v58, %v5798_v0  ;;  %v7084_v49 = vrot.slane %v5730_v32, 9  ;;  %v5805_v26 = vrot.slane %v8547_v35, 5 }
 0x19c   : > { %8076 = vmatprep.subr.bf16.mxu1 %v8542_v54  ;;  %8018 = vmatmul.mubr.bf16.gmra.mrb[24].mxu0 %v7072_v1  ;;  %v5802_v45 = vrot.slane %v8544_v23, 5  ;;  %v5893_v17 = vrot.slane %v10418_v18, 5  ;;  %v7074_v22 = vcombine.low %v5396_v44, %v5406_v3  ;;  %v7085_v1 = vrot.slane %v5731_v7, 9  ;;  %v8480_v0 = vld [vmem:[#allocation2 + $0x60] sm:$0xff]   ;;  %v8481_v15 = vld [vmem:[#allocation2 + $0x6c] sm:$0xff]  }
 0x19d   : > { %8021 = vmatprep.mubr.bf16.mxu0 %v7073_v6  ;;  %v5896_v50 = vrot.slane %v10466_v55, 5  ;;  %v7098_v6 = vrot.slane %v5744_v46, 9  ;;  %v7115_v21 = vcombine.low %v5796_v5, %v5799_v60  ;;  %v5811_v18 = vrot.slane %v5809_v13, 4  ;;  %v8550_v3 = vld [vmem:[#allocation2 + $0x40] sm:$0xf] }
 0x19e   : > { %v5804_v59 = vrot.slane %v5802_v45, 4  ;;  %v10592_v4 = vsel %vm9197_vm14, %v7097_v40, %v5893_v17  ;;  %v5812_v58 = vrot.slane %v8549_v63, 5  ;;  %v5900_v34 = vrot.slane %v10475_v53, 5  ;;  %v5732_v5 = vld [vmem:[#allocation2 + $0x3c] sm:$0xe] }
 0x19f   : > { %8084 = vmatpush3.bf16.msra.mxu1 %v8542_v54  ;;  %v5895_v54 = vrot.slane %v5893_v17, 4  ;;  %v5903_v55 = vrot.slane %v10529_v2, 5  ;;  %v5803_v53 = vsel %vm9197_vm14, %v7084_v49, %v5802_v45  ;;  %v5816_v23 = vrot.slane %v8550_v3, 5  ;;  %v8553_v17 = vld [vmem:[%s10759_s5 + $0x138] sm:$0xff]  }
 0x1a0   : > { %8077 = vmatprep.subr.bf16.mxu1 %v8545_v33  ;;  %v10604_v32 = vsel %vm9197_vm14, %v7098_v6, %v5900_v34  ;;  %v5902_v44 = vrot.slane %v5900_v34, 4  ;;  %v5806_v2 = vsel %vm9197_vm14, %v5804_v59, %v5805_v26  ;;  %v5810_v7 = vsel %vm9197_vm14, %v7085_v1, %v5809_v13  ;;  %v8552_v26 = vld [vmem:[#allocation2 + $0x44] sm:$0x1]  ;;  %v8482_v1 = vld [vmem:[#allocation2 + $0x78] sm:$0xff]  }
 0x1a1   : > { %v5813_v46 = vsel %vm9197_vm14, %v5811_v18, %v5812_v58  ;;  %v7116_v41 = vcombine.low %v5803_v53, %v5806_v2  ;;  %v7086_v49 = vrot.slane %v5732_v5, 9  ;;  %v5818_v35 = vrot.slane %v5816_v23, 4  ;;  %v8485_v53 = vld [vmem:[#allocation2 + $0x9c] sm:$0xff]   ;;  %v3363_v2 = vld [vmem:[#allocation2 + $0x84] sm:$0xf] }
 0x1a2   : > { %7810 = vmatmul.mubr.bf16.gmra.mrb[8].mxu1 %v8477_v39  ;;  %v10598_v39 = vsel %vm9197_vm14, %v5895_v54, %v5896_v50  ;;  %v10619_v45 = vsel %vm9197_vm14, %v5902_v44, %v5903_v55  ;;  %v7117_v40 = vcombine.low %v5810_v7, %v5813_v46  ;;  %v5819_v13 = vrot.slane %v8552_v26, 5  ;;  %v8483_v50 = vld [vmem:[#allocation2 + $0x84] sm:$0xff]   ;;  %v8554_v54 = vld [vmem:[#allocation2 + $0x70] sm:$0xf] }
 0x1a3   : > { %7813 = vmatprep.mubr.bf16.mxu1 %v8478_v10  ;;  %8085 = vmatpush3.bf16.msra.mxu1 %v8545_v33  ;;  %v7129_v10 = vcombine.low %v10592_v4, %v10598_v39  ;;  %v8551_v33 = vld [vmem:[%s10759_s5 + $0x130] sm:$0xff]   ;;  %v7130_v60 = vcombine.low %v10604_v32, %v10619_v45  ;;  %v5817_v6 = vsel %vm9197_vm14, %v7086_v49, %v5816_v23  ;;  %v3583_v18 = vshll.u32 %v8554_v54, 16 }
 0x1a4   : > { %8078 = vmatprep.subr.bf16.mxu1 %v8548_v57  ;;  %8022 = vmatmul.mubr.bf16.gmra.mrb[28].mxu0 %v7074_v22  ;;  %v3357_v22 = vld [vmem:[#allocation2 + $0x6c] sm:$0xf]  ;;  %v3587_v63 = vshrl.u32 %v8554_v54, 16  ;;  %v10841_v14 = vcombine.low %v10331_v31, %v10348_v12  ;;  %v3622_v46 = vshrl.u32 %v3363_v2, 16  ;;  %v3625_v5 = vshll.u32 %v3363_v2, 16 }
 0x1a5   : > { %8041 = vmatprep.mubr.bf16.mxu0 %v7115_v21  ;;  %v5820_v21 = vsel %vm9197_vm14, %v5818_v35, %v5819_v13  ;;  %v3574_v59 = vshrl.u32 %v3357_v22, 16  ;;  %v3366_v35 = vld [vmem:[#allocation2 + $0x90] sm:$0xf]  ;;  %v8486_v13 = vld [vmem:[#allocation2 + $0xa8] sm:$0xff]   ;;  %v3369_v31 = vld [vmem:[#allocation2 + $0x9c] sm:$0xf]  ;;  %v10842_v12 = vcombine.low %v10352_v47, %v10362_v24 }
 0x1a6   : > { %v7118_v58 = vcombine.low %v5817_v6, %v5820_v21  ;;  %v3589_v44 = vrot.slane %v3587_v63, 4  ;;  %v8487_v6 = vld [vmem:[#allocation2 + $0xb4] sm:$0xff]   ;;  %v3627_v21 = vrot.slane %v3625_v5, 5  ;;  %v3649_v54 = vshll.u32 %v3366_v35, 16  ;;  %v8558_v24 = vld [vmem:[#allocation2 + $0x8c] sm:$0x1] }
 0x1a7   : > { %8086 = vmatpush3.bf16.msra.mxu1 %v8548_v57  ;;  %v3577_v57 = vshll.u32 %v3357_v22, 16  ;;  %v3576_v34 = vrot.slane %v3574_v59, 4  ;;  %v8559_v2 = vld [vmem:[#allocation2 + $0xa0] sm:$0xf] }
 0x1a8   : > { %8079 = vmatprep.subr.bf16.mxu1 %v8551_v33 }
 0x1a9   : > { %v3579_v55 = vrot.slane %v3577_v57, 5 }
 0x1aa   : > { %7814 = vmatmul.mubr.bf16.gmra.mrb[12].mxu1 %v8480_v0  ;;  %v8484_v0 = vld [vmem:[#allocation2 + $0x90] sm:$0xff]  }
 0x1ab   : > { %7817 = vmatprep.mubr.bf16.mxu1 %v8481_v15  ;;  %8087 = vmatpush3.bf16.msra.mxu1 %v8551_v33  ;;  %v3585_v15 = vrot.slane %v3583_v18, 5  ;;  %v3580_v3 = vor.u32 %v3579_v55, %v3576_v34  ;;  %v8555_v33 = vld [vmem:[#allocation2 + $0x74] sm:$0x1]  ;;  %v10843_v18 = vcombine.low %v10371_v19, %v10388_v28 }
 0x1ac   : > { %8080 = vmatprep.subr.bf16.mxu1 %v8553_v17  ;;  %8042 = vmatmul.mubr.bf16.vlgmr.msra.gmra.mrb[0].mxu0 %v7116_v41  ;;  %v3593_v7 = vshll.u32 %v8555_v33, 16  ;;  %v8556_v41 = vld [vmem:[#allocation2 + $0x88] sm:$0xf] }
 0x1ad   : > { %8045 = vmatprep.mubr.bf16.mxu0 %v7117_v40  ;;  %v3590_v23 = vor.u32 %v3589_v44, %v3585_v15  ;;  %v3631_v40 = vshll.u32 %v8556_v41, 16  ;;  %v3635_v49 = vshrl.u32 %v8556_v41, 16  ;;  %v3581_v26 = vrot.slane %v3580_v3, 4  ;;  %v8488_v41 = vld [vmem:[#allocation2 + $0xc0] sm:$0xff]  }
 0x1ae   : > { %v3595_v22 = vrot.slane %v3593_v7, 5  ;;  %v3673_v44 = vshll.u32 %v3369_v31, 16  ;;  %v3683_v3 = vshrl.u32 %v8559_v2, 16 }
 0x1af   : > { %8088 = vmatpush3.bf16.msra.mxu1 %v8553_v17  ;;  %v3591_v17 = vrot.slane %v3590_v23, 4  ;;  %v10636_v59 = vrot.slane %v3631_v40, 5  ;;  %v3637_v57 = vrot.slane %v3635_v49, 4  ;;  %v3586_v63 = vsel %vm8870_vm11, %v3581_v26, %v3585_v15 }
 0x1b0   : > { %v3651_v15 = vrot.slane %v3649_v54, 5  ;;  %v3675_v5 = vrot.slane %v3673_v44, 5  ;;  %v3685_v26 = vrot.slane %v3683_v3, 4  ;;  %v8561_v54 = vld [vmem:[#allocation2 + $0xa4] sm:$0x1] }
 0x1b1   : > { %v3596_v47 = vsel %vm8870_vm11, %v3591_v17, %v3595_v22  ;;  %v3638_v28 = vor.u32 %v3637_v57, %v10636_v59  ;;  %v10844_v17 = vcombine.low %v10380_v56, %v10407_v11 }
 0x1b2   : > { %7818 = vmatmul.mubr.bf16.gmra.mrb[16].mxu1 %v8482_v1  ;;  %v3624_v1 = vrot.slane %v3622_v46, 4  ;;  %v6931_v40 = vcombine.low %v3586_v63, %v3596_v47 }
 0x1b3   : > { %7821 = vmatprep.mubr.bf16.mxu1 %v8483_v50  ;;  %v3646_v50 = vshrl.u32 %v3366_v35, 16 }
 0x1b4   : > { %8046 = vmatmul.mubr.bf16.gmra.mrb[4].mxu0 %v7118_v58  ;;  %v8557_v58 = vld [vmem:[#allocation2 + $0x94] sm:$0xf]  ;;  %v3628_v19 = vor.u32 %v3627_v21, %v3624_v1  ;;  %v3639_v1 = vrot.slane %v3638_v28, 4 }
 0x1b5   : > { %8049 = vmatprep.mubr.bf16.mxu0 %v10841_v14  ;;  %v3655_v34 = vshll.u32 %v8557_v58, 16  ;;  %v3659_v55 = vshrl.u32 %v8557_v58, 16  ;;  %v3679_v14 = vshll.u32 %v8559_v2, 16  ;;  %v3648_v23 = vrot.slane %v3646_v50, 4  ;;  %v3375_v58 = vld [vmem:[#allocation2 + $0xb4] sm:$0xf] }
 0x1b6   : > { %v3629_v22 = vrot.slane %v3628_v19, 4  ;;  %v8563_v2 = vld [vmem:[#allocation2 + $0xb8] sm:$0xf] }
 0x1b7   : > { %v10646_v33 = vrot.slane %v3655_v34, 5  ;;  %v3661_v7 = vrot.slane %v3659_v55, 4  ;;  %v10648_v35 = vrot.slane %v3679_v14, 5  ;;  %v3652_v50 = vor.u32 %v3651_v15, %v3648_v23  ;;  %v8562_v34 = vld [vmem:[#allocation2 + $0xac] sm:$0xf] }
 0x1b8   : > { %v3703_v55 = vshll.u32 %v8562_v34, 16  ;;  %v3727_v14 = vshll.u32 %v8563_v2, 16  ;;  %v3731_v3 = vshrl.u32 %v8563_v2, 16  ;;  %v8567_v2 = vld [vmem:[#allocation2 + $0xc8] sm:$0x1] }
 0x1b9   : > { %v3662_v21 = vor.u32 %v3661_v7, %v10646_v33  ;;  %v3686_v56 = vor.u32 %v3685_v26, %v10648_v35  ;;  %v3653_v44 = vrot.slane %v3652_v50, 4 }
 0x1ba   : > { %7822 = vmatmul.mubr.bf16.gmra.mrb[20].mxu1 %v8484_v0  ;;  %v3670_v0 = vshrl.u32 %v3369_v31, 16  ;;  %v8560_v31 = vld [vmem:[#allocation2 + $0x98] sm:$0x1] }
 0x1bb   : > { %7825 = vmatprep.mubr.bf16.mxu1 %v8485_v53  ;;  %v3641_v53 = vshll.u32 %v8558_v24, 16  ;;  %v3718_v24 = vshrl.u32 %v3375_v58, 16  ;;  %v3663_v19 = vrot.slane %v3662_v21, 4  ;;  %v3687_v7 = vrot.slane %v3686_v56, 4 }
 0x1bc   : > { %8050 = vmatmul.mubr.bf16.gmra.mrb[8].mxu0 %v10842_v12  ;;  %v3672_v46 = vrot.slane %v3670_v0, 4  ;;  %v3665_v12 = vshll.u32 %v8560_v31, 16  ;;  %v3707_v0 = vshrl.u32 %v8562_v34, 16  ;;  %v8564_v31 = vld [vmem:[#allocation2 + $0xb0] sm:$0x1] }
 0x1bd   : > { %8053 = vmatprep.mubr.bf16.mxu0 %v10843_v18  ;;  %v3643_v49 = vrot.slane %v3641_v53, 5  ;;  %v3689_v18 = vshll.u32 %v8561_v54, 16  ;;  %v3721_v53 = vshll.u32 %v3375_v58, 16 }
 0x1be   : > { %v3676_v57 = vor.u32 %v3675_v5, %v3672_v46  ;;  %v3667_v47 = vrot.slane %v3665_v12, 5  ;;  %v3705_v5 = vrot.slane %v3703_v55, 5 }
 0x1bf   : > { %v3691_v23 = vrot.slane %v3689_v18, 5  ;;  %v3723_v26 = vrot.slane %v3721_v53, 5 }
 0x1c0   : > { %v3677_v28 = vrot.slane %v3676_v57, 4  ;;  %v3668_v50 = vsel %vm8870_vm11, %v3663_v19, %v3667_v47 }
 0x1c1   : > { %v3692_v51 = vsel %vm8870_vm11, %v3687_v7, %v3691_v23 }
 0x1c2   : > { %7826 = vmatmul.mubr.bf16.gmra.mrb[24].mxu1 %v8486_v13  ;;  %v3372_v13 = vld [vmem:[#allocation2 + $0xa8] sm:$0xf] }
 0x1c3   : > { %7829 = vmatprep.mubr.bf16.mxu1 %v8487_v6  ;;  %v10845_v6 = vcombine.low %v10414_v29, %v10437_v37  ;;  %v3694_v63 = vshrl.u32 %v3372_v13, 16  ;;  %v3697_v11 = vshll.u32 %v3372_v13, 16  ;;  %v3634_v29 = vsel %vm8870_vm11, %v3629_v22, %v10636_v59  ;;  %v3378_v22 = vld [vmem:[#allocation2 + $0xc0] sm:$0xf] }
 0x1c4   : > { %8054 = vmatmul.mubr.bf16.gmra.mrb[12].mxu0 %v10844_v17  ;;  %v3644_v37 = vsel %vm8870_vm11, %v3639_v1, %v3643_v49  ;;  %v10846_v59 = vcombine.low %v10425_v48, %v10446_v9  ;;  %v3720_v49 = vrot.slane %v3718_v24, 4  ;;  %v3729_v13 = vrot.slane %v3727_v14, 5 }
 0x1c5   : > { %8057 = vmatprep.mubr.bf16.mxu0 %v10845_v6  ;;  %v3696_v15 = vrot.slane %v3694_v63, 4  ;;  %v3699_v46 = vrot.slane %v3697_v11, 5  ;;  %v3733_v17 = vrot.slane %v3731_v3, 4  ;;  %v3658_v1 = vsel %vm8870_vm11, %v3653_v44, %v10646_v33  ;;  %v8565_v33 = vld [vmem:[#allocation2 + $0xc4] sm:$0xf] }
 0x1c6   : > { %v3713_v48 = vshll.u32 %v8564_v31, 16  ;;  %v3682_v9 = vsel %vm8870_vm11, %v3677_v28, %v10648_v35  ;;  %v3742_v12 = vshrl.u32 %v3378_v22, 16  ;;  %v3745_v6 = vshll.u32 %v3378_v22, 16  ;;  %v8566_v63 = vld [vmem:[#allocation2 + $0xbc] sm:$0x1] }
 0x1c7   : > { %v3700_v20 = vor.u32 %v3699_v46, %v3696_v15  ;;  %v3751_v21 = vshll.u32 %v8565_v33, 16  ;;  %v3755_v57 = vshrl.u32 %v8565_v33, 16  ;;  %v3724_v54 = vor.u32 %v3723_v26, %v3720_v49 }
 0x1c8   : > { %v3734_v18 = vor.u32 %v3733_v17, %v3729_v13  ;;  %v3737_v58 = vshll.u32 %v8566_v63, 16  ;;  %v6935_v56 = vcombine.low %v3682_v9, %v3692_v51  ;;  %v3715_v35 = vrot.slane %v3713_v48, 5 }
 0x1c9   : > { %v3701_v11 = vrot.slane %v3700_v20, 4  ;;  %v3744_v55 = vrot.slane %v3742_v12, 4  ;;  %v3725_v44 = vrot.slane %v3724_v54, 4  ;;  %v3761_v14 = vshll.u32 %v8567_v2, 16 }
 0x1ca   : > { %7830 = vmatmul.mubr.bf16.gmra.mrb[28].mxu1 %v8488_v41  ;;  %v3709_v41 = vrot.slane %v3707_v0, 4  ;;  %v3747_v0 = vrot.slane %v3745_v6, 5  ;;  %v3735_v47 = vrot.slane %v3734_v18, 4  ;;  %v3739_v24 = vrot.slane %v3737_v58, 5 }
 0x1cb   : > { %7865 = vmatprep.mubr.bf16.mxu1 %v6931_v40  ;;  %v6933_v40 = vcombine.low %v3634_v29, %v3644_v37  ;;  %v3753_v29 = vrot.slane %v3751_v21, 5  ;;  %v3757_v37 = vrot.slane %v3755_v57, 4  ;;  %v3706_v53 = vsel %vm8870_vm11, %v3701_v11, %v3705_v5 }
 0x1cc   : > { %8058 = vmatmul.mubr.bf16.gmra.mrb[16].mxu0 %v10846_v59  ;;  %v3748_v27 = vor.u32 %v3747_v0, %v3744_v55  ;;  %v3730_v3 = vsel %vm8870_vm11, %v3725_v44, %v3729_v13  ;;  %v3740_v42 = vsel %vm8870_vm11, %v3735_v47, %v3739_v24  ;;  %v3763_v23 = vrot.slane %v3761_v14, 5 }
 0x1cd   : > { %8061 = vmatprep.mubr.bf16.mxu0 %v7125_v16  ;;  %v3710_v16 = vor.u32 %v3709_v41, %v3705_v5 }
 0x1ce   : > { %v3749_v19 = vrot.slane %v3748_v27, 4 }
 0x1cf   : > { %v3711_v34 = vrot.slane %v3710_v16, 4 }
 0x1d0   : > { %v3754_v15 = vsel %vm8870_vm11, %v3749_v19, %v3753_v29 }
 0x1d1   : > { %v3716_v62 = vsel %vm8870_vm11, %v3711_v34, %v3715_v35 }
 0x1d2   : > { %7866 = vmatmul.mubr.bf16.vlgmr.msra.gmra.mrb[16].mxu1 %v10506_v25  ;;  %v6934_v25 = vcombine.low %v3658_v1, %v3668_v50  ;;  %v6936_v52 = vcombine.low %v3706_v53, %v3716_v62 }
 0x1d3   : > { %7869 = vmatprep.mubr.bf16.mxu1 %v6933_v40 }
 0x1d4   : > { %8062 = vmatmul.mubr.bf16.gmra.mrb[20].mxu0 %v7126_v30  ;;  %v3758_v30 = vor.u32 %v3757_v37, %v3753_v29 }
 0x1d5   : > { %8065 = vmatprep.mubr.bf16.mxu0 %v7127_v43  ;;  %v6937_v43 = vcombine.low %v3730_v3, %v3740_v42 }
 0x1d6   : > { %v3759_v28 = vrot.slane %v3758_v30, 4 }
 0x1d8   : > { %v3764_v7 = vsel %vm8870_vm11, %v3759_v28, %v3763_v23 }
 0x1d9   : > { %v6938_v46 = vcombine.low %v3754_v15, %v3764_v7 }
 0x1da   : > { %7870 = vmatmul.mubr.bf16.gmra.mrb[20].mxu1 %v6934_v25 }
 0x1db   : > { %7873 = vmatprep.mubr.bf16.mxu1 %v6935_v56 }
 0x1dc   : > { %8066 = vmatmul.mubr.bf16.gmra.mrb[24].mxu0 %v7128_v38 }
 0x1dd   : > { %8069 = vmatprep.mubr.bf16.mxu0 %v7129_v10 }
 0x1e2   : > { %7874 = vmatmul.mubr.bf16.gmra.mrb[24].mxu1 %v6936_v52 }
 0x1e3   : > { %7877 = vmatprep.mubr.bf16.mxu1 %v6937_v43 }
 0x1e4   : > { %8070 = vmatmul.mubr.bf16.gmra.mrb[28].mxu0 %v7130_v60 }
 0x1ea   : > { %7878 = vmatmul.mubr.bf16.gmra.mrb[28].mxu1 %v6938_v46 }
 0x265   : > { %v7803_v36 = vpop.f32.mrb[0].mxu1 }
 0x266   : > { %v3174_v61 = vpop.f32.mrb[1].mxu1 }
 0x267   : > { %v7804_v38 = vpop.f32.mrb[2].mxu1 }
 0x268   : > { %v3177_v5 = vpop.f32.mrb[3].mxu1 }
 0x26d   : > { %v7807_v4 = vpop.f32.mrb[4].mxu1 }
 0x26e   : > { %v3190_v39 = vpop.f32.mrb[5].mxu1 }
 0x26f   : > { %v7808_v10 = vpop.f32.mrb[6].mxu1 }
 0x270   : > { %v3193_v41 = vpop.f32.mrb[7].mxu1 }
 0x275   : > { %v7811_v59 = vpop.f32.mrb[8].mxu1 }
 0x276   : > { %v3206_v40 = vpop.f32.mrb[9].mxu1 }
 0x277   : > { %v7812_v49 = vpop.f32.mrb[10].mxu1 }
 0x278   : > { %v3209_v8 = vpop.f32.mrb[11].mxu1 }
 0x27d   : > { %v10707_v26 = vpop.f32.mrb[12].mxu1 }
 0x27e   : > { %v10709_v13 = vpop.f32.mrb[13].mxu1 }
 0x27f   : > { %v10711_v32 = vpop.f32.mrb[14].mxu1  ;;  %v8043_v60 = vpop.f32.mrb[0].mxu0 }
 0x280   : > { %v10713_v45 = vpop.f32.mrb[15].mxu1  ;;  %v8089_v17 = vadd.f32 %v8043_v60, %v7803_v36  ;;  %v6068_v22 = vpop.f32.mrb[1].mxu0 }
 0x281   : > { %v8090_v1 = vadd.f32 %v6068_v22, %v3174_v61  ;;  %v8044_v50 = vpop.f32.mrb[2].mxu0 }
 0x282   : > { %v8091_v31 = vadd.f32 %v8044_v50, %v7804_v38  ;;  %v6071_v48 = vpop.f32.mrb[3].mxu0 }
 0x283   : > { %v8092_v9 = vadd.f32 %v6071_v48, %v3177_v5 }
 0x284   : > { %v6228_v51 = vpack.c.bf16 %v8091_v31, %v8089_v17 }
 0x285   : > { %v6227_v20 = vpack.c.bf16 %v8092_v9, %v8090_v1 }
 0x286   : > { %7410 = vst [vmem:[%s10719_s17 + $0x8] sm:$0xff] %v6228_v51   ;;  %v6389_v16 = vunpack.c.l.bf16 %v6228_v51  ;;  %v6390_v21 = vunpack.c.h.bf16 %v6228_v51 }
 0x287   : > { %7318 = vst [vmem:[%s10719_s17] sm:$0xff] %v6227_v20   ;;  %v6387_v12 = vunpack.c.l.bf16 %v6227_v20  ;;  %v6388_v6 = vunpack.c.h.bf16 %v6227_v20  ;;  %v8047_v33 = vpop.f32.mrb[4].mxu0 }
 0x288   : > { %v8093_v57 = vadd.f32 %v8047_v33, %v7807_v4  ;;  %v6084_v54 = vpop.f32.mrb[5].mxu0  ;;  %v6459_v35 = vmul.f32 %v6389_v16, %v6389_v16  ;;  %v6460_v44 = vmul.f32 %v6390_v21, %v6390_v21 }
 0x289   : > { %v6419_v18 = vadd.f32 %v6388_v6, %v6387_v12  ;;  %v6457_v63 = vmul.f32 %v6387_v12, %v6387_v12  ;;  %v6458_v58 = vmul.f32 %v6388_v6, %v6388_v6  ;;  %v8094_v25 = vadd.f32 %v6084_v54, %v3190_v39  ;;  %v8048_v56 = vpop.f32.mrb[6].mxu0 }
 0x28a   : > { %v8095_v11 = vadd.f32 %v8048_v56, %v7808_v10  ;;  %v6087_v34 = vpop.f32.mrb[7].mxu0 }
 0x28b   : > { %v6420_v55 = vadd.f32 %v6419_v18, %v6389_v16  ;;  %v6489_v0 = vadd.f32 %v6458_v58, %v6457_v63  ;;  %v8096_v29 = vadd.f32 %v6087_v34, %v3193_v41 }
 0x28c   : > { %v6230_v37 = vpack.c.bf16 %v8095_v11, %v8093_v57 }
 0x28d   : > { %v6490_v47 = vadd.f32 %v6489_v0, %v6459_v35  ;;  %v6229_v24 = vpack.c.bf16 %v8096_v29, %v8094_v25  ;;  %v6421_v53 = vadd.f32 %v6420_v55, %v6390_v21 }
 0x28e   : > { %7412 = vst [vmem:[%s10719_s17 + $0x18] sm:$0xff] %v6230_v37   ;;  %v6393_v42 = vunpack.c.l.bf16 %v6230_v37  ;;  %v6394_v23 = vunpack.c.h.bf16 %v6230_v37 }
 0x28f   : > { %7411 = vst [vmem:[%s10719_s17 + $0x10] sm:$0xff] %v6229_v24   ;;  %v6391_v62 = vunpack.c.l.bf16 %v6229_v24  ;;  %v6392_v27 = vunpack.c.h.bf16 %v6229_v24  ;;  %v6491_v30 = vadd.f32 %v6490_v47, %v6460_v44  ;;  %v8051_v2 = vpop.f32.mrb[8].mxu0 }
 0x290   : > { %v8097_v14 = vadd.f32 %v8051_v2, %v7811_v59  ;;  %v6100_v3 = vpop.f32.mrb[9].mxu0  ;;  %v6463_v4 = vmul.f32 %v6393_v42, %v6393_v42  ;;  %v6464_v59 = vmul.f32 %v6394_v23, %v6394_v23 }
 0x291   : > { %v6422_v52 = vadd.f32 %v6421_v53, %v6391_v62  ;;  %v6461_v43 = vmul.f32 %v6391_v62, %v6391_v62  ;;  %v8098_v19 = vadd.f32 %v6100_v3, %v3206_v40  ;;  %v8052_v28 = vpop.f32.mrb[10].mxu0  ;;  %v6462_v36 = vmul.f32 %v6392_v27, %v6392_v27 }
 0x292   : > { %v8099_v15 = vadd.f32 %v8052_v28, %v7812_v49  ;;  %v6103_v7 = vpop.f32.mrb[11].mxu0 }
 0x293   : > { %v6423_v46 = vadd.f32 %v6422_v52, %v6392_v27  ;;  %v6492_v61 = vadd.f32 %v6491_v30, %v6461_v43  ;;  %v8100_v38 = vadd.f32 %v6103_v7, %v3209_v8 }
 0x294   : > { %v6232_v5 = vpack.c.bf16 %v8099_v15, %v8097_v14 }
 0x295   : > { %v6424_v39 = vadd.f32 %v6423_v46, %v6393_v42  ;;  %v6493_v10 = vadd.f32 %v6492_v61, %v6462_v36  ;;  %v6231_v41 = vpack.c.bf16 %v8100_v38, %v8098_v19 }
 0x296   : > { %7414 = vst [vmem:[%s10719_s17 + $0x28] sm:$0xff] %v6232_v5   ;;  %v6397_v31 = vunpack.c.l.bf16 %v6232_v5  ;;  %v6398_v20 = vunpack.c.h.bf16 %v6232_v5 }
 0x297   : > { %v6494_v60 = vadd.f32 %v6493_v10, %v6463_v4  ;;  %7413 = vst [vmem:[%s10719_s17 + $0x20] sm:$0xff] %v6231_v41   ;;  %v6395_v17 = vunpack.c.l.bf16 %v6231_v41  ;;  %v6396_v40 = vunpack.c.h.bf16 %v6231_v41  ;;  %v6425_v22 = vadd.f32 %v6424_v39, %v6394_v23  ;;  %v8055_v1 = vpop.f32.mrb[12].mxu0 }
 0x298   : > { %v8101_v49 = vadd.f32 %v8055_v1, %v10707_v26  ;;  %v6116_v50 = vpop.f32.mrb[13].mxu0  ;;  %v6467_v18 = vmul.f32 %v6397_v31, %v6397_v31  ;;  %v6468_v56 = vmul.f32 %v6398_v20, %v6398_v20 }
 0x299   : > { %v6426_v48 = vadd.f32 %v6425_v22, %v6395_v17  ;;  %v6465_v9 = vmul.f32 %v6395_v17, %v6395_v17  ;;  %v6495_v8 = vadd.f32 %v6494_v60, %v6464_v59  ;;  %v8056_v51 = vpop.f32.mrb[14].mxu0  ;;  %v8102_v16 = vadd.f32 %v6116_v50, %v10709_v13 }
 0x29a   : > { %v8103_v12 = vadd.f32 %v8056_v51, %v10711_v32  ;;  %v6119_v6 = vpop.f32.mrb[15].mxu0  ;;  %v6466_v21 = vmul.f32 %v6396_v40, %v6396_v40 }
 0x29b   : > { %v6427_v33 = vadd.f32 %v6426_v48, %v6396_v40  ;;  %v6496_v57 = vadd.f32 %v6495_v8, %v6465_v9  ;;  %v8104_v54 = vadd.f32 %v6119_v6, %v10713_v45 }
 0x29c   : > { %v6234_v26 = vpack.c.bf16 %v8103_v12, %v8101_v49 }
 0x29d   : > { %v6428_v63 = vadd.f32 %v6427_v33, %v6397_v31  ;;  %v6497_v58 = vadd.f32 %v6496_v57, %v6466_v21  ;;  %v6233_v25 = vpack.c.bf16 %v8104_v54, %v8102_v16 }
 0x29e   : > { %7416 = vst [vmem:[%s10719_s17 + $0x38] sm:$0xff] %v6234_v26   ;;  %v6401_v0 = vunpack.c.l.bf16 %v6234_v26  ;;  %v6402_v45 = vunpack.c.h.bf16 %v6234_v26 }
 0x29f   : > { %v6498_v11 = vadd.f32 %v6497_v58, %v6467_v18  ;;  %7415 = vst [vmem:[%s10719_s17 + $0x30] sm:$0xff] %v6233_v25   ;;  %v6399_v34 = vunpack.c.l.bf16 %v6233_v25  ;;  %v6400_v35 = vunpack.c.h.bf16 %v6233_v25  ;;  %v6429_v13 = vadd.f32 %v6428_v63, %v6398_v20  ;;  %v8059_v55 = vpop.f32.mrb[16].mxu0 }
 0x2a0   : > { %v6132_v32 = vpop.f32.mrb[17].mxu0  ;;  %v6471_v52 = vmul.f32 %v6401_v0, %v6401_v0  ;;  %v6472_v7 = vmul.f32 %v6402_v45, %v6402_v45 }
 0x2a1   : > { %v6430_v29 = vadd.f32 %v6429_v13, %v6399_v34  ;;  %v6469_v37 = vmul.f32 %v6399_v34, %v6399_v34  ;;  %v6499_v44 = vadd.f32 %v6498_v11, %v6468_v56  ;;  %v8060_v47 = vpop.f32.mrb[18].mxu0  ;;  %v6470_v27 = vmul.f32 %v6400_v35, %v6400_v35 }
 0x2a2   : > { %v6135_v24 = vpop.f32.mrb[19].mxu0 }
 0x2a3   : > { %v6431_v62 = vadd.f32 %v6430_v29, %v6400_v35  ;;  %v6500_v30 = vadd.f32 %v6499_v44, %v6469_v37 }
 0x2a5   : > { %v7867_v53 = vpop.f32.mrb[16].mxu1  ;;  %v6432_v43 = vadd.f32 %v6431_v62, %v6401_v0  ;;  %v6501_v19 = vadd.f32 %v6500_v30, %v6470_v27 }
 0x2a6   : > { %v8105_v2 = vadd.f32 %v8059_v55, %v7867_v53  ;;  %v3992_v14 = vpop.f32.mrb[17].mxu1 }
 0x2a7   : > { %v8106_v3 = vadd.f32 %v6132_v32, %v3992_v14  ;;  %v7868_v42 = vpop.f32.mrb[18].mxu1  ;;  %v6502_v46 = vadd.f32 %v6501_v19, %v6471_v52  ;;  %v6433_v61 = vadd.f32 %v6432_v43, %v6402_v45  ;;  %v8063_v38 = vpop.f32.mrb[20].mxu0 }
 0x2a8   : > { %v8107_v28 = vadd.f32 %v8060_v47, %v7868_v42  ;;  %v3995_v23 = vpop.f32.mrb[19].mxu1  ;;  %v6148_v4 = vpop.f32.mrb[21].mxu0 }
 0x2a9   : > { %v8108_v15 = vadd.f32 %v6135_v24, %v3995_v23  ;;  %v6503_v39 = vadd.f32 %v6502_v46, %v6472_v7  ;;  %v8064_v10 = vpop.f32.mrb[22].mxu0 }
 0x2aa   : > { %v6236_v36 = vpack.c.bf16 %v8107_v28, %v8105_v2  ;;  %v6151_v60 = vpop.f32.mrb[23].mxu0 }
 0x2ab   : > { %v6235_v5 = vpack.c.bf16 %v8108_v15, %v8106_v3 }
 0x2ac   : > { %7418 = vst [vmem:[%s10719_s17 + $0x48] sm:$0xff] %v6236_v36   ;;  %v6405_v1 = vunpack.c.l.bf16 %v6236_v36  ;;  %v6406_v9 = vunpack.c.h.bf16 %v6236_v36 }
 0x2ad   : > { %7417 = vst [vmem:[%s10719_s17 + $0x40] sm:$0xff] %v6235_v5   ;;  %v6403_v41 = vunpack.c.l.bf16 %v6235_v5  ;;  %v6404_v59 = vunpack.c.h.bf16 %v6235_v5  ;;  %v7871_v17 = vpop.f32.mrb[20].mxu1 }
 0x2ae   : > { %v8109_v40 = vadd.f32 %v8063_v38, %v7871_v17  ;;  %v4008_v22 = vpop.f32.mrb[21].mxu1  ;;  %v6475_v57 = vmul.f32 %v6405_v1, %v6405_v1  ;;  %v6476_v58 = vmul.f32 %v6406_v9, %v6406_v9 }
 0x2af   : > { %v6434_v49 = vadd.f32 %v6433_v61, %v6403_v41  ;;  %v6473_v50 = vmul.f32 %v6403_v41, %v6403_v41  ;;  %v8110_v31 = vadd.f32 %v6148_v4, %v4008_v22  ;;  %v7872_v48 = vpop.f32.mrb[22].mxu1  ;;  %v6474_v16 = vmul.f32 %v6404_v59, %v6404_v59  ;;  %v8067_v21 = vpop.f32.mrb[24].mxu0 }
 0x2b0   : > { %v8111_v8 = vadd.f32 %v8064_v10, %v7872_v48  ;;  %v4011_v51 = vpop.f32.mrb[23].mxu1  ;;  %v6164_v63 = vpop.f32.mrb[25].mxu0 }
 0x2b1   : > { %v6435_v20 = vadd.f32 %v6434_v49, %v6404_v59  ;;  %v6504_v12 = vadd.f32 %v6503_v39, %v6473_v50  ;;  %v8112_v6 = vadd.f32 %v6151_v60, %v4011_v51  ;;  %v8068_v25 = vpop.f32.mrb[26].mxu0 }
 0x2b2   : > { %v6238_v33 = vpack.c.bf16 %v8111_v8, %v8109_v40  ;;  %v6167_v13 = vpop.f32.mrb[27].mxu0 }
 0x2b3   : > { %v6436_v54 = vadd.f32 %v6435_v20, %v6405_v1  ;;  %v6505_v26 = vadd.f32 %v6504_v12, %v6474_v16  ;;  %v6237_v18 = vpack.c.bf16 %v8112_v6, %v8110_v31 }
 0x2b4   : > { %7420 = vst [vmem:[%s10719_s17 + $0x58] sm:$0xff] %v6238_v33   ;;  %v6409_v29 = vunpack.c.l.bf16 %v6238_v33  ;;  %v6410_v24 = vunpack.c.h.bf16 %v6238_v33 }
 0x2b5   : > { %v6506_v56 = vadd.f32 %v6505_v26, %v6475_v57  ;;  %7419 = vst [vmem:[%s10719_s17 + $0x50] sm:$0xff] %v6237_v18   ;;  %v6407_v11 = vunpack.c.l.bf16 %v6237_v18  ;;  %v6408_v34 = vunpack.c.h.bf16 %v6237_v18  ;;  %v6437_v35 = vadd.f32 %v6436_v54, %v6406_v9  ;;  %v7875_v55 = vpop.f32.mrb[24].mxu1 }
 0x2b6   : > { %v8113_v32 = vadd.f32 %v8067_v21, %v7875_v55  ;;  %v4024_v0 = vpop.f32.mrb[25].mxu1  ;;  %v6479_v43 = vmul.f32 %v6409_v29, %v6409_v29  ;;  %v6480_v7 = vmul.f32 %v6410_v24, %v6410_v24 }
 0x2b7   : > { %v6438_v37 = vadd.f32 %v6437_v35, %v6407_v11  ;;  %v6477_v44 = vmul.f32 %v6407_v11, %v6407_v11  ;;  %v6507_v47 = vadd.f32 %v6506_v56, %v6476_v58  ;;  %v7876_v45 = vpop.f32.mrb[26].mxu1  ;;  %v8114_v53 = vadd.f32 %v6164_v63, %v4024_v0  ;;  %v8071_v52 = vpop.f32.mrb[28].mxu0 }
 0x2b8   : > { %v8115_v62 = vadd.f32 %v8068_v25, %v7876_v45  ;;  %v4027_v27 = vpop.f32.mrb[27].mxu1  ;;  %v6478_v2 = vmul.f32 %v6408_v34, %v6408_v34  ;;  %v6180_v15 = vpop.f32.mrb[29].mxu0 }
 0x2b9   : > { %v6439_v30 = vadd.f32 %v6438_v37, %v6408_v34  ;;  %v6508_v14 = vadd.f32 %v6507_v47, %v6477_v44  ;;  %v8116_v3 = vadd.f32 %v6167_v13, %v4027_v27  ;;  %v8072_v46 = vpop.f32.mrb[30].mxu0 }
 0x2ba   : > { %v6240_v42 = vpack.c.bf16 %v8115_v62, %v8113_v32  ;;  %v6183_v4 = vpop.f32.mrb[31].mxu0 }
 0x2bb   : > { %v6440_v19 = vadd.f32 %v6439_v30, %v6409_v29  ;;  %v6509_v28 = vadd.f32 %v6508_v14, %v6478_v2  ;;  %v6239_v23 = vpack.c.bf16 %v8116_v3, %v8114_v53 }
 0x2bc   : > { %7422 = vst [vmem:[%s10719_s17 + $0x68] sm:$0xff] %v6240_v42   ;;  %v6413_v59 = vunpack.c.l.bf16 %v6240_v42  ;;  %v6414_v1 = vunpack.c.h.bf16 %v6240_v42 }
 0x2bd   : > { %v6510_v36 = vadd.f32 %v6509_v28, %v6479_v43  ;;  %7421 = vst [vmem:[%s10719_s17 + $0x60] sm:$0xff] %v6239_v23   ;;  %v6411_v61 = vunpack.c.l.bf16 %v6239_v23  ;;  %v6412_v38 = vunpack.c.h.bf16 %v6239_v23  ;;  %v6441_v5 = vadd.f32 %v6440_v19, %v6410_v24  ;;  %v7879_v39 = vpop.f32.mrb[28].mxu1 }
 0x2be   : > { %v8117_v10 = vadd.f32 %v8071_v52, %v7879_v39  ;;  %v4040_v41 = vpop.f32.mrb[29].mxu1  ;;  %v6483_v16 = vmul.f32 %v6413_v59, %v6413_v59  ;;  %v6484_v21 = vmul.f32 %v6414_v1, %v6414_v1 }
 0x2bf   : > { %v6442_v60 = vadd.f32 %v6441_v5, %v6411_v61  ;;  %v6481_v17 = vmul.f32 %v6411_v61, %v6411_v61  ;;  %v6511_v40 = vadd.f32 %v6510_v36, %v6480_v7  ;;  %v7880_v22 = vpop.f32.mrb[30].mxu1  ;;  %v8118_v49 = vadd.f32 %v6180_v15, %v4040_v41 }
 0x2c0   : > { %v8119_v50 = vadd.f32 %v8072_v46, %v7880_v22  ;;  %v4043_v31 = vpop.f32.mrb[31].mxu1  ;;  %v6482_v9 = vmul.f32 %v6412_v38, %v6412_v38 }
 0x2c1   : > { %v6443_v48 = vadd.f32 %v6442_v60, %v6412_v38  ;;  %v6512_v8 = vadd.f32 %v6511_v40, %v6481_v17  ;;  %v8120_v51 = vadd.f32 %v6183_v4, %v4043_v31 }
 0x2c2   : > { %v6242_v20 = vpack.c.bf16 %v8119_v50, %v8117_v10 }
 0x2c3   : > { %v6444_v12 = vadd.f32 %v6443_v48, %v6413_v59  ;;  %v6513_v6 = vadd.f32 %v6512_v8, %v6482_v9  ;;  %v6241_v33 = vpack.c.bf16 %v8120_v51, %v8118_v49 }
 0x2c4   : > { %7424 = vst [vmem:[%s10719_s17 + $0x78] sm:$0xff] %v6242_v20   ;;  %v6417_v63 = vunpack.c.l.bf16 %v6242_v20  ;;  %v6418_v11 = vunpack.c.h.bf16 %v6242_v20 }
 0x2c5   : > { %v6514_v57 = vadd.f32 %v6513_v6, %v6483_v16  ;;  %7423 = vst [vmem:[%s10719_s17 + $0x70] sm:$0xff] %v6241_v33   ;;  %v6415_v54 = vunpack.c.l.bf16 %v6241_v33  ;;  %v6416_v26 = vunpack.c.h.bf16 %v6241_v33  ;;  %v6445_v18 = vadd.f32 %v6444_v12, %v6414_v1 }
 0x2c6   : > { %v6487_v55 = vmul.f32 %v6417_v63, %v6417_v63  ;;  %v6488_v29 = vmul.f32 %v6418_v11, %v6418_v11 }
 0x2c7   : > { %v6446_v58 = vadd.f32 %v6445_v18, %v6415_v54  ;;  %v6485_v25 = vmul.f32 %v6415_v54, %v6415_v54  ;;  %v6515_v56 = vadd.f32 %v6514_v57, %v6484_v21  ;;  %v6486_v35 = vmul.f32 %v6416_v26, %v6416_v26 }
 0x2c9   : > { %v6447_v34 = vadd.f32 %v6446_v58, %v6416_v26  ;;  %v6516_v13 = vadd.f32 %v6515_v56, %v6485_v25 }
 0x2cb   : > { %v6448_v32 = vadd.f32 %v6447_v34, %v6417_v63  ;;  %v6517_v0 = vadd.f32 %v6516_v13, %v6486_v35 }
 0x2cd   : > { %v6449_v37 = vadd.f32 %v6448_v32, %v6418_v11  ;;  %v6518_v44 = vadd.f32 %v6517_v0, %v6487_v55 }
 0x2cf   : > { %v6450_v47 = vrot.slane %v6449_v37, 4  ;;  %v6519_v45 = vadd.f32 %v6518_v44, %v6488_v29 }
 0x2d1   : > { %v6451_v24 = vadd.f32 %v6450_v47, %v6449_v37  ;;  %v6520_v53 = vrot.slane %v6519_v45, 4 }
 0x2d3   : > { %v6452_v62 = vrot.slane %v6451_v24, 2  ;;  %v6521_v27 = vadd.f32 %v6520_v53, %v6519_v45 }
 0x2d5   : > { %v6453_v30 = vadd.f32 %v6452_v62, %v6451_v24  ;;  %v6522_v2 = vrot.slane %v6521_v27, 2 }
 0x2d7   : > { %v6454_v14 = vrot.slane %v6453_v30, 1  ;;  %v6523_v3 = vadd.f32 %v6522_v2, %v6521_v27 }
 0x2d9   : > { %v6455_v42 = vadd.f32 %v6454_v14, %v6453_v30  ;;  %v6524_v52 = vrot.slane %v6523_v3, 1 }
 0x2db   : > { %v6525_v43 = vadd.f32 %v6524_v52, %v6523_v3  ;;  %6527 = vst [vmem:[%s464_s20] sm:$0x1] %v6455_v42 }
 0x2dd   : > { %6528 = vst [vmem:[%s464_s20 + $0x1] sm:$0x1] %v6525_v43 }
 0x2de PF: > { %s18_s26 = sadd.s32 1, %s8590_s26   ;;  %s10847_s24 = smov %s8586_s25 }
 0x2df   : > { %p15_p5 = scmp.ge.s32.totalorder %s18_s26, 4   ;;  %s10848_s25 = smov %s10850_s27 }
 0x2e1   :  { %17 = sbr.rel (!%p15_p5) target bundleno = 2 (0x2), region = 105 }

</bundles_post_ra>
